<compile_context>
chip_gen: v7x
topology: tpu7x:2x2x1
jax: 0.10.0
libtpu: 0.0.40
codegen_flags: <defaults>
</compile_context>

<pallas_src>
import functools

import numpy as np
import jax
import jax.numpy as jnp
from jax import lax
from jax.experimental import pallas as pl
from jax.experimental.pallas import tpu as pltpu

D_MODEL = 64 * 2 * 4          # 512 — fixed by the module (Flatten of 64 x 2 x 4)
MXU_DTYPE = jnp.bfloat16      # matmul-input dtype on all TPU generations
_INV_SQRT2 = float(1.0 / np.sqrt(2.0))
_NEG_INF = -1e30


# ---------------------------------------------------------------------------
# In-kernel math helpers
# ---------------------------------------------------------------------------
def _gelu(x):
    # exact (erf) GELU — matches torch.nn.GELU() default
    return 0.5 * x * (1.0 + lax.erf(x * _INV_SQRT2))


def _layernorm(x, g, b, eps=1e-5):
    mu = jnp.mean(x, axis=-1, keepdims=True)
    xc = x - mu
    var = jnp.mean(xc * xc, axis=-1, keepdims=True)
    return xc * lax.rsqrt(var + eps) * g + b


def _softmax_last(s):
    m = jnp.max(s, axis=-1, keepdims=True)
    e = jnp.exp(s - m)
    return e * pl.reciprocal(jnp.sum(e, axis=-1, keepdims=True), approx=True)


# ---------------------------------------------------------------------------
# Fused forward kernel: one grid step == TB batch elements (TB*S frames)
# ---------------------------------------------------------------------------
def _forward_kernel(
    x_ref, pe_ref, bias_ref, mask_ref, bmean_ref, msum_ref,
    g1_ref, g2_ref, g3_ref, g4_ref,
    wqkv_ref, wo_ref, wf1_ref, wf2_ref,
    wk_ref, wq_ref, wc_ref, wcls_ref,
    o_ref,
    qr_s, kr_s, vr_s, a_s,
    *, nhead, tb, seq, offs):
    TBS, D = pe_ref.shape            # TB*S rows, model dim
    S = seq
    dh = D // nhead
    P = nhead * TBS                  # packed attention rows
    scale = 1.0 / float(np.sqrt(dh))
    mxu = wqkv_ref.dtype

    def bias(name):
        off, w = offs[name]
        return bias_ref[:, off:off + w]          # (1, w) f32, broadcasts over rows

    def mm(a, w_ref):
        # MXU matmul, bf16 inputs, f32 accumulation.
        return jnp.dot(a.astype(w_ref.dtype), w_ref[...],
                       preferred_element_type=jnp.float32)

    # ---- Temporal(Sequential(Conv2d+BatchNorm2d+GELU x4, Flatten)) ----------
    # Each conv layer is a dense block-Toeplitz matmul (BN folded); the last
    # layer is produced directly in torch Flatten (c, h, w) order.
    h = x_ref[...]                                       # (TBS, H*W) f32
    h = _gelu(mm(h, g1_ref) + bias("c1"))
    h = _gelu(mm(h, g2_ref) + bias("c2"))
    h = _gelu(mm(h, g3_ref) + bias("c3"))
    feats = _gelu(mm(h, g4_ref) + bias("c4"))            # (TBS, D)

    # ---- PositionalEncoding (pe pre-tiled host-side to TBS rows) -------------
    x0 = feats + pe_ref[...]

    # ---- TransformerEncoderLayer (batch_first, post-norm, ReLU FFN, eval) ----
    qkv = mm(x0, wqkv_ref) + bias("bqkv")                # (TBS, 3D)

    # Head-packed attention: repack q/k/v into (P, dh) = (nhead*TBS, dh) so the
    # score computation is ONE matmul + ONE wide softmax + ONE PV matmul. The
    # additive mask keeps (head, clip) blocks independent.
    for hd in range(nhead):
        lo = hd * dh
        qr_s[hd * TBS:(hd + 1) * TBS, :] = qkv[:, lo:lo + dh]
        kr_s[hd * TBS:(hd + 1) * TBS, :] = qkv[:, D + lo:D + lo + dh]
        vr_s[hd * TBS:(hd + 1) * TBS, :] = qkv[:, 2 * D + lo:2 * D + lo + dh]
    q_r = qr_s[...].astype(mxu)
    k_r = kr_s[...].astype(mxu)
    v_r = vr_s[...].astype(mxu)
    s = lax.dot_general(q_r, k_r, (((1,), (1,)), ((), ())),
                        preferred_element_type=jnp.float32)          # (P, P)
    s = s * scale + mask_ref[...]
    p = _softmax_last(s).astype(mxu)
    o_r = jnp.dot(p, v_r, preferred_element_type=jnp.float32)        # (P, dh)

    # Out-projection: per-head accumulation == concat(heads) @ Wo.
    attn = jnp.zeros((TBS, D), jnp.float32)
    for hd in range(nhead):
        attn = attn + jnp.dot(o_r[hd * TBS:(hd + 1) * TBS, :].astype(mxu),
                              wo_ref[hd * dh:(hd + 1) * dh, :],
                              preferred_element_type=jnp.float32)
    attn = attn + bias("bo")
    x1 = _layernorm(x0 + attn, bias("ln1g"), bias("ln1b"))           # norm1

    f = jnp.maximum(mm(x1, wf1_ref) + bias("bf1"), 0.0)              # ReLU FFN
    f = mm(f, wf2_ref) + bias("bf2")
    x2 = _layernorm(x1 + f, bias("ln2g"), bias("ln2b"))              # norm2

    # ---- BahdanauAttention pooling (per clip) --------------------------------
    kk = mm(x2, wk_ref) + bias("bk")                                 # (TBS, D)
    xq = mm(x2, wq_ref)                                              # (TBS, D)
    # per-clip mean of x2 @ Wq, broadcast back to that clip's S rows (block
    # averaging matrix, built host-side) — mean commutes with the linear map.
    qq = jnp.dot(bmean_ref[...], xq, preferred_element_type=jnp.float32)
    t = jnp.tanh(kk + qq)
    sc = mm(t, wc_ref)[:, 0:1]                                       # (TBS, 1)
    for b in range(tb):                                              # (S,1) softmaxes
        sb = sc[b * S:(b + 1) * S, :]
        mb = jnp.max(sb, axis=0, keepdims=True)
        eb = jnp.exp(sb - mb)
        a_s[b * S:(b + 1) * S, :] = eb * pl.reciprocal(
            jnp.sum(eb, axis=0, keepdims=True), approx=True)
    # weighted pooling as one matmul against a block-sum matrix
    pooled = jnp.dot(msum_ref[...], a_s[...] * x2,
                     preferred_element_type=jnp.float32)             # (TB, D)

    # ---- Classifier (output padded to 128 lanes -> lane-dense store) ---------
    logits = mm(pooled, wcls_ref) + bias("bcls")                     # (TB, o_pad)
    o_ref[0] = logits


# ---------------------------------------------------------------------------
# Host-side parameter preparation
# ---------------------------------------------------------------------------
def conv_bn_to_dense(w, gamma, beta, mean, var, H, W, stride, out_order, eps=1e-5):
    """Lower Conv2d(bias=False)+BatchNorm2d(eval) to  y = x_cols @ G + b.

    Input columns are ordered (h, w, c).  Output columns are ordered (ho, wo, co)
    for out_order='hwc', or (co, ho, wo) for out_order='chw' (== torch Flatten of
    NCHW — used for the last conv layer so features match the PyTorch module).
    """
    w = np.asarray(w, np.float32)
    gamma = np.asarray(gamma, np.float32)
    beta = np.asarray(beta, np.float32)
    mean = np.asarray(mean, np.float32)
    var = np.asarray(var, np.float32)
    Cout, Cin, kh, kw = w.shape
    Ho = (H - kh) // stride + 1
    Wo = (W - kw) // stride + 1
    scale = gamma / np.sqrt(var + eps)
    shift = beta - mean * scale
    G = np.zeros((H * W * Cin, Ho * Wo * Cout), np.float32)
    ho = np.arange(Ho)[:, None]
    wo = np.arange(Wo)[None, :]
    for co in range(Cout):
        if out_order == "hwc":
            cols = (ho * Wo + wo) * Cout + co
        else:  # "chw" == torch Flatten(NCHW) order
            cols = co * (Ho * Wo) + ho * Wo + wo
        for c in range(Cin):
            for i in range(kh):
                for j in range(kw):
                    rows = ((ho * stride + i) * W + (wo * stride + j)) * Cin + c
                    G[rows, cols] = w[co, c, i, j] * scale[co]
    if out_order == "hwc":
        bias = np.tile(shift, Ho * Wo)
    else:
        bias = np.repeat(shift, Ho * Wo)
    return G, bias.reshape(1, -1).astype(np.float32), Ho, Wo


def make_posenc(max_len, d):
    pos = np.arange(max_len, dtype=np.float32)[:, None]
    div = np.exp(np.arange(0, d, 2, dtype=np.float32) * (-np.log(10000.0) / d))
    pe = np.zeros((max_len, d), np.float32)
    pe[:, 0::2] = np.sin(pos * div)
    pe[:, 1::2] = np.cos(pos * div)
    return jnp.asarray(pe)


def init_params(key, h_dim, o_dim, nhead, H, W, max_len=128):
    d = D_MODEL
    assert d % nhead == 0
    ks = iter(jax.random.split(key, 64))

    def nrm(shape, s=0.05):
        return s * jax.random.normal(next(ks), shape, jnp.float32)

    wm = lambda a: jnp.asarray(a, MXU_DTYPE)                      # matmul weights
    vf = lambda a: jnp.asarray(a, jnp.float32).reshape(1, -1)     # bias / LN rows

    p = {}
    # ---- conv stack lowered to dense block-Toeplitz matmuls (BN folded) ------
    conv_shapes = [(8, 1, 5, 5), (16, 8, 3, 3), (32, 16, 3, 3), (64, 32, 3, 3)]
    strides = [2, 1, 1, 1]
    hh, ww = H, W
    for li, (shp, st) in enumerate(zip(conv_shapes, strides)):
        cout = shp[0]
        wconv = nrm(shp, 0.1)
        gamma = 1.0 + nrm((cout,), 0.1)
        beta = nrm((cout,), 0.1)
        mean = nrm((cout,), 0.1)
        var = 1.0 + 0.1 * jax.random.uniform(next(ks), (cout,), jnp.float32)
        order = "chw" if li == len(conv_shapes) - 1 else "hwc"
        G, b, hh, ww = conv_bn_to_dense(wconv, gamma, beta, mean, var,
                                        hh, ww, st, order)
        p[f"g{li + 1}"] = wm(G)
        p[f"c{li + 1}"] = jnp.asarray(b, jnp.float32)
    assert conv_shapes[-1][0] * hh * ww == d, "conv stack must flatten to 512 feats"

    p["pe"] = make_posenc(max_len, d)
    # NOTE: weights are stored in (in, out) matmul orientation; a PyTorch
    # weight-porting path must transpose nn.Linear / in_proj weights.
    p["wqkv"] = wm(nrm((d, 3 * d))); p["bqkv"] = vf(nrm((3 * d,)))
    p["wo"] = wm(nrm((d, d)));       p["bo"] = vf(nrm((d,)))
    p["ln1g"] = vf(1.0 + nrm((d,), 0.1)); p["ln1b"] = vf(nrm((d,), 0.1))
    p["wf1"] = wm(nrm((d, h_dim)));  p["bf1"] = vf(nrm((h_dim,)))
    p["wf2"] = wm(nrm((h_dim, d)));  p["bf2"] = vf(nrm((d,)))
    p["ln2g"] = vf(1.0 + nrm((d,), 0.1)); p["ln2b"] = vf(nrm((d,), 0.1))
    p["wk"] = wm(nrm((d, d)));       p["bk"] = vf(nrm((d,)))
    p["wq"] = wm(nrm((d, d)))
    wc = np.zeros((d, 128), np.float32)          # Bahdanau context vec, 128-padded
    wc[:, 0] = np.asarray(nrm((d,)))
    p["wc"] = wm(wc)
    p["wcls"] = wm(nrm((d, o_dim))); p["bcls"] = vf(nrm((o_dim,)))
    return p


# ---------------------------------------------------------------------------
# Forward pass (one pallas_call for the whole network)
# ---------------------------------------------------------------------------
def _full_spec(a):
    nd = a.ndim
    return pl.BlockSpec(tuple(a.shape), lambda b, _nd=nd: (0,) * _nd)


@functools.partial(jax.jit, static_argnames=("nhead", "tb"))
def transformer_attention_convnet(x, params, nhead, tb=None):
    """x: (B, S, 1, H, W) -> (B, o_dim)."""
    B, S, C, H, W = x.shape
    D = params["wqkv"].shape[0]
    o_dim = params["wcls"].shape[1]
    o_pad = ((o_dim + 127) // 128) * 128          # lane-dense logits

    # ---- batch-tile size (static): big enough to fill MXU sublanes, small
    # ---- enough to keep the packed (P,P) score matrix tiny, and keeping the
    # ---- grid length >= 2 when B >= 2 so both v7x TensorCores get work.
    if tb is None:
        tb = max(1, min(B, max(1, 256 // S), max(1, 512 // (nhead * S))))
        if B > 1:
            tb = min(tb, max(1, B // 2))
    tb = int(tb)
    g = -(-B // tb)
    b_pad = g * tb

    # metadata-only reshape: rows = frames, cols = (h, w) == G1 row ordering
    x2 = x.reshape(B * S, C * H * W).astype(jnp.float32)
    if b_pad != B:
        x2 = jnp.pad(x2, ((0, (b_pad - B) * S), (0, 0)))

    TBS = tb * S
    P = nhead * TBS

    # ---- host-built constants (static shapes, baked at trace time) -----------
    pe = jnp.tile(params["pe"][:S, :], (tb, 1))                        # (TBS, D)
    gid = np.arange(P) // S                                            # (head, clip) group id
    mask = np.where(gid[:, None] == gid[None, :], 0.0, _NEG_INF).astype(np.float32)
    bid = np.arange(TBS) // S                                          # clip id
    bmean = (bid[:, None] == bid[None, :]).astype(np.float32) / float(S)   # (TBS,TBS)
    msum = (np.arange(tb)[:, None] == bid[None, :]).astype(np.float32)     # (tb, TBS)

    wcls = params["wcls"]
    bcls = params["bcls"]
    if o_pad != o_dim:
        wcls = jnp.pad(wcls, ((0, 0), (0, o_pad - o_dim)))
        bcls = jnp.pad(bcls, ((0, 0), (0, o_pad - o_dim)))

    # ---- pack all small (1, N) constants into ONE lane-aligned f32 row -------
    bias_items = [
        ("c1", params["c1"]), ("c2", params["c2"]),
        ("c3", params["c3"]), ("c4", params["c4"]),
        ("bqkv", params["bqkv"]), ("bo", params["bo"]),
        ("ln1g", params["ln1g"]), ("ln1b", params["ln1b"]),
        ("bf1", params["bf1"]), ("bf2", params["bf2"]),
        ("ln2g", params["ln2g"]), ("ln2b", params["ln2b"]),
        ("bk", params["bk"]), ("bcls", bcls),
    ]
    offs, segs, off = {}, [], 0
    for name, arr in bias_items:
        row = arr.reshape(1, -1).astype(jnp.float32)
        w = row.shape[1]
        wp = ((w + 127) // 128) * 128              # keep every segment 128-aligned
        if wp != w:
            row = jnp.pad(row, ((0, 0), (0, wp - w)))
        offs[name] = (off, w)
        segs.append(row)
        off += wp
    bias_pack = jnp.concatenate(segs, axis=1)      # (1, TOT)

    const_ops = [
        pe, bias_pack, jnp.asarray(mask), jnp.asarray(bmean), jnp.asarray(msum),
        params["g1"], params["g2"], params["g3"], params["g4"],
        params["wqkv"], params["wo"], params["wf1"], params["wf2"],
        params["wk"], params["wq"], params["wc"], wcls,
    ]
    in_specs = [pl.BlockSpec((TBS, C * H * W), lambda b: (b, 0))]
    in_specs += [_full_spec(a) for a in const_ops]

    out = pl.pallas_call(
        functools.partial(_forward_kernel, nhead=nhead, tb=tb, seq=S, offs=offs),
        out_shape=jax.ShapeDtypeStruct((g, tb, o_pad), jnp.float32),
        grid=(g,),
        in_specs=in_specs,
        out_specs=pl.BlockSpec((1, tb, o_pad), lambda b: (b, 0, 0)),
        scratch_shapes=[
            pltpu.VMEM((P, D // nhead), jnp.float32),    # packed q
            pltpu.VMEM((P, D // nhead), jnp.float32),    # packed k
            pltpu.VMEM((P, D // nhead), jnp.float32),    # packed v
            pltpu.VMEM((TBS, 1), jnp.float32),           # Bahdanau weights
        ],
        compiler_params=pltpu.CompilerParams(
            dimension_semantics=("parallel",),      # 2-way TensorCore split on v7x
            vmem_limit_bytes=40 * 1024 * 1024,      # ~2x actual need, < v7x 64 MiB
        ),
    )(x2, *const_ops)
    return out.reshape(b_pad, o_pad)[:B, :o_dim]


if __name__ == "__main__":
    # Input spatial size 20 x 24 makes the conv stack produce 64 x 2 x 4 = 512
    # features per frame, as hard-wired by the module.  B=4 with TB=2 gives a
    # 2-step "parallel" grid (both v7x TensorCores busy) and 16-row matmuls.
    B, S, H, W = 4, 8, 20, 24
    h_dim, o_dim, nhead = 128, 5, 8

    root = jax.random.PRNGKey(0)
    kx, kp = jax.random.split(root)
    x = jax.random.normal(kx, (B, S, 1, H, W), jnp.float32)
    params = init_params(kp, h_dim=h_dim, o_dim=o_dim, nhead=nhead, H=H, W=W)

    out = transformer_attention_convnet(x, params, nhead=nhead, tb=2)
    jax.block_until_ready(out)
    assert out.shape == (B, o_dim)
    assert bool(jnp.all(jnp.isfinite(out)))
    print("KERNEL_OK")
</pallas_src>

<mosaic_0001>
module attributes {stable_mosaic.version = 11 : i64} {
  func.func @_forward_kernel(%arg0: i32, %arg1: memref<16x480xf32, #tpu.memory_space<vmem>>, %arg2: memref<16x512xf32, #tpu.memory_space<vmem>>, %arg3: memref<1x8064xf32, #tpu.memory_space<vmem>>, %arg4: memref<128x128xf32, #tpu.memory_space<vmem>>, %arg5: memref<16x16xf32, #tpu.memory_space<vmem>>, %arg6: memref<2x16xf32, #tpu.memory_space<vmem>>, %arg7: memref<480x640xbf16, #tpu.memory_space<vmem>>, %arg8: memref<640x768xbf16, #tpu.memory_space<vmem>>, %arg9: memref<768x768xbf16, #tpu.memory_space<vmem>>, %arg10: memref<768x512xbf16, #tpu.memory_space<vmem>>, %arg11: memref<512x1536xbf16, #tpu.memory_space<vmem>>, %arg12: memref<512x512xbf16, #tpu.memory_space<vmem>>, %arg13: memref<512x128xbf16, #tpu.memory_space<vmem>>, %arg14: memref<128x512xbf16, #tpu.memory_space<vmem>>, %arg15: memref<512x512xbf16, #tpu.memory_space<vmem>>, %arg16: memref<512x512xbf16, #tpu.memory_space<vmem>>, %arg17: memref<512x128xbf16, #tpu.memory_space<vmem>>, %arg18: memref<512x128xbf16, #tpu.memory_space<vmem>>, %arg19: memref<1x2x128xf32, #tpu.memory_space<vmem>>, %arg20: memref<128x64xf32, #tpu.memory_space<vmem>>, %arg21: memref<128x64xf32, #tpu.memory_space<vmem>>, %arg22: memref<128x64xf32, #tpu.memory_space<vmem>>, %arg23: memref<16x1xf32, #tpu.memory_space<vmem>>) attributes {dimension_semantics = [#tpu.dimension_semantics<parallel>], iteration_bounds = array<i64: 2>, scalar_prefetch = 0 : i64, scratch_operands = 4 : i64, tpu.core_type = #tpu.core_type<tc>, window_params = [{transform_indices = @transform_0, window_bounds = array<i64: 16, 480>}, {pipeline_mode = #tpu.pipeline_mode<synchronous>, transform_indices = @transform_1, window_bounds = array<i64: 16, 512>}, {pipeline_mode = #tpu.pipeline_mode<synchronous>, transform_indices = @transform_2, window_bounds = array<i64: 1, 8064>}, {pipeline_mode = #tpu.pipeline_mode<synchronous>, transform_indices = @transform_3, window_bounds = array<i64: 128, 128>}, {pipeline_mode = #tpu.pipeline_mode<synchronous>, transform_indices = @transform_4, window_bounds = array<i64: 16, 16>}, {pipeline_mode = #tpu.pipeline_mode<synchronous>, transform_indices = @transform_5, window_bounds = array<i64: 2, 16>}, {pipeline_mode = #tpu.pipeline_mode<synchronous>, transform_indices = @transform_6, window_bounds = array<i64: 480, 640>}, {pipeline_mode = #tpu.pipeline_mode<synchronous>, transform_indices = @transform_7, window_bounds = array<i64: 640, 768>}, {pipeline_mode = #tpu.pipeline_mode<synchronous>, transform_indices = @transform_8, window_bounds = array<i64: 768, 768>}, {pipeline_mode = #tpu.pipeline_mode<synchronous>, transform_indices = @transform_9, window_bounds = array<i64: 768, 512>}, {pipeline_mode = #tpu.pipeline_mode<synchronous>, transform_indices = @transform_10, window_bounds = array<i64: 512, 1536>}, {pipeline_mode = #tpu.pipeline_mode<synchronous>, transform_indices = @transform_11, window_bounds = array<i64: 512, 512>}, {pipeline_mode = #tpu.pipeline_mode<synchronous>, transform_indices = @transform_12, window_bounds = array<i64: 512, 128>}, {pipeline_mode = #tpu.pipeline_mode<synchronous>, transform_indices = @transform_13, window_bounds = array<i64: 128, 512>}, {pipeline_mode = #tpu.pipeline_mode<synchronous>, transform_indices = @transform_14, window_bounds = array<i64: 512, 512>}, {pipeline_mode = #tpu.pipeline_mode<synchronous>, transform_indices = @transform_15, window_bounds = array<i64: 512, 512>}, {pipeline_mode = #tpu.pipeline_mode<synchronous>, transform_indices = @transform_16, window_bounds = array<i64: 512, 128>}, {pipeline_mode = #tpu.pipeline_mode<synchronous>, transform_indices = @transform_17, window_bounds = array<i64: 512, 128>}, {transform_indices = @transform_18, window_bounds = array<i64: 1, 2, 128>}]} {
    %c0 = arith.constant 0 : index
    %c0_0 = arith.constant 0 : index
    %0 = vector.load %arg1[%c0, %c0_0] : memref<16x480xf32, #tpu.memory_space<vmem>>, vector<16x480xf32>
    %1 = arith.truncf %0 : vector<16x480xf32> to vector<16x480xbf16>
    %c0_1 = arith.constant 0 : index
    %c0_2 = arith.constant 0 : index
    %2 = vector.load %arg7[%c0_1, %c0_2] : memref<480x640xbf16, #tpu.memory_space<vmem>>, vector<480x640xbf16>
    %cst = arith.constant dense<0.000000e+00> : vector<16x640xf32>
    %3 = tpu.matmul %1, %2, %cst {dimension_numbers = #tpu.dot_dimension_numbers<[1], [0], [0], [1], [0, 0, 1, 1], [], []>} : vector<16x480xbf16>, vector<480x640xbf16>, vector<16x640xf32> -> vector<16x640xf32>
    %c0_3 = arith.constant 0 : index
    %c0_4 = arith.constant 0 : index
    %4 = vector.load %arg3[%c0_3, %c0_4] : memref<1x8064xf32, #tpu.memory_space<vmem>>, vector<1x640xf32>
    %5 = vector.broadcast %4 : vector<1x640xf32> to vector<16x640xf32>
    %6 = arith.addf %3, %5 : vector<16x640xf32>
    %cst_5 = arith.constant 5.000000e-01 : f32
    %7 = vector.broadcast %cst_5 : f32 to vector<16x640xf32>
    %8 = arith.mulf %7, %6 : vector<16x640xf32>
    %cst_6 = arith.constant 0.707106769 : f32
    %9 = vector.broadcast %cst_6 : f32 to vector<16x640xf32>
    %10 = arith.mulf %6, %9 : vector<16x640xf32>
    %11 = math.erf %10 : vector<16x640xf32>
    %cst_7 = arith.constant 1.000000e+00 : f32
    %12 = vector.broadcast %cst_7 : f32 to vector<16x640xf32>
    %13 = arith.addf %12, %11 : vector<16x640xf32>
    %14 = arith.mulf %8, %13 : vector<16x640xf32>
    %15 = arith.truncf %14 : vector<16x640xf32> to vector<16x640xbf16>
    %c0_8 = arith.constant 0 : index
    %c0_9 = arith.constant 0 : index
    %16 = vector.load %arg8[%c0_8, %c0_9] : memref<640x768xbf16, #tpu.memory_space<vmem>>, vector<640x768xbf16>
    %cst_10 = arith.constant dense<0.000000e+00> : vector<16x768xf32>
    %17 = tpu.matmul %15, %16, %cst_10 {dimension_numbers = #tpu.dot_dimension_numbers<[1], [0], [0], [1], [0, 0, 1, 1], [], []>} : vector<16x640xbf16>, vector<640x768xbf16>, vector<16x768xf32> -> vector<16x768xf32>
    %c0_11 = arith.constant 0 : index
    %c640 = arith.constant 640 : index
    %18 = vector.load %arg3[%c0_11, %c640] : memref<1x8064xf32, #tpu.memory_space<vmem>>, vector<1x768xf32>
    %19 = vector.broadcast %18 : vector<1x768xf32> to vector<16x768xf32>
    %20 = arith.addf %17, %19 : vector<16x768xf32>
    %cst_12 = arith.constant 5.000000e-01 : f32
    %21 = vector.broadcast %cst_12 : f32 to vector<16x768xf32>
    %22 = arith.mulf %21, %20 : vector<16x768xf32>
    %cst_13 = arith.constant 0.707106769 : f32
    %23 = vector.broadcast %cst_13 : f32 to vector<16x768xf32>
    %24 = arith.mulf %20, %23 : vector<16x768xf32>
    %25 = math.erf %24 : vector<16x768xf32>
    %cst_14 = arith.constant 1.000000e+00 : f32
    %26 = vector.broadcast %cst_14 : f32 to vector<16x768xf32>
    %27 = arith.addf %26, %25 : vector<16x768xf32>
    %28 = arith.mulf %22, %27 : vector<16x768xf32>
    %29 = arith.truncf %28 : vector<16x768xf32> to vector<16x768xbf16>
    %c0_15 = arith.constant 0 : index
    %c0_16 = arith.constant 0 : index
    %30 = vector.load %arg9[%c0_15, %c0_16] : memref<768x768xbf16, #tpu.memory_space<vmem>>, vector<768x768xbf16>
    %cst_17 = arith.constant dense<0.000000e+00> : vector<16x768xf32>
    %31 = tpu.matmul %29, %30, %cst_17 {dimension_numbers = #tpu.dot_dimension_numbers<[1], [0], [0], [1], [0, 0, 1, 1], [], []>} : vector<16x768xbf16>, vector<768x768xbf16>, vector<16x768xf32> -> vector<16x768xf32>
    %c0_18 = arith.constant 0 : index
    %c1408 = arith.constant 1408 : index
    %32 = vector.load %arg3[%c0_18, %c1408] : memref<1x8064xf32, #tpu.memory_space<vmem>>, vector<1x768xf32>
    %33 = vector.broadcast %32 : vector<1x768xf32> to vector<16x768xf32>
    %34 = arith.addf %31, %33 : vector<16x768xf32>
    %cst_19 = arith.constant 5.000000e-01 : f32
    %35 = vector.broadcast %cst_19 : f32 to vector<16x768xf32>
    %36 = arith.mulf %35, %34 : vector<16x768xf32>
    %cst_20 = arith.constant 0.707106769 : f32
    %37 = vector.broadcast %cst_20 : f32 to vector<16x768xf32>
    %38 = arith.mulf %34, %37 : vector<16x768xf32>
    %39 = math.erf %38 : vector<16x768xf32>
    %cst_21 = arith.constant 1.000000e+00 : f32
    %40 = vector.broadcast %cst_21 : f32 to vector<16x768xf32>
    %41 = arith.addf %40, %39 : vector<16x768xf32>
    %42 = arith.mulf %36, %41 : vector<16x768xf32>
    %43 = arith.truncf %42 : vector<16x768xf32> to vector<16x768xbf16>
    %c0_22 = arith.constant 0 : index
    %c0_23 = arith.constant 0 : index
    %44 = vector.load %arg10[%c0_22, %c0_23] : memref<768x512xbf16, #tpu.memory_space<vmem>>, vector<768x512xbf16>
    %cst_24 = arith.constant dense<0.000000e+00> : vector<16x512xf32>
    %45 = tpu.matmul %43, %44, %cst_24 {dimension_numbers = #tpu.dot_dimension_numbers<[1], [0], [0], [1], [0, 0, 1, 1], [], []>} : vector<16x768xbf16>, vector<768x512xbf16>, vector<16x512xf32> -> vector<16x512xf32>
    %c0_25 = arith.constant 0 : index
    %c2176 = arith.constant 2176 : index
    %46 = vector.load %arg3[%c0_25, %c2176] : memref<1x8064xf32, #tpu.memory_space<vmem>>, vector<1x512xf32>
    %47 = vector.broadcast %46 : vector<1x512xf32> to vector<16x512xf32>
    %48 = arith.addf %45, %47 : vector<16x512xf32>
    %cst_26 = arith.constant 5.000000e-01 : f32
    %49 = vector.broadcast %cst_26 : f32 to vector<16x512xf32>
    %50 = arith.mulf %49, %48 : vector<16x512xf32>
    %cst_27 = arith.constant 0.707106769 : f32
    %51 = vector.broadcast %cst_27 : f32 to vector<16x512xf32>
    %52 = arith.mulf %48, %51 : vector<16x512xf32>
    %53 = math.erf %52 : vector<16x512xf32>
    %cst_28 = arith.constant 1.000000e+00 : f32
    %54 = vector.broadcast %cst_28 : f32 to vector<16x512xf32>
    %55 = arith.addf %54, %53 : vector<16x512xf32>
    %56 = arith.mulf %50, %55 : vector<16x512xf32>
    %c0_29 = arith.constant 0 : index
    %c0_30 = arith.constant 0 : index
    %57 = vector.load %arg2[%c0_29, %c0_30] : memref<16x512xf32, #tpu.memory_space<vmem>>, vector<16x512xf32>
    %58 = arith.addf %56, %57 : vector<16x512xf32>
    %59 = arith.truncf %58 : vector<16x512xf32> to vector<16x512xbf16>
    %c0_31 = arith.constant 0 : index
    %c0_32 = arith.constant 0 : index
    %60 = vector.load %arg11[%c0_31, %c0_32] : memref<512x1536xbf16, #tpu.memory_space<vmem>>, vector<512x1536xbf16>
    %cst_33 = arith.constant dense<0.000000e+00> : vector<16x1536xf32>
    %61 = tpu.matmul %59, %60, %cst_33 {dimension_numbers = #tpu.dot_dimension_numbers<[1], [0], [0], [1], [0, 0, 1, 1], [], []>} : vector<16x512xbf16>, vector<512x1536xbf16>, vector<16x1536xf32> -> vector<16x1536xf32>
    %c0_34 = arith.constant 0 : index
    %c2688 = arith.constant 2688 : index
    %62 = vector.load %arg3[%c0_34, %c2688] : memref<1x8064xf32, #tpu.memory_space<vmem>>, vector<1x1536xf32>
    %63 = vector.broadcast %62 : vector<1x1536xf32> to vector<16x1536xf32>
    %64 = arith.addf %61, %63 : vector<16x1536xf32>
    %65 = vector.extract_strided_slice %64 {offsets = [0, 0], sizes = [16, 64], strides = [1, 1]} : vector<16x1536xf32> to vector<16x64xf32>
    %c0_35 = arith.constant 0 : index
    %c0_36 = arith.constant 0 : index
    %66 = vector.load %arg20[%c0_35, %c0_36] : memref<128x64xf32, #tpu.memory_space<vmem>>, vector<16x64xf32>
    tpu.vector_store %arg20[%c0_35, %c0_36], %65 {strides = array<i32>} : memref<128x64xf32, #tpu.memory_space<vmem>>, vector<16x64xf32>,
    %67 = vector.extract_strided_slice %64 {offsets = [0, 512], sizes = [16, 64], strides = [1, 1]} : vector<16x1536xf32> to vector<16x64xf32>
    %c0_37 = arith.constant 0 : index
    %c0_38 = arith.constant 0 : index
    %68 = vector.load %arg21[%c0_37, %c0_38] : memref<128x64xf32, #tpu.memory_space<vmem>>, vector<16x64xf32>
    tpu.vector_store %arg21[%c0_37, %c0_38], %67 {strides = array<i32>} : memref<128x64xf32, #tpu.memory_space<vmem>>, vector<16x64xf32>,
    %69 = vector.extract_strided_slice %64 {offsets = [0, 1024], sizes = [16, 64], strides = [1, 1]} : vector<16x1536xf32> to vector<16x64xf32>
    %c0_39 = arith.constant 0 : index
    %c0_40 = arith.constant 0 : index
    %70 = vector.load %arg22[%c0_39, %c0_40] : memref<128x64xf32, #tpu.memory_space<vmem>>, vector<16x64xf32>
    tpu.vector_store %arg22[%c0_39, %c0_40], %69 {strides = array<i32>} : memref<128x64xf32, #tpu.memory_space<vmem>>, vector<16x64xf32>,
    %71 = vector.extract_strided_slice %64 {offsets = [0, 64], sizes = [16, 64], strides = [1, 1]} : vector<16x1536xf32> to vector<16x64xf32>
    %c16 = arith.constant 16 : index
    %c0_41 = arith.constant 0 : index
    %72 = vector.load %arg20[%c16, %c0_41] : memref<128x64xf32, #tpu.memory_space<vmem>>, vector<16x64xf32>
    tpu.vector_store %arg20[%c16, %c0_41], %71 {strides = array<i32>} : memref<128x64xf32, #tpu.memory_space<vmem>>, vector<16x64xf32>,
    %73 = vector.extract_strided_slice %64 {offsets = [0, 576], sizes = [16, 64], strides = [1, 1]} : vector<16x1536xf32> to vector<16x64xf32>
    %c16_42 = arith.constant 16 : index
    %c0_43 = arith.constant 0 : index
    %74 = vector.load %arg21[%c16_42, %c0_43] : memref<128x64xf32, #tpu.memory_space<vmem>>, vector<16x64xf32>
    tpu.vector_store %arg21[%c16_42, %c0_43], %73 {strides = array<i32>} : memref<128x64xf32, #tpu.memory_space<vmem>>, vector<16x64xf32>,
    %75 = vector.extract_strided_slice %64 {offsets = [0, 1088], sizes = [16, 64], strides = [1, 1]} : vector<16x1536xf32> to vector<16x64xf32>
    %c16_44 = arith.constant 16 : index
    %c0_45 = arith.constant 0 : index
    %76 = vector.load %arg22[%c16_44, %c0_45] : memref<128x64xf32, #tpu.memory_space<vmem>>, vector<16x64xf32>
    tpu.vector_store %arg22[%c16_44, %c0_45], %75 {strides = array<i32>} : memref<128x64xf32, #tpu.memory_space<vmem>>, vector<16x64xf32>,
    %77 = vector.extract_strided_slice %64 {offsets = [0, 128], sizes = [16, 64], strides = [1, 1]} : vector<16x1536xf32> to vector<16x64xf32>
    %c32 = arith.constant 32 : index
    %c0_46 = arith.constant 0 : index
    %78 = vector.load %arg20[%c32, %c0_46] : memref<128x64xf32, #tpu.memory_space<vmem>>, vector<16x64xf32>
    tpu.vector_store %arg20[%c32, %c0_46], %77 {strides = array<i32>} : memref<128x64xf32, #tpu.memory_space<vmem>>, vector<16x64xf32>,
    %79 = vector.extract_strided_slice %64 {offsets = [0, 640], sizes = [16, 64], strides = [1, 1]} : vector<16x1536xf32> to vector<16x64xf32>
    %c32_47 = arith.constant 32 : index
    %c0_48 = arith.constant 0 : index
    %80 = vector.load %arg21[%c32_47, %c0_48] : memref<128x64xf32, #tpu.memory_space<vmem>>, vector<16x64xf32>
    tpu.vector_store %arg21[%c32_47, %c0_48], %79 {strides = array<i32>} : memref<128x64xf32, #tpu.memory_space<vmem>>, vector<16x64xf32>,
    %81 = vector.extract_strided_slice %64 {offsets = [0, 1152], sizes = [16, 64], strides = [1, 1]} : vector<16x1536xf32> to vector<16x64xf32>
    %c32_49 = arith.constant 32 : index
    %c0_50 = arith.constant 0 : index
    %82 = vector.load %arg22[%c32_49, %c0_50] : memref<128x64xf32, #tpu.memory_space<vmem>>, vector<16x64xf32>
    tpu.vector_store %arg22[%c32_49, %c0_50], %81 {strides = array<i32>} : memref<128x64xf32, #tpu.memory_space<vmem>>, vector<16x64xf32>,
    %83 = vector.extract_strided_slice %64 {offsets = [0, 192], sizes = [16, 64], strides = [1, 1]} : vector<16x1536xf32> to vector<16x64xf32>
    %c48 = arith.constant 48 : index
    %c0_51 = arith.constant 0 : index
    %84 = vector.load %arg20[%c48, %c0_51] : memref<128x64xf32, #tpu.memory_space<vmem>>, vector<16x64xf32>
    tpu.vector_store %arg20[%c48, %c0_51], %83 {strides = array<i32>} : memref<128x64xf32, #tpu.memory_space<vmem>>, vector<16x64xf32>,
    %85 = vector.extract_strided_slice %64 {offsets = [0, 704], sizes = [16, 64], strides = [1, 1]} : vector<16x1536xf32> to vector<16x64xf32>
    %c48_52 = arith.constant 48 : index
    %c0_53 = arith.constant 0 : index
    %86 = vector.load %arg21[%c48_52, %c0_53] : memref<128x64xf32, #tpu.memory_space<vmem>>, vector<16x64xf32>
    tpu.vector_store %arg21[%c48_52, %c0_53], %85 {strides = array<i32>} : memref<128x64xf32, #tpu.memory_space<vmem>>, vector<16x64xf32>,
    %87 = vector.extract_strided_slice %64 {offsets = [0, 1216], sizes = [16, 64], strides = [1, 1]} : vector<16x1536xf32> to vector<16x64xf32>
    %c48_54 = arith.constant 48 : index
    %c0_55 = arith.constant 0 : index
    %88 = vector.load %arg22[%c48_54, %c0_55] : memref<128x64xf32, #tpu.memory_space<vmem>>, vector<16x64xf32>
    tpu.vector_store %arg22[%c48_54, %c0_55], %87 {strides = array<i32>} : memref<128x64xf32, #tpu.memory_space<vmem>>, vector<16x64xf32>,
    %89 = vector.extract_strided_slice %64 {offsets = [0, 256], sizes = [16, 64], strides = [1, 1]} : vector<16x1536xf32> to vector<16x64xf32>
    %c64 = arith.constant 64 : index
    %c0_56 = arith.constant 0 : index
    %90 = vector.load %arg20[%c64, %c0_56] : memref<128x64xf32, #tpu.memory_space<vmem>>, vector<16x64xf32>
    tpu.vector_store %arg20[%c64, %c0_56], %89 {strides = array<i32>} : memref<128x64xf32, #tpu.memory_space<vmem>>, vector<16x64xf32>,
    %91 = vector.extract_strided_slice %64 {offsets = [0, 768], sizes = [16, 64], strides = [1, 1]} : vector<16x1536xf32> to vector<16x64xf32>
    %c64_57 = arith.constant 64 : index
    %c0_58 = arith.constant 0 : index
    %92 = vector.load %arg21[%c64_57, %c0_58] : memref<128x64xf32, #tpu.memory_space<vmem>>, vector<16x64xf32>
    tpu.vector_store %arg21[%c64_57, %c0_58], %91 {strides = array<i32>} : memref<128x64xf32, #tpu.memory_space<vmem>>, vector<16x64xf32>,
    %93 = vector.extract_strided_slice %64 {offsets = [0, 1280], sizes = [16, 64], strides = [1, 1]} : vector<16x1536xf32> to vector<16x64xf32>
    %c64_59 = arith.constant 64 : index
    %c0_60 = arith.constant 0 : index
    %94 = vector.load %arg22[%c64_59, %c0_60] : memref<128x64xf32, #tpu.memory_space<vmem>>, vector<16x64xf32>
    tpu.vector_store %arg22[%c64_59, %c0_60], %93 {strides = array<i32>} : memref<128x64xf32, #tpu.memory_space<vmem>>, vector<16x64xf32>,
    %95 = vector.extract_strided_slice %64 {offsets = [0, 320], sizes = [16, 64], strides = [1, 1]} : vector<16x1536xf32> to vector<16x64xf32>
    %c80 = arith.constant 80 : index
    %c0_61 = arith.constant 0 : index
    %96 = vector.load %arg20[%c80, %c0_61] : memref<128x64xf32, #tpu.memory_space<vmem>>, vector<16x64xf32>
    tpu.vector_store %arg20[%c80, %c0_61], %95 {strides = array<i32>} : memref<128x64xf32, #tpu.memory_space<vmem>>, vector<16x64xf32>,
    %97 = vector.extract_strided_slice %64 {offsets = [0, 832], sizes = [16, 64], strides = [1, 1]} : vector<16x1536xf32> to vector<16x64xf32>
    %c80_62 = arith.constant 80 : index
    %c0_63 = arith.constant 0 : index
    %98 = vector.load %arg21[%c80_62, %c0_63] : memref<128x64xf32, #tpu.memory_space<vmem>>, vector<16x64xf32>
    tpu.vector_store %arg21[%c80_62, %c0_63], %97 {strides = array<i32>} : memref<128x64xf32, #tpu.memory_space<vmem>>, vector<16x64xf32>,
    %99 = vector.extract_strided_slice %64 {offsets = [0, 1344], sizes = [16, 64], strides = [1, 1]} : vector<16x1536xf32> to vector<16x64xf32>
    %c80_64 = arith.constant 80 : index
    %c0_65 = arith.constant 0 : index
    %100 = vector.load %arg22[%c80_64, %c0_65] : memref<128x64xf32, #tpu.memory_space<vmem>>, vector<16x64xf32>
    tpu.vector_store %arg22[%c80_64, %c0_65], %99 {strides = array<i32>} : memref<128x64xf32, #tpu.memory_space<vmem>>, vector<16x64xf32>,
    %101 = vector.extract_strided_slice %64 {offsets = [0, 384], sizes = [16, 64], strides = [1, 1]} : vector<16x1536xf32> to vector<16x64xf32>
    %c96 = arith.constant 96 : index
    %c0_66 = arith.constant 0 : index
    %102 = vector.load %arg20[%c96, %c0_66] : memref<128x64xf32, #tpu.memory_space<vmem>>, vector<16x64xf32>
    tpu.vector_store %arg20[%c96, %c0_66], %101 {strides = array<i32>} : memref<128x64xf32, #tpu.memory_space<vmem>>, vector<16x64xf32>,
    %103 = vector.extract_strided_slice %64 {offsets = [0, 896], sizes = [16, 64], strides = [1, 1]} : vector<16x1536xf32> to vector<16x64xf32>
    %c96_67 = arith.constant 96 : index
    %c0_68 = arith.constant 0 : index
    %104 = vector.load %arg21[%c96_67, %c0_68] : memref<128x64xf32, #tpu.memory_space<vmem>>, vector<16x64xf32>
    tpu.vector_store %arg21[%c96_67, %c0_68], %103 {strides = array<i32>} : memref<128x64xf32, #tpu.memory_space<vmem>>, vector<16x64xf32>,
    %105 = vector.extract_strided_slice %64 {offsets = [0, 1408], sizes = [16, 64], strides = [1, 1]} : vector<16x1536xf32> to vector<16x64xf32>
    %c96_69 = arith.constant 96 : index
    %c0_70 = arith.constant 0 : index
    %106 = vector.load %arg22[%c96_69, %c0_70] : memref<128x64xf32, #tpu.memory_space<vmem>>, vector<16x64xf32>
    tpu.vector_store %arg22[%c96_69, %c0_70], %105 {strides = array<i32>} : memref<128x64xf32, #tpu.memory_space<vmem>>, vector<16x64xf32>,
    %107 = vector.extract_strided_slice %64 {offsets = [0, 448], sizes = [16, 64], strides = [1, 1]} : vector<16x1536xf32> to vector<16x64xf32>
    %c112 = arith.constant 112 : index
    %c0_71 = arith.constant 0 : index
    %108 = vector.load %arg20[%c112, %c0_71] : memref<128x64xf32, #tpu.memory_space<vmem>>, vector<16x64xf32>
    tpu.vector_store %arg20[%c112, %c0_71], %107 {strides = array<i32>} : memref<128x64xf32, #tpu.memory_space<vmem>>, vector<16x64xf32>,
    %109 = vector.extract_strided_slice %64 {offsets = [0, 960], sizes = [16, 64], strides = [1, 1]} : vector<16x1536xf32> to vector<16x64xf32>
    %c112_72 = arith.constant 112 : index
    %c0_73 = arith.constant 0 : index
    %110 = vector.load %arg21[%c112_72, %c0_73] : memref<128x64xf32, #tpu.memory_space<vmem>>, vector<16x64xf32>
    tpu.vector_store %arg21[%c112_72, %c0_73], %109 {strides = array<i32>} : memref<128x64xf32, #tpu.memory_space<vmem>>, vector<16x64xf32>,
    %111 = vector.extract_strided_slice %64 {offsets = [0, 1472], sizes = [16, 64], strides = [1, 1]} : vector<16x1536xf32> to vector<16x64xf32>
    %c112_74 = arith.constant 112 : index
    %c0_75 = arith.constant 0 : index
    %112 = vector.load %arg22[%c112_74, %c0_75] : memref<128x64xf32, #tpu.memory_space<vmem>>, vector<16x64xf32>
    tpu.vector_store %arg22[%c112_74, %c0_75], %111 {strides = array<i32>} : memref<128x64xf32, #tpu.memory_space<vmem>>, vector<16x64xf32>,
    %c0_76 = arith.constant 0 : index
    %c0_77 = arith.constant 0 : index
    %113 = vector.load %arg20[%c0_76, %c0_77] : memref<128x64xf32, #tpu.memory_space<vmem>>, vector<128x64xf32>
    %114 = arith.truncf %113 : vector<128x64xf32> to vector<128x64xbf16>
    %c0_78 = arith.constant 0 : index
    %c0_79 = arith.constant 0 : index
    %115 = vector.load %arg21[%c0_78, %c0_79] : memref<128x64xf32, #tpu.memory_space<vmem>>, vector<128x64xf32>
    %116 = arith.truncf %115 : vector<128x64xf32> to vector<128x64xbf16>
    %c0_80 = arith.constant 0 : index
    %c0_81 = arith.constant 0 : index
    %117 = vector.load %arg22[%c0_80, %c0_81] : memref<128x64xf32, #tpu.memory_space<vmem>>, vector<128x64xf32>
    %118 = arith.truncf %117 : vector<128x64xf32> to vector<128x64xbf16>
    %cst_82 = arith.constant dense<0.000000e+00> : vector<128x128xf32>
    %119 = tpu.matmul %114, %116, %cst_82 {dimension_numbers = #tpu.dot_dimension_numbers<[1], [1], [0], [0], [0, 0, 1, 0], [], []>} : vector<128x64xbf16>, vector<128x64xbf16>, vector<128x128xf32> -> vector<128x128xf32>
    %cst_83 = arith.constant 1.250000e-01 : f32
    %120 = vector.broadcast %cst_83 : f32 to vector<128x128xf32>
    %121 = arith.mulf %119, %120 : vector<128x128xf32>
    %c0_84 = arith.constant 0 : index
    %c0_85 = arith.constant 0 : index
    %122 = vector.load %arg4[%c0_84, %c0_85] : memref<128x128xf32, #tpu.memory_space<vmem>>, vector<128x128xf32>
    %123 = arith.addf %121, %122 : vector<128x128xf32>
    %cst_86 = arith.constant dense<0xFF800000> : vector<128xf32>
    %124 = vector.multi_reduction <maximumf>, %123, %cst_86 [1] : vector<128x128xf32> to vector<128xf32>
    %125 = vector.shape_cast %124 : vector<128xf32> to vector<128x1xf32>
    %126 = vector.broadcast %125 : vector<128x1xf32> to vector<128x128xf32>
    %127 = arith.subf %123, %126 : vector<128x128xf32>
    %128 = math.exp %127 : vector<128x128xf32>
    %cst_87 = arith.constant dense<0.000000e+00> : vector<128xf32>
    %129 = vector.multi_reduction <add>, %128, %cst_87 [1] : vector<128x128xf32> to vector<128xf32>
    %130 = vector.shape_cast %129 : vector<128xf32> to vector<128x1xf32>
    %131 = tpu.reciprocal %130 {approx = true} : vector<128x1xf32> -> vector<128x1xf32>
    %132 = vector.broadcast %131 : vector<128x1xf32> to vector<128x128xf32>
    %133 = arith.mulf %128, %132 : vector<128x128xf32>
    %134 = arith.truncf %133 : vector<128x128xf32> to vector<128x128xbf16>
    %cst_88 = arith.constant dense<0.000000e+00> : vector<128x64xf32>
    %135 = tpu.matmul %134, %118, %cst_88 {dimension_numbers = #tpu.dot_dimension_numbers<[1], [0], [0], [1], [0, 0, 1, 1], [], []>} : vector<128x128xbf16>, vector<128x64xbf16>, vector<128x64xf32> -> vector<128x64xf32>
    %cst_89 = arith.constant 0.000000e+00 : f32
    %136 = vector.broadcast %cst_89 : f32 to vector<16x512xf32>
    %137 = vector.extract_strided_slice %135 {offsets = [0, 0], sizes = [16, 64], strides = [1, 1]} : vector<128x64xf32> to vector<16x64xf32>
    %138 = arith.truncf %137 : vector<16x64xf32> to vector<16x64xbf16>
    %c0_90 = arith.constant 0 : index
    %c0_91 = arith.constant 0 : index
    %139 = vector.load %arg12[%c0_90, %c0_91] : memref<512x512xbf16, #tpu.memory_space<vmem>>, vector<64x512xbf16>
    %cst_92 = arith.constant dense<0.000000e+00> : vector<16x512xf32>
    %140 = tpu.matmul %138, %139, %cst_92 {dimension_numbers = #tpu.dot_dimension_numbers<[1], [0], [0], [1], [0, 0, 1, 1], [], []>} : vector<16x64xbf16>, vector<64x512xbf16>, vector<16x512xf32> -> vector<16x512xf32>
    %141 = arith.addf %136, %140 : vector<16x512xf32>
    %142 = vector.extract_strided_slice %135 {offsets = [16, 0], sizes = [16, 64], strides = [1, 1]} : vector<128x64xf32> to vector<16x64xf32>
    %143 = arith.truncf %142 : vector<16x64xf32> to vector<16x64xbf16>
    %c64_93 = arith.constant 64 : index
    %c0_94 = arith.constant 0 : index
    %144 = vector.load %arg12[%c64_93, %c0_94] : memref<512x512xbf16, #tpu.memory_space<vmem>>, vector<64x512xbf16>
    %cst_95 = arith.constant dense<0.000000e+00> : vector<16x512xf32>
    %145 = tpu.matmul %143, %144, %cst_95 {dimension_numbers = #tpu.dot_dimension_numbers<[1], [0], [0], [1], [0, 0, 1, 1], [], []>} : vector<16x64xbf16>, vector<64x512xbf16>, vector<16x512xf32> -> vector<16x512xf32>
    %146 = arith.addf %141, %145 : vector<16x512xf32>
    %147 = vector.extract_strided_slice %135 {offsets = [32, 0], sizes = [16, 64], strides = [1, 1]} : vector<128x64xf32> to vector<16x64xf32>
    %148 = arith.truncf %147 : vector<16x64xf32> to vector<16x64xbf16>
    %c128 = arith.constant 128 : index
    %c0_96 = arith.constant 0 : index
    %149 = vector.load %arg12[%c128, %c0_96] : memref<512x512xbf16, #tpu.memory_space<vmem>>, vector<64x512xbf16>
    %cst_97 = arith.constant dense<0.000000e+00> : vector<16x512xf32>
    %150 = tpu.matmul %148, %149, %cst_97 {dimension_numbers = #tpu.dot_dimension_numbers<[1], [0], [0], [1], [0, 0, 1, 1], [], []>} : vector<16x64xbf16>, vector<64x512xbf16>, vector<16x512xf32> -> vector<16x512xf32>
    %151 = arith.addf %146, %150 : vector<16x512xf32>
    %152 = vector.extract_strided_slice %135 {offsets = [48, 0], sizes = [16, 64], strides = [1, 1]} : vector<128x64xf32> to vector<16x64xf32>
    %153 = arith.truncf %152 : vector<16x64xf32> to vector<16x64xbf16>
    %c192 = arith.constant 192 : index
    %c0_98 = arith.constant 0 : index
    %154 = vector.load %arg12[%c192, %c0_98] : memref<512x512xbf16, #tpu.memory_space<vmem>>, vector<64x512xbf16>
    %cst_99 = arith.constant dense<0.000000e+00> : vector<16x512xf32>
    %155 = tpu.matmul %153, %154, %cst_99 {dimension_numbers = #tpu.dot_dimension_numbers<[1], [0], [0], [1], [0, 0, 1, 1], [], []>} : vector<16x64xbf16>, vector<64x512xbf16>, vector<16x512xf32> -> vector<16x512xf32>
    %156 = arith.addf %151, %155 : vector<16x512xf32>
    %157 = vector.extract_strided_slice %135 {offsets = [64, 0], sizes = [16, 64], strides = [1, 1]} : vector<128x64xf32> to vector<16x64xf32>
    %158 = arith.truncf %157 : vector<16x64xf32> to vector<16x64xbf16>
    %c256 = arith.constant 256 : index
    %c0_100 = arith.constant 0 : index
    %159 = vector.load %arg12[%c256, %c0_100] : memref<512x512xbf16, #tpu.memory_space<vmem>>, vector<64x512xbf16>
    %cst_101 = arith.constant dense<0.000000e+00> : vector<16x512xf32>
    %160 = tpu.matmul %158, %159, %cst_101 {dimension_numbers = #tpu.dot_dimension_numbers<[1], [0], [0], [1], [0, 0, 1, 1], [], []>} : vector<16x64xbf16>, vector<64x512xbf16>, vector<16x512xf32> -> vector<16x512xf32>
    %161 = arith.addf %156, %160 : vector<16x512xf32>
    %162 = vector.extract_strided_slice %135 {offsets = [80, 0], sizes = [16, 64], strides = [1, 1]} : vector<128x64xf32> to vector<16x64xf32>
    %163 = arith.truncf %162 : vector<16x64xf32> to vector<16x64xbf16>
    %c320 = arith.constant 320 : index
    %c0_102 = arith.constant 0 : index
    %164 = vector.load %arg12[%c320, %c0_102] : memref<512x512xbf16, #tpu.memory_space<vmem>>, vector<64x512xbf16>
    %cst_103 = arith.constant dense<0.000000e+00> : vector<16x512xf32>
    %165 = tpu.matmul %163, %164, %cst_103 {dimension_numbers = #tpu.dot_dimension_numbers<[1], [0], [0], [1], [0, 0, 1, 1], [], []>} : vector<16x64xbf16>, vector<64x512xbf16>, vector<16x512xf32> -> vector<16x512xf32>
    %166 = arith.addf %161, %165 : vector<16x512xf32>
    %167 = vector.extract_strided_slice %135 {offsets = [96, 0], sizes = [16, 64], strides = [1, 1]} : vector<128x64xf32> to vector<16x64xf32>
    %168 = arith.truncf %167 : vector<16x64xf32> to vector<16x64xbf16>
    %c384 = arith.constant 384 : index
    %c0_104 = arith.constant 0 : index
    %169 = vector.load %arg12[%c384, %c0_104] : memref<512x512xbf16, #tpu.memory_space<vmem>>, vector<64x512xbf16>
    %cst_105 = arith.constant dense<0.000000e+00> : vector<16x512xf32>
    %170 = tpu.matmul %168, %169, %cst_105 {dimension_numbers = #tpu.dot_dimension_numbers<[1], [0], [0], [1], [0, 0, 1, 1], [], []>} : vector<16x64xbf16>, vector<64x512xbf16>, vector<16x512xf32> -> vector<16x512xf32>
    %171 = arith.addf %166, %170 : vector<16x512xf32>
    %172 = vector.extract_strided_slice %135 {offsets = [112, 0], sizes = [16, 64], strides = [1, 1]} : vector<128x64xf32> to vector<16x64xf32>
    %173 = arith.truncf %172 : vector<16x64xf32> to vector<16x64xbf16>
    %c448 = arith.constant 448 : index
    %c0_106 = arith.constant 0 : index
    %174 = vector.load %arg12[%c448, %c0_106] : memref<512x512xbf16, #tpu.memory_space<vmem>>, vector<64x512xbf16>
    %cst_107 = arith.constant dense<0.000000e+00> : vector<16x512xf32>
    %175 = tpu.matmul %173, %174, %cst_107 {dimension_numbers = #tpu.dot_dimension_numbers<[1], [0], [0], [1], [0, 0, 1, 1], [], []>} : vector<16x64xbf16>, vector<64x512xbf16>, vector<16x512xf32> -> vector<16x512xf32>
    %176 = arith.addf %171, %175 : vector<16x512xf32>
    %c0_108 = arith.constant 0 : index
    %c4224 = arith.constant 4224 : index
    %177 = vector.load %arg3[%c0_108, %c4224] : memref<1x8064xf32, #tpu.memory_space<vmem>>, vector<1x512xf32>
    %178 = vector.broadcast %177 : vector<1x512xf32> to vector<16x512xf32>
    %179 = arith.addf %176, %178 : vector<16x512xf32>
    %180 = arith.addf %58, %179 : vector<16x512xf32>
    %c0_109 = arith.constant 0 : index
    %c4736 = arith.constant 4736 : index
    %181 = vector.load %arg3[%c0_109, %c4736] : memref<1x8064xf32, #tpu.memory_space<vmem>>, vector<1x512xf32>
    %c0_110 = arith.constant 0 : index
    %c5248 = arith.constant 5248 : index
    %182 = vector.load %arg3[%c0_110, %c5248] : memref<1x8064xf32, #tpu.memory_space<vmem>>, vector<1x512xf32>
    %cst_111 = arith.constant dense<0.000000e+00> : vector<16xf32>
    %183 = vector.multi_reduction <add>, %180, %cst_111 [1] : vector<16x512xf32> to vector<16xf32>
    %184 = vector.shape_cast %183 : vector<16xf32> to vector<16x1xf32>
    %cst_112 = arith.constant 5.120000e+02 : f32
    %185 = vector.broadcast %cst_112 : f32 to vector<16x1xf32>
    %186 = arith.divf %184, %185 : vector<16x1xf32>
    %187 = vector.broadcast %186 : vector<16x1xf32> to vector<16x512xf32>
    %188 = arith.subf %180, %187 : vector<16x512xf32>
    %189 = arith.mulf %188, %188 : vector<16x512xf32>
    %cst_113 = arith.constant dense<0.000000e+00> : vector<16xf32>
    %190 = vector.multi_reduction <add>, %189, %cst_113 [1] : vector<16x512xf32> to vector<16xf32>
    %191 = vector.shape_cast %190 : vector<16xf32> to vector<16x1xf32>
    %cst_114 = arith.constant 5.120000e+02 : f32
    %192 = vector.broadcast %cst_114 : f32 to vector<16x1xf32>
    %193 = arith.divf %191, %192 : vector<16x1xf32>
    %cst_115 = arith.constant 9.99999974E-6 : f32
    %194 = vector.broadcast %cst_115 : f32 to vector<16x1xf32>
    %195 = arith.addf %193, %194 : vector<16x1xf32>
    %196 = math.rsqrt %195 : vector<16x1xf32>
    %197 = vector.broadcast %196 : vector<16x1xf32> to vector<16x512xf32>
    %198 = arith.mulf %188, %197 : vector<16x512xf32>
    %199 = vector.broadcast %181 : vector<1x512xf32> to vector<16x512xf32>
    %200 = arith.mulf %198, %199 : vector<16x512xf32>
    %201 = vector.broadcast %182 : vector<1x512xf32> to vector<16x512xf32>
    %202 = arith.addf %200, %201 : vector<16x512xf32>
    %203 = arith.truncf %202 : vector<16x512xf32> to vector<16x512xbf16>
    %c0_116 = arith.constant 0 : index
    %c0_117 = arith.constant 0 : index
    %204 = vector.load %arg13[%c0_116, %c0_117] : memref<512x128xbf16, #tpu.memory_space<vmem>>, vector<512x128xbf16>
    %cst_118 = arith.constant dense<0.000000e+00> : vector<16x128xf32>
    %205 = tpu.matmul %203, %204, %cst_118 {dimension_numbers = #tpu.dot_dimension_numbers<[1], [0], [0], [1], [0, 0, 1, 1], [], []>} : vector<16x512xbf16>, vector<512x128xbf16>, vector<16x128xf32> -> vector<16x128xf32>
    %c0_119 = arith.constant 0 : index
    %c5760 = arith.constant 5760 : index
    %206 = vector.load %arg3[%c0_119, %c5760] : memref<1x8064xf32, #tpu.memory_space<vmem>>, vector<1x128xf32>
    %207 = vector.broadcast %206 : vector<1x128xf32> to vector<16x128xf32>
    %208 = arith.addf %205, %207 : vector<16x128xf32>
    %cst_120 = arith.constant 0.000000e+00 : f32
    %209 = vector.broadcast %cst_120 : f32 to vector<16x128xf32>
    %210 = arith.maximumf %208, %209 : vector<16x128xf32>
    %211 = arith.truncf %210 : vector<16x128xf32> to vector<16x128xbf16>
    %c0_121 = arith.constant 0 : index
    %c0_122 = arith.constant 0 : index
    %212 = vector.load %arg14[%c0_121, %c0_122] : memref<128x512xbf16, #tpu.memory_space<vmem>>, vector<128x512xbf16>
    %cst_123 = arith.constant dense<0.000000e+00> : vector<16x512xf32>
    %213 = tpu.matmul %211, %212, %cst_123 {dimension_numbers = #tpu.dot_dimension_numbers<[1], [0], [0], [1], [0, 0, 1, 1], [], []>} : vector<16x128xbf16>, vector<128x512xbf16>, vector<16x512xf32> -> vector<16x512xf32>
    %c0_124 = arith.constant 0 : index
    %c5888 = arith.constant 5888 : index
    %214 = vector.load %arg3[%c0_124, %c5888] : memref<1x8064xf32, #tpu.memory_space<vmem>>, vector<1x512xf32>
    %215 = vector.broadcast %214 : vector<1x512xf32> to vector<16x512xf32>
    %216 = arith.addf %213, %215 : vector<16x512xf32>
    %217 = arith.addf %202, %216 : vector<16x512xf32>
    %c0_125 = arith.constant 0 : index
    %c6400 = arith.constant 6400 : index
    %218 = vector.load %arg3[%c0_125, %c6400] : memref<1x8064xf32, #tpu.memory_space<vmem>>, vector<1x512xf32>
    %c0_126 = arith.constant 0 : index
    %c6912 = arith.constant 6912 : index
    %219 = vector.load %arg3[%c0_126, %c6912] : memref<1x8064xf32, #tpu.memory_space<vmem>>, vector<1x512xf32>
    %cst_127 = arith.constant dense<0.000000e+00> : vector<16xf32>
    %220 = vector.multi_reduction <add>, %217, %cst_127 [1] : vector<16x512xf32> to vector<16xf32>
    %221 = vector.shape_cast %220 : vector<16xf32> to vector<16x1xf32>
    %cst_128 = arith.constant 5.120000e+02 : f32
    %222 = vector.broadcast %cst_128 : f32 to vector<16x1xf32>
    %223 = arith.divf %221, %222 : vector<16x1xf32>
    %224 = vector.broadcast %223 : vector<16x1xf32> to vector<16x512xf32>
    %225 = arith.subf %217, %224 : vector<16x512xf32>
    %226 = arith.mulf %225, %225 : vector<16x512xf32>
    %cst_129 = arith.constant dense<0.000000e+00> : vector<16xf32>
    %227 = vector.multi_reduction <add>, %226, %cst_129 [1] : vector<16x512xf32> to vector<16xf32>
    %228 = vector.shape_cast %227 : vector<16xf32> to vector<16x1xf32>
    %cst_130 = arith.constant 5.120000e+02 : f32
    %229 = vector.broadcast %cst_130 : f32 to vector<16x1xf32>
    %230 = arith.divf %228, %229 : vector<16x1xf32>
    %cst_131 = arith.constant 9.99999974E-6 : f32
    %231 = vector.broadcast %cst_131 : f32 to vector<16x1xf32>
    %232 = arith.addf %230, %231 : vector<16x1xf32>
    %233 = math.rsqrt %232 : vector<16x1xf32>
    %234 = vector.broadcast %233 : vector<16x1xf32> to vector<16x512xf32>
    %235 = arith.mulf %225, %234 : vector<16x512xf32>
    %236 = vector.broadcast %218 : vector<1x512xf32> to vector<16x512xf32>
    %237 = arith.mulf %235, %236 : vector<16x512xf32>
    %238 = vector.broadcast %219 : vector<1x512xf32> to vector<16x512xf32>
    %239 = arith.addf %237, %238 : vector<16x512xf32>
    %240 = arith.truncf %239 : vector<16x512xf32> to vector<16x512xbf16>
    %c0_132 = arith.constant 0 : index
    %c0_133 = arith.constant 0 : index
    %241 = vector.load %arg15[%c0_132, %c0_133] : memref<512x512xbf16, #tpu.memory_space<vmem>>, vector<512x512xbf16>
    %cst_134 = arith.constant dense<0.000000e+00> : vector<16x512xf32>
    %242 = tpu.matmul %240, %241, %cst_134 {dimension_numbers = #tpu.dot_dimension_numbers<[1], [0], [0], [1], [0, 0, 1, 1], [], []>} : vector<16x512xbf16>, vector<512x512xbf16>, vector<16x512xf32> -> vector<16x512xf32>
    %c0_135 = arith.constant 0 : index
    %c7424 = arith.constant 7424 : index
    %243 = vector.load %arg3[%c0_135, %c7424] : memref<1x8064xf32, #tpu.memory_space<vmem>>, vector<1x512xf32>
    %244 = vector.broadcast %243 : vector<1x512xf32> to vector<16x512xf32>
    %245 = arith.addf %242, %244 : vector<16x512xf32>
    %246 = arith.truncf %239 : vector<16x512xf32> to vector<16x512xbf16>
    %c0_136 = arith.constant 0 : index
    %c0_137 = arith.constant 0 : index
    %247 = vector.load %arg16[%c0_136, %c0_137] : memref<512x512xbf16, #tpu.memory_space<vmem>>, vector<512x512xbf16>
    %cst_138 = arith.constant dense<0.000000e+00> : vector<16x512xf32>
    %248 = tpu.matmul %246, %247, %cst_138 {dimension_numbers = #tpu.dot_dimension_numbers<[1], [0], [0], [1], [0, 0, 1, 1], [], []>} : vector<16x512xbf16>, vector<512x512xbf16>, vector<16x512xf32> -> vector<16x512xf32>
    %c0_139 = arith.constant 0 : index
    %c0_140 = arith.constant 0 : index
    %249 = vector.load %arg5[%c0_139, %c0_140] : memref<16x16xf32, #tpu.memory_space<vmem>>, vector<16x16xf32>
    %cst_141 = arith.constant dense<0.000000e+00> : vector<16x512xf32>
    %250 = tpu.matmul %249, %248, %cst_141 {dimension_numbers = #tpu.dot_dimension_numbers<[1], [0], [0], [1], [0, 0, 1, 1], [], []>} : vector<16x16xf32>, vector<16x512xf32>, vector<16x512xf32> -> vector<16x512xf32>
    %251 = arith.addf %245, %250 : vector<16x512xf32>
    %252 = math.tanh %251 : vector<16x512xf32>
    %253 = arith.truncf %252 : vector<16x512xf32> to vector<16x512xbf16>
    %c0_142 = arith.constant 0 : index
    %c0_143 = arith.constant 0 : index
    %254 = vector.load %arg17[%c0_142, %c0_143] : memref<512x128xbf16, #tpu.memory_space<vmem>>, vector<512x128xbf16>
    %cst_144 = arith.constant dense<0.000000e+00> : vector<16x128xf32>
    %255 = tpu.matmul %253, %254, %cst_144 {dimension_numbers = #tpu.dot_dimension_numbers<[1], [0], [0], [1], [0, 0, 1, 1], [], []>} : vector<16x512xbf16>, vector<512x128xbf16>, vector<16x128xf32> -> vector<16x128xf32>
    %256 = vector.extract_strided_slice %255 {offsets = [0, 0], sizes = [16, 1], strides = [1, 1]} : vector<16x128xf32> to vector<16x1xf32>
    %257 = vector.extract_strided_slice %256 {offsets = [0, 0], sizes = [8, 1], strides = [1, 1]} : vector<16x1xf32> to vector<8x1xf32>
    %cst_145 = arith.constant dense<0xFF800000> : vector<1xf32>
    %258 = vector.multi_reduction <maximumf>, %257, %cst_145 [0] : vector<8x1xf32> to vector<1xf32>
    %259 = vector.shape_cast %258 : vector<1xf32> to vector<1x1xf32>
    %260 = vector.broadcast %259 : vector<1x1xf32> to vector<8x1xf32>
    %261 = arith.subf %257, %260 : vector<8x1xf32>
    %262 = math.exp %261 : vector<8x1xf32>
    %cst_146 = arith.constant dense<0.000000e+00> : vector<1xf32>
    %263 = vector.multi_reduction <add>, %262, %cst_146 [0] : vector<8x1xf32> to vector<1xf32>
    %264 = vector.shape_cast %263 : vector<1xf32> to vector<1x1xf32>
    %265 = tpu.reciprocal %264 {approx = true} : vector<1x1xf32> -> vector<1x1xf32>
    %266 = vector.broadcast %265 : vector<1x1xf32> to vector<8x1xf32>
    %267 = arith.mulf %262, %266 : vector<8x1xf32>
    %c0_147 = arith.constant 0 : index
    %c0_148 = arith.constant 0 : index
    %268 = vector.load %arg23[%c0_147, %c0_148] : memref<16x1xf32, #tpu.memory_space<vmem>>, vector<8x1xf32>
    tpu.vector_store %arg23[%c0_147, %c0_148], %267 {strides = array<i32>} : memref<16x1xf32, #tpu.memory_space<vmem>>, vector<8x1xf32>,
    %269 = vector.extract_strided_slice %256 {offsets = [8, 0], sizes = [8, 1], strides = [1, 1]} : vector<16x1xf32> to vector<8x1xf32>
    %cst_149 = arith.constant dense<0xFF800000> : vector<1xf32>
    %270 = vector.multi_reduction <maximumf>, %269, %cst_149 [0] : vector<8x1xf32> to vector<1xf32>
    %271 = vector.shape_cast %270 : vector<1xf32> to vector<1x1xf32>
    %272 = vector.broadcast %271 : vector<1x1xf32> to vector<8x1xf32>
    %273 = arith.subf %269, %272 : vector<8x1xf32>
    %274 = math.exp %273 : vector<8x1xf32>
    %cst_150 = arith.constant dense<0.000000e+00> : vector<1xf32>
    %275 = vector.multi_reduction <add>, %274, %cst_150 [0] : vector<8x1xf32> to vector<1xf32>
    %276 = vector.shape_cast %275 : vector<1xf32> to vector<1x1xf32>
    %277 = tpu.reciprocal %276 {approx = true} : vector<1x1xf32> -> vector<1x1xf32>
    %278 = vector.broadcast %277 : vector<1x1xf32> to vector<8x1xf32>
    %279 = arith.mulf %274, %278 : vector<8x1xf32>
    %c8 = arith.constant 8 : index
    %c0_151 = arith.constant 0 : index
    %280 = vector.load %arg23[%c8, %c0_151] : memref<16x1xf32, #tpu.memory_space<vmem>>, vector<8x1xf32>
    tpu.vector_store %arg23[%c8, %c0_151], %279 {strides = array<i32>} : memref<16x1xf32, #tpu.memory_space<vmem>>, vector<8x1xf32>,
    %c0_152 = arith.constant 0 : index
    %c0_153 = arith.constant 0 : index
    %281 = vector.load %arg6[%c0_152, %c0_153] : memref<2x16xf32, #tpu.memory_space<vmem>>, vector<2x16xf32>
    %c0_154 = arith.constant 0 : index
    %c0_155 = arith.constant 0 : index
    %282 = vector.load %arg23[%c0_154, %c0_155] : memref<16x1xf32, #tpu.memory_space<vmem>>, vector<16x1xf32>
    %283 = vector.broadcast %282 : vector<16x1xf32> to vector<16x512xf32>
    %284 = arith.mulf %283, %239 : vector<16x512xf32>
    %cst_156 = arith.constant dense<0.000000e+00> : vector<2x512xf32>
    %285 = tpu.matmul %281, %284, %cst_156 {dimension_numbers = #tpu.dot_dimension_numbers<[1], [0], [0], [1], [0, 0, 1, 1], [], []>} : vector<2x16xf32>, vector<16x512xf32>, vector<2x512xf32> -> vector<2x512xf32>
    %286 = arith.truncf %285 : vector<2x512xf32> to vector<2x512xbf16>
    %c0_157 = arith.constant 0 : index
    %c0_158 = arith.constant 0 : index
    %287 = vector.load %arg18[%c0_157, %c0_158] : memref<512x128xbf16, #tpu.memory_space<vmem>>, vector<512x128xbf16>
    %cst_159 = arith.constant dense<0.000000e+00> : vector<2x128xf32>
    %288 = tpu.matmul %286, %287, %cst_159 {dimension_numbers = #tpu.dot_dimension_numbers<[1], [0], [0], [1], [0, 0, 1, 1], [], []>} : vector<2x512xbf16>, vector<512x128xbf16>, vector<2x128xf32> -> vector<2x128xf32>
    %c0_160 = arith.constant 0 : index
    %c7936 = arith.constant 7936 : index
    %289 = vector.load %arg3[%c0_160, %c7936] : memref<1x8064xf32, #tpu.memory_space<vmem>>, vector<1x128xf32>
    %290 = vector.broadcast %289 : vector<1x128xf32> to vector<2x128xf32>
    %291 = arith.addf %288, %290 : vector<2x128xf32>
    %c0_161 = arith.constant 0 : index
    %c0_162 = arith.constant 0 : index
    %c0_163 = arith.constant 0 : index
    %292 = vector.load %arg19[%c0_161, %c0_162, %c0_163] : memref<1x2x128xf32, #tpu.memory_space<vmem>>, vector<1x2x128xf32>
    %293 = vector.shape_cast %292 : vector<1x2x128xf32> to vector<2x128xf32>
    %294 = vector.shape_cast %291 : vector<2x128xf32> to vector<1x2x128xf32>
    tpu.vector_store %arg19[%c0_161, %c0_162, %c0_163], %294 {strides = array<i32>} : memref<1x2x128xf32, #tpu.memory_space<vmem>>, vector<1x2x128xf32>,
    return
  }
  func.func @transform_0(%arg0: i32) -> (i32, i32) {
    %c0_i32 = arith.constant 0 : i32
    %c0_i32_0 = arith.constant 0 : i32
    return %arg0, %c0_i32 : i32, i32
  }
  func.func @transform_1(%arg0: i32) -> (i32, i32) {
    %c0_i32 = arith.constant 0 : i32
    %c0_i32_0 = arith.constant 0 : i32
    %c0_i32_1 = arith.constant 0 : i32
    return %c0_i32, %c0_i32_0 : i32, i32
  }
  func.func @transform_2(%arg0: i32) -> (i32, i32) {
    %c0_i32 = arith.constant 0 : i32
    %c0_i32_0 = arith.constant 0 : i32
    %c0_i32_1 = arith.constant 0 : i32
    return %c0_i32, %c0_i32_0 : i32, i32
  }
  func.func @transform_3(%arg0: i32) -> (i32, i32) {
    %c0_i32 = arith.constant 0 : i32
    %c0_i32_0 = arith.constant 0 : i32
    %c0_i32_1 = arith.constant 0 : i32
    return %c0_i32, %c0_i32_0 : i32, i32
  }
  func.func @transform_4(%arg0: i32) -> (i32, i32) {
    %c0_i32 = arith.constant 0 : i32
    %c0_i32_0 = arith.constant 0 : i32
    %c0_i32_1 = arith.constant 0 : i32
    return %c0_i32, %c0_i32_0 : i32, i32
  }
  func.func @transform_5(%arg0: i32) -> (i32, i32) {
    %c0_i32 = arith.constant 0 : i32
    %c0_i32_0 = arith.constant 0 : i32
    %c0_i32_1 = arith.constant 0 : i32
    return %c0_i32, %c0_i32_0 : i32, i32
  }
  func.func @transform_6(%arg0: i32) -> (i32, i32) {
    %c0_i32 = arith.constant 0 : i32
    %c0_i32_0 = arith.constant 0 : i32
    %c0_i32_1 = arith.constant 0 : i32
    return %c0_i32, %c0_i32_0 : i32, i32
  }
  func.func @transform_7(%arg0: i32) -> (i32, i32) {
    %c0_i32 = arith.constant 0 : i32
    %c0_i32_0 = arith.constant 0 : i32
    %c0_i32_1 = arith.constant 0 : i32
    return %c0_i32, %c0_i32_0 : i32, i32
  }
  func.func @transform_8(%arg0: i32) -> (i32, i32) {
    %c0_i32 = arith.constant 0 : i32
    %c0_i32_0 = arith.constant 0 : i32
    %c0_i32_1 = arith.constant 0 : i32
    return %c0_i32, %c0_i32_0 : i32, i32
  }
  func.func @transform_9(%arg0: i32) -> (i32, i32) {
    %c0_i32 = arith.constant 0 : i32
    %c0_i32_0 = arith.constant 0 : i32
    %c0_i32_1 = arith.constant 0 : i32
    return %c0_i32, %c0_i32_0 : i32, i32
  }
  func.func @transform_10(%arg0: i32) -> (i32, i32) {
    %c0_i32 = arith.constant 0 : i32
    %c0_i32_0 = arith.constant 0 : i32
    %c0_i32_1 = arith.constant 0 : i32
    return %c0_i32, %c0_i32_0 : i32, i32
  }
  func.func @transform_11(%arg0: i32) -> (i32, i32) {
    %c0_i32 = arith.constant 0 : i32
    %c0_i32_0 = arith.constant 0 : i32
    %c0_i32_1 = arith.constant 0 : i32
    return %c0_i32, %c0_i32_0 : i32, i32
  }
  func.func @transform_12(%arg0: i32) -> (i32, i32) {
    %c0_i32 = arith.constant 0 : i32
    %c0_i32_0 = arith.constant 0 : i32
    %c0_i32_1 = arith.constant 0 : i32
    return %c0_i32, %c0_i32_0 : i32, i32
  }
  func.func @transform_13(%arg0: i32) -> (i32, i32) {
    %c0_i32 = arith.constant 0 : i32
    %c0_i32_0 = arith.constant 0 : i32
    %c0_i32_1 = arith.constant 0 : i32
    return %c0_i32, %c0_i32_0 : i32, i32
  }
  func.func @transform_14(%arg0: i32) -> (i32, i32) {
    %c0_i32 = arith.constant 0 : i32
    %c0_i32_0 = arith.constant 0 : i32
    %c0_i32_1 = arith.constant 0 : i32
    return %c0_i32, %c0_i32_0 : i32, i32
  }
  func.func @transform_15(%arg0: i32) -> (i32, i32) {
    %c0_i32 = arith.constant 0 : i32
    %c0_i32_0 = arith.constant 0 : i32
    %c0_i32_1 = arith.constant 0 : i32
    return %c0_i32, %c0_i32_0 : i32, i32
  }
  func.func @transform_16(%arg0: i32) -> (i32, i32) {
    %c0_i32 = arith.constant 0 : i32
    %c0_i32_0 = arith.constant 0 : i32
    %c0_i32_1 = arith.constant 0 : i32
    return %c0_i32, %c0_i32_0 : i32, i32
  }
  func.func @transform_17(%arg0: i32) -> (i32, i32) {
    %c0_i32 = arith.constant 0 : i32
    %c0_i32_0 = arith.constant 0 : i32
    %c0_i32_1 = arith.constant 0 : i32
    return %c0_i32, %c0_i32_0 : i32, i32
  }
  func.func @transform_18(%arg0: i32) -> (i32, i32, i32) {
    %c0_i32 = arith.constant 0 : i32
    %c0_i32_0 = arith.constant 0 : i32
    %c0_i32_1 = arith.constant 0 : i32
    return %arg0, %c0_i32, %c0_i32_0 : i32, i32, i32
  }
}

</mosaic_0001>

<bundles_post_ra>
// kernel: transformer_attention_convnet.1
= control target key start
LH: loop header
LB: loop body
LE: loop exit
PB: predicated region body
PF: predicated region fallthrough
CT: control target
= control target key end

     0   :  { %s25269_s0 = inlined_call_operand.vmem [shape: f32[32,480], index: 0, kind: input, shape index: {}]   ;;  %s25270_s1 = inlined_call_operand.vmem [shape: f32[16,512], index: 1, kind: input, shape index: {}]   ;;  %s25271_s2 = inlined_call_operand.vmem [shape: f32[1,8064], index: 2, kind: input, shape index: {}]   ;;  %s25272_s3 = inlined_call_operand.vmem [shape: f32[128,128], index: 3, kind: input, shape index: {}]   ;;  %s25273_s4 = inlined_call_operand.hbm [shape: f32[16,16], index: 4, kind: input, shape index: {}]   ;;  %s25274_s5 = inlined_call_operand.vmem [shape: f32[2,16], index: 5, kind: input, shape index: {}]   ;;  %s25275_s6 = inlined_call_operand.hbm [shape: bf16[480,640], index: 6, kind: input, shape index: {}]   ;;  %s25276_s7 = inlined_call_operand.hbm [shape: bf16[640,768], index: 7, kind: input, shape index: {}]   ;;  %s25277_s8 = inlined_call_operand.hbm [shape: bf16[768,768], index: 8, kind: input, shape index: {}]   ;;  %s25278_s9 = inlined_call_operand.hbm [shape: bf16[768,512], index: 9, kind: input, shape index: {}]   ;;  %s25279_s10 = inlined_call_operand.vmem [shape: bf16[512,1536], index: 10, kind: input, shape index: {}]   ;;  %s25280_s11 = inlined_call_operand.hbm [shape: bf16[512,512], index: 11, kind: input, shape index: {}]   ;;  %s25281_s12 = inlined_call_operand.vmem [shape: bf16[512,128], index: 12, kind: input, shape index: {}]   ;;  %s25282_s13 = inlined_call_operand.hbm [shape: bf16[128,512], index: 13, kind: input, shape index: {}]   ;;  %s25283_s14 = inlined_call_operand.hbm [shape: bf16[512,512], index: 14, kind: input, shape index: {}]   ;;  %s25284_s15 = inlined_call_operand.hbm [shape: bf16[512,512], index: 15, kind: input, shape index: {}]   ;;  %s25285_s16 = inlined_call_operand.hbm [shape: bf16[512,128], index: 16, kind: input, shape index: {}]   ;;  %s25286_s17 = inlined_call_operand.vmem [shape: bf16[512,128], index: 17, kind: input, shape index: {}]   ;;  %s25287_s18 = inlined_call_operand.hbm [shape: f32[2,2,128], index: 18, kind: output, shape index: {}]  }
   0x1   :  { %25309 = sst [smem:[#allocation39_spill]] %s25269_s0 }
   0x2   :  { %25310 = sst [smem:[#allocation40_spill]] %s25270_s1 }
   0x3   :  { %25311 = sst [smem:[#allocation41_spill]] %s25271_s2 }
   0x4   :  { %25312 = sst [smem:[#allocation42_spill]] %s25274_s5 }
   0x5   :  { %25313 = sst [smem:[#allocation43_spill]] %s25275_s6 }
   0x6   :  { %25314 = sst [smem:[#allocation44_spill]] %s25277_s8 }
   0x7   :  { %25315 = sst [smem:[#allocation45_spill]] %s25280_s11 }
   0x8   :  { %25316 = sst [smem:[#allocation46_spill]] %s25287_s18 }
   0x9   :  { %23 = vsyncpa [#allocation7], 0 }
   0xa   :  { %24 = vsyncpa [#allocation10], 0 }
   0xb   :  { %25 = vsyncpa [#allocation13], 0 }
   0xc   :  { %26 = vsyncpa [#allocation16], 0 }
   0xd   :  { %27 = vsyncpa [#allocation19], 0 }
   0xe   :  { %28 = vsyncpa [#allocation22], 0 }
   0xf   :  { %29 = vsyncpa [#allocation8], 0 }
  0x10   :  { %31 = vsyncpa [#allocation8 + $0x1], 0  ;;  %s22580_s27 = smov 0   ;;  %s22582_s28 = smov 0  }
  0x11   :  { %s22584_s29 = smov 0   ;;  %s22586_s30 = smov 0  }
  0x12 LB: > { %25317 = sst [smem:[#allocation31_spill]] %s22447_s27  ;;  %s22601_s0 = sadd.s32 4294967295, %s22459_s30   ;;  %s22459_s30 = sphi %s22586_s30, %s25363_s30   ;;  %s22455_s29 = sphi %s22584_s29, %s25366_s29   ;;  %s22451_s28 = sphi %s22582_s28, %s25365_s28   ;;  %s22447_s27 = sphi %s22580_s27, %s25364_s27  }
  0x13   : > { %25318 = sst [smem:[#allocation32_spill]] %s22451_s28  ;;  %s16823_s19 = sadd.s32 4294967294, %s22459_s30  }
  0x14   : > { %25319 = sst [smem:[#allocation33_spill]] %s22455_s29  ;;  %s22605_s1 = sadd.s32 1, %s22459_s30  }
  0x15   : > { %25320 = sst [smem:[#allocation34_spill]] %s22459_s30  ;;  %s427_s20 = sadd.s32 1, %s22455_s29 }
  0x16   : > { %25321 = sst [smem:[#allocation35_spill]] %s22605_s1  ;;  %s424_s21 = ssub.s32 %s22459_s30, %s22605_s1 }
  0x17   : > { %p437_p0 = scmp.ne.s32.totalorder %s22455_s29, %s22451_s28  ;;  %p425_p1 = scmp.eq.s32.totalorder %s424_s21, 0 }
  0x18   : > { %p438_p2 = scmp.eq.s32.totalorder %s22601_s0, 1  ;;  %p443_p3 = scmp.ne.s32.totalorder %s22451_s28, %s22447_s27 }
  0x19   : > { %p444_p4 = scmp.eq.s32.totalorder %s16823_s19, 1  ;;  %p16824_p7 = scmp.ge.s32.totalorder %s22459_s30, 1 }
  0x1a   : > { %s22616_s22 = scalar_select %p425_p1, %s22455_s29, %s427_s20  }
  0x1b   : > { %p22618_p5 = por %p438_p2, %p437_p0  ;;  %p22622_p6 = por %p444_p4, %p443_p3 }
  0x1c   : > { %25322 = sst [smem:[#allocation36_spill]] %s22616_s22  ;;  %p451_p8 = scmp.lt.s32.totalorder %s22459_s30, 3 }
  0x1d   : > { %s25323_s2 = scalar_select %p22618_p5, 1, 0 }
  0x1e   : > { %s25325_s23 = scalar_select %p22622_p6, 1, 0 }
  0x1f   : > { %25324 = sst [smem:[#allocation37_spill]] %s25323_s2  ;;  %p25297_p9 = scmp.eq.s32.totalorder %s22601_s0, 0 }
  0x20   : > { %25326 = sst [smem:[#allocation38_spill]] %s25325_s23  ;;  %p22629_p10 = pnand %p16824_p7, %p451_p8 }
  0x21   : > { %s22461_s25 = smov [#allocation9]   ;;  %s22462_s20 = smov [#allocation12]  }
  0x22   : > { %s25327_s24 = scalar_select %p22629_p10, 1, 0 }
  0x23   : > { %s488_s26 = sshll.u32 %s22461_s25, 4  ;;  %p19213_p11 = pneg %p22629_p10  ;;  %s489_s26 = int_to_ptr.vmem [resolvable:$true] %s488_s26 }
  0x24   : > { %s514_s21 = sshll.u32 %s22462_s20, 4  ;;  %s25329_s6 = sld [smem:[#allocation43_spill]]  ;;  %s515_s21 = int_to_ptr.vmem [resolvable:$true] %s514_s21 }
  0x25   : > { %p22637_p12 = pnand %p25297_p9, %p19213_p11 }
  0x27   : > { %p22649_p0 = pneg %p22637_p12 }
  0x2a   : > { %s22093_s1 = scalar_lea.hbm %s25329_s6, 19200 }
  0x2b   : > { %p22094_p13 = scmp.ne.s32.totalorder %s25329_s6, %s22093_s1  ;;  %p22100_p3 = scmp.lt.u32.totalorder %s22093_s1, %s25329_s6 }
  0x2d   : > { %p22096_p1 = pnand %p22649_p0, %p22094_p13 }
  0x2f   : > { %p22097_p2 = pneg %p22096_p1 }
  0x31   : > { %p22102_p4 = pnand %p22100_p3, %p22097_p2 }
  0x33   : > { %22105 = shalt.err (!%p22102_p4)
}
  0x34   : > { %s22106_s29 = scalar_lea.vmem %s489_s26, 19200  ;;  %p22114_p9 = scmp.lt.s32.totalorder %s489_s26, %s489_s26 }
  0x35   : > { %p22107_p7 = scmp.ne.s32.totalorder %s489_s26, %s22106_s29  ;;  %p22115_p6 = scmp.lt.s32.totalorder %s22106_s29, %s22106_s29 }
  0x37   : > { %p22109_p8 = pnand %p22107_p7, %p22649_p0  ;;  %p22116_p5 = por %p22115_p6, %p22114_p9 }
  0x39   : > { %p22110_p11 = pneg %p22109_p8 }
  0x3b   : > { %p22117_p10 = pnand %p22116_p5, %p22110_p11 }
  0x3d   : > { %22120 = shalt.err (!%p22117_p10)
}
  0x3e   : > { %s22463_s27 = smov 320   ;;  %s22464_s22 = smov 20  }
  0x3f   : > { %19219 = dma.hbm_to_vmem [thread:$0]  (!%p22637_p12), %s25329_s6, 19200, %s489_s26, [#allocation10], %s22463_s27, %s22463_s27, %s22464_s22  }
  0x40   : > { %s25331_s8 = sld [smem:[#allocation44_spill]] }
  0x46   : > { %s22121_s20 = scalar_lea.hbm %s25331_s8, 36864 }
  0x47   : > { %p22122_p6 = scmp.ne.s32.totalorder %s25331_s8, %s22121_s20  ;;  %p22128_p10 = scmp.lt.u32.totalorder %s22121_s20, %s25331_s8 }
  0x49   : > { %p22124_p5 = pnand %p22122_p6, %p22649_p0 }
  0x4b   : > { %p22125_p9 = pneg %p22124_p5 }
  0x4d   : > { %p22130_p13 = pnand %p22128_p10, %p22125_p9 }
  0x4f   : > { %22133 = shalt.err (!%p22130_p13)
}
  0x50   : > { %s22134_s18 = scalar_lea.vmem %s515_s21, 36864  ;;  %p22142_p4 = scmp.lt.s32.totalorder %s515_s21, %s515_s21 }
  0x51   : > { %p22135_p1 = scmp.ne.s32.totalorder %s515_s21, %s22134_s18  ;;  %p22143_p7 = scmp.lt.s32.totalorder %s22134_s18, %s22134_s18 }
  0x53   : > { %p22137_p2 = pnand %p22135_p1, %p22649_p0  ;;  %p22144_p8 = por %p22143_p7, %p22142_p4 }
  0x55   : > { %p22138_p3 = pneg %p22137_p2 }
  0x57   : > { %p22145_p11 = pnand %p22144_p8, %p22138_p3 }
  0x59   : > { %22148 = shalt.err (!%p22145_p11)
}
  0x5a   : > { %s25303_s28 = smov 384   ;;  %s25304_s2 = smov 24  }
  0x5b   : > { %19225 = dma.hbm_to_vmem [thread:$0]  (!%p22637_p12), %s25331_s8, 36864, %s515_s21, [#allocation13], %s25303_s28, %s25303_s28, %s25304_s2  }
  0x5c   : > { %s22467_s27 = smov [#allocation15]   ;;  %s22468_s30 = smov [#allocation18]  }
  0x5d   : > { %s543_s22 = sshll.u32 %s22467_s27, 4  ;;  %s572_s1 = sshll.u32 %s22468_s30, 4  ;;  %s544_s22 = int_to_ptr.vmem [resolvable:$true] %s543_s22  ;;  %s22686_s1 = int_to_ptr.vmem [resolvable:$true] %s572_s1 }
  0x5e   : > { %s25332_s11 = sld [smem:[#allocation45_spill]] }
  0x64   : > { %s22149_s29 = scalar_lea.hbm %s25332_s11, 16384 }
  0x65   : > { %p22150_p6 = scmp.ne.s32.totalorder %s25332_s11, %s22149_s29  ;;  %p22156_p10 = scmp.lt.u32.totalorder %s22149_s29, %s25332_s11 }
  0x67   : > { %p22152_p5 = pnand %p22150_p6, %p22649_p0 }
  0x69   : > { %p22153_p9 = pneg %p22152_p5 }
  0x6b   : > { %p22158_p13 = pnand %p22156_p10, %p22153_p9 }
  0x6d   : > { %22161 = shalt.err (!%p22158_p13)
}
  0x6e   : > { %s22162_s26 = scalar_lea.vmem %s544_s22, 16384  ;;  %p22170_p4 = scmp.lt.s32.totalorder %s544_s22, %s544_s22 }
  0x6f   : > { %p22163_p1 = scmp.ne.s32.totalorder %s544_s22, %s22162_s26  ;;  %p22171_p7 = scmp.lt.s32.totalorder %s22162_s26, %s22162_s26 }
  0x71   : > { %p22165_p2 = pnand %p22163_p1, %p22649_p0  ;;  %p22172_p8 = por %p22171_p7, %p22170_p4 }
  0x73   : > { %p22166_p3 = pneg %p22165_p2 }
  0x75   : > { %p22173_p11 = pnand %p22172_p8, %p22166_p3 }
  0x77   : > { %22176 = shalt.err (!%p22173_p11)
}
  0x78   : > { %s25305_s6 = smov 256   ;;  %s25307_s27 = smov 16  }
  0x79   : > { %19231 = dma.hbm_to_vmem [thread:$0]  (!%p22637_p12), %s25332_s11, 16384, %s544_s22, [#allocation16], %s25305_s6, %s25305_s6, %s25307_s27  }
  0x7a   : > { %s22177_s18 = scalar_lea.hbm %s25283_s14, 16384 }
  0x7b   : > { %p22178_p6 = scmp.ne.s32.totalorder %s25283_s14, %s22177_s18  ;;  %p22184_p10 = scmp.lt.u32.totalorder %s22177_s18, %s25283_s14 }
  0x7d   : > { %p22180_p5 = pnand %p22178_p6, %p22649_p0 }
  0x7f   : > { %p22181_p9 = pneg %p22180_p5 }
  0x81   : > { %p22186_p13 = pnand %p22184_p10, %p22181_p9 }
  0x83   : > { %22189 = shalt.err (!%p22186_p13)
}
  0x84   : > { %s22190_s22 = scalar_lea.vmem %s22686_s1, 16384  ;;  %p22198_p4 = scmp.lt.s32.totalorder %s22686_s1, %s22686_s1 }
  0x85   : > { %p22191_p1 = scmp.ne.s32.totalorder %s22686_s1, %s22190_s22  ;;  %p22199_p7 = scmp.lt.s32.totalorder %s22190_s22, %s22190_s22 }
  0x87   : > { %p22193_p2 = pnand %p22191_p1, %p22649_p0  ;;  %p22200_p8 = por %p22199_p7, %p22198_p4 }
  0x89   : > { %p22194_p3 = pneg %p22193_p2 }
  0x8b   : > { %p22201_p11 = pnand %p22200_p8, %p22194_p3 }
  0x8d   : > { %22204 = shalt.err (!%p22201_p11)
}
  0x8e   : > { %19237 = dma.hbm_to_vmem [thread:$0]  (!%p22637_p12), %s25283_s14, 16384, %s22686_s1, [#allocation19], %s25305_s6, %s25305_s6, %s25307_s27  }
  0x8f   : > { %s22471_s23 = smov [#allocation6]   ;;  %s22205_s5 = scalar_lea.hbm %s25273_s4, 256 }
  0x90   : > { %s472_s20 = sshll.u32 %s22471_s23, 4  ;;  %p22206_p6 = scmp.ne.s32.totalorder %s25273_s4, %s22205_s5  ;;  %s473_s20 = int_to_ptr.vmem [resolvable:$true] %s472_s20 }
  0x91   : > { %p22212_p10 = scmp.lt.u32.totalorder %s22205_s5, %s25273_s4 }
  0x92   : > { %p22208_p5 = pnand %p22206_p6, %p22649_p0 }
  0x94   : > { %p22209_p9 = pneg %p22208_p5 }
  0x96   : > { %p22214_p13 = pnand %p22212_p10, %p22209_p9 }
  0x98   : > { %22217 = shalt.err (!%p22214_p13)
}
  0x99   : > { %s22218_s1 = scalar_lea.vmem %s473_s20, 256  ;;  %p22226_p4 = scmp.lt.s32.totalorder %s473_s20, %s473_s20 }
  0x9a   : > { %p22219_p1 = scmp.ne.s32.totalorder %s473_s20, %s22218_s1  ;;  %p22227_p7 = scmp.lt.s32.totalorder %s22218_s1, %s22218_s1 }
  0x9c   : > { %p22221_p2 = pnand %p22219_p1, %p22649_p0  ;;  %p22228_p8 = por %p22227_p7, %p22226_p4 }
  0x9e   : > { %p22222_p3 = pneg %p22221_p2 }
  0xa0   : > { %p22229_p11 = pnand %p22228_p8, %p22222_p3 }
  0xa2   : > { %22232 = shalt.err (!%p22229_p11)
}
  0xa3   : > { %s22472_s28 = smov 128   ;;  %s22473_s30 = smov 8  }
  0xa4   : > { %19216 = dma.hbm_to_vmem [thread:$0]  (!%p22637_p12), %s25273_s4, 256, %s473_s20, [#allocation7], %s22472_s28, %s22472_s28, %s22473_s30  }
  0xa5   : > { %s22474_s29 = smov [#allocation11]   ;;  %s22475_s5 = smov [#allocation14]  }
  0xa6   : > { %s501_s18 = sshll.u32 %s22474_s29, 4  ;;  %s527_s21 = sshll.u32 %s22475_s5, 4  ;;  %s502_s18 = int_to_ptr.vmem [resolvable:$true] %s501_s18  ;;  %s528_s21 = int_to_ptr.vmem [resolvable:$true] %s527_s21 }
  0xa7   : > { %s22233_s1 = scalar_lea.hbm %s25276_s7, 30720 }
  0xa8   : > { %p22234_p6 = scmp.ne.s32.totalorder %s25276_s7, %s22233_s1  ;;  %p22240_p10 = scmp.lt.u32.totalorder %s22233_s1, %s25276_s7 }
  0xaa   : > { %p22236_p5 = pnand %p22234_p6, %p22649_p0 }
  0xac   : > { %p22237_p9 = pneg %p22236_p5 }
  0xae   : > { %p22242_p13 = pnand %p22240_p10, %p22237_p9 }
  0xb0   : > { %22245 = shalt.err (!%p22242_p13)
}
  0xb1   : > { %s22246_s20 = scalar_lea.vmem %s502_s18, 30720  ;;  %p22254_p4 = scmp.lt.s32.totalorder %s502_s18, %s502_s18 }
  0xb2   : > { %p22247_p1 = scmp.ne.s32.totalorder %s502_s18, %s22246_s20  ;;  %p22255_p7 = scmp.lt.s32.totalorder %s22246_s20, %s22246_s20 }
  0xb4   : > { %p22249_p2 = pnand %p22247_p1, %p22649_p0  ;;  %p22256_p8 = por %p22255_p7, %p22254_p4 }
  0xb6   : > { %p22250_p3 = pneg %p22249_p2 }
  0xb8   : > { %p22257_p11 = pnand %p22256_p8, %p22250_p3 }
  0xba   : > { %22260 = shalt.err (!%p22257_p11)
}
  0xbb   : > { %s25333_s6 = smov 24   ;;  %s25334_s27 = smov 384  }
  0xbc   : > { %19222 = dma.hbm_to_vmem [thread:$0]  (!%p22637_p12), %s25276_s7, 30720, %s502_s18, [#allocation10], %s25334_s27, %s25334_s27, %s25333_s6  }
  0xbd   : > { %s22261_s2 = scalar_lea.hbm %s25278_s9, 24576 }
  0xbe   : > { %p22262_p6 = scmp.ne.s32.totalorder %s25278_s9, %s22261_s2  ;;  %p22268_p10 = scmp.lt.u32.totalorder %s22261_s2, %s25278_s9 }
  0xc0   : > { %p22264_p5 = pnand %p22262_p6, %p22649_p0 }
  0xc2   : > { %p22265_p9 = pneg %p22264_p5 }
  0xc4   : > { %p22270_p13 = pnand %p22268_p10, %p22265_p9 }
  0xc6   : > { %22273 = shalt.err (!%p22270_p13)
}
  0xc7   : > { %s22274_s22 = scalar_lea.vmem %s528_s21, 24576  ;;  %p22282_p4 = scmp.lt.s32.totalorder %s528_s21, %s528_s21 }
  0xc8   : > { %p22275_p1 = scmp.ne.s32.totalorder %s528_s21, %s22274_s22  ;;  %p22283_p7 = scmp.lt.s32.totalorder %s22274_s22, %s22274_s22 }
  0xca   : > { %p22277_p2 = pnand %p22275_p1, %p22649_p0  ;;  %p22284_p8 = por %p22283_p7, %p22282_p4 }
  0xcc   : > { %p22278_p3 = pneg %p22277_p2 }
  0xce   : > { %p22285_p11 = pnand %p22284_p8, %p22278_p3 }
  0xd0   : > { %22288 = shalt.err (!%p22285_p11)
}
  0xd1   : > { %s25335_s18 = smov 16   ;;  %s25336_s1 = smov 256  }
  0xd2   : > { %19228 = dma.hbm_to_vmem [thread:$0]  (!%p22637_p12), %s25278_s9, 24576, %s528_s21, [#allocation13], %s25336_s1, %s25336_s1, %s25335_s18  }
  0xd3   : > { %s22476_s27 = smov [#allocation17]   ;;  %s22477_s11 = smov [#allocation20]  }
  0xd4   : > { %s559_s8 = sshll.u32 %s22476_s27, 4  ;;  %s585_s28 = sshll.u32 %s22477_s11, 4  ;;  %s560_s8 = int_to_ptr.vmem [resolvable:$true] %s559_s8  ;;  %s586_s28 = int_to_ptr.vmem [resolvable:$true] %s585_s28 }
  0xd5   : > { %s22289_s23 = scalar_lea.hbm %s25282_s13, 4096 }
  0xd6   : > { %p22290_p6 = scmp.ne.s32.totalorder %s25282_s13, %s22289_s23  ;;  %p22296_p10 = scmp.lt.u32.totalorder %s22289_s23, %s25282_s13 }
  0xd8   : > { %p22292_p5 = pnand %p22290_p6, %p22649_p0 }
  0xda   : > { %p22293_p9 = pneg %p22292_p5 }
  0xdc   : > { %p22298_p13 = pnand %p22296_p10, %p22293_p9 }
  0xde   : > { %22301 = shalt.err (!%p22298_p13)
}
  0xdf   : > { %s22302_s21 = scalar_lea.vmem %s560_s8, 4096  ;;  %p22310_p4 = scmp.lt.s32.totalorder %s560_s8, %s560_s8 }
  0xe0   : > { %p22303_p1 = scmp.ne.s32.totalorder %s560_s8, %s22302_s21  ;;  %p22311_p7 = scmp.lt.s32.totalorder %s22302_s21, %s22302_s21 }
  0xe2   : > { %p22305_p2 = pnand %p22303_p1, %p22649_p0  ;;  %p22312_p8 = por %p22311_p7, %p22310_p4 }
  0xe4   : > { %p22306_p3 = pneg %p22305_p2 }
  0xe6   : > { %p22313_p11 = pnand %p22312_p8, %p22306_p3 }
  0xe8   : > { %22316 = shalt.err (!%p22313_p11)
}
  0xe9   : > { %19234 = dma.hbm_to_vmem [thread:$0]  (!%p22637_p12), %s25282_s13, 4096, %s560_s8, [#allocation16], %s25336_s1, %s25336_s1, %s25335_s18  }
  0xea   : > { %s22317_s30 = scalar_lea.hbm %s25284_s15, 16384 }
  0xeb   : > { %p22318_p6 = scmp.ne.s32.totalorder %s25284_s15, %s22317_s30  ;;  %p22324_p10 = scmp.lt.u32.totalorder %s22317_s30, %s25284_s15 }
  0xed   : > { %p22320_p5 = pnand %p22318_p6, %p22649_p0 }
  0xef   : > { %p22321_p9 = pneg %p22320_p5 }
  0xf1   : > { %p22326_p13 = pnand %p22324_p10, %p22321_p9 }
  0xf3   : > { %22329 = shalt.err (!%p22326_p13)
}
  0xf4   : > { %s22330_s26 = scalar_lea.vmem %s586_s28, 16384  ;;  %p22338_p4 = scmp.lt.s32.totalorder %s586_s28, %s586_s28 }
  0xf5   : > { %p22331_p1 = scmp.ne.s32.totalorder %s586_s28, %s22330_s26  ;;  %p22339_p7 = scmp.lt.s32.totalorder %s22330_s26, %s22330_s26 }
  0xf7   : > { %p22333_p2 = pnand %p22331_p1, %p22649_p0  ;;  %p22340_p8 = por %p22339_p7, %p22338_p4 }
  0xf9   : > { %p22334_p3 = pneg %p22333_p2 }
  0xfb   : > { %p22341_p11 = pnand %p22340_p8, %p22334_p3 }
  0xfd   : > { %22344 = shalt.err (!%p22341_p11)
}
  0xfe   : > { %19240 = dma.hbm_to_vmem [thread:$0]  (!%p22637_p12), %s25284_s15, 16384, %s586_s28, [#allocation19], %s25336_s1, %s25336_s1, %s25335_s18  }
  0xff   : > { %s22478_s21 = smov [#allocation21]   ;;  %s22345_s11 = scalar_lea.hbm %s25285_s16, 4096 }
 0x100   : > { %s598_s20 = sshll.u32 %s22478_s21, 4  ;;  %p22346_p6 = scmp.ne.s32.totalorder %s25285_s16, %s22345_s11  ;;  %s599_s20 = int_to_ptr.vmem [resolvable:$true] %s598_s20 }
 0x101   : > { %p22352_p10 = scmp.lt.u32.totalorder %s22345_s11, %s25285_s16 }
 0x102   : > { %p22348_p5 = pnand %p22346_p6, %p22649_p0 }
 0x104   : > { %p22349_p9 = pneg %p22348_p5 }
 0x106   : > { %p22354_p13 = pnand %p22352_p10, %p22349_p9 }
 0x108   : > { %22357 = shalt.err (!%p22354_p13)
}
 0x109   : > { %s22358_s18 = scalar_lea.vmem %s599_s20, 4096  ;;  %p22366_p4 = scmp.lt.s32.totalorder %s599_s20, %s599_s20 }
 0x10a   : > { %p22359_p1 = scmp.ne.s32.totalorder %s599_s20, %s22358_s18  ;;  %p22367_p7 = scmp.lt.s32.totalorder %s22358_s18, %s22358_s18 }
 0x10c   : > { %p22361_p2 = pnand %p22359_p1, %p22649_p0  ;;  %p22368_p8 = por %p22367_p7, %p22366_p4 }
 0x10e   : > { %p22362_p3 = pneg %p22361_p2 }
 0x110   : > { %p22369_p11 = pnand %p22368_p8, %p22362_p3 }
 0x112   : > { %22372 = shalt.err (!%p22369_p11)
}
 0x113   : > { %s22479_s1 = smov 64   ;;  %s22480_s28 = smov 4  }
 0x114   : > { %19243 = dma.hbm_to_vmem [thread:$0]  (!%p22637_p12), %s25285_s16, 4096, %s599_s20, [#allocation22], %s22479_s1, %s22479_s1, %s22480_s28  }
 0x115   : > { %p25337_p6 = scmp.ne.s32.totalorder %s25327_s24, 0 }
 0x116   : > { %p25338_p5 = scmp.eq.s32.totalorder (!%p25337_p6), %s22601_s0, 0 }
 0x117   : > { %627 = sbr.rel (%p25337_p6) target bundleno = 6420 (0x1914), region = 92 }
 0x11e   : > { %22418 = dma.done.wait (%p25338_p5), [#allocation7], 256   ;;  %p25339_p0 = pmov %p25338_p5 }
 0x120   : > { %22420 = vsyncadd (%p25339_p0), [#allocation7], 4294967040  ;;  %p25340_p9 = pmov %p25339_p0 }
 0x121   : > { %p25341_p10 = pmov %p25339_p0 }
 0x122   : > { %22422 = dma.done.wait (%p25340_p9), [#allocation10], 49920  }
 0x123   : > { %22424 = vsyncadd (%p25341_p10), [#allocation10], 4294917376  ;;  %p25342_p13 = pmov %p25339_p0 }
 0x124   : > { %p25343_p12 = pmov %p25339_p0 }
 0x125   : > { %22426 = dma.done.wait (%p25342_p13), [#allocation13], 61440  }
 0x126   : > { %22428 = vsyncadd (%p25343_p12), [#allocation13], 4294905856  ;;  %p25344_p1 = pmov %p25339_p0 }
 0x127   : > { %p25345_p2 = pmov %p25339_p0 }
 0x128   : > { %22430 = dma.done.wait (%p25344_p1), [#allocation16], 20480  }
 0x129   : > { %22432 = vsyncadd (%p25345_p2), [#allocation16], 4294946816  ;;  %p25346_p3 = pmov %p25339_p0 }
 0x12a   : > { %p25347_p4 = pmov %p25339_p0 }
 0x12b   : > { %22434 = dma.done.wait (%p25346_p3), [#allocation19], 32768  }
 0x12c   : > { %22436 = vsyncadd (%p25347_p4), [#allocation19], 4294934528  ;;  %p25348_p7 = pmov %p25339_p0 }
 0x12d   : > { %p25349_p8 = pmov %p25339_p0 }
 0x12e   : > { %22438 = dma.done.wait (%p25348_p7), [#allocation22], 4096  }
 0x12f   : > { %22440 = vsyncadd (%p25349_p8), [#allocation22], 4294963200  ;;  %v22481_v0 = vmov 0   ;;  %v19326_v1 = vld [vmem:[#allocation9 + $0x4] ss:$20 sps:$4 sm:$0xff]   ;;  %s16848_s24 = sshll.u32 %s22601_s0, 1 }
 0x130   : > { %19324 = vset.pattern.permute.xlu1 %v22481_v0  ;;  %19325 = vset.pattern.permute.xlu0 %v22481_v0  ;;  %v19328_v2 = vld [vmem:[#allocation9 + $0xc] ss:$20 sps:$4 sm:$0xff]   ;;  %v19331_v4 = vld [vmem:[#allocation9 + $0x8] ss:$20 sps:$4 sm:$0xff]   ;;  %v19337_v8 = vld [vmem:[#allocation9 + $0x30] ss:$20 sps:$4 sm:$0xff]  }
 0x131   : > { %1729 = vmatprep.subr.bf16.mxu0 %v19326_v1  ;;  %v19330_v3 = vld [vmem:[#allocation9] ss:$20 sps:$4 sm:$0xff]   ;;  %1815 = vmatprep.subr.bf16.mxu1 %v19328_v2  ;;  %v19336_v7 = vld [vmem:[#allocation9 + $0x28] ss:$20 sps:$4 sm:$0xff]   ;;  %v19342_v11 = vld [vmem:[#allocation9 + $0x50] ss:$20 sps:$4 sm:$0xff]  }
 0x132   : > { %v19332_v5 = vld [vmem:[#allocation9 + $0x2c] ss:$20 sps:$4 sm:$0xff]   ;;  %1730 = vmatpush1.bf16.msra.mxu0 %v19330_v3  ;;  %1816 = vmatpush1.bf16.msra.mxu1 %v19331_v4  ;;  %v19334_v6 = vld [vmem:[#allocation9 + $0x34] ss:$20 sps:$4 sm:$0xff]   ;;  %v19340_v10 = vld [vmem:[#allocation9 + $0x5c] ss:$20 sps:$4 sm:$0xff]  }
 0x133   : > { %1731 = vmatprep.subr.bf16.mxu0 %v19332_v5  ;;  %1817 = vmatprep.subr.bf16.mxu1 %v19334_v6  ;;  %v19338_v9 = vld [vmem:[#allocation9 + $0x54] ss:$20 sps:$4 sm:$0xff]   ;;  %v19343_v12 = vld [vmem:[#allocation9 + $0x58] ss:$20 sps:$4 sm:$0xff]   ;;  %v19344_v13 = vld [vmem:[#allocation9 + $0x7c] ss:$20 sps:$4 sm:$0xff]  }
 0x134   : > { %v19346_v14 = vld [vmem:[#allocation9 + $0x84] ss:$20 sps:$4 sm:$0xff]   ;;  %v19349_v16 = vld [vmem:[#allocation9 + $0x80] ss:$20 sps:$4 sm:$0xff]   ;;  %v19355_v20 = vld [vmem:[#allocation9 + $0xa8] ss:$20 sps:$4 sm:$0xff]  }
 0x135   : > { %v19348_v15 = vld [vmem:[#allocation9 + $0x78] ss:$20 sps:$4 sm:$0xff]   ;;  %v19354_v19 = vld [vmem:[#allocation9 + $0xa0] ss:$20 sps:$4 sm:$0xff]   ;;  %v19360_v23 = vld [vmem:[#allocation9 + $0xc8] ss:$20 sps:$4 sm:$0xff]  }
 0x136   : > { %1732 = vmatpush1.bf16.msra.mxu0 %v19336_v7  ;;  %1818 = vmatpush1.bf16.msra.mxu1 %v19337_v8  ;;  %v19350_v17 = vld [vmem:[#allocation9 + $0xa4] ss:$20 sps:$4 sm:$0xff]   ;;  %v19352_v18 = vld [vmem:[#allocation9 + $0xac] ss:$20 sps:$4 sm:$0xff]   ;;  %v19358_v22 = vld [vmem:[#allocation9 + $0xd4] ss:$20 sps:$4 sm:$0xff]  }
 0x137   : > { %1733 = vmatprep.subr.bf16.mxu0 %v19338_v9  ;;  %1819 = vmatprep.subr.bf16.mxu1 %v19340_v10  ;;  %v19356_v21 = vld [vmem:[#allocation9 + $0xcc] ss:$20 sps:$4 sm:$0xff]   ;;  %v19361_v24 = vld [vmem:[#allocation9 + $0xd0] ss:$20 sps:$4 sm:$0xff]   ;;  %v19362_v25 = vld [vmem:[#allocation9 + $0xf4] ss:$20 sps:$4 sm:$0xff]  }
 0x138   : > { %v19364_v26 = vld [vmem:[#allocation9 + $0xfc] ss:$20 sps:$4 sm:$0xff]   ;;  %v19367_v28 = vld [vmem:[#allocation9 + $0xf8] ss:$20 sps:$4 sm:$0xff]   ;;  %v19373_v32 = vld [vmem:[#allocation9 + $0x120] ss:$20 sps:$4 sm:$0xff]  }
 0x139   : > { %v19366_v27 = vld [vmem:[#allocation9 + $0xf0] ss:$20 sps:$4 sm:$0xff]   ;;  %v19372_v31 = vld [vmem:[#allocation9 + $0x118] ss:$20 sps:$4 sm:$0xff]   ;;  %p719_p11 = scmp.lt.s32.totalorder %s16848_s24, 3  ;;  %s25350_s22 = sld [smem:[#allocation39_spill]] }
 0x13a   : > { %1734 = vmatpush1.bf16.msra.mxu0 %v19342_v11  ;;  %1820 = vmatpush1.bf16.msra.mxu1 %v19343_v12  ;;  %v19368_v29 = vld [vmem:[#allocation9 + $0x11c] ss:$20 sps:$4 sm:$0xff]   ;;  %v19370_v30 = vld [vmem:[#allocation9 + $0x124] ss:$20 sps:$4 sm:$0xff]   ;;  %v19376_v34 = vld [vmem:[#allocation9 + $0x14c] ss:$20 sps:$4 sm:$0xff]  }
 0x13b   : > { %1735 = vmatprep.subr.bf16.mxu0 %v19344_v13  ;;  %1821 = vmatprep.subr.bf16.mxu1 %v19346_v14  ;;  %v19374_v33 = vld [vmem:[#allocation9 + $0x144] ss:$20 sps:$4 sm:$0xff]   ;;  %v19378_v35 = vld [vmem:[#allocation9 + $0x140] ss:$20 sps:$4 sm:$0xff]   ;;  %v19379_v36 = vld [vmem:[#allocation9 + $0x148] ss:$20 sps:$4 sm:$0xff]  }
 0x13c   : > { %v19380_v37 = vld [vmem:[#allocation9 + $0x16c] ss:$20 sps:$4 sm:$0xff]   ;;  %s25368_s24 = smov (!%p719_p11, %s16848_s24), 3  ;;  %v19382_v38 = vld [vmem:[#allocation9 + $0x174] ss:$20 sps:$4 sm:$0xff]   ;;  %vm1725_vm0 = vcmask 785408  }
 0x13d   : > { %v19384_v39 = vld [vmem:[#allocation9 + $0x168] ss:$20 sps:$4 sm:$0xff]   ;;  %v19385_v40 = vld [vmem:[#allocation9 + $0x170] ss:$20 sps:$4 sm:$0xff]   ;;  %s18656_s19 = sshll.u32 %s25368_s24, 5  ;;  %s25351_s27 = sld [smem:[#allocation41_spill]] }
 0x13e   : > { %1736 = vmatpush1.bf16.msra.mxu0 %v19348_v15  ;;  %1822 = vmatpush1.bf16.msra.mxu1 %v19349_v16  ;;  %v19386_v41 = vld [vmem:[#allocation9 + $0x194] ss:$20 sps:$4 sm:$0xff]   ;;  %v19388_v42 = vld [vmem:[#allocation9 + $0x19c] ss:$20 sps:$4 sm:$0xff]   ;;  %v19391_v44 = vld [vmem:[#allocation9 + $0x198] ss:$20 sps:$4 sm:$0xff]  }
 0x13f   : > { %1737 = vmatprep.subr.bf16.mxu0 %v19350_v17  ;;  %1823 = vmatprep.subr.bf16.mxu1 %v19352_v18  ;;  %v19390_v43 = vld [vmem:[#allocation9 + $0x190] ss:$20 sps:$4 sm:$0xff]   ;;  %s22887_s21 = scalar_lea.vmem %s25350_s22, %s18656_s19  ;;  %v19396_v49 = vld [vmem:[#allocation9 + $0x1b8] ss:$20 sps:$4 sm:$0xff]   ;;  %v19397_v50 = vld [vmem:[#allocation9 + $0x1c0] ss:$20 sps:$4 sm:$0xff]  }
 0x140   : > { %v19392_v45 = vld [vmem:[#allocation9 + $0x1bc] ss:$20 sps:$4 sm:$0xff]   ;;  %v19394_v46 = vld [vmem:[#allocation9 + $0x1c4] ss:$20 sps:$4 sm:$0xff]   ;;  %v727_v47 = vld [vmem:[%s22887_s21 + $0x8] sm:$0xff]  ;;  %s25353_s6 = sld [smem:[#allocation40_spill]] }
 0x141   : > { %v731_v48 = vld [vmem:[%s22887_s21 + $0x28] sm:$0xff]  ;;  %v19398_v52 = vld [vmem:[#allocation9 + $0x1e4] ss:$20 sps:$4 sm:$0xff]   ;;  %v19402_v54 = vld [vmem:[#allocation9 + $0x1e0] ss:$20 sps:$4 sm:$0xff]   ;;  %vm10552_vm1 = vcmask 523264  }
 0x142   : > { %1738 = vmatpush1.bf16.msra.mxu0 %v19354_v19  ;;  %1824 = vmatpush1.bf16.msra.mxu1 %v19355_v20  ;;  %v22891_v51 = vpack.c.bf16 %v731_v48, %v727_v47  ;;  %v19400_v53 = vld [vmem:[#allocation9 + $0x1ec] ss:$20 sps:$4 sm:$0xff]   ;;  %v19403_v55 = vld [vmem:[#allocation9 + $0x1e8] ss:$20 sps:$4 sm:$0xff]   ;;  %v19409_v59 = vld [vmem:[#allocation9 + $0x210] ss:$20 sps:$4 sm:$0xff]  }
 0x143   : > { %1739 = vmatprep.subr.bf16.mxu0 %v19356_v21  ;;  %1825 = vmatprep.subr.bf16.mxu1 %v19358_v22  ;;  %v19404_v56 = vld [vmem:[#allocation9 + $0x20c] ss:$20 sps:$4 sm:$0xff]   ;;  %v19406_v57 = vld [vmem:[#allocation9 + $0x214] ss:$20 sps:$4 sm:$0xff]   ;;  %v19412_v61 = vld [vmem:[#allocation9 + $0x23c] ss:$20 sps:$4 sm:$0xff]   ;;  %s25352_s11 = smov %s25351_s27 }
 0x144   : > { %1761 = vmatprep.mubr.bf16.mxu0 %v22891_v51  ;;  %1847 = vmatprep.mubr.bf16.mxu1 %v22891_v51  ;;  %v19408_v58 = vld [vmem:[#allocation9 + $0x208] ss:$20 sps:$4 sm:$0xff]   ;;  %v19414_v62 = vld [vmem:[#allocation9 + $0x230] ss:$20 sps:$4 sm:$0xff]   ;;  %v19415_v63 = vld [vmem:[#allocation9 + $0x238] ss:$20 sps:$4 sm:$0xff]  }
 0x145   : > { %v19410_v60 = vld [vmem:[#allocation9 + $0x234] ss:$20 sps:$4 sm:$0xff]   ;;  %v19416_v1 = vld [vmem:[#allocation9 + $0x25c] ss:$20 sps:$4 sm:$0xff]   ;;  %v19418_v2 = vld [vmem:[#allocation9 + $0x264] ss:$20 sps:$4 sm:$0xff]  }
 0x146   : > { %1740 = vmatpush1.bf16.msra.mxu0 %v19360_v23  ;;  %1826 = vmatpush1.bf16.msra.mxu1 %v19361_v24  ;;  %v19420_v3 = vld [vmem:[#allocation9 + $0x258] ss:$20 sps:$4 sm:$0xff]   ;;  %v19421_v4 = vld [vmem:[#allocation9 + $0x260] ss:$20 sps:$4 sm:$0xff]   ;;  %v19425_v10 = vld [vmem:[#allocation9 + $0x288] ss:$20 sps:$4 sm:$0xff]  }
 0x147   : > { %1741 = vmatprep.subr.bf16.mxu0 %v19362_v25  ;;  %1827 = vmatprep.subr.bf16.mxu1 %v19364_v26  ;;  %v19424_v5 = vld [vmem:[#allocation9 + $0x284] ss:$20 sps:$4 sm:$0xff]   ;;  %v19427_v8 = vld [vmem:[#allocation9 + $0x28c] ss:$20 sps:$4 sm:$0xff]   ;;  %v19433_v13 = vld [vmem:[#allocation9 + $0x2b4] ss:$20 sps:$4 sm:$0xff]  }
 0x148   : > { %v726_v6 = vld [vmem:[%s22887_s21] sm:$0xff]  ;;  %v19428_v14 = vld [vmem:[#allocation9 + $0x2a8] ss:$20 sps:$4 sm:$0xff]   ;;  %v19437_v19 = vld [vmem:[#allocation9 + $0x2d8] ss:$20 sps:$4 sm:$0xff]   ;;  %s22482_s1 = smov 64  }
 0x149   : > { %v730_v7 = vld [vmem:[%s22887_s21 + $0x20] sm:$0xff]  ;;  %v19436_v16 = vld [vmem:[#allocation9 + $0x2d4] ss:$20 sps:$4 sm:$0xff]   ;;  %v19439_v17 = vld [vmem:[#allocation9 + $0x2dc] ss:$20 sps:$4 sm:$0xff]   ;;  %vm15578_vm2 = vcmask 130048  }
 0x14a   : > { %1742 = vmatpush1.bf16.msra.mxu0 %v19366_v27  ;;  %1828 = vmatpush1.bf16.msra.mxu1 %v19367_v28  ;;  %v19422_v9 = vld [vmem:[#allocation9 + $0x280] ss:$20 sps:$4 sm:$0xff]   ;;  %v22897_v11 = vpack.c.bf16 %v730_v7, %v726_v6  ;;  %v19431_v15 = vld [vmem:[#allocation9 + $0x2b0] ss:$20 sps:$4 sm:$0xff]   ;;  %v19440_v22 = vld [vmem:[#allocation9 + $0x2f8] ss:$20 sps:$4 sm:$0xff]  }
 0x14b   : > { %1743 = vmatprep.subr.bf16.mxu0 %v19368_v29  ;;  %1829 = vmatprep.subr.bf16.mxu1 %v19370_v30  ;;  %v19430_v12 = vld [vmem:[#allocation9 + $0x2ac] ss:$20 sps:$4 sm:$0xff]   ;;  %v19434_v18 = vld [vmem:[#allocation9 + $0x2d0] ss:$20 sps:$4 sm:$0xff]   ;;  %v19449_v27 = vld [vmem:[#allocation9 + $0x328] ss:$20 sps:$4 sm:$0xff]  }
 0x14c   : > { %v19442_v20 = vld [vmem:[#allocation9 + $0x2fc] ss:$20 sps:$4 sm:$0xff]   ;;  %v19445_v21 = vld [vmem:[#allocation9 + $0x304] ss:$20 sps:$4 sm:$0xff]   ;;  %v19443_v23 = vld [vmem:[#allocation9 + $0x300] ss:$20 sps:$4 sm:$0xff]  }
 0x14d   : > { %v19448_v24 = vld [vmem:[#allocation9 + $0x324] ss:$20 sps:$4 sm:$0xff]   ;;  %v19451_v25 = vld [vmem:[#allocation9 + $0x32c] ss:$20 sps:$4 sm:$0xff]   ;;  %v19457_v29 = vld [vmem:[#allocation9 + $0x354] ss:$20 sps:$4 sm:$0xff]  }
 0x14e   : > { %1744 = vmatpush1.bf16.msra.mxu0 %v19372_v31  ;;  %1830 = vmatpush1.bf16.msra.mxu1 %v19373_v32  ;;  %v19446_v26 = vld [vmem:[#allocation9 + $0x320] ss:$20 sps:$4 sm:$0xff]   ;;  %v729_v30 = vld [vmem:[%s22887_s21 + $0x18] sm:$0xff]  ;;  %v19511_v7 = vld [vmem:[#allocation9 + $0x150] ss:$20 sps:$4 sm:$0xff]   ;;  %vm16097_vm3 = vcmask 7168  }
 0x14f   : > { %1745 = vmatprep.subr.bf16.mxu0 %v19374_v33  ;;  %1831 = vmatprep.subr.bf16.mxu1 %v19376_v34  ;;  %v19454_v28 = vld [vmem:[#allocation9 + $0x34c] ss:$20 sps:$4 sm:$0xff]   ;;  %v733_v31 = vld [vmem:[%s22887_s21 + $0x38] sm:$0xff]  ;;  %v19455_v34 = vld [vmem:[#allocation9 + $0x350] ss:$20 sps:$4 sm:$0xff]   ;;  %s25354_s19 = sld [smem:[#allocation42_spill]] }
 0x150   : > { %v19452_v32 = vld [vmem:[#allocation9 + $0x348] ss:$20 sps:$4 sm:$0xff]   ;;  %v22903_v33 = vpack.c.bf16 %v733_v31, %v729_v30  ;;  %v19478_v47 = vld [vmem:[#allocation9 + $0x3ec] ss:$20 sps:$4 sm:$0xff]   ;;  %v732_v6 = vld [vmem:[%s22887_s21 + $0x30] sm:$0xff]  ;;  %s25355_s30 = sld [smem:[#allocation32_spill]] }
 0x151   : > { %v19481_v48 = vld [vmem:[#allocation9 + $0x3f4] ss:$20 sps:$4 sm:$0xff]   ;;  %s25356_s28 = sld [smem:[#allocation37_spill]]  ;;  %s18653_s5 = sshll.u32 %s22601_s0, 5 }
 0x152   : > { %1746 = vmatpush1.bf16.msra.mxu0 %v19378_v35  ;;  %1832 = vmatpush1.bf16.msra.mxu1 %v19379_v36  ;;  %v19460_v35 = vld [vmem:[#allocation9 + $0x374] ss:$20 sps:$4 sm:$0xff]   ;;  %v19463_v36 = vld [vmem:[#allocation9 + $0x37c] ss:$20 sps:$4 sm:$0xff]   ;;  %s25357_s25 = sld [smem:[#allocation46_spill]] }
 0x153   : > { %1747 = vmatprep.subr.bf16.mxu0 %v19380_v37  ;;  %1833 = vmatprep.subr.bf16.mxu1 %v19382_v38  ;;  %v19458_v37 = vld [vmem:[#allocation9 + $0x370] ss:$20 sps:$4 sm:$0xff]   ;;  %v19461_v38 = vld [vmem:[#allocation9 + $0x378] ss:$20 sps:$4 sm:$0xff]   ;;  %v19519_v30 = vld [vmem:[#allocation9 + $0x3a8] ss:$20 sps:$4 sm:$0xff]  }
 0x154   : > { %v19533_v31 = vld [vmem:[#allocation9 + $0x128] ss:$20 sps:$4 sm:$0xff]  }
 0x156   : > { %1748 = vmatpush1.bf16.msra.mxu0 %v19384_v39  ;;  %1834 = vmatpush1.bf16.msra.mxu1 %v19385_v40  ;;  %v19466_v39 = vld [vmem:[#allocation9 + $0x39c] ss:$20 sps:$4 sm:$0xff]   ;;  %v19469_v40 = vld [vmem:[#allocation9 + $0x3a4] ss:$20 sps:$4 sm:$0xff]   ;;  %s715_s2 = sand.u32 1, %s25355_s30  }
 0x157   : > { %1749 = vmatprep.subr.bf16.mxu0 %v19386_v41  ;;  %1835 = vmatprep.subr.bf16.mxu1 %v19388_v42  ;;  %v19464_v41 = vld [vmem:[#allocation9 + $0x398] ss:$20 sps:$4 sm:$0xff]   ;;  %v19467_v42 = vld [vmem:[#allocation9 + $0x3a0] ss:$20 sps:$4 sm:$0xff]   ;;  %s16847_s23 = sshll.u32 %s715_s2, 1  ;;  %s16653_s22 = scalar_lea.sflag [#allocation8], %s715_s2 }
 0x158   : > { %s717_s26 = scalar_lea.vmem [#allocation23], %s16847_s23  ;;  %s25227_s8 = scalar_lea.hbm %s25357_s25, %s18653_s5 }
 0x159   : > { %s16666_s24 = sshll.u32 %s717_s26, 4  ;;  %p25358_p5 = scmp.ne.s32.totalorder %s25356_s28, 0  ;;  %s25229_s24 = int_to_ptr.vmem [resolvable:$true] %s16666_s24 }
 0x15a   : > { %1750 = vmatpush1.bf16.msra.mxu0 %v19390_v43  ;;  %1836 = vmatpush1.bf16.msra.mxu1 %v19391_v44  ;;  %v19472_v43 = vld [vmem:[#allocation9 + $0x3c4] ss:$20 sps:$4 sm:$0xff]   ;;  %v19475_v44 = vld [vmem:[#allocation9 + $0x3cc] ss:$20 sps:$4 sm:$0xff]   ;;  %s22373_s0 = scalar_lea.vmem %s25229_s24, 32 }
 0x15b   : > { %1751 = vmatprep.subr.bf16.mxu0 %v19392_v45  ;;  %1837 = vmatprep.subr.bf16.mxu1 %v19394_v46  ;;  %v19470_v45 = vld [vmem:[#allocation9 + $0x3c0] ss:$20 sps:$4 sm:$0xff]   ;;  %v19473_v46 = vld [vmem:[#allocation9 + $0x3c8] ss:$20 sps:$4 sm:$0xff]   ;;  %p22374_p6 = scmp.ne.s32.totalorder %s25229_s24, %s22373_s0 }
 0x15d   : > { %p22375_p0 = pnand %p22374_p6, %p25358_p5 }
 0x15e   : > { %1752 = vmatpush1.bf16.msra.mxu0 %v19396_v49  ;;  %1838 = vmatpush1.bf16.msra.mxu1 %v19397_v50  ;;  %v19476_v49 = vld [vmem:[#allocation9 + $0x3e8] ss:$20 sps:$4 sm:$0xff]   ;;  %v19479_v50 = vld [vmem:[#allocation9 + $0x3f0] ss:$20 sps:$4 sm:$0xff]  }
 0x15f   : > { %1753 = vmatprep.subr.bf16.mxu0 %v19398_v52  ;;  %1839 = vmatprep.subr.bf16.mxu1 %v19400_v53  ;;  %v19484_v52 = vld [vmem:[#allocation9 + $0x414] ss:$20 sps:$4 sm:$0xff]   ;;  %v19487_v53 = vld [vmem:[#allocation9 + $0x41c] ss:$20 sps:$4 sm:$0xff]   ;;  %p22376_p9 = pneg %p22375_p0 }
 0x162   : > { %1754 = vmatpush1.bf16.msra.mxu0 %v19402_v54  ;;  %1840 = vmatpush1.bf16.msra.mxu1 %v19403_v55  ;;  %v19482_v54 = vld [vmem:[#allocation9 + $0x410] ss:$20 sps:$4 sm:$0xff]   ;;  %v19485_v55 = vld [vmem:[#allocation9 + $0x418] ss:$20 sps:$4 sm:$0xff]  }
 0x163   : > { %1755 = vmatprep.subr.bf16.mxu0 %v19404_v56  ;;  %1841 = vmatprep.subr.bf16.mxu1 %v19406_v57  ;;  %v19490_v56 = vld [vmem:[#allocation9 + $0x43c] ss:$20 sps:$4 sm:$0xff]   ;;  %v19493_v57 = vld [vmem:[#allocation9 + $0x444] ss:$20 sps:$4 sm:$0xff]  }
 0x166   : > { %1756 = vmatpush1.bf16.msra.mxu0 %v19408_v58  ;;  %1842 = vmatpush1.bf16.msra.mxu1 %v19409_v59  ;;  %v19488_v58 = vld [vmem:[#allocation9 + $0x438] ss:$20 sps:$4 sm:$0xff]   ;;  %v19491_v59 = vld [vmem:[#allocation9 + $0x440] ss:$20 sps:$4 sm:$0xff]  }
 0x167   : > { %1757 = vmatprep.subr.bf16.mxu0 %v19410_v60  ;;  %1843 = vmatprep.subr.bf16.mxu1 %v19412_v61  ;;  %v19496_v60 = vld [vmem:[#allocation9 + $0x464] ss:$20 sps:$4 sm:$0xff]   ;;  %v19499_v61 = vld [vmem:[#allocation9 + $0x46c] ss:$20 sps:$4 sm:$0xff]  }
 0x16a   : > { %1758 = vmatpush1.bf16.msra.mxu0 %v19414_v62  ;;  %1844 = vmatpush1.bf16.msra.mxu1 %v19415_v63  ;;  %v19494_v62 = vld [vmem:[#allocation9 + $0x460] ss:$20 sps:$4 sm:$0xff]   ;;  %v19497_v63 = vld [vmem:[#allocation9 + $0x468] ss:$20 sps:$4 sm:$0xff]  }
 0x16b   : > { %1759 = vmatprep.subr.bf16.mxu0 %v19416_v1  ;;  %1845 = vmatprep.subr.bf16.mxu1 %v19418_v2  ;;  %v19502_v1 = vld [vmem:[#allocation9 + $0x48c] ss:$20 sps:$4 sm:$0xff]   ;;  %v19505_v2 = vld [vmem:[#allocation9 + $0x494] ss:$20 sps:$4 sm:$0xff]  }
 0x16e   : > { %1760 = vmatpush1.bf16.msra.mxu0 %v19420_v3  ;;  %1846 = vmatpush1.bf16.msra.mxu1 %v19421_v4  ;;  %v19500_v3 = vld [vmem:[#allocation9 + $0x488] ss:$20 sps:$4 sm:$0xff]   ;;  %v19503_v4 = vld [vmem:[#allocation9 + $0x490] ss:$20 sps:$4 sm:$0xff]  }
 0x16f   : > { %1772 = vmatprep.subr.bf16.mxu0 %v19424_v5  ;;  %1858 = vmatprep.subr.bf16.mxu1 %v19427_v8  ;;  %v728_v5 = vld [vmem:[%s22887_s21 + $0x10] sm:$0xff]  ;;  %s22484_s21 = smov [#allocation23]  }
 0x170   : > { %v22911_v8 = vpack.c.bf16 %v732_v6, %v728_v5  ;;  %v19571_v5 = vld [vmem:[#allocation11 + $0xfc] ss:$24 sps:$4 sm:$0xff]   ;;  %v19569_v6 = vld [vmem:[#allocation11 + $0xf8] ss:$24 sps:$4 sm:$0xff]   ;;  %s22377_s20 = sshll.u32 %s22484_s21, 4  ;;  %s22378_s20 = int_to_ptr.vmem [resolvable:$false] %s22377_s20 }
 0x171   : > { %1762 = vmatmul.mubr.bf16.vlgmr.msra.gmra.mrb[0].mxu0 %v22897_v11  ;;  %1848 = vmatmul.mubr.bf16.vlgmr.msra.gmra.mrb[0].mxu1 %v22897_v11  ;;  %p22380_p10 = scmp.lt.s32.totalorder %s25229_s24, %s22378_s20 }
 0x172   : > { %1773 = vmatpush1.bf16.msra.mxu0 %v19422_v9  ;;  %1859 = vmatpush1.bf16.msra.mxu1 %v19425_v10  ;;  %v19506_v9 = vld [vmem:[#allocation9 + $0x290] ss:$20 sps:$4 sm:$0xff]  }
 0x173   : > { %1774 = vmatprep.subr.bf16.mxu0 %v19430_v12  ;;  %1860 = vmatprep.subr.bf16.mxu1 %v19433_v13  ;;  %v19512_v10 = vld [vmem:[#allocation9 + $0x10] ss:$20 sps:$4 sm:$0xff]   ;;  %v19514_v12 = vld [vmem:[#allocation9 + $0x178] ss:$20 sps:$4 sm:$0xff]  }
 0x174   : > { %17001 = vmatprep.mubr.msk.bf16.mxu0 %vm1725_vm0, %v22903_v33  ;;  %17002 = vmatprep.mubr.msk.bf16.mxu1 %vm1725_vm0, %v22903_v33  ;;  %v19507_v13 = vld [vmem:[#allocation9 + $0x2b8] ss:$20 sps:$4 sm:$0xff]  }
 0x176   : > { %1775 = vmatpush1.bf16.msra.mxu0 %v19428_v14  ;;  %1861 = vmatpush1.bf16.msra.mxu1 %v19431_v15  ;;  %v19515_v14 = vld [vmem:[#allocation9 + $0x38] ss:$20 sps:$4 sm:$0xff]   ;;  %v19517_v15 = vld [vmem:[#allocation9 + $0x1a0] ss:$20 sps:$4 sm:$0xff]  }
 0x177   : > { %1776 = vmatprep.subr.bf16.mxu0 %v19436_v16  ;;  %1862 = vmatprep.subr.bf16.mxu1 %v19439_v17  ;;  %v19508_v16 = vld [vmem:[#allocation9 + $0x2e0] ss:$20 sps:$4 sm:$0xff]  }
 0x178   : > { %v19518_v17 = vld [vmem:[#allocation9 + $0x60] ss:$20 sps:$4 sm:$0xff]  }
 0x17a   : > { %1777 = vmatpush1.bf16.msra.mxu0 %v19434_v18  ;;  %1863 = vmatpush1.bf16.msra.mxu1 %v19437_v19  ;;  %v19520_v18 = vld [vmem:[#allocation9 + $0x1c8] ss:$20 sps:$4 sm:$0xff]  }
 0x17b   : > { %1778 = vmatprep.subr.bf16.mxu0 %v19442_v20  ;;  %1864 = vmatprep.subr.bf16.mxu1 %v19445_v21  ;;  %v19509_v19 = vld [vmem:[#allocation9 + $0x308] ss:$20 sps:$4 sm:$0xff]   ;;  %v19523_v21 = vld [vmem:[#allocation9 + $0x1f0] ss:$20 sps:$4 sm:$0xff]  }
 0x17c   : > { %v19521_v20 = vld [vmem:[#allocation9 + $0x88] ss:$20 sps:$4 sm:$0xff]  }
 0x17e   : > { %1779 = vmatpush1.bf16.msra.mxu0 %v19440_v22  ;;  %1865 = vmatpush1.bf16.msra.mxu1 %v19443_v23  ;;  %v19524_v22 = vld [vmem:[#allocation9 + $0xb0] ss:$20 sps:$4 sm:$0xff]   ;;  %v19526_v23 = vld [vmem:[#allocation9 + $0x218] ss:$20 sps:$4 sm:$0xff]  }
 0x17f   : > { %1780 = vmatprep.subr.bf16.mxu0 %v19448_v24  ;;  %1866 = vmatprep.subr.bf16.mxu1 %v19451_v25  ;;  %v19513_v24 = vld [vmem:[#allocation9 + $0x358] ss:$20 sps:$4 sm:$0xff]  }
 0x180   : > { %v19527_v25 = vld [vmem:[#allocation9 + $0xd8] ss:$20 sps:$4 sm:$0xff]  }
 0x182   : > { %1781 = vmatpush1.bf16.msra.mxu0 %v19446_v26  ;;  %1867 = vmatpush1.bf16.msra.mxu1 %v19449_v27  ;;  %v19529_v26 = vld [vmem:[#allocation9 + $0x240] ss:$20 sps:$4 sm:$0xff]  }
 0x183   : > { %1782 = vmatprep.subr.bf16.mxu0 %v19454_v28  ;;  %1868 = vmatprep.subr.bf16.mxu1 %v19457_v29  ;;  %v19516_v27 = vld [vmem:[#allocation9 + $0x380] ss:$20 sps:$4 sm:$0xff]   ;;  %v19532_v29 = vld [vmem:[#allocation9 + $0x268] ss:$20 sps:$4 sm:$0xff]  }
 0x184   : > { %v19530_v28 = vld [vmem:[#allocation9 + $0x100] ss:$20 sps:$4 sm:$0xff]  }
 0x186   : > { %1783 = vmatpush1.bf16.msra.mxu0 %v19452_v32  ;;  %1869 = vmatpush1.bf16.msra.mxu1 %v19455_v34  ;;  %v19538_v32 = vld [vmem:[#allocation11 + $0x4] ss:$24 sps:$4 sm:$0xff]   ;;  %v19536_v34 = vld [vmem:[#allocation11] ss:$24 sps:$4 sm:$0xff]  }
 0x187   : > { %1784 = vmatprep.subr.bf16.mxu0 %v19460_v35  ;;  %1870 = vmatprep.subr.bf16.mxu1 %v19463_v36  ;;  %v19544_v35 = vld [vmem:[#allocation11 + $0x34] ss:$24 sps:$4 sm:$0xff]   ;;  %v19525_v36 = vld [vmem:[#allocation9 + $0x3f8] ss:$20 sps:$4 sm:$0xff]  }
 0x18a   : > { %1785 = vmatpush1.bf16.msra.mxu0 %v19458_v37  ;;  %1871 = vmatpush1.bf16.msra.mxu1 %v19461_v38  ;;  %v19542_v37 = vld [vmem:[#allocation11 + $0x30] ss:$24 sps:$4 sm:$0xff]   ;;  %v19550_v38 = vld [vmem:[#allocation11 + $0x64] ss:$24 sps:$4 sm:$0xff]  }
 0x18b   : > { %1786 = vmatprep.subr.bf16.mxu0 %v19466_v39  ;;  %1872 = vmatprep.subr.bf16.mxu1 %v19469_v40  ;;  %v19528_v39 = vld [vmem:[#allocation9 + $0x420] ss:$20 sps:$4 sm:$0xff]   ;;  %v19548_v40 = vld [vmem:[#allocation11 + $0x60] ss:$24 sps:$4 sm:$0xff]  }
 0x18e   : > { %1787 = vmatpush1.bf16.msra.mxu0 %v19464_v41  ;;  %1873 = vmatpush1.bf16.msra.mxu1 %v19467_v42  ;;  %v19556_v41 = vld [vmem:[#allocation11 + $0x94] ss:$24 sps:$4 sm:$0xff]  }
 0x18f   : > { %1788 = vmatprep.subr.bf16.mxu0 %v19472_v43  ;;  %1874 = vmatprep.subr.bf16.mxu1 %v19475_v44  ;;  %v19531_v42 = vld [vmem:[#allocation9 + $0x448] ss:$20 sps:$4 sm:$0xff]   ;;  %v19554_v43 = vld [vmem:[#allocation11 + $0x90] ss:$24 sps:$4 sm:$0xff]   ;;  %v19562_v44 = vld [vmem:[#allocation11 + $0xc4] ss:$24 sps:$4 sm:$0xff]  }
 0x192   : > { %1789 = vmatpush1.bf16.msra.mxu0 %v19470_v45  ;;  %1875 = vmatpush1.bf16.msra.mxu1 %v19473_v46  ;;  %v19560_v45 = vld [vmem:[#allocation11 + $0xc0] ss:$24 sps:$4 sm:$0xff]   ;;  %v19568_v46 = vld [vmem:[#allocation11 + $0xf4] ss:$24 sps:$4 sm:$0xff]  }
 0x193   : > { %1790 = vmatprep.subr.bf16.mxu0 %v19478_v47  ;;  %1876 = vmatprep.subr.bf16.mxu1 %v19481_v48  ;;  %v19535_v47 = vld [vmem:[#allocation9 + $0x498] ss:$20 sps:$4 sm:$0xff]  }
 0x194   : > { %v19566_v48 = vld [vmem:[#allocation11 + $0xf0] ss:$24 sps:$4 sm:$0xff]  }
 0x196   : > { %1791 = vmatpush1.bf16.msra.mxu0 %v19476_v49  ;;  %1877 = vmatpush1.bf16.msra.mxu1 %v19479_v50  ;;  %v19541_v49 = vld [vmem:[#allocation11 + $0xc] ss:$24 sps:$4 sm:$0xff]  }
 0x197   : > { %1792 = vmatprep.subr.bf16.mxu0 %v19484_v52  ;;  %1878 = vmatprep.subr.bf16.mxu1 %v19487_v53  ;;  %v19574_v50 = vld [vmem:[#allocation11 + $0x124] ss:$24 sps:$4 sm:$0xff]   ;;  %v19539_v52 = vld [vmem:[#allocation11 + $0x8] ss:$24 sps:$4 sm:$0xff]  }
 0x198   : > { %v19572_v53 = vld [vmem:[#allocation11 + $0x120] ss:$24 sps:$4 sm:$0xff]  }
 0x19a   : > { %1793 = vmatpush1.bf16.msra.mxu0 %v19482_v54  ;;  %1879 = vmatpush1.bf16.msra.mxu1 %v19485_v55  ;;  %v19547_v54 = vld [vmem:[#allocation11 + $0x3c] ss:$24 sps:$4 sm:$0xff]  }
 0x19b   : > { %1794 = vmatprep.subr.bf16.mxu0 %v19490_v56  ;;  %1880 = vmatprep.subr.bf16.mxu1 %v19493_v57  ;;  %v19580_v55 = vld [vmem:[#allocation11 + $0x154] ss:$24 sps:$4 sm:$0xff]   ;;  %v19545_v56 = vld [vmem:[#allocation11 + $0x38] ss:$24 sps:$4 sm:$0xff]  }
 0x19c   : > { %v19578_v57 = vld [vmem:[#allocation11 + $0x150] ss:$24 sps:$4 sm:$0xff]  }
 0x19e   : > { %1795 = vmatpush1.bf16.msra.mxu0 %v19488_v58  ;;  %1881 = vmatpush1.bf16.msra.mxu1 %v19491_v59  ;;  %v19553_v58 = vld [vmem:[#allocation11 + $0x6c] ss:$24 sps:$4 sm:$0xff]  }
 0x19f   : > { %1796 = vmatprep.subr.bf16.mxu0 %v19496_v60  ;;  %1882 = vmatprep.subr.bf16.mxu1 %v19499_v61  ;;  %v19586_v59 = vld [vmem:[#allocation11 + $0x184] ss:$24 sps:$4 sm:$0xff]   ;;  %v19551_v60 = vld [vmem:[#allocation11 + $0x68] ss:$24 sps:$4 sm:$0xff]  }
 0x1a0   : > { %v19584_v61 = vld [vmem:[#allocation11 + $0x180] ss:$24 sps:$4 sm:$0xff]  }
 0x1a2   : > { %1797 = vmatpush1.bf16.msra.mxu0 %v19494_v62  ;;  %1883 = vmatpush1.bf16.msra.mxu1 %v19497_v63  ;;  %v19559_v62 = vld [vmem:[#allocation11 + $0x9c] ss:$24 sps:$4 sm:$0xff]  }
 0x1a3   : > { %1798 = vmatprep.subr.bf16.mxu0 %v19502_v1  ;;  %1884 = vmatprep.subr.bf16.mxu1 %v19505_v2  ;;  %v19592_v63 = vld [vmem:[#allocation11 + $0x1b4] ss:$24 sps:$4 sm:$0xff]   ;;  %v19557_v1 = vld [vmem:[#allocation11 + $0x98] ss:$24 sps:$4 sm:$0xff]  }
 0x1a4   : > { %v19590_v2 = vld [vmem:[#allocation11 + $0x1b0] ss:$24 sps:$4 sm:$0xff]  }
 0x1a6   : > { %1799 = vmatpush1.bf16.msra.mxu0 %v19500_v3  ;;  %1885 = vmatpush1.bf16.msra.mxu1 %v19503_v4  ;;  %v19565_v3 = vld [vmem:[#allocation11 + $0xcc] ss:$24 sps:$4 sm:$0xff]   ;;  %v19563_v4 = vld [vmem:[#allocation11 + $0xc8] ss:$24 sps:$4 sm:$0xff]  }
 0x1a7   : > { %1942 = vmatprep.subr.bf16.mxu1 %v22481_v0  ;;  %18657 = vmatprep.subr.bf16.mxu0 %v19511_v7  ;;  %v19577_v7 = vld [vmem:[#allocation11 + $0x12c] ss:$24 sps:$4 sm:$0xff]  }
 0x1a9   : > { %1805 = vmatmul.mubr.bf16.vlgmr.msra.gmra.mrb[0].mxu0 %v22911_v8  ;;  %1891 = vmatmul.mubr.bf16.vlgmr.msra.gmra.mrb[0].mxu1 %v22911_v8 }
 0x1aa   : > { %1943 = vmatpush1.bf16.msra.mxu1 %v19506_v9  ;;  %18658 = vmatpush3.bf16.msra.mxu0 %v19512_v10  ;;  %v19583_v9 = vld [vmem:[#allocation11 + $0x15c] ss:$24 sps:$4 sm:$0xff]   ;;  %v19581_v10 = vld [vmem:[#allocation11 + $0x158] ss:$24 sps:$4 sm:$0xff]  }
 0x1ab   : > { %1944 = vmatprep.subr.bf16.mxu1 %v22481_v0  ;;  %18659 = vmatprep.subr.bf16.mxu0 %v19514_v12  ;;  %v19589_v12 = vld [vmem:[#allocation11 + $0x18c] ss:$24 sps:$4 sm:$0xff]  }
 0x1ac   : > { %1933 = vmatprep.mubr.bf16.mxu0 %v22891_v51  ;;  %17003 = vmatprep.mubr.msk.bf16.mxu1 %vm1725_vm0, %v22903_v33  ;;  %v19510_v51 = vld [vmem:[#allocation9 + $0x330] ss:$20 sps:$4 sm:$0xff]  }
 0x1ad   : > { %v19522_v33 = vld [vmem:[#allocation9 + $0x3d0] ss:$20 sps:$4 sm:$0xff]  }
 0x1ae   : > { %1945 = vmatpush1.bf16.msra.mxu1 %v19507_v13  ;;  %18660 = vmatpush3.bf16.msra.mxu0 %v19515_v14  ;;  %v19587_v13 = vld [vmem:[#allocation11 + $0x188] ss:$24 sps:$4 sm:$0xff]   ;;  %v19598_v14 = vld [vmem:[#allocation11 + $0x1e4] ss:$24 sps:$4 sm:$0xff]  }
 0x1af   : > { %1946 = vmatprep.subr.bf16.mxu1 %v22481_v0  ;;  %18661 = vmatprep.subr.bf16.mxu0 %v19517_v15  ;;  %v19595_v15 = vld [vmem:[#allocation11 + $0x1bc] ss:$24 sps:$4 sm:$0xff]  }
 0x1b2   : > { %1947 = vmatpush1.bf16.msra.mxu1 %v19508_v16  ;;  %18662 = vmatpush3.bf16.msra.mxu0 %v19518_v17  ;;  %v19596_v16 = vld [vmem:[#allocation11 + $0x1e0] ss:$24 sps:$4 sm:$0xff]  }
 0x1b3   : > { %1948 = vmatprep.subr.bf16.mxu1 %v22481_v0  ;;  %18663 = vmatprep.subr.bf16.mxu0 %v19520_v18  ;;  %v19593_v17 = vld [vmem:[#allocation11 + $0x1b8] ss:$24 sps:$4 sm:$0xff]   ;;  %v19601_v18 = vld [vmem:[#allocation11 + $0x1ec] ss:$24 sps:$4 sm:$0xff]  }
 0x1b6   : > { %1949 = vmatpush1.bf16.msra.mxu1 %v19509_v19  ;;  %18664 = vmatpush3.bf16.msra.mxu0 %v19521_v20  ;;  %v19604_v19 = vld [vmem:[#allocation11 + $0x214] ss:$24 sps:$4 sm:$0xff]   ;;  %v19599_v20 = vld [vmem:[#allocation11 + $0x1e8] ss:$24 sps:$4 sm:$0xff]  }
 0x1b7   : > { %1950 = vmatprep.subr.bf16.mxu1 %v22481_v0  ;;  %18665 = vmatprep.subr.bf16.mxu0 %v19523_v21  ;;  %v19602_v21 = vld [vmem:[#allocation11 + $0x210] ss:$24 sps:$4 sm:$0xff]  }
 0x1ba   : > { %1951 = vmatpush1.bf16.msra.mxu1 %v19510_v51  ;;  %18666 = vmatpush3.bf16.msra.mxu0 %v19524_v22  ;;  %v19607_v51 = vld [vmem:[#allocation11 + $0x21c] ss:$24 sps:$4 sm:$0xff]  }
 0x1bb   : > { %1952 = vmatprep.subr.bf16.mxu1 %v22481_v0  ;;  %18667 = vmatprep.subr.bf16.mxu0 %v19526_v23  ;;  %v19610_v22 = vld [vmem:[#allocation11 + $0x244] ss:$24 sps:$4 sm:$0xff]   ;;  %v19605_v23 = vld [vmem:[#allocation11 + $0x218] ss:$24 sps:$4 sm:$0xff]  }
 0x1be   : > { %1953 = vmatpush1.bf16.msra.mxu1 %v19513_v24  ;;  %18668 = vmatpush3.bf16.msra.mxu0 %v19527_v25  ;;  %v19608_v24 = vld [vmem:[#allocation11 + $0x240] ss:$24 sps:$4 sm:$0xff]   ;;  %v19613_v25 = vld [vmem:[#allocation11 + $0x24c] ss:$24 sps:$4 sm:$0xff]  }
 0x1bf   : > { %1954 = vmatprep.subr.bf16.mxu1 %v22481_v0  ;;  %18669 = vmatprep.subr.bf16.mxu0 %v19529_v26  ;;  %v19616_v26 = vld [vmem:[#allocation11 + $0x274] ss:$24 sps:$4 sm:$0xff]  }
 0x1c2   : > { %1955 = vmatpush1.bf16.msra.mxu1 %v19516_v27  ;;  %18670 = vmatpush3.bf16.msra.mxu0 %v19530_v28  ;;  %v19611_v27 = vld [vmem:[#allocation11 + $0x248] ss:$24 sps:$4 sm:$0xff]  }
 0x1c3   : > { %1956 = vmatprep.subr.bf16.mxu1 %v22481_v0  ;;  %18671 = vmatprep.subr.bf16.mxu0 %v19532_v29  ;;  %v19614_v28 = vld [vmem:[#allocation11 + $0x270] ss:$24 sps:$4 sm:$0xff]   ;;  %v19619_v29 = vld [vmem:[#allocation11 + $0x27c] ss:$24 sps:$4 sm:$0xff]  }
 0x1c6   : > { %1957 = vmatpush1.bf16.msra.mxu1 %v19519_v30  ;;  %18672 = vmatpush3.bf16.msra.mxu0 %v19533_v31  ;;  %v19622_v30 = vld [vmem:[#allocation11 + $0x2a4] ss:$24 sps:$4 sm:$0xff]   ;;  %v19617_v31 = vld [vmem:[#allocation11 + $0x278] ss:$24 sps:$4 sm:$0xff]  }
 0x1c7   : > { %1958 = vmatprep.subr.bf16.mxu1 %v22481_v0  ;;  %3510 = vmatprep.subr.bf16.mxu0 %v19538_v32  ;;  %v19620_v32 = vld [vmem:[#allocation11 + $0x2a0] ss:$24 sps:$4 sm:$0xff]  }
 0x1c9   : > { %1934 = vmatmul.mubr.bf16.vlgmr.msra.gmra.mrb[4].mxu0 %v22897_v11  ;;  %v19534_v11 = vld [vmem:[#allocation9 + $0x470] ss:$20 sps:$4 sm:$0xff]  }
 0x1ca   : > { %1959 = vmatpush1.bf16.msra.mxu1 %v19522_v33  ;;  %3511 = vmatpush1.bf16.msra.mxu0 %v19536_v34  ;;  %v19625_v33 = vld [vmem:[#allocation11 + $0x2ac] ss:$24 sps:$4 sm:$0xff]  }
 0x1cb   : > { %1960 = vmatprep.subr.bf16.mxu1 %v22481_v0  ;;  %3512 = vmatprep.subr.bf16.mxu0 %v19544_v35  ;;  %v19628_v34 = vld [vmem:[#allocation11 + $0x2d4] ss:$24 sps:$4 sm:$0xff]   ;;  %v19623_v35 = vld [vmem:[#allocation11 + $0x2a8] ss:$24 sps:$4 sm:$0xff]  }
 0x1ce   : > { %1961 = vmatpush1.bf16.msra.mxu1 %v19525_v36  ;;  %3513 = vmatpush1.bf16.msra.mxu0 %v19542_v37  ;;  %v19626_v36 = vld [vmem:[#allocation11 + $0x2d0] ss:$24 sps:$4 sm:$0xff]   ;;  %v19631_v37 = vld [vmem:[#allocation11 + $0x2dc] ss:$24 sps:$4 sm:$0xff]  }
 0x1cf   : > { %1962 = vmatprep.subr.bf16.mxu1 %v22481_v0  ;;  %3514 = vmatprep.subr.bf16.mxu0 %v19550_v38  ;;  %v19634_v38 = vld [vmem:[#allocation11 + $0x304] ss:$24 sps:$4 sm:$0xff]  }
 0x1d2   : > { %1963 = vmatpush1.bf16.msra.mxu1 %v19528_v39  ;;  %3515 = vmatpush1.bf16.msra.mxu0 %v19548_v40  ;;  %v19629_v39 = vld [vmem:[#allocation11 + $0x2d8] ss:$24 sps:$4 sm:$0xff]   ;;  %v19637_v40 = vld [vmem:[#allocation11 + $0x30c] ss:$24 sps:$4 sm:$0xff]  }
 0x1d3   : > { %1964 = vmatprep.subr.bf16.mxu1 %v22481_v0  ;;  %3516 = vmatprep.subr.bf16.mxu0 %v19556_v41  ;;  %v920_v41 = vlaneseq }
 0x1d6   : > { %1965 = vmatpush1.bf16.msra.mxu1 %v19531_v42  ;;  %3517 = vmatpush1.bf16.msra.mxu0 %v19554_v43  ;;  %v22934_v42 = vshrl.u32 %v920_v41, 7  ;;  %v22939_v43 = vld [vmem:[%s25351_s27] sm:$0x1f]  ;;  %s22379_s27 = scalar_lea.vmem %s22378_s20, 64 }
 0x1d7   : > { %1966 = vmatprep.subr.bf16.mxu1 %v22481_v0  ;;  %3518 = vmatprep.subr.bf16.mxu0 %v19562_v44  ;;  %p22381_p13 = scmp.lt.s32.totalorder %s22379_s27, %s22373_s0 }
 0x1d8   : > { %v22942_v44 = vsub.s32 0, %v22934_v42 }
 0x1d9   : > { %p22382_p12 = por %p22381_p13, %p22380_p10 }
 0x1da   : > { %1967 = vmatpush1.bf16.msra.mxu1 %v19534_v11  ;;  %3519 = vmatpush1.bf16.msra.mxu0 %v19560_v45  ;;  %v22945_v11 = vsub.s32 2, %v22934_v42  ;;  %v22948_v45 = vsub.s32 1, %v22934_v42 }
 0x1db   : > { %1968 = vmatprep.subr.bf16.mxu1 %v22481_v0  ;;  %3520 = vmatprep.subr.bf16.mxu0 %v19568_v46  ;;  %v22951_v46 = vsub.s32 3, %v22934_v42  ;;  %p22383_p1 = pnand %p22382_p12, %p22376_p9 }
 0x1de   : > { %1969 = vmatpush1.bf16.msra.mxu1 %v19535_v47  ;;  %3521 = vmatpush1.bf16.msra.mxu0 %v19566_v48  ;;  %v923_v47 = vrot.slane %v22939_v43, %v22942_v44  ;;  %v931_v48 = vrot.slane %v22939_v43, %v22945_v11 }
 0x1df   : > { %3639 = vmatprep.subr.bf16.mxu1 %v19541_v49  ;;  %3522 = vmatprep.subr.bf16.mxu0 %v19574_v50  ;;  %v927_v49 = vrot.slane %v22939_v43, %v22948_v45  ;;  %v935_v50 = vrot.slane %v22939_v43, %v22951_v46 }
 0x1e1   : > { %1975 = vmatmul.mubr.bf16.vlgmr.msra.gmra.mrb[4].mxu1 %v22911_v8  ;;  %v19575_v8 = vld [vmem:[#allocation11 + $0x128] ss:$24 sps:$4 sm:$0xff]  }
 0x1e2   : > { %3640 = vmatpush1.bf16.msra.mxu1 %v19539_v52  ;;  %3523 = vmatpush1.bf16.msra.mxu0 %v19572_v53 }
 0x1e3   : > { %3641 = vmatprep.subr.bf16.mxu1 %v19547_v54  ;;  %3524 = vmatprep.subr.bf16.mxu0 %v19580_v55 }
 0x1e6   : > { %3642 = vmatpush1.bf16.msra.mxu1 %v19545_v56  ;;  %3525 = vmatpush1.bf16.msra.mxu0 %v19578_v57 }
 0x1e7   : > { %3643 = vmatprep.subr.bf16.mxu1 %v19553_v58  ;;  %3526 = vmatprep.subr.bf16.mxu0 %v19586_v59 }
 0x1ea   : > { %3644 = vmatpush1.bf16.msra.mxu1 %v19551_v60  ;;  %3527 = vmatpush1.bf16.msra.mxu0 %v19584_v61 }
 0x1eb   : > { %3645 = vmatprep.subr.bf16.mxu1 %v19559_v62  ;;  %3528 = vmatprep.subr.bf16.mxu0 %v19592_v63 }
 0x1ee   : > { %3646 = vmatpush1.bf16.msra.mxu1 %v19557_v1  ;;  %3529 = vmatpush1.bf16.msra.mxu0 %v19590_v2 }
 0x1ef   : > { %3647 = vmatprep.subr.bf16.mxu1 %v19565_v3  ;;  %3530 = vmatprep.subr.bf16.mxu0 %v19598_v14 }
 0x1f2   : > { %3648 = vmatpush1.bf16.msra.mxu1 %v19563_v4  ;;  %3531 = vmatpush1.bf16.msra.mxu0 %v19596_v16 }
 0x1f3   : > { %3649 = vmatprep.subr.bf16.mxu1 %v19571_v5  ;;  %3532 = vmatprep.subr.bf16.mxu0 %v19604_v19 }
 0x1f6   : > { %3650 = vmatpush1.bf16.msra.mxu1 %v19569_v6  ;;  %3533 = vmatpush1.bf16.msra.mxu0 %v19602_v21 }
 0x1f7   : > { %3651 = vmatprep.subr.bf16.mxu1 %v19577_v7  ;;  %3534 = vmatprep.subr.bf16.mxu0 %v19610_v22 }
 0x1fa   : > { %3652 = vmatpush1.bf16.msra.mxu1 %v19575_v8  ;;  %3535 = vmatpush1.bf16.msra.mxu0 %v19608_v24 }
 0x1fb   : > { %3653 = vmatprep.subr.bf16.mxu1 %v19583_v9  ;;  %3536 = vmatprep.subr.bf16.mxu0 %v19616_v26 }
 0x1fe   : > { %3654 = vmatpush1.bf16.msra.mxu1 %v19581_v10  ;;  %3537 = vmatpush1.bf16.msra.mxu0 %v19614_v28 }
 0x1ff   : > { %3655 = vmatprep.subr.bf16.mxu1 %v19589_v12  ;;  %3538 = vmatprep.subr.bf16.mxu0 %v19622_v30 }
 0x202   : > { %3656 = vmatpush1.bf16.msra.mxu1 %v19587_v13  ;;  %3539 = vmatpush1.bf16.msra.mxu0 %v19620_v32 }
 0x203   : > { %3657 = vmatprep.subr.bf16.mxu1 %v19595_v15  ;;  %3540 = vmatprep.subr.bf16.mxu0 %v19628_v34 }
 0x206   : > { %3658 = vmatpush1.bf16.msra.mxu1 %v19593_v17  ;;  %3541 = vmatpush1.bf16.msra.mxu0 %v19626_v36 }
 0x207   : > { %3659 = vmatprep.subr.bf16.mxu1 %v19601_v18  ;;  %3553 = vmatprep.subr.bf16.mxu0 %v19634_v38 }
 0x20a   : > { %3660 = vmatpush1.bf16.msra.mxu1 %v19599_v20 }
 0x20b   : > { %3661 = vmatprep.subr.bf16.mxu1 %v19607_v51 }
 0x20e   : > { %3662 = vmatpush1.bf16.msra.mxu1 %v19605_v23 }
 0x20f   : > { %3663 = vmatprep.subr.bf16.mxu1 %v19613_v25 }
 0x212   : > { %3664 = vmatpush1.bf16.msra.mxu1 %v19611_v27 }
 0x213   : > { %3665 = vmatprep.subr.bf16.mxu1 %v19619_v29 }
 0x216   : > { %3666 = vmatpush1.bf16.msra.mxu1 %v19617_v31 }
 0x217   : > { %3667 = vmatprep.subr.bf16.mxu1 %v19625_v33 }
 0x21a   : > { %3668 = vmatpush1.bf16.msra.mxu1 %v19623_v35 }
 0x21b   : > { %3669 = vmatprep.subr.bf16.mxu1 %v19631_v37 }
 0x21e   : > { %3670 = vmatpush1.bf16.msra.mxu1 %v19629_v39 }
 0x21f   : > { %3682 = vmatprep.subr.bf16.mxu1 %v19637_v40 }
 0x27c   : > { %v1806_v52 = vpop.f32.mrb[0].mxu0  ;;  %v1892_v53 = vpop.f32.mrb[0].mxu1 }
 0x27d   : > { %v18923_v54 = vadd.f32 %v1806_v52, %v923_v47  ;;  %v18927_v55 = vadd.f32 %v1892_v53, %v931_v48  ;;  %v1808_v56 = vpop.f32.mrb[1].mxu0  ;;  %v1894_v57 = vpop.f32.mrb[1].mxu1 }
 0x27e   : > { %v18924_v58 = vadd.f32 %v1808_v56, %v927_v49  ;;  %v18928_v59 = vadd.f32 %v1894_v57, %v935_v50  ;;  %v1810_v60 = vpop.f32.mrb[2].mxu0  ;;  %v1896_v61 = vpop.f32.mrb[2].mxu1  ;;  %v19640_v56 = vld [vmem:[#allocation11 + $0x334] ss:$24 sps:$4 sm:$0xff]  }
 0x27f   : > { %v1993_v62 = vmul.f32 0.70710677, %v18923_v54  ;;  %v1995_v63 = vmul.f32 0.70710677, %v18927_v55  ;;  %v18925_v3 = vadd.f32 %v1810_v60, %v923_v47  ;;  %v18929_v4 = vadd.f32 %v1896_v61, %v931_v48  ;;  %v1812_v5 = vpop.f32.mrb[3].mxu0  ;;  %v1898_v6 = vpop.f32.mrb[3].mxu1 }
 0x280   : > { %v1994_v1 = vmul.f32 0.70710677, %v18924_v58  ;;  %v1996_v2 = vmul.f32 0.70710677, %v18928_v59  ;;  %v18926_v7 = vadd.f32 %v1812_v5, %v927_v49  ;;  %v18930_v8 = vadd.f32 %v1898_v6, %v935_v50  ;;  %v19632_v49 = vld [vmem:[#allocation11 + $0x300] ss:$24 sps:$4 sm:$0xff]  }
 0x281   : > { %21912 = verf.f32 %v1993_v62  ;;  %v1998_v9 = vmul.f32 0.70710677, %v18925_v3  ;;  %v2000_v10 = vmul.f32 0.70710677, %v18929_v4  ;;  %v1983_v18 = vmul.f32 0.5, %v18923_v54 }
 0x282   : > { %21914 = verf.f32 %v1995_v63  ;;  %v1999_v12 = vmul.f32 0.70710677, %v18926_v7  ;;  %v2001_v13 = vmul.f32 0.70710677, %v18930_v8  ;;  %v1985_v20 = vmul.f32 0.5, %v18927_v55 }
 0x283   : > { %21916 = verf.f32 %v1994_v1  ;;  %v1984_v22 = vmul.f32 0.5, %v18924_v58  ;;  %v1986_v23 = vmul.f32 0.5, %v18928_v59  ;;  %v1988_v26 = vmul.f32 0.5, %v18925_v3  ;;  %v19635_v50 = vld [vmem:[#allocation11 + $0x308] ss:$24 sps:$4 sm:$0xff]  }
 0x284   : > { %21918 = verf.f32 %v1996_v2  ;;  %v1990_v30 = vmul.f32 0.5, %v18929_v4  ;;  %v1989_v35 = vmul.f32 0.5, %v18926_v7  ;;  %v1991_v39 = vmul.f32 0.5, %v18930_v8  ;;  %v19643_v57 = vld [vmem:[#allocation11 + $0x33c] ss:$24 sps:$4 sm:$0xff]  }
 0x285   : > { %21920 = verf.f32 %v1998_v9  ;;  %v19638_v59 = vld [vmem:[#allocation11 + $0x330] ss:$24 sps:$4 sm:$0xff]   ;;  %v19646_v61 = vld [vmem:[#allocation11 + $0x364] ss:$24 sps:$4 sm:$0xff]   ;;  %v19644_v63 = vld [vmem:[#allocation11 + $0x360] ss:$24 sps:$4 sm:$0xff]  }
 0x286   : > { %21922 = verf.f32 %v2000_v10  ;;  %v19641_v60 = vld [vmem:[#allocation11 + $0x338] ss:$24 sps:$4 sm:$0xff]   ;;  %v19649_v62 = vld [vmem:[#allocation11 + $0x36c] ss:$24 sps:$4 sm:$0xff]   ;;  %v19647_v1 = vld [vmem:[#allocation11 + $0x368] ss:$24 sps:$4 sm:$0xff]  }
 0x287   : > { %21924 = verf.f32 %v1999_v12  ;;  %v19652_v4 = vld [vmem:[#allocation11 + $0x394] ss:$24 sps:$4 sm:$0xff]   ;;  %v19650_v9 = vld [vmem:[#allocation11 + $0x390] ss:$24 sps:$4 sm:$0xff]  }
 0x288   : > { %21926 = verf.f32 %v2001_v13  ;;  %v19655_v5 = vld [vmem:[#allocation11 + $0x39c] ss:$24 sps:$4 sm:$0xff]   ;;  %v19653_v10 = vld [vmem:[#allocation11 + $0x398] ss:$24 sps:$4 sm:$0xff]  }
 0x289   : > { %v19658_v13 = vld [vmem:[#allocation11 + $0x3c4] ss:$24 sps:$4 sm:$0xff]  }
 0x28b   : > { %v21913_v14 = vpop.eup %21912 }
 0x28c   : > { %v21915_v15 = vpop.eup %21914  ;;  %v2013_v19 = vadd.f32 1.0, %v21913_v14  ;;  %v19661_v14 = vld [vmem:[#allocation11 + $0x3cc] ss:$24 sps:$4 sm:$0xff]  }
 0x28d   : > { %v21917_v16 = vpop.eup %21916  ;;  %v2015_v51 = vadd.f32 1.0, %v21915_v15  ;;  %v19656_v15 = vld [vmem:[#allocation11 + $0x3c0] ss:$24 sps:$4 sm:$0xff]  }
 0x28e   : > { %v21919_v17 = vpop.eup %21918  ;;  %v2014_v25 = vadd.f32 1.0, %v21917_v16  ;;  %v2023_v33 = vmul.f32 %v2013_v19, %v1983_v18  ;;  %v19659_v16 = vld [vmem:[#allocation11 + $0x3c8] ss:$24 sps:$4 sm:$0xff]   ;;  %v19667_v18 = vld [vmem:[#allocation11 + $0x3fc] ss:$24 sps:$4 sm:$0xff]  }
 0x28f   : > { %v21921_v21 = vpop.eup %21920  ;;  %v2016_v29 = vadd.f32 1.0, %v21919_v17  ;;  %v2025_v37 = vmul.f32 %v2015_v51, %v1985_v20  ;;  %v19664_v17 = vld [vmem:[#allocation11 + $0x3f4] ss:$24 sps:$4 sm:$0xff]   ;;  %v19662_v19 = vld [vmem:[#allocation11 + $0x3f0] ss:$24 sps:$4 sm:$0xff]  }
 0x290   : > { %v21923_v24 = vpop.eup %21922  ;;  %v2018_v27 = vadd.f32 1.0, %v21921_v21  ;;  %v2024_v41 = vmul.f32 %v2014_v25, %v1984_v22  ;;  %v19665_v20 = vld [vmem:[#allocation11 + $0x3f8] ss:$24 sps:$4 sm:$0xff]   ;;  %v22976_v21 = vsub.s32 4, %v22934_v42  ;;  %v19670_v51 = vld [vmem:[#allocation11 + $0x424] ss:$24 sps:$4 sm:$0xff]  }
 0x291   : > { %v21925_v28 = vpop.eup %21924  ;;  %v2020_v31 = vadd.f32 1.0, %v21923_v24  ;;  %v2026_v52 = vmul.f32 %v2016_v29, %v1986_v23  ;;  %v19673_v22 = vld [vmem:[#allocation11 + $0x42c] ss:$24 sps:$4 sm:$0xff]   ;;  %v19668_v23 = vld [vmem:[#allocation11 + $0x420] ss:$24 sps:$4 sm:$0xff]  }
 0x292   : > { %v21927_v32 = vpop.eup %21926  ;;  %v2028_v34 = vmul.f32 %v2018_v27, %v1988_v26  ;;  %v2019_v36 = vadd.f32 1.0, %v21925_v28  ;;  %v19671_v24 = vld [vmem:[#allocation11 + $0x428] ss:$24 sps:$4 sm:$0xff]   ;;  %v939_v25 = vrot.slane %v22939_v43, %v22976_v21  ;;  %v19676_v26 = vld [vmem:[#allocation11 + $0x454] ss:$24 sps:$4 sm:$0xff]  }
 0x293   : > { %v2030_v38 = vmul.f32 %v2020_v31, %v1990_v30  ;;  %v2021_v40 = vadd.f32 1.0, %v21927_v32  ;;  %v19679_v27 = vld [vmem:[#allocation11 + $0x45c] ss:$24 sps:$4 sm:$0xff]   ;;  %v19674_v28 = vld [vmem:[#allocation11 + $0x450] ss:$24 sps:$4 sm:$0xff]  }
 0x294   : > { %v22961_v47 = vpack.c.bf16 %v2028_v34, %v2023_v33  ;;  %v2029_v48 = vmul.f32 %v2019_v36, %v1989_v35  ;;  %v19677_v29 = vld [vmem:[#allocation11 + $0x458] ss:$24 sps:$4 sm:$0xff]   ;;  %v19682_v31 = vld [vmem:[#allocation11 + $0x484] ss:$24 sps:$4 sm:$0xff]   ;;  %v19683_v35 = vld [vmem:[#allocation11 + $0x488] ss:$24 sps:$4 sm:$0xff]  }
 0x295   : > { %v22963_v53 = vpack.c.bf16 %v2030_v38, %v2025_v37  ;;  %v2031_v54 = vmul.f32 %v2021_v40, %v1991_v39  ;;  %v19685_v32 = vld [vmem:[#allocation11 + $0x48c] ss:$24 sps:$4 sm:$0xff]   ;;  %v19680_v34 = vld [vmem:[#allocation11 + $0x480] ss:$24 sps:$4 sm:$0xff]   ;;  %v19691_v40 = vld [vmem:[#allocation11 + $0x4bc] ss:$24 sps:$4 sm:$0xff]  }
 0x296   : > { %v22965_v55 = vpack.c.bf16 %v2029_v48, %v2024_v41  ;;  %v19688_v43 = vld [vmem:[#allocation11 + $0x4b4] ss:$24 sps:$4 sm:$0xff]  }
 0x297   : > { %v22967_v58 = vpack.c.bf16 %v2031_v54, %v2026_v52  ;;  %v19689_v52 = vld [vmem:[#allocation11 + $0x4b8] ss:$24 sps:$4 sm:$0xff]  }
 0x298   : > { %3542 = vmatprep.mubr.bf16.mxu0 %v22965_v55  ;;  %3671 = vmatprep.mubr.bf16.mxu1 %v22965_v55 }
 0x299   : > { %3543 = vmatmul.mubr.bf16.vlgmr.msra.gmra.mrb[8].mxu0 %v22961_v47  ;;  %3672 = vmatmul.mubr.bf16.vlgmr.msra.gmra.mrb[8].mxu1 %v22961_v47 }
 0x29a   : > { %3554 = vmatpush1.bf16.msra.mxu0 %v19632_v49  ;;  %3683 = vmatpush1.bf16.msra.mxu1 %v19635_v50  ;;  %v19686_v50 = vld [vmem:[#allocation11 + $0x4b0] ss:$24 sps:$4 sm:$0xff]  }
 0x29b   : > { %3585 = vmatprep.mubr.bf16.mxu0 %v22967_v58  ;;  %3714 = vmatprep.mubr.bf16.mxu1 %v22967_v58 }
 0x29c   : > { %3555 = vmatprep.subr.bf16.mxu0 %v19640_v56  ;;  %3684 = vmatprep.subr.bf16.mxu1 %v19643_v57  ;;  %v18673_v2 = vpop.f32.mrb[4].mxu0  ;;  %v19694_v56 = vld [vmem:[#allocation11 + $0x4e4] ss:$24 sps:$4 sm:$0xff]  }
 0x29d   : > { %v18674_v3 = vpop.f32.mrb[5].mxu0  ;;  %v19697_v57 = vld [vmem:[#allocation11 + $0x4ec] ss:$24 sps:$4 sm:$0xff]  }
 0x29e   : > { %3556 = vmatpush1.bf16.msra.mxu0 %v19638_v59  ;;  %3685 = vmatpush1.bf16.msra.mxu1 %v19641_v60  ;;  %v18675_v6 = vadd.f32 %v18674_v3, %v18673_v2  ;;  %v18676_v7 = vpop.f32.mrb[6].mxu0  ;;  %v19692_v59 = vld [vmem:[#allocation11 + $0x4e0] ss:$24 sps:$4 sm:$0xff]   ;;  %v19706_v2 = vld [vmem:[#allocation11 + $0x544] ss:$24 sps:$4 sm:$0xff]  }
 0x29f   : > { %3557 = vmatprep.subr.bf16.mxu0 %v19646_v61  ;;  %3686 = vmatprep.subr.bf16.mxu1 %v19649_v62  ;;  %v18677_v8 = vpop.f32.mrb[7].mxu0  ;;  %v19695_v60 = vld [vmem:[#allocation11 + $0x4e8] ss:$24 sps:$4 sm:$0xff]   ;;  %v19700_v61 = vld [vmem:[#allocation11 + $0x514] ss:$24 sps:$4 sm:$0xff]  }
 0x2a0   : > { %v18678_v12 = vadd.f32 %v18677_v8, %v18676_v7  ;;  %v1936_v30 = vadd.f32 %v18675_v6, %v939_v25  ;;  %v19703_v62 = vld [vmem:[#allocation11 + $0x51c] ss:$24 sps:$4 sm:$0xff]   ;;  %v19709_v3 = vld [vmem:[#allocation11 + $0x54c] ss:$24 sps:$4 sm:$0xff]   ;;  %v19704_v6 = vld [vmem:[#allocation11 + $0x540] ss:$24 sps:$4 sm:$0xff]  }
 0x2a1   : > { %v19707_v7 = vld [vmem:[#allocation11 + $0x548] ss:$24 sps:$4 sm:$0xff]  }
 0x2a2   : > { %3558 = vmatpush1.bf16.msra.mxu0 %v19644_v63  ;;  %3687 = vmatpush1.bf16.msra.mxu1 %v19647_v1  ;;  %v1939_v33 = vadd.f32 %v18678_v12, %v939_v25  ;;  %v19698_v63 = vld [vmem:[#allocation11 + $0x510] ss:$24 sps:$4 sm:$0xff]   ;;  %v19712_v12 = vld [vmem:[#allocation11 + $0x574] ss:$24 sps:$4 sm:$0xff]  }
 0x2a3   : > { %3559 = vmatprep.subr.bf16.mxu0 %v19652_v4  ;;  %3688 = vmatprep.subr.bf16.mxu1 %v19655_v5  ;;  %v19701_v1 = vld [vmem:[#allocation11 + $0x518] ss:$24 sps:$4 sm:$0xff]   ;;  %v19727_v25 = vld [vmem:[#allocation11 + $0x5dc] ss:$24 sps:$4 sm:$0xff]  }
 0x2a6   : > { %3560 = vmatpush1.bf16.msra.mxu0 %v19650_v9  ;;  %3689 = vmatpush1.bf16.msra.mxu1 %v19653_v10 }
 0x2a7   : > { %3561 = vmatprep.subr.bf16.mxu0 %v19658_v13  ;;  %3690 = vmatprep.subr.bf16.mxu1 %v19661_v14  ;;  %v19715_v13 = vld [vmem:[#allocation11 + $0x57c] ss:$24 sps:$4 sm:$0xff]  }
 0x2aa   : > { %3562 = vmatpush1.bf16.msra.mxu0 %v19656_v15  ;;  %3691 = vmatpush1.bf16.msra.mxu1 %v19659_v16  ;;  %v19710_v16 = vld [vmem:[#allocation11 + $0x570] ss:$24 sps:$4 sm:$0xff]  }
 0x2ab   : > { %3563 = vmatprep.subr.bf16.mxu0 %v19664_v17  ;;  %3692 = vmatprep.subr.bf16.mxu1 %v19667_v18  ;;  %v19713_v17 = vld [vmem:[#allocation11 + $0x578] ss:$24 sps:$4 sm:$0xff]  }
 0x2ae   : > { %3564 = vmatpush1.bf16.msra.mxu0 %v19662_v19  ;;  %3693 = vmatpush1.bf16.msra.mxu1 %v19665_v20  ;;  %v19718_v19 = vld [vmem:[#allocation11 + $0x5a4] ss:$24 sps:$4 sm:$0xff]  }
 0x2af   : > { %3565 = vmatprep.subr.bf16.mxu0 %v19670_v51  ;;  %3694 = vmatprep.subr.bf16.mxu1 %v19673_v22  ;;  %v19721_v20 = vld [vmem:[#allocation11 + $0x5ac] ss:$24 sps:$4 sm:$0xff]   ;;  %v19716_v22 = vld [vmem:[#allocation11 + $0x5a0] ss:$24 sps:$4 sm:$0xff]  }
 0x2b2   : > { %3566 = vmatpush1.bf16.msra.mxu0 %v19668_v23  ;;  %3695 = vmatpush1.bf16.msra.mxu1 %v19671_v24  ;;  %v19719_v23 = vld [vmem:[#allocation11 + $0x5a8] ss:$24 sps:$4 sm:$0xff]   ;;  %v19724_v24 = vld [vmem:[#allocation11 + $0x5d4] ss:$24 sps:$4 sm:$0xff]  }
 0x2b3   : > { %3567 = vmatprep.subr.bf16.mxu0 %v19676_v26  ;;  %3696 = vmatprep.subr.bf16.mxu1 %v19679_v27  ;;  %v19722_v26 = vld [vmem:[#allocation11 + $0x5d0] ss:$24 sps:$4 sm:$0xff]  }
 0x2b4   : > { %v1976_v36 = vpop.f32.mrb[4].mxu1  ;;  %v19725_v27 = vld [vmem:[#allocation11 + $0x5d8] ss:$24 sps:$4 sm:$0xff]  }
 0x2b5   : > { %v1977_v37 = vadd.f32 %v1976_v36, %v1936_v30  ;;  %v1978_v38 = vpop.f32.mrb[5].mxu1  ;;  %v19728_v30 = vld [vmem:[#allocation11 + $0x600] ss:$24 sps:$4 sm:$0xff]   ;;  %v19742_v36 = vld [vmem:[#allocation11 + $0x664] ss:$24 sps:$4 sm:$0xff]  }
 0x2b6   : > { %3568 = vmatpush1.bf16.msra.mxu0 %v19674_v28  ;;  %3697 = vmatpush1.bf16.msra.mxu1 %v19677_v29  ;;  %v1979_v39 = vpop.f32.mrb[6].mxu1  ;;  %v19730_v28 = vld [vmem:[#allocation11 + $0x604] ss:$24 sps:$4 sm:$0xff]   ;;  %v19743_v38 = vld [vmem:[#allocation11 + $0x668] ss:$24 sps:$4 sm:$0xff]  }
 0x2b7   : > { %3569 = vmatprep.subr.bf16.mxu0 %v19682_v31  ;;  %3698 = vmatprep.subr.bf16.mxu1 %v19685_v32  ;;  %v1997_v41 = vmul.f32 0.70710677, %v1977_v37  ;;  %v1980_v48 = vadd.f32 %v1979_v39, %v1939_v33  ;;  %v1981_v49 = vpop.f32.mrb[7].mxu1  ;;  %v1987_v4 = vmul.f32 0.5, %v1977_v37  ;;  %v19733_v29 = vld [vmem:[#allocation11 + $0x60c] ss:$24 sps:$4 sm:$0xff]  }
 0x2b8   : > { %v19731_v31 = vld [vmem:[#allocation11 + $0x608] ss:$24 sps:$4 sm:$0xff]   ;;  %v19736_v32 = vld [vmem:[#allocation11 + $0x634] ss:$24 sps:$4 sm:$0xff]   ;;  %v19754_v49 = vld [vmem:[#allocation11 + $0x6c4] ss:$24 sps:$4 sm:$0xff]  }
 0x2b9   : > { %21928 = verf.f32 %v1997_v41  ;;  %v2002_v54 = vmul.f32 0.70710677, %v1980_v48  ;;  %v1992_v9 = vmul.f32 0.5, %v1980_v48  ;;  %v19739_v33 = vld [vmem:[#allocation11 + $0x63c] ss:$24 sps:$4 sm:$0xff]  }
 0x2ba   : > { %3570 = vmatpush1.bf16.msra.mxu0 %v19680_v34  ;;  %3699 = vmatpush1.bf16.msra.mxu1 %v19683_v35  ;;  %v19734_v34 = vld [vmem:[#allocation11 + $0x630] ss:$24 sps:$4 sm:$0xff]   ;;  %v19740_v37 = vld [vmem:[#allocation11 + $0x660] ss:$24 sps:$4 sm:$0xff]   ;;  %v19748_v39 = vld [vmem:[#allocation11 + $0x694] ss:$24 sps:$4 sm:$0xff]  }
 0x2bb   : > { %3571 = vmatprep.subr.bf16.mxu0 %v19688_v43  ;;  %3700 = vmatprep.subr.bf16.mxu1 %v19691_v40  ;;  %21930 = verf.f32 %v2002_v54  ;;  %v19737_v35 = vld [vmem:[#allocation11 + $0x638] ss:$24 sps:$4 sm:$0xff]   ;;  %v19745_v43 = vld [vmem:[#allocation11 + $0x66c] ss:$24 sps:$4 sm:$0xff]   ;;  %v19751_v40 = vld [vmem:[#allocation11 + $0x69c] ss:$24 sps:$4 sm:$0xff]  }
 0x2bc   : > { %v19746_v41 = vld [vmem:[#allocation11 + $0x690] ss:$24 sps:$4 sm:$0xff]  }
 0x2bd   : > { %v19749_v48 = vld [vmem:[#allocation11 + $0x698] ss:$24 sps:$4 sm:$0xff]   ;;  %v19755_v54 = vld [vmem:[#allocation11 + $0x6c8] ss:$24 sps:$4 sm:$0xff]  }
 0x2be   : > { %3572 = vmatpush1.bf16.msra.mxu0 %v19686_v50  ;;  %3701 = vmatpush1.bf16.msra.mxu1 %v19689_v52  ;;  %v19757_v50 = vld [vmem:[#allocation11 + $0x6cc] ss:$24 sps:$4 sm:$0xff]   ;;  %v19752_v52 = vld [vmem:[#allocation11 + $0x6c0] ss:$24 sps:$4 sm:$0xff]  }
 0x2bf   : > { %3573 = vmatprep.subr.bf16.mxu0 %v19694_v56  ;;  %3702 = vmatprep.subr.bf16.mxu1 %v19697_v57  ;;  %v19760_v56 = vld [vmem:[#allocation11 + $0x6f4] ss:$24 sps:$4 sm:$0xff]  }
 0x2c0   : > { %v19763_v57 = vld [vmem:[#allocation11 + $0x6fc] ss:$24 sps:$4 sm:$0xff]  }
 0x2c2   : > { %3574 = vmatpush1.bf16.msra.mxu0 %v19692_v59  ;;  %3703 = vmatpush1.bf16.msra.mxu1 %v19695_v60  ;;  %v19758_v59 = vld [vmem:[#allocation11 + $0x6f0] ss:$24 sps:$4 sm:$0xff]  }
 0x2c3   : > { %v21929_v5 = vpop.eup %21928  ;;  %3575 = vmatprep.subr.bf16.mxu0 %v19700_v61  ;;  %3704 = vmatprep.subr.bf16.mxu1 %v19703_v62  ;;  %v19761_v60 = vld [vmem:[#allocation11 + $0x6f8] ss:$24 sps:$4 sm:$0xff]   ;;  %v19766_v61 = vld [vmem:[#allocation11 + $0x724] ss:$24 sps:$4 sm:$0xff]  }
 0x2c4   : > { %v2017_v8 = vadd.f32 1.0, %v21929_v5  ;;  %v19769_v62 = vld [vmem:[#allocation11 + $0x72c] ss:$24 sps:$4 sm:$0xff]   ;;  %v19773_v5 = vld [vmem:[#allocation11 + $0x758] ss:$24 sps:$4 sm:$0xff]  }
 0x2c5   : > { %v21931_v10 = vpop.eup %21930 }
 0x2c6   : > { %3576 = vmatpush1.bf16.msra.mxu0 %v19698_v63  ;;  %3705 = vmatpush1.bf16.msra.mxu1 %v19701_v1  ;;  %v2027_v14 = vmul.f32 %v2017_v8, %v1987_v4  ;;  %v2022_v15 = vadd.f32 1.0, %v21931_v10  ;;  %v19764_v63 = vld [vmem:[#allocation11 + $0x720] ss:$24 sps:$4 sm:$0xff]   ;;  %v19770_v4 = vld [vmem:[#allocation11 + $0x750] ss:$24 sps:$4 sm:$0xff]  }
 0x2c7   : > { %3577 = vmatprep.subr.bf16.mxu0 %v19706_v2  ;;  %3706 = vmatprep.subr.bf16.mxu1 %v19709_v3  ;;  %v19767_v1 = vld [vmem:[#allocation11 + $0x728] ss:$24 sps:$4 sm:$0xff]   ;;  %v19772_v2 = vld [vmem:[#allocation11 + $0x754] ss:$24 sps:$4 sm:$0xff]   ;;  %v19781_v8 = vld [vmem:[#allocation11 + $0x44] ss:$24 sps:$4 sm:$0xff]  }
 0x2c8   : > { %v2032_v18 = vmul.f32 %v2022_v15, %v1992_v9  ;;  %v19775_v3 = vld [vmem:[#allocation11 + $0x75c] ss:$24 sps:$4 sm:$0xff]   ;;  %v19779_v9 = vld [vmem:[#allocation11 + $0x40] ss:$24 sps:$4 sm:$0xff]  }
 0x2c9   : > { %v19784_v10 = vld [vmem:[#allocation11 + $0x74] ss:$24 sps:$4 sm:$0xff]  }
 0x2ca   : > { %3578 = vmatpush1.bf16.msra.mxu0 %v19704_v6  ;;  %3707 = vmatpush1.bf16.msra.mxu1 %v19707_v7  ;;  %v22980_v51 = vpack.c.bf16 %v2032_v18, %v2027_v14  ;;  %v19778_v6 = vld [vmem:[#allocation11 + $0x14] ss:$24 sps:$4 sm:$0xff]   ;;  %v19776_v7 = vld [vmem:[#allocation11 + $0x10] ss:$24 sps:$4 sm:$0xff]   ;;  %v19785_v14 = vld [vmem:[#allocation11 + $0xa0] ss:$24 sps:$4 sm:$0xff]  }
 0x2cb   : > { %3579 = vmatprep.subr.bf16.mxu0 %v19712_v12  ;;  %3708 = vmatprep.subr.bf16.mxu1 %v19715_v13  ;;  %v19782_v12 = vld [vmem:[#allocation11 + $0x70] ss:$24 sps:$4 sm:$0xff]   ;;  %v19787_v13 = vld [vmem:[#allocation11 + $0xa4] ss:$24 sps:$4 sm:$0xff]   ;;  %v19790_v15 = vld [vmem:[#allocation11 + $0xd4] ss:$24 sps:$4 sm:$0xff]  }
 0x2cc   : > { %v19791_v18 = vld [vmem:[#allocation11 + $0x100] ss:$24 sps:$4 sm:$0xff]  }
 0x2ce   : > { %3580 = vmatpush1.bf16.msra.mxu0 %v19710_v16  ;;  %3709 = vmatpush1.bf16.msra.mxu1 %v19713_v17  ;;  %v19788_v16 = vld [vmem:[#allocation11 + $0xd0] ss:$24 sps:$4 sm:$0xff]   ;;  %v19793_v17 = vld [vmem:[#allocation11 + $0x104] ss:$24 sps:$4 sm:$0xff]  }
 0x2cf   : > { %3581 = vmatprep.subr.bf16.mxu0 %v19718_v19  ;;  %3710 = vmatprep.subr.bf16.mxu1 %v19721_v20  ;;  %v19796_v19 = vld [vmem:[#allocation11 + $0x134] ss:$24 sps:$4 sm:$0xff]   ;;  %v19799_v20 = vld [vmem:[#allocation11 + $0x164] ss:$24 sps:$4 sm:$0xff]  }
 0x2d2   : > { %3582 = vmatpush1.bf16.msra.mxu0 %v19716_v22  ;;  %3711 = vmatpush1.bf16.msra.mxu1 %v19719_v23  ;;  %v19797_v22 = vld [vmem:[#allocation11 + $0x160] ss:$24 sps:$4 sm:$0xff]   ;;  %v19802_v23 = vld [vmem:[#allocation11 + $0x194] ss:$24 sps:$4 sm:$0xff]  }
 0x2d3   : > { %3583 = vmatprep.subr.bf16.mxu0 %v19724_v24  ;;  %3712 = vmatprep.subr.bf16.mxu1 %v19727_v25  ;;  %v19800_v24 = vld [vmem:[#allocation11 + $0x190] ss:$24 sps:$4 sm:$0xff]   ;;  %v19805_v25 = vld [vmem:[#allocation11 + $0x1c4] ss:$24 sps:$4 sm:$0xff]  }
 0x2d6   : > { %3584 = vmatpush1.bf16.msra.mxu0 %v19722_v26  ;;  %3713 = vmatpush1.bf16.msra.mxu1 %v19725_v27  ;;  %v19896_v26 = vld [vmem:[#allocation12] ss:$24 sps:$4 sm:$0xff]   ;;  %v19898_v27 = vld [vmem:[#allocation12 + $0x4] ss:$24 sps:$4 sm:$0xff]  }
 0x2d7   : > { %3596 = vmatprep.subr.bf16.mxu0 %v19730_v28  ;;  %3725 = vmatprep.subr.bf16.mxu1 %v19733_v29  ;;  %v19803_v28 = vld [vmem:[#allocation11 + $0x1c0] ss:$24 sps:$4 sm:$0xff]   ;;  %v19904_v29 = vld [vmem:[#allocation12 + $0x34] ss:$24 sps:$4 sm:$0xff]  }
 0x2d9   : > { %3586 = vmatmul.mubr.bf16.vlgmr.msra.gmra.mrb[8].mxu0 %v22963_v53  ;;  %3715 = vmatmul.mubr.bf16.vlgmr.msra.gmra.mrb[8].mxu1 %v22963_v53 }
 0x2da   : > { %3597 = vmatpush1.bf16.msra.mxu0 %v19728_v30  ;;  %3726 = vmatpush1.bf16.msra.mxu1 %v19731_v31  ;;  %v19808_v30 = vld [vmem:[#allocation11 + $0x1f4] ss:$24 sps:$4 sm:$0xff]   ;;  %v19902_v31 = vld [vmem:[#allocation12 + $0x30] ss:$24 sps:$4 sm:$0xff]  }
 0x2db   : > { %3598 = vmatprep.subr.bf16.mxu0 %v19736_v32  ;;  %3727 = vmatprep.subr.bf16.mxu1 %v19739_v33  ;;  %v19806_v32 = vld [vmem:[#allocation11 + $0x1f0] ss:$24 sps:$4 sm:$0xff]   ;;  %v19811_v33 = vld [vmem:[#allocation11 + $0x224] ss:$24 sps:$4 sm:$0xff]  }
 0x2dc   : > { %3628 = vmatprep.mubr.bf16.mxu0 %v22481_v0  ;;  %3757 = vmatprep.mubr.bf16.mxu1 %v22481_v0 }
 0x2de   : > { %3599 = vmatpush1.bf16.msra.mxu0 %v19734_v34  ;;  %3728 = vmatpush1.bf16.msra.mxu1 %v19737_v35  ;;  %v19910_v34 = vld [vmem:[#allocation12 + $0x64] ss:$24 sps:$4 sm:$0xff]   ;;  %v19908_v35 = vld [vmem:[#allocation12 + $0x60] ss:$24 sps:$4 sm:$0xff]  }
 0x2df   : > { %3600 = vmatprep.subr.bf16.mxu0 %v19742_v36  ;;  %3729 = vmatprep.subr.bf16.mxu1 %v19745_v43  ;;  %v19809_v36 = vld [vmem:[#allocation11 + $0x220] ss:$24 sps:$4 sm:$0xff]   ;;  %v19814_v43 = vld [vmem:[#allocation11 + $0x254] ss:$24 sps:$4 sm:$0xff]  }
 0x2e2   : > { %3601 = vmatpush1.bf16.msra.mxu0 %v19740_v37  ;;  %3730 = vmatpush1.bf16.msra.mxu1 %v19743_v38  ;;  %v19916_v37 = vld [vmem:[#allocation12 + $0x94] ss:$24 sps:$4 sm:$0xff]   ;;  %v19914_v38 = vld [vmem:[#allocation12 + $0x90] ss:$24 sps:$4 sm:$0xff]  }
 0x2e3   : > { %3602 = vmatprep.subr.bf16.mxu0 %v19748_v39  ;;  %3731 = vmatprep.subr.bf16.mxu1 %v19751_v40  ;;  %v19812_v39 = vld [vmem:[#allocation11 + $0x250] ss:$24 sps:$4 sm:$0xff]   ;;  %v19817_v40 = vld [vmem:[#allocation11 + $0x284] ss:$24 sps:$4 sm:$0xff]  }
 0x2e6   : > { %3603 = vmatpush1.bf16.msra.mxu0 %v19746_v41  ;;  %3732 = vmatpush1.bf16.msra.mxu1 %v19749_v48  ;;  %v19922_v41 = vld [vmem:[#allocation12 + $0xc4] ss:$24 sps:$4 sm:$0xff]   ;;  %v19920_v48 = vld [vmem:[#allocation12 + $0xc0] ss:$24 sps:$4 sm:$0xff]  }
 0x2e7   : > { %3604 = vmatprep.subr.bf16.mxu0 %v19754_v49  ;;  %3733 = vmatprep.subr.bf16.mxu1 %v19757_v50  ;;  %v19815_v49 = vld [vmem:[#allocation11 + $0x280] ss:$24 sps:$4 sm:$0xff]   ;;  %v19820_v50 = vld [vmem:[#allocation11 + $0x2b4] ss:$24 sps:$4 sm:$0xff]  }
 0x2ea   : > { %3605 = vmatpush1.bf16.msra.mxu0 %v19752_v52  ;;  %3734 = vmatpush1.bf16.msra.mxu1 %v19755_v54  ;;  %v19928_v52 = vld [vmem:[#allocation12 + $0xf4] ss:$24 sps:$4 sm:$0xff]   ;;  %v19926_v54 = vld [vmem:[#allocation12 + $0xf0] ss:$24 sps:$4 sm:$0xff]  }
 0x2eb   : > { %3606 = vmatprep.subr.bf16.mxu0 %v19760_v56  ;;  %3735 = vmatprep.subr.bf16.mxu1 %v19763_v57  ;;  %v19818_v56 = vld [vmem:[#allocation11 + $0x2b0] ss:$24 sps:$4 sm:$0xff]   ;;  %v19823_v57 = vld [vmem:[#allocation11 + $0x2e4] ss:$24 sps:$4 sm:$0xff]  }
 0x2ee   : > { %3607 = vmatpush1.bf16.msra.mxu0 %v19758_v59  ;;  %3736 = vmatpush1.bf16.msra.mxu1 %v19761_v60  ;;  %v19934_v59 = vld [vmem:[#allocation12 + $0x124] ss:$24 sps:$4 sm:$0xff]   ;;  %v19932_v60 = vld [vmem:[#allocation12 + $0x120] ss:$24 sps:$4 sm:$0xff]  }
 0x2ef   : > { %3608 = vmatprep.subr.bf16.mxu0 %v19766_v61  ;;  %3737 = vmatprep.subr.bf16.mxu1 %v19769_v62  ;;  %v19821_v61 = vld [vmem:[#allocation11 + $0x2e0] ss:$24 sps:$4 sm:$0xff]   ;;  %v19826_v62 = vld [vmem:[#allocation11 + $0x314] ss:$24 sps:$4 sm:$0xff]  }
 0x2f2   : > { %3609 = vmatpush1.bf16.msra.mxu0 %v19764_v63  ;;  %3738 = vmatpush1.bf16.msra.mxu1 %v19767_v1  ;;  %v19940_v63 = vld [vmem:[#allocation12 + $0x154] ss:$24 sps:$4 sm:$0xff]   ;;  %v19938_v1 = vld [vmem:[#allocation12 + $0x150] ss:$24 sps:$4 sm:$0xff]  }
 0x2f3   : > { %3610 = vmatprep.subr.bf16.mxu0 %v19772_v2  ;;  %3739 = vmatprep.subr.bf16.mxu1 %v19775_v3  ;;  %v19824_v2 = vld [vmem:[#allocation11 + $0x310] ss:$24 sps:$4 sm:$0xff]   ;;  %v19829_v3 = vld [vmem:[#allocation11 + $0x344] ss:$24 sps:$4 sm:$0xff]  }
 0x2f6   : > { %3611 = vmatpush1.bf16.msra.mxu0 %v19770_v4  ;;  %3740 = vmatpush1.bf16.msra.mxu1 %v19773_v5  ;;  %v19946_v4 = vld [vmem:[#allocation12 + $0x184] ss:$24 sps:$4 sm:$0xff]   ;;  %v19944_v5 = vld [vmem:[#allocation12 + $0x180] ss:$24 sps:$4 sm:$0xff]  }
 0x2f7   : > { %3768 = vmatprep.subr.bf16.mxu0 %v19778_v6  ;;  %5723 = vmatprep.subr.bf16.mxu1 %v19898_v27  ;;  %v19827_v6 = vld [vmem:[#allocation11 + $0x340] ss:$24 sps:$4 sm:$0xff]   ;;  %v19970_v27 = vld [vmem:[#allocation12 + $0x244] ss:$24 sps:$4 sm:$0xff]  }
 0x2f9   : > { %3629 = vmatmul.mubr.bf16.vlgmr.msra.gmra.mrb[8].mxu0 %v22980_v51  ;;  %3758 = vmatmul.mubr.bf16.vlgmr.msra.gmra.mrb[8].mxu1 %v22980_v51 }
 0x2fa   : > { %3769 = vmatpush1.bf16.msra.mxu0 %v19776_v7  ;;  %3800 = vmatprep.mubr.bf16.mxu0 %v22965_v55  ;;  %v19794_v55 = vld [vmem:[#allocation11 + $0x130] ss:$24 sps:$4 sm:$0xff]   ;;  %v19832_v7 = vld [vmem:[#allocation11 + $0x374] ss:$24 sps:$4 sm:$0xff]  }
 0x2fb   : > { %3770 = vmatprep.subr.bf16.mxu0 %v19781_v8  ;;  %5724 = vmatpush1.bf16.msra.mxu1 %v19896_v26  ;;  %v19952_v8 = vld [vmem:[#allocation12 + $0x1b4] ss:$24 sps:$4 sm:$0xff]   ;;  %v19853_v26 = vld [vmem:[#allocation11 + $0x4c4] ss:$24 sps:$4 sm:$0xff]  }
 0x2fc   : > { %5725 = vmatprep.subr.bf16.mxu1 %v19904_v29  ;;  %v19968_v29 = vld [vmem:[#allocation12 + $0x240] ss:$24 sps:$4 sm:$0xff]  }
 0x2fe   : > { %3771 = vmatpush1.bf16.msra.mxu0 %v19779_v9  ;;  %v19950_v9 = vld [vmem:[#allocation12 + $0x1b0] ss:$24 sps:$4 sm:$0xff]  }
 0x2ff   : > { %3772 = vmatprep.subr.bf16.mxu0 %v19784_v10  ;;  %5726 = vmatpush1.bf16.msra.mxu1 %v19902_v31  ;;  %v19830_v10 = vld [vmem:[#allocation11 + $0x370] ss:$24 sps:$4 sm:$0xff]   ;;  %v19976_v31 = vld [vmem:[#allocation12 + $0x274] ss:$24 sps:$4 sm:$0xff]  }
 0x300   : > { %5727 = vmatprep.subr.bf16.mxu1 %v19910_v34  ;;  %v19859_v34 = vld [vmem:[#allocation11 + $0x524] ss:$24 sps:$4 sm:$0xff]  }
 0x302   : > { %3773 = vmatpush1.bf16.msra.mxu0 %v19782_v12  ;;  %v19835_v12 = vld [vmem:[#allocation11 + $0x3a4] ss:$24 sps:$4 sm:$0xff]  }
 0x303   : > { %3774 = vmatprep.subr.bf16.mxu0 %v19787_v13  ;;  %5728 = vmatpush1.bf16.msra.mxu1 %v19908_v35  ;;  %v19833_v13 = vld [vmem:[#allocation11 + $0x3a0] ss:$24 sps:$4 sm:$0xff]   ;;  %v19982_v35 = vld [vmem:[#allocation12 + $0x2a4] ss:$24 sps:$4 sm:$0xff]  }
 0x304   : > { %5729 = vmatprep.subr.bf16.mxu1 %v19916_v37  ;;  %v19862_v37 = vld [vmem:[#allocation11 + $0x554] ss:$24 sps:$4 sm:$0xff]  }
 0x306   : > { %3775 = vmatpush1.bf16.msra.mxu0 %v19785_v14  ;;  %v19838_v14 = vld [vmem:[#allocation11 + $0x3d4] ss:$24 sps:$4 sm:$0xff]  }
 0x307   : > { %3776 = vmatprep.subr.bf16.mxu0 %v19790_v15  ;;  %5730 = vmatpush1.bf16.msra.mxu1 %v19914_v38  ;;  %v19841_v15 = vld [vmem:[#allocation11 + $0x404] ss:$24 sps:$4 sm:$0xff]   ;;  %v19988_v38 = vld [vmem:[#allocation12 + $0x2d4] ss:$24 sps:$4 sm:$0xff]  }
 0x308   : > { %5731 = vmatprep.subr.bf16.mxu1 %v19922_v41  ;;  %v19865_v41 = vld [vmem:[#allocation11 + $0x584] ss:$24 sps:$4 sm:$0xff]  }
 0x30a   : > { %3777 = vmatpush1.bf16.msra.mxu0 %v19788_v16  ;;  %v19844_v16 = vld [vmem:[#allocation11 + $0x434] ss:$24 sps:$4 sm:$0xff]  }
 0x30b   : > { %3778 = vmatprep.subr.bf16.mxu0 %v19793_v17  ;;  %5732 = vmatpush1.bf16.msra.mxu1 %v19920_v48  ;;  %v19842_v17 = vld [vmem:[#allocation11 + $0x430] ss:$24 sps:$4 sm:$0xff]   ;;  %v19994_v48 = vld [vmem:[#allocation12 + $0x304] ss:$24 sps:$4 sm:$0xff]  }
 0x30c   : > { %5733 = vmatprep.subr.bf16.mxu1 %v19928_v52  ;;  %v19866_v52 = vld [vmem:[#allocation11 + $0x5b0] ss:$24 sps:$4 sm:$0xff]  }
 0x30e   : > { %3779 = vmatpush1.bf16.msra.mxu0 %v19791_v18  ;;  %v19958_v18 = vld [vmem:[#allocation12 + $0x1e4] ss:$24 sps:$4 sm:$0xff]  }
 0x30f   : > { %3780 = vmatprep.subr.bf16.mxu0 %v19796_v19  ;;  %5734 = vmatpush1.bf16.msra.mxu1 %v19926_v54  ;;  %v19847_v19 = vld [vmem:[#allocation11 + $0x464] ss:$24 sps:$4 sm:$0xff]  }
 0x310   : > { %5735 = vmatprep.subr.bf16.mxu1 %v19934_v59  ;;  %v19871_v54 = vld [vmem:[#allocation11 + $0x5e4] ss:$24 sps:$4 sm:$0xff]   ;;  %v19872_v59 = vld [vmem:[#allocation11 + $0x610] ss:$24 sps:$4 sm:$0xff]  }
 0x312   : > { %3781 = vmatpush1.bf16.msra.mxu0 %v19794_v55  ;;  %v19956_v55 = vld [vmem:[#allocation12 + $0x1e0] ss:$24 sps:$4 sm:$0xff]  }
 0x313   : > { %3782 = vmatprep.subr.bf16.mxu0 %v19799_v20  ;;  %5736 = vmatpush1.bf16.msra.mxu1 %v19932_v60  ;;  %v19845_v20 = vld [vmem:[#allocation11 + $0x460] ss:$24 sps:$4 sm:$0xff]   ;;  %v19877_v60 = vld [vmem:[#allocation11 + $0x644] ss:$24 sps:$4 sm:$0xff]  }
 0x314   : > { %5737 = vmatprep.subr.bf16.mxu1 %v19940_v63  ;;  %v19878_v63 = vld [vmem:[#allocation11 + $0x670] ss:$24 sps:$4 sm:$0xff]  }
 0x316   : > { %3783 = vmatpush1.bf16.msra.mxu0 %v19797_v22  ;;  %v19850_v22 = vld [vmem:[#allocation11 + $0x494] ss:$24 sps:$4 sm:$0xff]  }
 0x317   : > { %3784 = vmatprep.subr.bf16.mxu0 %v19802_v23  ;;  %5738 = vmatpush1.bf16.msra.mxu1 %v19938_v1  ;;  %v19964_v23 = vld [vmem:[#allocation12 + $0x214] ss:$24 sps:$4 sm:$0xff]   ;;  %v19883_v1 = vld [vmem:[#allocation11 + $0x6a4] ss:$24 sps:$4 sm:$0xff]  }
 0x318   : > { %5739 = vmatprep.subr.bf16.mxu1 %v19946_v4  ;;  %v19884_v4 = vld [vmem:[#allocation11 + $0x6d0] ss:$24 sps:$4 sm:$0xff]  }
 0x31a   : > { %3785 = vmatpush1.bf16.msra.mxu0 %v19800_v24  ;;  %v19848_v24 = vld [vmem:[#allocation11 + $0x490] ss:$24 sps:$4 sm:$0xff]  }
 0x31b   : > { %3786 = vmatprep.subr.bf16.mxu0 %v19805_v25  ;;  %5740 = vmatpush1.bf16.msra.mxu1 %v19944_v5  ;;  %v19962_v25 = vld [vmem:[#allocation12 + $0x210] ss:$24 sps:$4 sm:$0xff]   ;;  %v19889_v5 = vld [vmem:[#allocation11 + $0x704] ss:$24 sps:$4 sm:$0xff]  }
 0x31c   : > { %5741 = vmatprep.subr.bf16.mxu1 %v19952_v8  ;;  %v19895_v8 = vld [vmem:[#allocation11 + $0x764] ss:$24 sps:$4 sm:$0xff]  }
 0x31e   : > { %3787 = vmatpush1.bf16.msra.mxu0 %v19803_v28  ;;  %v19851_v28 = vld [vmem:[#allocation11 + $0x4c0] ss:$24 sps:$4 sm:$0xff]  }
 0x31f   : > { %3788 = vmatprep.subr.bf16.mxu0 %v19808_v30  ;;  %5742 = vmatpush1.bf16.msra.mxu1 %v19950_v9  ;;  %v19856_v30 = vld [vmem:[#allocation11 + $0x4f4] ss:$24 sps:$4 sm:$0xff]   ;;  %v19893_v9 = vld [vmem:[#allocation11 + $0x760] ss:$24 sps:$4 sm:$0xff]  }
 0x320   : > { %5743 = vmatprep.subr.bf16.mxu1 %v19958_v18  ;;  %v19923_v18 = vld [vmem:[#allocation12 + $0xc8] ss:$24 sps:$4 sm:$0xff]  }
 0x322   : > { %3789 = vmatpush1.bf16.msra.mxu0 %v19806_v32  ;;  %v19854_v32 = vld [vmem:[#allocation11 + $0x4f0] ss:$24 sps:$4 sm:$0xff]  }
 0x323   : > { %3790 = vmatprep.subr.bf16.mxu0 %v19811_v33  ;;  %5744 = vmatpush1.bf16.msra.mxu1 %v19956_v55  ;;  %v19974_v33 = vld [vmem:[#allocation12 + $0x270] ss:$24 sps:$4 sm:$0xff]  }
 0x324   : > { %5745 = vmatprep.subr.bf16.mxu1 %v19964_v23  ;;  %v19929_v55 = vld [vmem:[#allocation12 + $0xf8] ss:$24 sps:$4 sm:$0xff]  }
 0x325   : > { %v19941_v23 = vld [vmem:[#allocation12 + $0x158] ss:$24 sps:$4 sm:$0xff]  }
 0x326   : > { %3791 = vmatpush1.bf16.msra.mxu0 %v19809_v36  ;;  %v19857_v36 = vld [vmem:[#allocation11 + $0x520] ss:$24 sps:$4 sm:$0xff]  }
 0x327   : > { %3792 = vmatprep.subr.bf16.mxu0 %v19814_v43  ;;  %5746 = vmatpush1.bf16.msra.mxu1 %v19962_v25  ;;  %v19980_v43 = vld [vmem:[#allocation12 + $0x2a0] ss:$24 sps:$4 sm:$0xff]  }
 0x328   : > { %5747 = vmatprep.subr.bf16.mxu1 %v19970_v27  ;;  %v19947_v25 = vld [vmem:[#allocation12 + $0x188] ss:$24 sps:$4 sm:$0xff]   ;;  %v19953_v27 = vld [vmem:[#allocation12 + $0x1b8] ss:$24 sps:$4 sm:$0xff]  }
 0x32a   : > { %3793 = vmatpush1.bf16.msra.mxu0 %v19812_v39  ;;  %v19860_v39 = vld [vmem:[#allocation11 + $0x550] ss:$24 sps:$4 sm:$0xff]  }
 0x32b   : > { %3794 = vmatprep.subr.bf16.mxu0 %v19817_v40  ;;  %5748 = vmatpush1.bf16.msra.mxu1 %v19968_v29  ;;  %v19986_v40 = vld [vmem:[#allocation12 + $0x2d0] ss:$24 sps:$4 sm:$0xff]  }
 0x32c   : > { %5749 = vmatprep.subr.bf16.mxu1 %v19976_v31  ;;  %v19959_v29 = vld [vmem:[#allocation12 + $0x1e8] ss:$24 sps:$4 sm:$0xff]   ;;  %v19965_v31 = vld [vmem:[#allocation12 + $0x218] ss:$24 sps:$4 sm:$0xff]  }
 0x32e   : > { %3795 = vmatpush1.bf16.msra.mxu0 %v19815_v49  ;;  %v19863_v49 = vld [vmem:[#allocation11 + $0x580] ss:$24 sps:$4 sm:$0xff]  }
 0x32f   : > { %3796 = vmatprep.subr.bf16.mxu0 %v19820_v50  ;;  %5750 = vmatpush1.bf16.msra.mxu1 %v19974_v33  ;;  %v19868_v50 = vld [vmem:[#allocation11 + $0x5b4] ss:$24 sps:$4 sm:$0xff]  }
 0x330   : > { %5751 = vmatprep.subr.bf16.mxu1 %v19982_v35  ;;  %v2278_v33 = vld [vmem:[%s25352_s11 + $0x5] sm:$0x3f] }
 0x331   : > { %v19979_v35 = vld [vmem:[#allocation12 + $0x27c] ss:$24 sps:$4 sm:$0xff]  }
 0x332   : > { %3797 = vmatpush1.bf16.msra.mxu0 %v19818_v56  ;;  %v19869_v56 = vld [vmem:[#allocation11 + $0x5e0] ss:$24 sps:$4 sm:$0xff]  }
 0x333   : > { %3798 = vmatprep.subr.bf16.mxu0 %v19823_v57  ;;  %5752 = vmatpush1.bf16.msra.mxu1 %v19980_v43  ;;  %v19874_v57 = vld [vmem:[#allocation11 + $0x614] ss:$24 sps:$4 sm:$0xff]   ;;  %v2291_v43 = vrot.slane %v2278_v33, %v22945_v11 }
 0x334   : > { %5753 = vmatprep.subr.bf16.mxu1 %v19988_v38  ;;  %v2295_v38 = vrot.slane %v2278_v33, %v22951_v46 }
 0x336   : > { %3799 = vmatpush1.bf16.msra.mxu0 %v19821_v61  ;;  %v19875_v61 = vld [vmem:[#allocation11 + $0x640] ss:$24 sps:$4 sm:$0xff]  }
 0x337   : > { %3811 = vmatprep.subr.bf16.mxu0 %v19826_v62  ;;  %5754 = vmatpush1.bf16.msra.mxu1 %v19986_v40  ;;  %v19880_v62 = vld [vmem:[#allocation11 + $0x674] ss:$24 sps:$4 sm:$0xff]  }
 0x338   : > { %5766 = vmatprep.subr.bf16.mxu1 %v19994_v48  ;;  %v19985_v40 = vld [vmem:[#allocation12 + $0x2ac] ss:$24 sps:$4 sm:$0xff]  }
 0x339   : > { %3801 = vmatmul.mubr.bf16.vlgmr.msra.gmra.mrb[12].mxu0 %v22961_v47  ;;  %v19836_v47 = vld [vmem:[#allocation11 + $0x3d0] ss:$24 sps:$4 sm:$0xff]  }
 0x33a   : > { %3812 = vmatpush1.bf16.msra.mxu0 %v19824_v2  ;;  %3843 = vmatprep.mubr.bf16.mxu0 %v22967_v58  ;;  %v19839_v58 = vld [vmem:[#allocation11 + $0x400] ss:$24 sps:$4 sm:$0xff]  }
 0x33b   : > { %3813 = vmatprep.subr.bf16.mxu0 %v19829_v3  ;;  %v19881_v2 = vld [vmem:[#allocation11 + $0x6a0] ss:$24 sps:$4 sm:$0xff]   ;;  %v19886_v3 = vld [vmem:[#allocation11 + $0x6d4] ss:$24 sps:$4 sm:$0xff]  }
 0x33e   : > { %3814 = vmatpush1.bf16.msra.mxu0 %v19827_v6  ;;  %v19892_v6 = vld [vmem:[#allocation11 + $0x734] ss:$24 sps:$4 sm:$0xff]  }
 0x33f   : > { %3815 = vmatprep.subr.bf16.mxu0 %v19832_v7  ;;  %v19890_v7 = vld [vmem:[#allocation11 + $0x730] ss:$24 sps:$4 sm:$0xff]  }
 0x342   : > { %3816 = vmatpush1.bf16.msra.mxu0 %v19830_v10  ;;  %v19901_v10 = vld [vmem:[#allocation12 + $0xc] ss:$24 sps:$4 sm:$0xff]  }
 0x343   : > { %3817 = vmatprep.subr.bf16.mxu0 %v19835_v12  ;;  %v19899_v12 = vld [vmem:[#allocation12 + $0x8] ss:$24 sps:$4 sm:$0xff]  }
 0x346   : > { %3818 = vmatpush1.bf16.msra.mxu0 %v19833_v13  ;;  %v19907_v13 = vld [vmem:[#allocation12 + $0x3c] ss:$24 sps:$4 sm:$0xff]  }
 0x347   : > { %3819 = vmatprep.subr.bf16.mxu0 %v19838_v14  ;;  %v19905_v14 = vld [vmem:[#allocation12 + $0x38] ss:$24 sps:$4 sm:$0xff]  }
 0x34a   : > { %3820 = vmatpush1.bf16.msra.mxu0 %v19836_v47  ;;  %v19913_v47 = vld [vmem:[#allocation12 + $0x6c] ss:$24 sps:$4 sm:$0xff]  }
 0x34b   : > { %3821 = vmatprep.subr.bf16.mxu0 %v19841_v15  ;;  %v19911_v15 = vld [vmem:[#allocation12 + $0x68] ss:$24 sps:$4 sm:$0xff]  }
 0x34e   : > { %3822 = vmatpush1.bf16.msra.mxu0 %v19839_v58  ;;  %v19919_v58 = vld [vmem:[#allocation12 + $0x9c] ss:$24 sps:$4 sm:$0xff]  }
 0x34f   : > { %3823 = vmatprep.subr.bf16.mxu0 %v19844_v16  ;;  %v19917_v16 = vld [vmem:[#allocation12 + $0x98] ss:$24 sps:$4 sm:$0xff]  }
 0x352   : > { %3824 = vmatpush1.bf16.msra.mxu0 %v19842_v17  ;;  %v19925_v17 = vld [vmem:[#allocation12 + $0xcc] ss:$24 sps:$4 sm:$0xff]  }
 0x353   : > { %3825 = vmatprep.subr.bf16.mxu0 %v19847_v19  ;;  %v19931_v19 = vld [vmem:[#allocation12 + $0xfc] ss:$24 sps:$4 sm:$0xff]  }
 0x356   : > { %3826 = vmatpush1.bf16.msra.mxu0 %v19845_v20  ;;  %v19935_v20 = vld [vmem:[#allocation12 + $0x128] ss:$24 sps:$4 sm:$0xff]  }
 0x357   : > { %3827 = vmatprep.subr.bf16.mxu0 %v19850_v22  ;;  %v19943_v22 = vld [vmem:[#allocation12 + $0x15c] ss:$24 sps:$4 sm:$0xff]  }
 0x35a   : > { %3828 = vmatpush1.bf16.msra.mxu0 %v19848_v24  ;;  %v19949_v24 = vld [vmem:[#allocation12 + $0x18c] ss:$24 sps:$4 sm:$0xff]  }
 0x35b   : > { %3829 = vmatprep.subr.bf16.mxu0 %v19853_v26  ;;  %v19955_v26 = vld [vmem:[#allocation12 + $0x1bc] ss:$24 sps:$4 sm:$0xff]  }
 0x35e   : > { %3830 = vmatpush1.bf16.msra.mxu0 %v19851_v28  ;;  %v19961_v28 = vld [vmem:[#allocation12 + $0x1ec] ss:$24 sps:$4 sm:$0xff]  }
 0x35f   : > { %3831 = vmatprep.subr.bf16.mxu0 %v19856_v30  ;;  %v19967_v30 = vld [vmem:[#allocation12 + $0x21c] ss:$24 sps:$4 sm:$0xff]  }
 0x362   : > { %3832 = vmatpush1.bf16.msra.mxu0 %v19854_v32  ;;  %v19973_v32 = vld [vmem:[#allocation12 + $0x24c] ss:$24 sps:$4 sm:$0xff]  }
 0x363   : > { %3833 = vmatprep.subr.bf16.mxu0 %v19859_v34  ;;  %v19971_v34 = vld [vmem:[#allocation12 + $0x248] ss:$24 sps:$4 sm:$0xff]  }
 0x366   : > { %3834 = vmatpush1.bf16.msra.mxu0 %v19857_v36  ;;  %v2283_v36 = vrot.slane %v2278_v33, %v22942_v44 }
 0x367   : > { %3835 = vmatprep.subr.bf16.mxu0 %v19862_v37  ;;  %v2287_v37 = vrot.slane %v2278_v33, %v22948_v45 }
 0x36a   : > { %3836 = vmatpush1.bf16.msra.mxu0 %v19860_v39  ;;  %v19977_v39 = vld [vmem:[#allocation12 + $0x278] ss:$24 sps:$4 sm:$0xff]  }
 0x36b   : > { %3837 = vmatprep.subr.bf16.mxu0 %v19865_v41 }
 0x36e   : > { %3838 = vmatpush1.bf16.msra.mxu0 %v19863_v49 }
 0x36f   : > { %3839 = vmatprep.subr.bf16.mxu0 %v19868_v50 }
 0x372   : > { %3840 = vmatpush1.bf16.msra.mxu0 %v19866_v52 }
 0x373   : > { %3841 = vmatprep.subr.bf16.mxu0 %v19871_v54 }
 0x376   : > { %3842 = vmatpush1.bf16.msra.mxu0 %v19869_v56 }
 0x377   : > { %3854 = vmatprep.subr.bf16.mxu0 %v19874_v57 }
 0x379   : > { %3844 = vmatmul.mubr.bf16.vlgmr.msra.gmra.mrb[12].mxu0 %v22963_v53  ;;  %v19887_v53 = vld [vmem:[#allocation11 + $0x700] ss:$24 sps:$4 sm:$0xff]  }
 0x37a   : > { %3855 = vmatpush1.bf16.msra.mxu0 %v19872_v59  ;;  %3886 = vmatprep.mubr.bf16.mxu0 %v22481_v0 }
 0x37b   : > { %3856 = vmatprep.subr.bf16.mxu0 %v19877_v60 }
 0x37e   : > { %3857 = vmatpush1.bf16.msra.mxu0 %v19875_v61  ;;  %v19983_v61 = vld [vmem:[#allocation12 + $0x2a8] ss:$24 sps:$4 sm:$0xff]  }
 0x37f   : > { %3858 = vmatprep.subr.bf16.mxu0 %v19880_v62  ;;  %v19991_v62 = vld [vmem:[#allocation12 + $0x2dc] ss:$24 sps:$4 sm:$0xff]  }
 0x382   : > { %3859 = vmatpush1.bf16.msra.mxu0 %v19878_v63 }
 0x383   : > { %3860 = vmatprep.subr.bf16.mxu0 %v19883_v1 }
 0x386   : > { %3861 = vmatpush1.bf16.msra.mxu0 %v19881_v2 }
 0x387   : > { %3862 = vmatprep.subr.bf16.mxu0 %v19886_v3 }
 0x38a   : > { %3863 = vmatpush1.bf16.msra.mxu0 %v19884_v4 }
 0x38b   : > { %3864 = vmatprep.subr.bf16.mxu0 %v19889_v5 }
 0x38e   : > { %3865 = vmatpush1.bf16.msra.mxu0 %v19887_v53 }
 0x38f   : > { %3866 = vmatprep.subr.bf16.mxu0 %v19892_v6  ;;  %v19989_v6 = vld [vmem:[#allocation12 + $0x2d8] ss:$24 sps:$4 sm:$0xff]  }
 0x392   : > { %3867 = vmatpush1.bf16.msra.mxu0 %v19890_v7 }
 0x393   : > { %3868 = vmatprep.subr.bf16.mxu0 %v19895_v8 }
 0x396   : > { %3869 = vmatpush1.bf16.msra.mxu0 %v19893_v9 }
 0x397   : > { %5852 = vmatprep.subr.bf16.mxu0 %v19901_v10 }
 0x399   : > { %3887 = vmatmul.mubr.bf16.vlgmr.msra.gmra.mrb[12].mxu0 %v22980_v51  ;;  %v19937_v51 = vld [vmem:[#allocation12 + $0x12c] ss:$24 sps:$4 sm:$0xff]  }
 0x39a   : > { %5853 = vmatpush1.bf16.msra.mxu0 %v19899_v12  ;;  %v19997_v12 = vld [vmem:[#allocation12 + $0x30c] ss:$24 sps:$4 sm:$0xff]  }
 0x39b   : > { %5854 = vmatprep.subr.bf16.mxu0 %v19907_v13 }
 0x39e   : > { %5855 = vmatpush1.bf16.msra.mxu0 %v19905_v14 }
 0x39f   : > { %5856 = vmatprep.subr.bf16.mxu0 %v19913_v47 }
 0x3a2   : > { %5857 = vmatpush1.bf16.msra.mxu0 %v19911_v15 }
 0x3a3   : > { %5858 = vmatprep.subr.bf16.mxu0 %v19919_v58 }
 0x3a6   : > { %5859 = vmatpush1.bf16.msra.mxu0 %v19917_v16 }
 0x3a7   : > { %5860 = vmatprep.subr.bf16.mxu0 %v19925_v17 }
 0x3aa   : > { %5861 = vmatpush1.bf16.msra.mxu0 %v19923_v18 }
 0x3ab   : > { %5862 = vmatprep.subr.bf16.mxu0 %v19931_v19 }
 0x3ae   : > { %5863 = vmatpush1.bf16.msra.mxu0 %v19929_v55 }
 0x3af   : > { %5864 = vmatprep.subr.bf16.mxu0 %v19937_v51 }
 0x3b2   : > { %5865 = vmatpush1.bf16.msra.mxu0 %v19935_v20 }
 0x3b3   : > { %5866 = vmatprep.subr.bf16.mxu0 %v19943_v22 }
 0x3b6   : > { %5867 = vmatpush1.bf16.msra.mxu0 %v19941_v23 }
 0x3b7   : > { %5868 = vmatprep.subr.bf16.mxu0 %v19949_v24 }
 0x3ba   : > { %5869 = vmatpush1.bf16.msra.mxu0 %v19947_v25 }
 0x3bb   : > { %5870 = vmatprep.subr.bf16.mxu0 %v19955_v26 }
 0x3be   : > { %5871 = vmatpush1.bf16.msra.mxu0 %v19953_v27 }
 0x3bf   : > { %5872 = vmatprep.subr.bf16.mxu0 %v19961_v28 }
 0x3c2   : > { %5873 = vmatpush1.bf16.msra.mxu0 %v19959_v29 }
 0x3c3   : > { %5874 = vmatprep.subr.bf16.mxu0 %v19967_v30 }
 0x3c6   : > { %5875 = vmatpush1.bf16.msra.mxu0 %v19965_v31 }
 0x3c7   : > { %5876 = vmatprep.subr.bf16.mxu0 %v19973_v32 }
 0x3ca   : > { %5877 = vmatpush1.bf16.msra.mxu0 %v19971_v34 }
 0x3cb   : > { %5878 = vmatprep.subr.bf16.mxu0 %v19979_v35 }
 0x3cc   : > { %v3630_v41 = vpop.f32.mrb[8].mxu0  ;;  %v3759_v48 = vpop.f32.mrb[8].mxu1 }
 0x3cd   : > { %v18931_v49 = vadd.f32 %v3630_v41, %v2283_v36  ;;  %v18935_v50 = vadd.f32 %v3759_v48, %v2291_v43  ;;  %v3632_v52 = vpop.f32.mrb[9].mxu0  ;;  %v3761_v54 = vpop.f32.mrb[9].mxu1 }
 0x3ce   : > { %v18932_v56 = vadd.f32 %v3632_v52, %v2287_v37  ;;  %v18936_v57 = vadd.f32 %v3761_v54, %v2295_v38  ;;  %v3634_v59 = vpop.f32.mrb[10].mxu0  ;;  %v3763_v60 = vpop.f32.mrb[10].mxu1  ;;  %5879 = vmatpush1.bf16.msra.mxu0 %v19977_v39 }
 0x3cf   : > { %v3897_v63 = vmul.f32 0.5, %v18931_v49  ;;  %v3909_v1 = vmul.f32 0.70710677, %v18931_v49  ;;  %v3911_v2 = vmul.f32 0.70710677, %v18935_v50  ;;  %5880 = vmatprep.subr.bf16.mxu0 %v19985_v40  ;;  %v3899_v3 = vmul.f32 0.5, %v18935_v50 }
 0x3d0   : > { %v3898_v4 = vmul.f32 0.5, %v18932_v56  ;;  %v3910_v5 = vmul.f32 0.70710677, %v18932_v56  ;;  %v3912_v53 = vmul.f32 0.70710677, %v18936_v57  ;;  %v18933_v7 = vadd.f32 %v3634_v59, %v2283_v36  ;;  %v3636_v9 = vpop.f32.mrb[11].mxu0 }
 0x3d1   : > { %21932 = verf.f32 %v3909_v1  ;;  %v18937_v8 = vadd.f32 %v3763_v60, %v2291_v43  ;;  %v3765_v10 = vpop.f32.mrb[11].mxu1  ;;  %v18934_v13 = vadd.f32 %v3636_v9, %v2287_v37  ;;  %v3900_v47 = vmul.f32 0.5, %v18936_v57  ;;  %v19992_v49 = vld [vmem:[#allocation12 + $0x300] ss:$24 sps:$4 sm:$0xff]   ;;  %v20000_v59 = vld [vmem:[#allocation12 + $0x334] ss:$24 sps:$4 sm:$0xff]  }
 0x3d2   : > { %21934 = verf.f32 %v3911_v2  ;;  %v18938_v14 = vadd.f32 %v3765_v10, %v2295_v38  ;;  %5881 = vmatpush1.bf16.msra.mxu0 %v19983_v61  ;;  %v3903_v15 = vmul.f32 0.5, %v18933_v7  ;;  %v3915_v58 = vmul.f32 0.70710677, %v18933_v7  ;;  %v19995_v50 = vld [vmem:[#allocation12 + $0x308] ss:$24 sps:$4 sm:$0xff]  }
 0x3d3   : > { %21936 = verf.f32 %v3910_v5  ;;  %5882 = vmatprep.subr.bf16.mxu0 %v19991_v62  ;;  %v3905_v16 = vmul.f32 0.5, %v18937_v8  ;;  %v3917_v17 = vmul.f32 0.70710677, %v18937_v8  ;;  %v3916_v18 = vmul.f32 0.70710677, %v18934_v13 }
 0x3d4   : > { %21938 = verf.f32 %v3912_v53  ;;  %v3904_v19 = vmul.f32 0.5, %v18934_v13  ;;  %v3918_v55 = vmul.f32 0.70710677, %v18938_v14  ;;  %v3906_v38 = vmul.f32 0.5, %v18938_v14  ;;  %v20003_v60 = vld [vmem:[#allocation12 + $0x33c] ss:$24 sps:$4 sm:$0xff]  }
 0x3d5   : > { %21940 = verf.f32 %v3915_v58  ;;  %v19998_v62 = vld [vmem:[#allocation12 + $0x330] ss:$24 sps:$4 sm:$0xff]   ;;  %v20006_v1 = vld [vmem:[#allocation12 + $0x364] ss:$24 sps:$4 sm:$0xff]   ;;  %v20012_v5 = vld [vmem:[#allocation12 + $0x394] ss:$24 sps:$4 sm:$0xff]  }
 0x3d6   : > { %21942 = verf.f32 %v3917_v17  ;;  %5883 = vmatpush1.bf16.msra.mxu0 %v19989_v6  ;;  %v20009_v2 = vld [vmem:[#allocation12 + $0x36c] ss:$24 sps:$4 sm:$0xff]   ;;  %v20015_v53 = vld [vmem:[#allocation12 + $0x39c] ss:$24 sps:$4 sm:$0xff]   ;;  %v20010_v6 = vld [vmem:[#allocation12 + $0x390] ss:$24 sps:$4 sm:$0xff]  }
 0x3d7   : > { %21944 = verf.f32 %v3916_v18  ;;  %5895 = vmatprep.subr.bf16.mxu0 %v19997_v12  ;;  %v20013_v7 = vld [vmem:[#allocation12 + $0x398] ss:$24 sps:$4 sm:$0xff]   ;;  %v20018_v8 = vld [vmem:[#allocation12 + $0x3c4] ss:$24 sps:$4 sm:$0xff]   ;;  %v20019_v12 = vld [vmem:[#allocation12 + $0x3c8] ss:$24 sps:$4 sm:$0xff]  }
 0x3d8   : > { %21946 = verf.f32 %v3918_v55  ;;  %v20021_v9 = vld [vmem:[#allocation12 + $0x3cc] ss:$24 sps:$4 sm:$0xff]   ;;  %v20016_v10 = vld [vmem:[#allocation12 + $0x3c0] ss:$24 sps:$4 sm:$0xff]   ;;  %v20027_v14 = vld [vmem:[#allocation12 + $0x3fc] ss:$24 sps:$4 sm:$0xff]  }
 0x3d9   : > { %v20024_v13 = vld [vmem:[#allocation12 + $0x3f4] ss:$24 sps:$4 sm:$0xff]   ;;  %v20030_v58 = vld [vmem:[#allocation12 + $0x424] ss:$24 sps:$4 sm:$0xff]   ;;  %v20028_v17 = vld [vmem:[#allocation12 + $0x420] ss:$24 sps:$4 sm:$0xff]  }
 0x3da   : > { %v20031_v18 = vld [vmem:[#allocation12 + $0x428] ss:$24 sps:$4 sm:$0xff]   ;;  %v20039_v55 = vld [vmem:[#allocation12 + $0x45c] ss:$24 sps:$4 sm:$0xff]  }
 0x3db   : > { %v21933_v51 = vpop.eup %21932 }
 0x3dc   : > { %v21935_v20 = vpop.eup %21934  ;;  %v3933_v22 = vadd.f32 1.0, %v21933_v51  ;;  %v20034_v51 = vld [vmem:[#allocation12 + $0x450] ss:$24 sps:$4 sm:$0xff]  }
 0x3dd   : > { %v21937_v23 = vpop.eup %21936  ;;  %v3935_v24 = vadd.f32 1.0, %v21935_v20  ;;  %v20037_v20 = vld [vmem:[#allocation12 + $0x458] ss:$24 sps:$4 sm:$0xff]  }
 0x3de   : > { %v21939_v25 = vpop.eup %21938  ;;  %v3934_v26 = vadd.f32 1.0, %v21937_v23  ;;  %v3945_v34 = vmul.f32 %v3933_v22, %v3897_v63  ;;  %v20001_v63 = vld [vmem:[#allocation12 + $0x338] ss:$24 sps:$4 sm:$0xff]   ;;  %v20042_v22 = vld [vmem:[#allocation12 + $0x484] ss:$24 sps:$4 sm:$0xff]  }
 0x3df   : > { %v21941_v27 = vpop.eup %21940  ;;  %v3936_v28 = vadd.f32 1.0, %v21939_v25  ;;  %v3947_v43 = vmul.f32 %v3935_v24, %v3899_v3  ;;  %v20004_v3 = vld [vmem:[#allocation12 + $0x360] ss:$24 sps:$4 sm:$0xff]   ;;  %v20045_v23 = vld [vmem:[#allocation12 + $0x48c] ss:$24 sps:$4 sm:$0xff]  }
 0x3e0   : > { %v21943_v29 = vpop.eup %21942  ;;  %v3939_v30 = vadd.f32 1.0, %v21941_v27  ;;  %v3946_v40 = vmul.f32 %v3934_v26, %v3898_v4  ;;  %v20007_v4 = vld [vmem:[#allocation12 + $0x368] ss:$24 sps:$4 sm:$0xff]   ;;  %v20048_v26 = vld [vmem:[#allocation12 + $0x4b4] ss:$24 sps:$4 sm:$0xff]  }
 0x3e1   : > { %v21945_v31 = vpop.eup %21944  ;;  %v3941_v32 = vadd.f32 1.0, %v21943_v29  ;;  %v3948_v52 = vmul.f32 %v3936_v28, %v3900_v47  ;;  %v20022_v47 = vld [vmem:[#allocation12 + $0x3f0] ss:$24 sps:$4 sm:$0xff]   ;;  %v20040_v24 = vld [vmem:[#allocation12 + $0x480] ss:$24 sps:$4 sm:$0xff]  }
 0x3e2   : > { %v21947_v33 = vpop.eup %21946  ;;  %v3951_v35 = vmul.f32 %v3939_v30, %v3903_v15  ;;  %v3940_v36 = vadd.f32 1.0, %v21945_v31  ;;  %v20025_v15 = vld [vmem:[#allocation12 + $0x3f8] ss:$24 sps:$4 sm:$0xff]   ;;  %v20043_v25 = vld [vmem:[#allocation12 + $0x488] ss:$24 sps:$4 sm:$0xff]  }
 0x3e3   : > { %v3953_v37 = vmul.f32 %v3941_v32, %v3905_v16  ;;  %v3942_v39 = vadd.f32 1.0, %v21947_v33  ;;  %v20033_v16 = vld [vmem:[#allocation12 + $0x42c] ss:$24 sps:$4 sm:$0xff]   ;;  %v20051_v27 = vld [vmem:[#allocation12 + $0x4bc] ss:$24 sps:$4 sm:$0xff]  }
 0x3e4   : > { %v23001_v41 = vpack.c.bf16 %v3951_v35, %v3945_v34  ;;  %v3952_v48 = vmul.f32 %v3940_v36, %v3904_v19  ;;  %v20036_v19 = vld [vmem:[#allocation12 + $0x454] ss:$24 sps:$4 sm:$0xff]   ;;  %v20046_v28 = vld [vmem:[#allocation12 + $0x4b0] ss:$24 sps:$4 sm:$0xff]   ;;  %v20054_v30 = vld [vmem:[#allocation12 + $0x4e4] ss:$24 sps:$4 sm:$0xff]  }
 0x3e5   : > { %v23003_v54 = vpack.c.bf16 %v3953_v37, %v3947_v43  ;;  %v3954_v56 = vmul.f32 %v3942_v39, %v3906_v38  ;;  %v20049_v29 = vld [vmem:[#allocation12 + $0x4b8] ss:$24 sps:$4 sm:$0xff]   ;;  %v20057_v31 = vld [vmem:[#allocation12 + $0x4ec] ss:$24 sps:$4 sm:$0xff]   ;;  %v20055_v33 = vld [vmem:[#allocation12 + $0x4e8] ss:$24 sps:$4 sm:$0xff]  }
 0x3e6   : > { %v23005_v57 = vpack.c.bf16 %v3952_v48, %v3946_v40  ;;  %v20052_v32 = vld [vmem:[#allocation12 + $0x4e0] ss:$24 sps:$4 sm:$0xff]   ;;  %v20060_v34 = vld [vmem:[#allocation12 + $0x514] ss:$24 sps:$4 sm:$0xff]   ;;  %v20058_v36 = vld [vmem:[#allocation12 + $0x510] ss:$24 sps:$4 sm:$0xff]  }
 0x3e7   : > { %v23007_v61 = vpack.c.bf16 %v3954_v56, %v3948_v52  ;;  %v20063_v35 = vld [vmem:[#allocation12 + $0x51c] ss:$24 sps:$4 sm:$0xff]   ;;  %v20061_v43 = vld [vmem:[#allocation12 + $0x518] ss:$24 sps:$4 sm:$0xff]   ;;  %v20069_v38 = vld [vmem:[#allocation12 + $0x54c] ss:$24 sps:$4 sm:$0xff]  }
 0x3e8   : > { %5755 = vmatprep.mubr.bf16.mxu1 %v23005_v57  ;;  %5884 = vmatprep.mubr.bf16.mxu0 %v23005_v57  ;;  %v20066_v37 = vld [vmem:[#allocation12 + $0x544] ss:$24 sps:$4 sm:$0xff]   ;;  %v20064_v39 = vld [vmem:[#allocation12 + $0x540] ss:$24 sps:$4 sm:$0xff]   ;;  %v20072_v48 = vld [vmem:[#allocation12 + $0x574] ss:$24 sps:$4 sm:$0xff]  }
 0x3e9   : > { %5756 = vmatmul.mubr.bf16.vlgmr.msra.gmra.mrb[12].mxu1 %v23001_v41  ;;  %5885 = vmatmul.mubr.bf16.vlgmr.msra.gmra.mrb[16].mxu0 %v23001_v41  ;;  %v20067_v40 = vld [vmem:[#allocation12 + $0x548] ss:$24 sps:$4 sm:$0xff]   ;;  %v20073_v52 = vld [vmem:[#allocation12 + $0x578] ss:$24 sps:$4 sm:$0xff]   ;;  %v20078_v56 = vld [vmem:[#allocation12 + $0x5a4] ss:$24 sps:$4 sm:$0xff]  }
 0x3ea   : > { %5767 = vmatpush1.bf16.msra.mxu1 %v19992_v49  ;;  %5896 = vmatpush1.bf16.msra.mxu0 %v19995_v50  ;;  %v20075_v49 = vld [vmem:[#allocation12 + $0x57c] ss:$24 sps:$4 sm:$0xff]   ;;  %v20070_v50 = vld [vmem:[#allocation12 + $0x570] ss:$24 sps:$4 sm:$0xff]  }
 0x3eb   : > { %5798 = vmatprep.mubr.bf16.mxu1 %v23007_v61  ;;  %5927 = vmatprep.mubr.bf16.mxu0 %v23007_v61 }
 0x3ec   : > { %5768 = vmatprep.subr.bf16.mxu1 %v20000_v59  ;;  %5897 = vmatprep.subr.bf16.mxu0 %v20003_v60  ;;  %v20081_v59 = vld [vmem:[#allocation12 + $0x5ac] ss:$24 sps:$4 sm:$0xff]   ;;  %v20076_v60 = vld [vmem:[#allocation12 + $0x5a0] ss:$24 sps:$4 sm:$0xff]  }
 0x3ee   : > { %5769 = vmatpush1.bf16.msra.mxu1 %v19998_v62  ;;  %5898 = vmatpush1.bf16.msra.mxu0 %v20001_v63  ;;  %v20079_v62 = vld [vmem:[#allocation12 + $0x5a8] ss:$24 sps:$4 sm:$0xff]   ;;  %v20084_v63 = vld [vmem:[#allocation12 + $0x5d4] ss:$24 sps:$4 sm:$0xff]  }
 0x3ef   : > { %5770 = vmatprep.subr.bf16.mxu1 %v20006_v1  ;;  %5899 = vmatprep.subr.bf16.mxu0 %v20009_v2  ;;  %v20087_v1 = vld [vmem:[#allocation12 + $0x5dc] ss:$24 sps:$4 sm:$0xff]   ;;  %v20082_v2 = vld [vmem:[#allocation12 + $0x5d0] ss:$24 sps:$4 sm:$0xff]  }
 0x3f2   : > { %5771 = vmatpush1.bf16.msra.mxu1 %v20004_v3  ;;  %5900 = vmatpush1.bf16.msra.mxu0 %v20007_v4  ;;  %v20085_v3 = vld [vmem:[#allocation12 + $0x5d8] ss:$24 sps:$4 sm:$0xff]   ;;  %v20090_v4 = vld [vmem:[#allocation12 + $0x604] ss:$24 sps:$4 sm:$0xff]  }
 0x3f3   : > { %5772 = vmatprep.subr.bf16.mxu1 %v20012_v5  ;;  %5901 = vmatprep.subr.bf16.mxu0 %v20015_v53  ;;  %v20093_v5 = vld [vmem:[#allocation12 + $0x60c] ss:$24 sps:$4 sm:$0xff]   ;;  %v20088_v53 = vld [vmem:[#allocation12 + $0x600] ss:$24 sps:$4 sm:$0xff]  }
 0x3f6   : > { %5773 = vmatpush1.bf16.msra.mxu1 %v20010_v6  ;;  %5902 = vmatpush1.bf16.msra.mxu0 %v20013_v7  ;;  %v20091_v6 = vld [vmem:[#allocation12 + $0x608] ss:$24 sps:$4 sm:$0xff]   ;;  %v20096_v7 = vld [vmem:[#allocation12 + $0x634] ss:$24 sps:$4 sm:$0xff]  }
 0x3f7   : > { %5774 = vmatprep.subr.bf16.mxu1 %v20018_v8  ;;  %5903 = vmatprep.subr.bf16.mxu0 %v20021_v9  ;;  %v20099_v8 = vld [vmem:[#allocation12 + $0x63c] ss:$24 sps:$4 sm:$0xff]   ;;  %v20094_v9 = vld [vmem:[#allocation12 + $0x630] ss:$24 sps:$4 sm:$0xff]  }
 0x3fa   : > { %5775 = vmatpush1.bf16.msra.mxu1 %v20016_v10  ;;  %5904 = vmatpush1.bf16.msra.mxu0 %v20019_v12  ;;  %v20097_v10 = vld [vmem:[#allocation12 + $0x638] ss:$24 sps:$4 sm:$0xff]   ;;  %v20102_v12 = vld [vmem:[#allocation12 + $0x664] ss:$24 sps:$4 sm:$0xff]  }
 0x3fb   : > { %5776 = vmatprep.subr.bf16.mxu1 %v20024_v13  ;;  %5905 = vmatprep.subr.bf16.mxu0 %v20027_v14  ;;  %v20105_v13 = vld [vmem:[#allocation12 + $0x66c] ss:$24 sps:$4 sm:$0xff]   ;;  %v20100_v14 = vld [vmem:[#allocation12 + $0x660] ss:$24 sps:$4 sm:$0xff]  }
 0x3fe   : > { %5777 = vmatpush1.bf16.msra.mxu1 %v20022_v47  ;;  %5906 = vmatpush1.bf16.msra.mxu0 %v20025_v15  ;;  %v20103_v47 = vld [vmem:[#allocation12 + $0x668] ss:$24 sps:$4 sm:$0xff]   ;;  %v20108_v15 = vld [vmem:[#allocation12 + $0x694] ss:$24 sps:$4 sm:$0xff]  }
 0x3ff   : > { %5778 = vmatprep.subr.bf16.mxu1 %v20030_v58  ;;  %5907 = vmatprep.subr.bf16.mxu0 %v20033_v16  ;;  %v20111_v58 = vld [vmem:[#allocation12 + $0x69c] ss:$24 sps:$4 sm:$0xff]   ;;  %v20106_v16 = vld [vmem:[#allocation12 + $0x690] ss:$24 sps:$4 sm:$0xff]  }
 0x402   : > { %5779 = vmatpush1.bf16.msra.mxu1 %v20028_v17  ;;  %5908 = vmatpush1.bf16.msra.mxu0 %v20031_v18  ;;  %v20109_v17 = vld [vmem:[#allocation12 + $0x698] ss:$24 sps:$4 sm:$0xff]   ;;  %v20114_v18 = vld [vmem:[#allocation12 + $0x6c4] ss:$24 sps:$4 sm:$0xff]  }
 0x403   : > { %5780 = vmatprep.subr.bf16.mxu1 %v20036_v19  ;;  %5909 = vmatprep.subr.bf16.mxu0 %v20039_v55  ;;  %v20117_v19 = vld [vmem:[#allocation12 + $0x6cc] ss:$24 sps:$4 sm:$0xff]   ;;  %v20112_v55 = vld [vmem:[#allocation12 + $0x6c0] ss:$24 sps:$4 sm:$0xff]  }
 0x406   : > { %5781 = vmatpush1.bf16.msra.mxu1 %v20034_v51  ;;  %5910 = vmatpush1.bf16.msra.mxu0 %v20037_v20  ;;  %v20115_v51 = vld [vmem:[#allocation12 + $0x6c8] ss:$24 sps:$4 sm:$0xff]   ;;  %v20120_v20 = vld [vmem:[#allocation12 + $0x6f4] ss:$24 sps:$4 sm:$0xff]  }
 0x407   : > { %5782 = vmatprep.subr.bf16.mxu1 %v20042_v22  ;;  %5911 = vmatprep.subr.bf16.mxu0 %v20045_v23  ;;  %v20123_v22 = vld [vmem:[#allocation12 + $0x6fc] ss:$24 sps:$4 sm:$0xff]   ;;  %v20118_v23 = vld [vmem:[#allocation12 + $0x6f0] ss:$24 sps:$4 sm:$0xff]  }
 0x40a   : > { %5783 = vmatpush1.bf16.msra.mxu1 %v20040_v24  ;;  %5912 = vmatpush1.bf16.msra.mxu0 %v20043_v25  ;;  %v20121_v24 = vld [vmem:[#allocation12 + $0x6f8] ss:$24 sps:$4 sm:$0xff]   ;;  %v20126_v25 = vld [vmem:[#allocation12 + $0x724] ss:$24 sps:$4 sm:$0xff]  }
 0x40b   : > { %5784 = vmatprep.subr.bf16.mxu1 %v20048_v26  ;;  %5913 = vmatprep.subr.bf16.mxu0 %v20051_v27  ;;  %v20129_v26 = vld [vmem:[#allocation12 + $0x72c] ss:$24 sps:$4 sm:$0xff]   ;;  %v20124_v27 = vld [vmem:[#allocation12 + $0x720] ss:$24 sps:$4 sm:$0xff]  }
 0x40e   : > { %5785 = vmatpush1.bf16.msra.mxu1 %v20046_v28  ;;  %5914 = vmatpush1.bf16.msra.mxu0 %v20049_v29  ;;  %v20127_v28 = vld [vmem:[#allocation12 + $0x728] ss:$24 sps:$4 sm:$0xff]   ;;  %v20132_v29 = vld [vmem:[#allocation12 + $0x754] ss:$24 sps:$4 sm:$0xff]  }
 0x40f   : > { %5786 = vmatprep.subr.bf16.mxu1 %v20054_v30  ;;  %5915 = vmatprep.subr.bf16.mxu0 %v20057_v31  ;;  %v20135_v30 = vld [vmem:[#allocation12 + $0x75c] ss:$24 sps:$4 sm:$0xff]   ;;  %v20130_v31 = vld [vmem:[#allocation12 + $0x750] ss:$24 sps:$4 sm:$0xff]  }
 0x412   : > { %5787 = vmatpush1.bf16.msra.mxu1 %v20052_v32  ;;  %5916 = vmatpush1.bf16.msra.mxu0 %v20055_v33  ;;  %v20133_v32 = vld [vmem:[#allocation12 + $0x758] ss:$24 sps:$4 sm:$0xff]   ;;  %v20138_v33 = vld [vmem:[#allocation12 + $0x784] ss:$24 sps:$4 sm:$0xff]  }
 0x413   : > { %5788 = vmatprep.subr.bf16.mxu1 %v20060_v34  ;;  %5917 = vmatprep.subr.bf16.mxu0 %v20063_v35  ;;  %v20141_v34 = vld [vmem:[#allocation12 + $0x78c] ss:$24 sps:$4 sm:$0xff]   ;;  %v20136_v35 = vld [vmem:[#allocation12 + $0x780] ss:$24 sps:$4 sm:$0xff]  }
 0x416   : > { %5789 = vmatpush1.bf16.msra.mxu1 %v20058_v36  ;;  %5918 = vmatpush1.bf16.msra.mxu0 %v20061_v43  ;;  %v20139_v36 = vld [vmem:[#allocation12 + $0x788] ss:$24 sps:$4 sm:$0xff]   ;;  %v20144_v43 = vld [vmem:[#allocation12 + $0x7b4] ss:$24 sps:$4 sm:$0xff]  }
 0x417   : > { %5790 = vmatprep.subr.bf16.mxu1 %v20066_v37  ;;  %5919 = vmatprep.subr.bf16.mxu0 %v20069_v38  ;;  %v20147_v37 = vld [vmem:[#allocation12 + $0x7bc] ss:$24 sps:$4 sm:$0xff]   ;;  %v20142_v38 = vld [vmem:[#allocation12 + $0x7b0] ss:$24 sps:$4 sm:$0xff]  }
 0x41a   : > { %5791 = vmatpush1.bf16.msra.mxu1 %v20064_v39  ;;  %5920 = vmatpush1.bf16.msra.mxu0 %v20067_v40  ;;  %v20145_v39 = vld [vmem:[#allocation12 + $0x7b8] ss:$24 sps:$4 sm:$0xff]   ;;  %v20150_v40 = vld [vmem:[#allocation12 + $0x7e4] ss:$24 sps:$4 sm:$0xff]  }
 0x41b   : > { %5792 = vmatprep.subr.bf16.mxu1 %v20072_v48  ;;  %5921 = vmatprep.subr.bf16.mxu0 %v20075_v49  ;;  %v20153_v48 = vld [vmem:[#allocation12 + $0x7ec] ss:$24 sps:$4 sm:$0xff]   ;;  %v20148_v49 = vld [vmem:[#allocation12 + $0x7e0] ss:$24 sps:$4 sm:$0xff]  }
 0x41e   : > { %5793 = vmatpush1.bf16.msra.mxu1 %v20070_v50  ;;  %5922 = vmatpush1.bf16.msra.mxu0 %v20073_v52  ;;  %v20151_v50 = vld [vmem:[#allocation12 + $0x7e8] ss:$24 sps:$4 sm:$0xff]   ;;  %v20156_v52 = vld [vmem:[#allocation12 + $0x814] ss:$24 sps:$4 sm:$0xff]  }
 0x41f   : > { %5794 = vmatprep.subr.bf16.mxu1 %v20078_v56  ;;  %5923 = vmatprep.subr.bf16.mxu0 %v20081_v59  ;;  %v20159_v56 = vld [vmem:[#allocation12 + $0x81c] ss:$24 sps:$4 sm:$0xff]   ;;  %v20154_v59 = vld [vmem:[#allocation12 + $0x810] ss:$24 sps:$4 sm:$0xff]  }
 0x422   : > { %5795 = vmatpush1.bf16.msra.mxu1 %v20076_v60  ;;  %5924 = vmatpush1.bf16.msra.mxu0 %v20079_v62  ;;  %v20157_v60 = vld [vmem:[#allocation12 + $0x818] ss:$24 sps:$4 sm:$0xff]   ;;  %v20162_v62 = vld [vmem:[#allocation12 + $0x844] ss:$24 sps:$4 sm:$0xff]  }
 0x423   : > { %5796 = vmatprep.subr.bf16.mxu1 %v20084_v63  ;;  %5925 = vmatprep.subr.bf16.mxu0 %v20087_v1  ;;  %v20165_v63 = vld [vmem:[#allocation12 + $0x84c] ss:$24 sps:$4 sm:$0xff]   ;;  %v20160_v1 = vld [vmem:[#allocation12 + $0x840] ss:$24 sps:$4 sm:$0xff]  }
 0x426   : > { %5797 = vmatpush1.bf16.msra.mxu1 %v20082_v2  ;;  %5926 = vmatpush1.bf16.msra.mxu0 %v20085_v3  ;;  %v20163_v2 = vld [vmem:[#allocation12 + $0x848] ss:$24 sps:$4 sm:$0xff]   ;;  %v20168_v3 = vld [vmem:[#allocation12 + $0x874] ss:$24 sps:$4 sm:$0xff]  }
 0x427   : > { %5809 = vmatprep.subr.bf16.mxu1 %v20090_v4  ;;  %5938 = vmatprep.subr.bf16.mxu0 %v20093_v5  ;;  %v20171_v4 = vld [vmem:[#allocation12 + $0x87c] ss:$24 sps:$4 sm:$0xff]   ;;  %v20166_v5 = vld [vmem:[#allocation12 + $0x870] ss:$24 sps:$4 sm:$0xff]  }
 0x429   : > { %5799 = vmatmul.mubr.bf16.vlgmr.msra.gmra.mrb[12].mxu1 %v23003_v54  ;;  %5928 = vmatmul.mubr.bf16.vlgmr.msra.gmra.mrb[16].mxu0 %v23003_v54 }
 0x42a   : > { %5810 = vmatpush1.bf16.msra.mxu1 %v20088_v53  ;;  %5939 = vmatpush1.bf16.msra.mxu0 %v20091_v6  ;;  %v20169_v53 = vld [vmem:[#allocation12 + $0x878] ss:$24 sps:$4 sm:$0xff]   ;;  %v20174_v6 = vld [vmem:[#allocation12 + $0x8a4] ss:$24 sps:$4 sm:$0xff]  }
 0x42b   : > { %5811 = vmatprep.subr.bf16.mxu1 %v20096_v7  ;;  %5940 = vmatprep.subr.bf16.mxu0 %v20099_v8  ;;  %v20177_v7 = vld [vmem:[#allocation12 + $0x8ac] ss:$24 sps:$4 sm:$0xff]   ;;  %v20172_v8 = vld [vmem:[#allocation12 + $0x8a0] ss:$24 sps:$4 sm:$0xff]  }
 0x42e   : > { %5812 = vmatpush1.bf16.msra.mxu1 %v20094_v9  ;;  %5941 = vmatpush1.bf16.msra.mxu0 %v20097_v10  ;;  %v20175_v9 = vld [vmem:[#allocation12 + $0x8a8] ss:$24 sps:$4 sm:$0xff]   ;;  %v20180_v10 = vld [vmem:[#allocation12 + $0x8d4] ss:$24 sps:$4 sm:$0xff]  }
 0x42f   : > { %5813 = vmatprep.subr.bf16.mxu1 %v20102_v12  ;;  %5942 = vmatprep.subr.bf16.mxu0 %v20105_v13  ;;  %v20183_v12 = vld [vmem:[#allocation12 + $0x8dc] ss:$24 sps:$4 sm:$0xff]   ;;  %v20178_v13 = vld [vmem:[#allocation12 + $0x8d0] ss:$24 sps:$4 sm:$0xff]  }
 0x432   : > { %5814 = vmatpush1.bf16.msra.mxu1 %v20100_v14  ;;  %5943 = vmatpush1.bf16.msra.mxu0 %v20103_v47  ;;  %v20181_v14 = vld [vmem:[#allocation12 + $0x8d8] ss:$24 sps:$4 sm:$0xff]   ;;  %v23018_v47 = vsub.s32 5, %v22934_v42 }
 0x433   : > { %5815 = vmatprep.subr.bf16.mxu1 %v20108_v15  ;;  %5944 = vmatprep.subr.bf16.mxu0 %v20111_v58  ;;  %v20186_v15 = vld [vmem:[#allocation12 + $0x14] ss:$24 sps:$4 sm:$0xff]  }
 0x434   : > { %v22092_v58 = vld [vmem:[%s25352_s11 + $0x5] sm:$0x3f] }
 0x436   : > { %5816 = vmatpush1.bf16.msra.mxu1 %v20106_v16  ;;  %5945 = vmatpush1.bf16.msra.mxu0 %v20109_v17  ;;  %v2299_v16 = vrot.slane %v22092_v58, %v22976_v21  ;;  %v2303_v17 = vrot.slane %v22092_v58, %v23018_v47  ;;  %v20214_v58 = vld [vmem:[#allocation12 + $0x1f0] ss:$24 sps:$4 sm:$0xff]  }
 0x437   : > { %5817 = vmatprep.subr.bf16.mxu1 %v20114_v18  ;;  %5946 = vmatprep.subr.bf16.mxu0 %v20117_v19 }
 0x43a   : > { %5818 = vmatpush1.bf16.msra.mxu1 %v20112_v55  ;;  %5947 = vmatpush1.bf16.msra.mxu0 %v20115_v51 }
 0x43b   : > { %5819 = vmatprep.subr.bf16.mxu1 %v20120_v20  ;;  %5948 = vmatprep.subr.bf16.mxu0 %v20123_v22 }
 0x43e   : > { %5820 = vmatpush1.bf16.msra.mxu1 %v20118_v23  ;;  %5949 = vmatpush1.bf16.msra.mxu0 %v20121_v24 }
 0x43f   : > { %5821 = vmatprep.subr.bf16.mxu1 %v20126_v25  ;;  %5950 = vmatprep.subr.bf16.mxu0 %v20129_v26 }
 0x442   : > { %5822 = vmatpush1.bf16.msra.mxu1 %v20124_v27  ;;  %5951 = vmatpush1.bf16.msra.mxu0 %v20127_v28 }
 0x443   : > { %5823 = vmatprep.subr.bf16.mxu1 %v20132_v29  ;;  %5952 = vmatprep.subr.bf16.mxu0 %v20135_v30 }
 0x446   : > { %5824 = vmatpush1.bf16.msra.mxu1 %v20130_v31  ;;  %5953 = vmatpush1.bf16.msra.mxu0 %v20133_v32 }
 0x447   : > { %5825 = vmatprep.subr.bf16.mxu1 %v20138_v33  ;;  %5954 = vmatprep.subr.bf16.mxu0 %v20141_v34 }
 0x44a   : > { %5826 = vmatpush1.bf16.msra.mxu1 %v20136_v35  ;;  %5955 = vmatpush1.bf16.msra.mxu0 %v20139_v36 }
 0x44b   : > { %5827 = vmatprep.subr.bf16.mxu1 %v20144_v43  ;;  %5956 = vmatprep.subr.bf16.mxu0 %v20147_v37 }
 0x44e   : > { %5828 = vmatpush1.bf16.msra.mxu1 %v20142_v38  ;;  %5957 = vmatpush1.bf16.msra.mxu0 %v20145_v39 }
 0x44f   : > { %5829 = vmatprep.subr.bf16.mxu1 %v20150_v40  ;;  %5958 = vmatprep.subr.bf16.mxu0 %v20153_v48 }
 0x452   : > { %5830 = vmatpush1.bf16.msra.mxu1 %v20148_v49  ;;  %5959 = vmatpush1.bf16.msra.mxu0 %v20151_v50 }
 0x453   : > { %5831 = vmatprep.subr.bf16.mxu1 %v20156_v52  ;;  %5960 = vmatprep.subr.bf16.mxu0 %v20159_v56  ;;  %v20184_v52 = vld [vmem:[#allocation12 + $0x10] ss:$24 sps:$4 sm:$0xff]  }
 0x456   : > { %5832 = vmatpush1.bf16.msra.mxu1 %v20154_v59  ;;  %5961 = vmatpush1.bf16.msra.mxu0 %v20157_v60  ;;  %v20189_v59 = vld [vmem:[#allocation12 + $0x44] ss:$24 sps:$4 sm:$0xff]  }
 0x457   : > { %5833 = vmatprep.subr.bf16.mxu1 %v20162_v62  ;;  %5962 = vmatprep.subr.bf16.mxu0 %v20165_v63  ;;  %v20187_v62 = vld [vmem:[#allocation12 + $0x40] ss:$24 sps:$4 sm:$0xff]   ;;  %v20192_v63 = vld [vmem:[#allocation12 + $0x74] ss:$24 sps:$4 sm:$0xff]  }
 0x45a   : > { %5834 = vmatpush1.bf16.msra.mxu1 %v20160_v1  ;;  %5963 = vmatpush1.bf16.msra.mxu0 %v20163_v2  ;;  %v20190_v1 = vld [vmem:[#allocation12 + $0x70] ss:$24 sps:$4 sm:$0xff]   ;;  %v20195_v2 = vld [vmem:[#allocation12 + $0xa4] ss:$24 sps:$4 sm:$0xff]  }
 0x45b   : > { %5835 = vmatprep.subr.bf16.mxu1 %v20168_v3  ;;  %5964 = vmatprep.subr.bf16.mxu0 %v20171_v4  ;;  %v20193_v3 = vld [vmem:[#allocation12 + $0xa0] ss:$24 sps:$4 sm:$0xff]   ;;  %v20198_v4 = vld [vmem:[#allocation12 + $0xd4] ss:$24 sps:$4 sm:$0xff]  }
 0x45e   : > { %5836 = vmatpush1.bf16.msra.mxu1 %v20166_v5  ;;  %5965 = vmatpush1.bf16.msra.mxu0 %v20169_v53  ;;  %v20196_v5 = vld [vmem:[#allocation12 + $0xd0] ss:$24 sps:$4 sm:$0xff]   ;;  %v20201_v53 = vld [vmem:[#allocation12 + $0x104] ss:$24 sps:$4 sm:$0xff]  }
 0x45f   : > { %5837 = vmatprep.subr.bf16.mxu1 %v20174_v6  ;;  %5966 = vmatprep.subr.bf16.mxu0 %v20177_v7  ;;  %v20199_v6 = vld [vmem:[#allocation12 + $0x100] ss:$24 sps:$4 sm:$0xff]   ;;  %v20204_v7 = vld [vmem:[#allocation12 + $0x134] ss:$24 sps:$4 sm:$0xff]  }
 0x462   : > { %5838 = vmatpush1.bf16.msra.mxu1 %v20172_v8  ;;  %5967 = vmatpush1.bf16.msra.mxu0 %v20175_v9  ;;  %v20207_v8 = vld [vmem:[#allocation12 + $0x164] ss:$24 sps:$4 sm:$0xff]   ;;  %v20205_v9 = vld [vmem:[#allocation12 + $0x160] ss:$24 sps:$4 sm:$0xff]  }
 0x463   : > { %5839 = vmatprep.subr.bf16.mxu1 %v20180_v10  ;;  %5968 = vmatprep.subr.bf16.mxu0 %v20183_v12  ;;  %v20210_v10 = vld [vmem:[#allocation12 + $0x194] ss:$24 sps:$4 sm:$0xff]   ;;  %v20208_v12 = vld [vmem:[#allocation12 + $0x190] ss:$24 sps:$4 sm:$0xff]  }
 0x466   : > { %5840 = vmatpush1.bf16.msra.mxu1 %v20178_v13  ;;  %5969 = vmatpush1.bf16.msra.mxu0 %v20181_v14  ;;  %v20213_v13 = vld [vmem:[#allocation12 + $0x1c4] ss:$24 sps:$4 sm:$0xff]   ;;  %v20211_v14 = vld [vmem:[#allocation12 + $0x1c0] ss:$24 sps:$4 sm:$0xff]  }
 0x467   : > { %5981 = vmatprep.subr.bf16.mxu1 %v20186_v15  ;;  %v20216_v15 = vld [vmem:[#allocation12 + $0x1f4] ss:$24 sps:$4 sm:$0xff]  }
 0x46c   : > { %v3888_v18 = vpop.f32.mrb[12].mxu0 }
 0x46d   : > { %v18939_v19 = vadd.f32 %v3888_v18, %v2299_v16  ;;  %v3890_v55 = vpop.f32.mrb[13].mxu0  ;;  %v20222_v18 = vld [vmem:[#allocation12 + $0x254] ss:$24 sps:$4 sm:$0xff]  }
 0x46e   : > { %v18940_v51 = vadd.f32 %v3890_v55, %v2303_v17  ;;  %v3892_v20 = vpop.f32.mrb[14].mxu0  ;;  %v20316_v55 = vld [vmem:[#allocation14] ss:$16 sps:$4 sm:$0xff]  }
 0x46f   : > { %v3913_v22 = vmul.f32 0.70710677, %v18939_v19  ;;  %v18941_v23 = vadd.f32 %v3892_v20, %v2299_v16  ;;  %v3894_v24 = vpop.f32.mrb[15].mxu0  ;;  %v3901_v33 = vmul.f32 0.5, %v18939_v19  ;;  %v20219_v16 = vld [vmem:[#allocation12 + $0x224] ss:$24 sps:$4 sm:$0xff]  }
 0x470   : > { %v3914_v25 = vmul.f32 0.70710677, %v18940_v51  ;;  %v18942_v26 = vadd.f32 %v3894_v24, %v2303_v17  ;;  %v3902_v37 = vmul.f32 0.5, %v18940_v51  ;;  %v20217_v17 = vld [vmem:[#allocation12 + $0x220] ss:$24 sps:$4 sm:$0xff]  }
 0x471   : > { %21948 = verf.f32 %v3913_v22  ;;  %v3919_v27 = vmul.f32 0.70710677, %v18941_v23  ;;  %v3907_v36 = vmul.f32 0.5, %v18941_v23  ;;  %v20220_v19 = vld [vmem:[#allocation12 + $0x250] ss:$24 sps:$4 sm:$0xff]  }
 0x472   : > { %21950 = verf.f32 %v3914_v25  ;;  %v3920_v28 = vmul.f32 0.70710677, %v18942_v26  ;;  %v3908_v38 = vmul.f32 0.5, %v18942_v26  ;;  %v20318_v51 = vld [vmem:[#allocation14 + $0x4] ss:$16 sps:$4 sm:$0xff]  }
 0x473   : > { %21952 = verf.f32 %v3919_v27  ;;  %v20225_v20 = vld [vmem:[#allocation12 + $0x284] ss:$24 sps:$4 sm:$0xff]   ;;  %7350 = vmatprep.subr.bf16.mxu0 %v20318_v51  ;;  %v20223_v22 = vld [vmem:[#allocation12 + $0x280] ss:$24 sps:$4 sm:$0xff]   ;;  %v20228_v25 = vld [vmem:[#allocation12 + $0x2b4] ss:$24 sps:$4 sm:$0xff]  }
 0x474   : > { %21954 = verf.f32 %v3920_v28  ;;  %v20322_v23 = vld [vmem:[#allocation14 + $0x20] ss:$16 sps:$4 sm:$0xff]   ;;  %v20324_v24 = vld [vmem:[#allocation14 + $0x24] ss:$16 sps:$4 sm:$0xff]  }
 0x475   : > { %v20226_v26 = vld [vmem:[#allocation12 + $0x2b0] ss:$24 sps:$4 sm:$0xff]   ;;  %v20330_v28 = vld [vmem:[#allocation14 + $0x44] ss:$16 sps:$4 sm:$0xff]  }
 0x476   : > { %v20328_v27 = vld [vmem:[#allocation14 + $0x40] ss:$16 sps:$4 sm:$0xff]  }
 0x477   : > { %v20394_v51 = vld [vmem:[#allocation14 + $0x1a0] ss:$16 sps:$4 sm:$0xff]  }
 0x47b   : > { %v21949_v29 = vpop.eup %21948 }
 0x47c   : > { %v21951_v30 = vpop.eup %21950  ;;  %v3937_v31 = vadd.f32 1.0, %v21949_v29  ;;  %v20231_v29 = vld [vmem:[#allocation12 + $0x2e4] ss:$24 sps:$4 sm:$0xff]  }
 0x47d   : > { %v21953_v32 = vpop.eup %21952  ;;  %v3938_v34 = vadd.f32 1.0, %v21951_v30  ;;  %v20229_v30 = vld [vmem:[#allocation12 + $0x2e0] ss:$24 sps:$4 sm:$0xff]  }
 0x47e   : > { %v21955_v35 = vpop.eup %21954  ;;  %v3943_v43 = vadd.f32 1.0, %v21953_v32  ;;  %v3949_v40 = vmul.f32 %v3937_v31, %v3901_v33  ;;  %v20334_v31 = vld [vmem:[#allocation14 + $0x60] ss:$16 sps:$4 sm:$0xff]   ;;  %v20336_v32 = vld [vmem:[#allocation14 + $0x64] ss:$16 sps:$4 sm:$0xff]  }
 0x47f   : > { %v3944_v39 = vadd.f32 1.0, %v21955_v35  ;;  %v3950_v49 = vmul.f32 %v3938_v34, %v3902_v37  ;;  %v20234_v33 = vld [vmem:[#allocation12 + $0x314] ss:$24 sps:$4 sm:$0xff]   ;;  %v20232_v34 = vld [vmem:[#allocation12 + $0x310] ss:$24 sps:$4 sm:$0xff]  }
 0x480   : > { %v3955_v48 = vmul.f32 %v3943_v43, %v3907_v36  ;;  %v20340_v35 = vld [vmem:[#allocation14 + $0x80] ss:$16 sps:$4 sm:$0xff]   ;;  %v20342_v36 = vld [vmem:[#allocation14 + $0x84] ss:$16 sps:$4 sm:$0xff]  }
 0x481   : > { %v3956_v50 = vmul.f32 %v3944_v39, %v3908_v38  ;;  %v20237_v43 = vld [vmem:[#allocation12 + $0x344] ss:$24 sps:$4 sm:$0xff]   ;;  %v20346_v37 = vld [vmem:[#allocation14 + $0xa0] ss:$16 sps:$4 sm:$0xff]  }
 0x482   : > { %v23025_v56 = vpack.c.bf16 %v3955_v48, %v3949_v40  ;;  %v20235_v38 = vld [vmem:[#allocation12 + $0x340] ss:$24 sps:$4 sm:$0xff]   ;;  %v20348_v39 = vld [vmem:[#allocation14 + $0xa4] ss:$16 sps:$4 sm:$0xff]  }
 0x483   : > { %v23027_v60 = vpack.c.bf16 %v3956_v50, %v3950_v49  ;;  %v20240_v40 = vld [vmem:[#allocation12 + $0x374] ss:$24 sps:$4 sm:$0xff]   ;;  %v20352_v49 = vld [vmem:[#allocation14 + $0xc0] ss:$16 sps:$4 sm:$0xff]  }
 0x484   : > { %v20354_v48 = vld [vmem:[#allocation14 + $0xc4] ss:$16 sps:$4 sm:$0xff]   ;;  %v20238_v50 = vld [vmem:[#allocation12 + $0x370] ss:$24 sps:$4 sm:$0xff]  }
 0x485   : > { %5841 = vmatprep.mubr.bf16.mxu1 %v23027_v60  ;;  %5970 = vmatprep.mubr.bf16.mxu0 %v23027_v60 }
 0x486   : > { %5842 = vmatmul.mubr.bf16.vlgmr.msra.gmra.mrb[12].mxu1 %v23025_v56  ;;  %5971 = vmatmul.mubr.bf16.vlgmr.msra.gmra.mrb[16].mxu0 %v23025_v56 }
 0x487   : > { %5982 = vmatpush1.bf16.msra.mxu1 %v20184_v52  ;;  %6013 = vmatprep.mubr.bf16.mxu1 %v23005_v57  ;;  %v20202_v57 = vld [vmem:[#allocation12 + $0x130] ss:$24 sps:$4 sm:$0xff]   ;;  %v20243_v52 = vld [vmem:[#allocation12 + $0x3a4] ss:$24 sps:$4 sm:$0xff]  }
 0x488   : > { %5983 = vmatprep.subr.bf16.mxu1 %v20189_v59  ;;  %7351 = vmatpush1.bf16.msra.mxu0 %v20316_v55  ;;  %v20360_v59 = vld [vmem:[#allocation14 + $0xe4] ss:$16 sps:$4 sm:$0xff]  }
 0x489   : > { %7352 = vmatprep.subr.bf16.mxu0 %v20324_v24  ;;  %v20396_v55 = vld [vmem:[#allocation14 + $0x1a4] ss:$16 sps:$4 sm:$0xff]   ;;  %v20400_v24 = vld [vmem:[#allocation14 + $0x1c0] ss:$16 sps:$4 sm:$0xff]  }
 0x48b   : > { %5984 = vmatpush1.bf16.msra.mxu1 %v20187_v62  ;;  %v20241_v62 = vld [vmem:[#allocation12 + $0x3a0] ss:$24 sps:$4 sm:$0xff]  }
 0x48c   : > { %5985 = vmatprep.subr.bf16.mxu1 %v20192_v63  ;;  %7353 = vmatpush1.bf16.msra.mxu0 %v20322_v23  ;;  %v20366_v63 = vld [vmem:[#allocation14 + $0x104] ss:$16 sps:$4 sm:$0xff]  }
 0x48d   : > { %7354 = vmatprep.subr.bf16.mxu0 %v20330_v28  ;;  %v20402_v23 = vld [vmem:[#allocation14 + $0x1c4] ss:$16 sps:$4 sm:$0xff]   ;;  %v20406_v28 = vld [vmem:[#allocation14 + $0x1e0] ss:$16 sps:$4 sm:$0xff]  }
 0x48f   : > { %5986 = vmatpush1.bf16.msra.mxu1 %v20190_v1  ;;  %v20364_v1 = vld [vmem:[#allocation14 + $0x100] ss:$16 sps:$4 sm:$0xff]  }
 0x490   : > { %5987 = vmatprep.subr.bf16.mxu1 %v20195_v2  ;;  %7355 = vmatpush1.bf16.msra.mxu0 %v20328_v27  ;;  %v20244_v2 = vld [vmem:[#allocation12 + $0x3d0] ss:$24 sps:$4 sm:$0xff]   ;;  %v20408_v27 = vld [vmem:[#allocation14 + $0x1e4] ss:$16 sps:$4 sm:$0xff]  }
 0x491   : > { %7356 = vmatprep.subr.bf16.mxu0 %v20336_v32  ;;  %v20271_v32 = vld [vmem:[#allocation12 + $0x580] ss:$24 sps:$4 sm:$0xff]  }
 0x493   : > { %5988 = vmatpush1.bf16.msra.mxu1 %v20193_v3  ;;  %v20249_v3 = vld [vmem:[#allocation12 + $0x404] ss:$24 sps:$4 sm:$0xff]  }
 0x494   : > { %5989 = vmatprep.subr.bf16.mxu1 %v20198_v4  ;;  %7357 = vmatpush1.bf16.msra.mxu0 %v20334_v31  ;;  %v20372_v4 = vld [vmem:[#allocation14 + $0x124] ss:$16 sps:$4 sm:$0xff]  }
 0x495   : > { %7358 = vmatprep.subr.bf16.mxu0 %v20342_v36  ;;  %v20414_v31 = vld [vmem:[#allocation14 + $0x204] ss:$16 sps:$4 sm:$0xff]   ;;  %v20277_v36 = vld [vmem:[#allocation12 + $0x5e0] ss:$24 sps:$4 sm:$0xff]  }
 0x497   : > { %5990 = vmatpush1.bf16.msra.mxu1 %v20196_v5  ;;  %v20370_v5 = vld [vmem:[#allocation14 + $0x120] ss:$16 sps:$4 sm:$0xff]  }
 0x498   : > { %5991 = vmatprep.subr.bf16.mxu1 %v20201_v53  ;;  %7359 = vmatpush1.bf16.msra.mxu0 %v20340_v35  ;;  %v20247_v53 = vld [vmem:[#allocation12 + $0x400] ss:$24 sps:$4 sm:$0xff]   ;;  %v20279_v35 = vld [vmem:[#allocation12 + $0x5e4] ss:$24 sps:$4 sm:$0xff]  }
 0x499   : > { %7360 = vmatprep.subr.bf16.mxu0 %v20348_v39  ;;  %v20283_v39 = vld [vmem:[#allocation12 + $0x640] ss:$24 sps:$4 sm:$0xff]  }
 0x49b   : > { %5992 = vmatpush1.bf16.msra.mxu1 %v20199_v6  ;;  %v20252_v6 = vld [vmem:[#allocation12 + $0x434] ss:$24 sps:$4 sm:$0xff]  }
 0x49c   : > { %5993 = vmatprep.subr.bf16.mxu1 %v20204_v7  ;;  %7361 = vmatpush1.bf16.msra.mxu0 %v20346_v37  ;;  %v20250_v7 = vld [vmem:[#allocation12 + $0x430] ss:$24 sps:$4 sm:$0xff]  }
 0x49d   : > { %7362 = vmatprep.subr.bf16.mxu0 %v20354_v48  ;;  %v20280_v37 = vld [vmem:[#allocation12 + $0x610] ss:$24 sps:$4 sm:$0xff]  }
 0x49e   : > { %v20286_v48 = vld [vmem:[#allocation12 + $0x670] ss:$24 sps:$4 sm:$0xff]  }
 0x49f   : > { %5994 = vmatpush1.bf16.msra.mxu1 %v20202_v57  ;;  %v20255_v57 = vld [vmem:[#allocation12 + $0x464] ss:$24 sps:$4 sm:$0xff]  }
 0x4a0   : > { %5995 = vmatprep.subr.bf16.mxu1 %v20207_v8  ;;  %7363 = vmatpush1.bf16.msra.mxu0 %v20352_v49  ;;  %v20378_v8 = vld [vmem:[#allocation14 + $0x144] ss:$16 sps:$4 sm:$0xff]  }
 0x4a1   : > { %7364 = vmatprep.subr.bf16.mxu0 %v20360_v59  ;;  %v20291_v49 = vld [vmem:[#allocation12 + $0x6a4] ss:$24 sps:$4 sm:$0xff]   ;;  %v20292_v59 = vld [vmem:[#allocation12 + $0x6d0] ss:$24 sps:$4 sm:$0xff]  }
 0x4a3   : > { %5996 = vmatpush1.bf16.msra.mxu1 %v20205_v9  ;;  %v20376_v9 = vld [vmem:[#allocation14 + $0x140] ss:$16 sps:$4 sm:$0xff]  }
 0x4a4   : > { %5997 = vmatprep.subr.bf16.mxu1 %v20210_v10  ;;  %v20253_v10 = vld [vmem:[#allocation12 + $0x460] ss:$24 sps:$4 sm:$0xff]  }
 0x4a7   : > { %5998 = vmatpush1.bf16.msra.mxu1 %v20208_v12  ;;  %v20258_v12 = vld [vmem:[#allocation12 + $0x494] ss:$24 sps:$4 sm:$0xff]  }
 0x4a8   : > { %5999 = vmatprep.subr.bf16.mxu1 %v20213_v13  ;;  %v20384_v13 = vld [vmem:[#allocation14 + $0x164] ss:$16 sps:$4 sm:$0xff]  }
 0x4ab   : > { %6000 = vmatpush1.bf16.msra.mxu1 %v20211_v14  ;;  %v20382_v14 = vld [vmem:[#allocation14 + $0x160] ss:$16 sps:$4 sm:$0xff]  }
 0x4ac   : > { %6001 = vmatprep.subr.bf16.mxu1 %v20216_v15  ;;  %v20256_v15 = vld [vmem:[#allocation12 + $0x490] ss:$24 sps:$4 sm:$0xff]  }
 0x4af   : > { %6002 = vmatpush1.bf16.msra.mxu1 %v20214_v58  ;;  %v20261_v58 = vld [vmem:[#allocation12 + $0x4c4] ss:$24 sps:$4 sm:$0xff]  }
 0x4b0   : > { %6003 = vmatprep.subr.bf16.mxu1 %v20219_v16  ;;  %v20390_v16 = vld [vmem:[#allocation14 + $0x184] ss:$16 sps:$4 sm:$0xff]  }
 0x4b3   : > { %6004 = vmatpush1.bf16.msra.mxu1 %v20217_v17  ;;  %v20388_v17 = vld [vmem:[#allocation14 + $0x180] ss:$16 sps:$4 sm:$0xff]  }
 0x4b4   : > { %6005 = vmatprep.subr.bf16.mxu1 %v20222_v18  ;;  %v20259_v18 = vld [vmem:[#allocation12 + $0x4c0] ss:$24 sps:$4 sm:$0xff]  }
 0x4b7   : > { %6006 = vmatpush1.bf16.msra.mxu1 %v20220_v19  ;;  %v20264_v19 = vld [vmem:[#allocation12 + $0x4f4] ss:$24 sps:$4 sm:$0xff]  }
 0x4b8   : > { %6007 = vmatprep.subr.bf16.mxu1 %v20225_v20  ;;  %v20262_v20 = vld [vmem:[#allocation12 + $0x4f0] ss:$24 sps:$4 sm:$0xff]  }
 0x4bb   : > { %6008 = vmatpush1.bf16.msra.mxu1 %v20223_v22  ;;  %v20267_v22 = vld [vmem:[#allocation12 + $0x524] ss:$24 sps:$4 sm:$0xff]  }
 0x4bc   : > { %6009 = vmatprep.subr.bf16.mxu1 %v20228_v25  ;;  %v20265_v25 = vld [vmem:[#allocation12 + $0x520] ss:$24 sps:$4 sm:$0xff]  }
 0x4bf   : > { %6010 = vmatpush1.bf16.msra.mxu1 %v20226_v26  ;;  %v20270_v26 = vld [vmem:[#allocation12 + $0x554] ss:$24 sps:$4 sm:$0xff]  }
 0x4c0   : > { %6011 = vmatprep.subr.bf16.mxu1 %v20231_v29  ;;  %v20268_v29 = vld [vmem:[#allocation12 + $0x550] ss:$24 sps:$4 sm:$0xff]  }
 0x4c3   : > { %6012 = vmatpush1.bf16.msra.mxu1 %v20229_v30  ;;  %v20273_v30 = vld [vmem:[#allocation12 + $0x584] ss:$24 sps:$4 sm:$0xff]  }
 0x4c4   : > { %6024 = vmatprep.subr.bf16.mxu1 %v20234_v33  ;;  %v20276_v33 = vld [vmem:[#allocation12 + $0x5b4] ss:$24 sps:$4 sm:$0xff]  }
 0x4c6   : > { %6014 = vmatmul.mubr.bf16.vlgmr.msra.gmra.mrb[16].mxu1 %v23001_v41  ;;  %v20358_v41 = vld [vmem:[#allocation14 + $0xe0] ss:$16 sps:$4 sm:$0xff]  }
 0x4c7   : > { %6025 = vmatpush1.bf16.msra.mxu1 %v20232_v34  ;;  %6056 = vmatprep.mubr.bf16.mxu1 %v23007_v61  ;;  %v20246_v61 = vld [vmem:[#allocation12 + $0x3d4] ss:$24 sps:$4 sm:$0xff]   ;;  %v20274_v34 = vld [vmem:[#allocation12 + $0x5b0] ss:$24 sps:$4 sm:$0xff]  }
 0x4c8   : > { %6026 = vmatprep.subr.bf16.mxu1 %v20237_v43  ;;  %7365 = vmatpush1.bf16.msra.mxu0 %v20358_v41  ;;  %v20282_v43 = vld [vmem:[#allocation12 + $0x614] ss:$24 sps:$4 sm:$0xff]   ;;  %v20297_v41 = vld [vmem:[#allocation12 + $0x704] ss:$24 sps:$4 sm:$0xff]  }
 0x4c9   : > { %7366 = vmatprep.subr.bf16.mxu0 %v20366_v63  ;;  %v20301_v63 = vld [vmem:[#allocation12 + $0x760] ss:$24 sps:$4 sm:$0xff]  }
 0x4cb   : > { %6027 = vmatpush1.bf16.msra.mxu1 %v20235_v38  ;;  %v20285_v38 = vld [vmem:[#allocation12 + $0x644] ss:$24 sps:$4 sm:$0xff]  }
 0x4cc   : > { %6028 = vmatprep.subr.bf16.mxu1 %v20240_v40  ;;  %7367 = vmatpush1.bf16.msra.mxu0 %v20364_v1  ;;  %v20288_v40 = vld [vmem:[#allocation12 + $0x674] ss:$24 sps:$4 sm:$0xff]  }
 0x4cd   : > { %7368 = vmatprep.subr.bf16.mxu0 %v20372_v4  ;;  %v20306_v1 = vld [vmem:[#allocation12 + $0x794] ss:$24 sps:$4 sm:$0xff]   ;;  %v20307_v4 = vld [vmem:[#allocation12 + $0x7c0] ss:$24 sps:$4 sm:$0xff]  }
 0x4cf   : > { %6029 = vmatpush1.bf16.msra.mxu1 %v20238_v50  ;;  %v20289_v50 = vld [vmem:[#allocation12 + $0x6a0] ss:$24 sps:$4 sm:$0xff]  }
 0x4d0   : > { %6030 = vmatprep.subr.bf16.mxu1 %v20243_v52  ;;  %7369 = vmatpush1.bf16.msra.mxu0 %v20370_v5  ;;  %v20294_v52 = vld [vmem:[#allocation12 + $0x6d4] ss:$24 sps:$4 sm:$0xff]  }
 0x4d1   : > { %7370 = vmatprep.subr.bf16.mxu0 %v20378_v8  ;;  %v20312_v5 = vld [vmem:[#allocation12 + $0x7f4] ss:$24 sps:$4 sm:$0xff]   ;;  %v20319_v8 = vld [vmem:[#allocation12 + $0x850] ss:$24 sps:$4 sm:$0xff]  }
 0x4d3   : > { %6031 = vmatpush1.bf16.msra.mxu1 %v20241_v62  ;;  %v20300_v62 = vld [vmem:[#allocation12 + $0x734] ss:$24 sps:$4 sm:$0xff]  }
 0x4d4   : > { %6032 = vmatprep.subr.bf16.mxu1 %v20246_v61  ;;  %7371 = vmatpush1.bf16.msra.mxu0 %v20376_v9  ;;  %v20303_v61 = vld [vmem:[#allocation12 + $0x764] ss:$24 sps:$4 sm:$0xff]  }
 0x4d5   : > { %7372 = vmatprep.subr.bf16.mxu0 %v20384_v13  ;;  %v20327_v9 = vld [vmem:[#allocation12 + $0x884] ss:$24 sps:$4 sm:$0xff]   ;;  %v20331_v13 = vld [vmem:[#allocation12 + $0x8b0] ss:$24 sps:$4 sm:$0xff]  }
 0x4d7   : > { %6033 = vmatpush1.bf16.msra.mxu1 %v20244_v2  ;;  %v20304_v2 = vld [vmem:[#allocation12 + $0x790] ss:$24 sps:$4 sm:$0xff]  }
 0x4d8   : > { %6034 = vmatprep.subr.bf16.mxu1 %v20249_v3  ;;  %7373 = vmatpush1.bf16.msra.mxu0 %v20382_v14  ;;  %v20309_v3 = vld [vmem:[#allocation12 + $0x7c4] ss:$24 sps:$4 sm:$0xff]  }
 0x4d9   : > { %7374 = vmatprep.subr.bf16.mxu0 %v20390_v16  ;;  %v20339_v14 = vld [vmem:[#allocation12 + $0x8e4] ss:$24 sps:$4 sm:$0xff]   ;;  %v20343_v16 = vld [vmem:[#allocation14 + $0x8] ss:$16 sps:$4 sm:$0xff]  }
 0x4db   : > { %6035 = vmatpush1.bf16.msra.mxu1 %v20247_v53  ;;  %v20310_v53 = vld [vmem:[#allocation12 + $0x7f0] ss:$24 sps:$4 sm:$0xff]  }
 0x4dc   : > { %6036 = vmatprep.subr.bf16.mxu1 %v20252_v6  ;;  %7375 = vmatpush1.bf16.msra.mxu0 %v20388_v17  ;;  %v20315_v6 = vld [vmem:[#allocation12 + $0x824] ss:$24 sps:$4 sm:$0xff]  }
 0x4dd   : > { %7376 = vmatprep.subr.bf16.mxu0 %v20396_v55  ;;  %v20351_v17 = vld [vmem:[#allocation14 + $0x2c] ss:$16 sps:$4 sm:$0xff]   ;;  %v20355_v55 = vld [vmem:[#allocation14 + $0x48] ss:$16 sps:$4 sm:$0xff]  }
 0x4df   : > { %6037 = vmatpush1.bf16.msra.mxu1 %v20250_v7  ;;  %v20313_v7 = vld [vmem:[#allocation12 + $0x820] ss:$24 sps:$4 sm:$0xff]  }
 0x4e0   : > { %6038 = vmatprep.subr.bf16.mxu1 %v20255_v57  ;;  %7377 = vmatpush1.bf16.msra.mxu0 %v20394_v51  ;;  %v20321_v57 = vld [vmem:[#allocation12 + $0x854] ss:$24 sps:$4 sm:$0xff]  }
 0x4e1   : > { %7378 = vmatprep.subr.bf16.mxu0 %v20402_v23  ;;  %v20363_v51 = vld [vmem:[#allocation14 + $0x6c] ss:$16 sps:$4 sm:$0xff]   ;;  %v20367_v23 = vld [vmem:[#allocation14 + $0x88] ss:$16 sps:$4 sm:$0xff]  }
 0x4e3   : > { %6039 = vmatpush1.bf16.msra.mxu1 %v20253_v10  ;;  %v20325_v10 = vld [vmem:[#allocation12 + $0x880] ss:$24 sps:$4 sm:$0xff]  }
 0x4e4   : > { %6040 = vmatprep.subr.bf16.mxu1 %v20258_v12  ;;  %7379 = vmatpush1.bf16.msra.mxu0 %v20400_v24  ;;  %v20333_v12 = vld [vmem:[#allocation12 + $0x8b4] ss:$24 sps:$4 sm:$0xff]   ;;  %v23042_v24 = vld [vmem:[%s25352_s11 + $0xb] sm:$0x3f] }
 0x4e5   : > { %7380 = vmatprep.subr.bf16.mxu0 %v20408_v27  ;;  %v20373_v27 = vld [vmem:[#allocation14 + $0xa8] ss:$16 sps:$4 sm:$0xff]  }
 0x4e7   : > { %6041 = vmatpush1.bf16.msra.mxu1 %v20256_v15  ;;  %v20337_v15 = vld [vmem:[#allocation12 + $0x8e0] ss:$24 sps:$4 sm:$0xff]  }
 0x4e8   : > { %6042 = vmatprep.subr.bf16.mxu1 %v20261_v58  ;;  %7381 = vmatpush1.bf16.msra.mxu0 %v20406_v28  ;;  %v20345_v58 = vld [vmem:[#allocation14 + $0xc] ss:$16 sps:$4 sm:$0xff]   ;;  %v4260_v28 = vrot.slane %v23042_v24, %v22948_v45 }
 0x4e9   : > { %7393 = vmatprep.subr.bf16.mxu0 %v20414_v31 }
 0x4eb   : > { %6043 = vmatpush1.bf16.msra.mxu1 %v20259_v18  ;;  %v20349_v18 = vld [vmem:[#allocation14 + $0x28] ss:$16 sps:$4 sm:$0xff]  }
 0x4ec   : > { %6044 = vmatprep.subr.bf16.mxu1 %v20264_v19  ;;  %v20357_v19 = vld [vmem:[#allocation14 + $0x4c] ss:$16 sps:$4 sm:$0xff]  }
 0x4ef   : > { %6045 = vmatpush1.bf16.msra.mxu1 %v20262_v20  ;;  %v20361_v20 = vld [vmem:[#allocation14 + $0x68] ss:$16 sps:$4 sm:$0xff]  }
 0x4f0   : > { %6046 = vmatprep.subr.bf16.mxu1 %v20267_v22  ;;  %v20369_v22 = vld [vmem:[#allocation14 + $0x8c] ss:$16 sps:$4 sm:$0xff]  }
 0x4f3   : > { %6047 = vmatpush1.bf16.msra.mxu1 %v20265_v25  ;;  %v4256_v25 = vrot.slane %v23042_v24, %v22942_v44 }
 0x4f4   : > { %6048 = vmatprep.subr.bf16.mxu1 %v20270_v26  ;;  %v4264_v26 = vrot.slane %v23042_v24, %v22945_v11 }
 0x4f7   : > { %6049 = vmatpush1.bf16.msra.mxu1 %v20268_v29  ;;  %v4268_v29 = vrot.slane %v23042_v24, %v22951_v46 }
 0x4f8   : > { %6050 = vmatprep.subr.bf16.mxu1 %v20273_v30  ;;  %v20381_v30 = vld [vmem:[#allocation14 + $0xcc] ss:$16 sps:$4 sm:$0xff]  }
 0x4fb   : > { %6051 = vmatpush1.bf16.msra.mxu1 %v20271_v32 }
 0x4fc   : > { %6052 = vmatprep.subr.bf16.mxu1 %v20276_v33 }
 0x4ff   : > { %6053 = vmatpush1.bf16.msra.mxu1 %v20274_v34 }
 0x500   : > { %6054 = vmatprep.subr.bf16.mxu1 %v20279_v35 }
 0x503   : > { %6055 = vmatpush1.bf16.msra.mxu1 %v20277_v36 }
 0x504   : > { %6067 = vmatprep.subr.bf16.mxu1 %v20282_v43 }
 0x506   : > { %6057 = vmatmul.mubr.bf16.vlgmr.msra.gmra.mrb[16].mxu1 %v23003_v54  ;;  %v20295_v54 = vld [vmem:[#allocation12 + $0x700] ss:$24 sps:$4 sm:$0xff]  }
 0x507   : > { %6068 = vmatpush1.bf16.msra.mxu1 %v20280_v37  ;;  %6099 = vmatprep.mubr.bf16.mxu1 %v23027_v60  ;;  %v20298_v60 = vld [vmem:[#allocation12 + $0x730] ss:$24 sps:$4 sm:$0xff]  }
 0x508   : > { %6069 = vmatprep.subr.bf16.mxu1 %v20285_v38 }
 0x50b   : > { %6070 = vmatpush1.bf16.msra.mxu1 %v20283_v39 }
 0x50c   : > { %6071 = vmatprep.subr.bf16.mxu1 %v20288_v40  ;;  %v20379_v40 = vld [vmem:[#allocation14 + $0xc8] ss:$16 sps:$4 sm:$0xff]  }
 0x50f   : > { %6072 = vmatpush1.bf16.msra.mxu1 %v20286_v48 }
 0x510   : > { %6073 = vmatprep.subr.bf16.mxu1 %v20291_v49 }
 0x513   : > { %6074 = vmatpush1.bf16.msra.mxu1 %v20289_v50  ;;  %v20387_v50 = vld [vmem:[#allocation14 + $0xec] ss:$16 sps:$4 sm:$0xff]  }
 0x514   : > { %6075 = vmatprep.subr.bf16.mxu1 %v20294_v52 }
 0x517   : > { %6076 = vmatpush1.bf16.msra.mxu1 %v20292_v59 }
 0x518   : > { %6077 = vmatprep.subr.bf16.mxu1 %v20297_v41 }
 0x51b   : > { %6078 = vmatpush1.bf16.msra.mxu1 %v20295_v54 }
 0x51c   : > { %6079 = vmatprep.subr.bf16.mxu1 %v20300_v62 }
 0x51f   : > { %6080 = vmatpush1.bf16.msra.mxu1 %v20298_v60 }
 0x520   : > { %6081 = vmatprep.subr.bf16.mxu1 %v20303_v61 }
 0x523   : > { %6082 = vmatpush1.bf16.msra.mxu1 %v20301_v63 }
 0x524   : > { %6083 = vmatprep.subr.bf16.mxu1 %v20306_v1  ;;  %v20385_v1 = vld [vmem:[#allocation14 + $0xe8] ss:$16 sps:$4 sm:$0xff]  }
 0x527   : > { %6084 = vmatpush1.bf16.msra.mxu1 %v20304_v2 }
 0x528   : > { %6085 = vmatprep.subr.bf16.mxu1 %v20309_v3  ;;  %v20393_v3 = vld [vmem:[#allocation14 + $0x10c] ss:$16 sps:$4 sm:$0xff]  }
 0x52b   : > { %6086 = vmatpush1.bf16.msra.mxu1 %v20307_v4 }
 0x52c   : > { %6087 = vmatprep.subr.bf16.mxu1 %v20312_v5 }
 0x52f   : > { %6088 = vmatpush1.bf16.msra.mxu1 %v20310_v53 }
 0x530   : > { %6089 = vmatprep.subr.bf16.mxu1 %v20315_v6  ;;  %v20391_v6 = vld [vmem:[#allocation14 + $0x108] ss:$16 sps:$4 sm:$0xff]  }
 0x533   : > { %6090 = vmatpush1.bf16.msra.mxu1 %v20313_v7  ;;  %v20399_v7 = vld [vmem:[#allocation14 + $0x12c] ss:$16 sps:$4 sm:$0xff]  }
 0x534   : > { %6091 = vmatprep.subr.bf16.mxu1 %v20321_v57  ;;  %v20397_v57 = vld [vmem:[#allocation14 + $0x128] ss:$16 sps:$4 sm:$0xff]  }
 0x537   : > { %6092 = vmatpush1.bf16.msra.mxu1 %v20319_v8 }
 0x538   : > { %6093 = vmatprep.subr.bf16.mxu1 %v20327_v9  ;;  %v20405_v9 = vld [vmem:[#allocation14 + $0x14c] ss:$16 sps:$4 sm:$0xff]  }
 0x53b   : > { %6094 = vmatpush1.bf16.msra.mxu1 %v20325_v10 }
 0x53c   : > { %6095 = vmatprep.subr.bf16.mxu1 %v20333_v12 }
 0x53f   : > { %6096 = vmatpush1.bf16.msra.mxu1 %v20331_v13 }
 0x540   : > { %6097 = vmatprep.subr.bf16.mxu1 %v20339_v14 }
 0x543   : > { %6098 = vmatpush1.bf16.msra.mxu1 %v20337_v15  ;;  %v20403_v15 = vld [vmem:[#allocation14 + $0x148] ss:$16 sps:$4 sm:$0xff]  }
 0x544   : > { %7479 = vmatprep.subr.bf16.mxu1 %v20345_v58 }
 0x546   : > { %6100 = vmatmul.mubr.bf16.vlgmr.msra.gmra.mrb[16].mxu1 %v23025_v56  ;;  %v20375_v56 = vld [vmem:[#allocation14 + $0xac] ss:$16 sps:$4 sm:$0xff]  }
 0x547   : > { %7480 = vmatpush1.bf16.msra.mxu1 %v20343_v16 }
 0x548   : > { %7481 = vmatprep.subr.bf16.mxu1 %v20351_v17 }
 0x54b   : > { %7482 = vmatpush1.bf16.msra.mxu1 %v20349_v18 }
 0x54c   : > { %7483 = vmatprep.subr.bf16.mxu1 %v20357_v19  ;;  %v20411_v19 = vld [vmem:[#allocation14 + $0x16c] ss:$16 sps:$4 sm:$0xff]  }
 0x54f   : > { %7484 = vmatpush1.bf16.msra.mxu1 %v20355_v55 }
 0x550   : > { %7485 = vmatprep.subr.bf16.mxu1 %v20363_v51 }
 0x553   : > { %7486 = vmatpush1.bf16.msra.mxu1 %v20361_v20 }
 0x554   : > { %7487 = vmatprep.subr.bf16.mxu1 %v20369_v22 }
 0x557   : > { %7488 = vmatpush1.bf16.msra.mxu1 %v20367_v23 }
 0x558   : > { %7489 = vmatprep.subr.bf16.mxu1 %v20375_v56 }
 0x559   : > { %v5843_v31 = vpop.f32.mrb[12].mxu1  ;;  %v5972_v32 = vpop.f32.mrb[16].mxu0 }
 0x55a   : > { %v18943_v33 = vadd.f32 %v5843_v31, %v4256_v25  ;;  %v18947_v34 = vadd.f32 %v5972_v32, %v4264_v26  ;;  %v5845_v35 = vpop.f32.mrb[13].mxu1  ;;  %v5974_v36 = vpop.f32.mrb[17].mxu0 }
 0x55b   : > { %v18944_v43 = vadd.f32 %v5845_v35, %v4260_v28  ;;  %v18948_v37 = vadd.f32 %v5974_v36, %v4268_v29  ;;  %7490 = vmatpush1.bf16.msra.mxu1 %v20373_v27  ;;  %v5847_v38 = vpop.f32.mrb[14].mxu1  ;;  %v5976_v39 = vpop.f32.mrb[18].mxu0 }
 0x55c   : > { %v6122_v48 = vmul.f32 0.70710677, %v18943_v33  ;;  %v6124_v49 = vmul.f32 0.70710677, %v18947_v34  ;;  %7491 = vmatprep.subr.bf16.mxu1 %v20381_v30  ;;  %v18945_v41 = vadd.f32 %v5847_v38, %v4256_v25  ;;  %v18949_v54 = vadd.f32 %v5976_v39, %v4264_v26  ;;  %v5849_v62 = vpop.f32.mrb[15].mxu1  ;;  %v5978_v60 = vpop.f32.mrb[19].mxu0 }
 0x55d   : > { %v6123_v52 = vmul.f32 0.70710677, %v18944_v43  ;;  %v6125_v59 = vmul.f32 0.70710677, %v18948_v37  ;;  %v18946_v61 = vadd.f32 %v5849_v62, %v4260_v28  ;;  %v18950_v63 = vadd.f32 %v5978_v60, %v4268_v29  ;;  %v20415_v62 = vld [vmem:[#allocation14 + $0x188] ss:$16 sps:$4 sm:$0xff]  }
 0x55e   : > { %21956 = verf.f32 %v6122_v48  ;;  %v6128_v2 = vmul.f32 0.70710677, %v18945_v41  ;;  %v6130_v4 = vmul.f32 0.70710677, %v18949_v54  ;;  %v6110_v16 = vmul.f32 0.5, %v18943_v33 }
 0x55f   : > { %21958 = verf.f32 %v6124_v49  ;;  %7492 = vmatpush1.bf16.msra.mxu1 %v20379_v40  ;;  %v6129_v5 = vmul.f32 0.70710677, %v18946_v61  ;;  %v6131_v53 = vmul.f32 0.70710677, %v18950_v63  ;;  %v6112_v17 = vmul.f32 0.5, %v18947_v34 }
 0x560   : > { %21960 = verf.f32 %v6123_v52  ;;  %7493 = vmatprep.subr.bf16.mxu1 %v20387_v50  ;;  %v6111_v51 = vmul.f32 0.5, %v18944_v43  ;;  %v6116_v22 = vmul.f32 0.5, %v18945_v41  ;;  %v6113_v25 = vmul.f32 0.5, %v18948_v37  ;;  %v20409_v33 = vld [vmem:[#allocation14 + $0x168] ss:$16 sps:$4 sm:$0xff]  }
 0x561   : > { %21962 = verf.f32 %v6125_v59  ;;  %v6118_v27 = vmul.f32 0.5, %v18949_v54  ;;  %v6117_v32 = vmul.f32 0.5, %v18946_v61  ;;  %v6119_v38 = vmul.f32 0.5, %v18950_v63  ;;  %v20417_v43 = vld [vmem:[#allocation14 + $0x18c] ss:$16 sps:$4 sm:$0xff]  }
 0x562   : > { %21964 = verf.f32 %v6128_v2  ;;  %v20412_v41 = vld [vmem:[#allocation14 + $0x200] ss:$16 sps:$4 sm:$0xff]   ;;  %v20420_v60 = vld [vmem:[#allocation14 + $0x224] ss:$16 sps:$4 sm:$0xff]   ;;  %v20423_v61 = vld [vmem:[#allocation14 + $0x1ac] ss:$16 sps:$4 sm:$0xff]  }
 0x563   : > { %21966 = verf.f32 %v6130_v4  ;;  %7494 = vmatpush1.bf16.msra.mxu1 %v20385_v1  ;;  %v20418_v63 = vld [vmem:[#allocation14 + $0x220] ss:$16 sps:$4 sm:$0xff]   ;;  %v20421_v1 = vld [vmem:[#allocation14 + $0x1a8] ss:$16 sps:$4 sm:$0xff]   ;;  %v20426_v2 = vld [vmem:[#allocation14 + $0x244] ss:$16 sps:$4 sm:$0xff]  }
 0x564   : > { %21968 = verf.f32 %v6129_v5  ;;  %7495 = vmatprep.subr.bf16.mxu1 %v20393_v3  ;;  %v20429_v3 = vld [vmem:[#allocation14 + $0x1cc] ss:$16 sps:$4 sm:$0xff]   ;;  %v20424_v4 = vld [vmem:[#allocation14 + $0x240] ss:$16 sps:$4 sm:$0xff]   ;;  %v20427_v5 = vld [vmem:[#allocation14 + $0x1c8] ss:$16 sps:$4 sm:$0xff]  }
 0x565   : > { %21970 = verf.f32 %v6131_v53  ;;  %v20432_v53 = vld [vmem:[#allocation14 + $0x264] ss:$16 sps:$4 sm:$0xff]  }
 0x567   : > { %7496 = vmatpush1.bf16.msra.mxu1 %v20391_v6  ;;  %v20435_v6 = vld [vmem:[#allocation14 + $0x1ec] ss:$16 sps:$4 sm:$0xff]  }
 0x568   : > { %v21957_v8 = vpop.eup %21956  ;;  %7497 = vmatprep.subr.bf16.mxu1 %v20399_v7  ;;  %v20430_v7 = vld [vmem:[#allocation14 + $0x260] ss:$16 sps:$4 sm:$0xff]  }
 0x569   : > { %v21959_v10 = vpop.eup %21958  ;;  %v6146_v14 = vadd.f32 1.0, %v21957_v8  ;;  %v20438_v8 = vld [vmem:[#allocation14 + $0x284] ss:$16 sps:$4 sm:$0xff]  }
 0x56a   : > { %v21961_v12 = vpop.eup %21960  ;;  %v6148_v18 = vadd.f32 1.0, %v21959_v10  ;;  %v20436_v10 = vld [vmem:[#allocation14 + $0x280] ss:$16 sps:$4 sm:$0xff]  }
 0x56b   : > { %v21963_v13 = vpop.eup %21962  ;;  %7498 = vmatpush1.bf16.msra.mxu1 %v20397_v57  ;;  %v6147_v20 = vadd.f32 1.0, %v21961_v12  ;;  %v6158_v30 = vmul.f32 %v6146_v14, %v6110_v16  ;;  %v20433_v57 = vld [vmem:[#allocation14 + $0x1e8] ss:$16 sps:$4 sm:$0xff]   ;;  %v20447_v14 = vld [vmem:[#allocation14 + $0x22c] ss:$16 sps:$4 sm:$0xff]  }
 0x56c   : > { %v21965_v58 = vpop.eup %21964  ;;  %7499 = vmatprep.subr.bf16.mxu1 %v20405_v9  ;;  %v6149_v26 = vadd.f32 1.0, %v21963_v13  ;;  %v6160_v34 = vmul.f32 %v6148_v18, %v6112_v17  ;;  %v20441_v9 = vld [vmem:[#allocation14 + $0x20c] ss:$16 sps:$4 sm:$0xff]   ;;  %v20439_v12 = vld [vmem:[#allocation14 + $0x208] ss:$16 sps:$4 sm:$0xff]  }
 0x56d   : > { %v21967_v55 = vpop.eup %21966  ;;  %v6152_v23 = vadd.f32 1.0, %v21965_v58  ;;  %v6159_v40 = vmul.f32 %v6147_v20, %v6111_v51  ;;  %v20444_v13 = vld [vmem:[#allocation14 + $0x2a4] ss:$16 sps:$4 sm:$0xff]   ;;  %v20445_v58 = vld [vmem:[#allocation14 + $0x228] ss:$16 sps:$4 sm:$0xff]  }
 0x56e   : > { %v21969_v56 = vpop.eup %21968  ;;  %v6154_v28 = vadd.f32 1.0, %v21967_v55  ;;  %v6161_v37 = vmul.f32 %v6149_v26, %v6113_v25  ;;  %v20450_v16 = vld [vmem:[#allocation14 + $0x2c4] ss:$16 sps:$4 sm:$0xff]   ;;  %v20453_v17 = vld [vmem:[#allocation14 + $0x24c] ss:$16 sps:$4 sm:$0xff]  }
 0x56f   : > { %v21971_v29 = vpop.eup %21970  ;;  %v6164_v31 = vmul.f32 %v6152_v23, %v6116_v22  ;;  %v6153_v35 = vadd.f32 1.0, %v21969_v56  ;;  %7500 = vmatpush1.bf16.msra.mxu1 %v20403_v15  ;;  %v20442_v15 = vld [vmem:[#allocation14 + $0x2a0] ss:$16 sps:$4 sm:$0xff]   ;;  %v20456_v55 = vld [vmem:[#allocation14 + $0x2e4] ss:$16 sps:$4 sm:$0xff]  }
 0x570   : > { %v6166_v36 = vmul.f32 %v6154_v28, %v6118_v27  ;;  %v6155_v39 = vadd.f32 1.0, %v21971_v29  ;;  %7501 = vmatprep.subr.bf16.mxu1 %v20411_v19  ;;  %v20448_v18 = vld [vmem:[#allocation14 + $0x2c0] ss:$16 sps:$4 sm:$0xff]   ;;  %v20451_v19 = vld [vmem:[#allocation14 + $0x248] ss:$16 sps:$4 sm:$0xff]  }
 0x571   : > { %v6170_v48 = vpack.c.bf16 %v6164_v31, %v6158_v30  ;;  %v6165_v49 = vmul.f32 %v6153_v35, %v6117_v32  ;;  %v20459_v51 = vld [vmem:[#allocation14 + $0x26c] ss:$16 sps:$4 sm:$0xff]   ;;  %v20454_v20 = vld [vmem:[#allocation14 + $0x2e0] ss:$16 sps:$4 sm:$0xff]   ;;  %v20457_v22 = vld [vmem:[#allocation14 + $0x268] ss:$16 sps:$4 sm:$0xff]  }
 0x572   : > { %v23052_v50 = vpack.c.bf16 %v6166_v36, %v6160_v34  ;;  %v6167_v52 = vmul.f32 %v6155_v39, %v6119_v38  ;;  %v20462_v23 = vld [vmem:[#allocation14 + $0x304] ss:$16 sps:$4 sm:$0xff]   ;;  %v20465_v56 = vld [vmem:[#allocation14 + $0x28c] ss:$16 sps:$4 sm:$0xff]   ;;  %v20460_v25 = vld [vmem:[#allocation14 + $0x300] ss:$16 sps:$4 sm:$0xff]  }
 0x573   : > { %v6171_v59 = vpack.c.bf16 %v6165_v49, %v6159_v40  ;;  %7502 = vmatpush1.bf16.msra.mxu1 %v20409_v33  ;;  %v20463_v26 = vld [vmem:[#allocation14 + $0x288] ss:$16 sps:$4 sm:$0xff]   ;;  %v20468_v27 = vld [vmem:[#allocation14 + $0x324] ss:$16 sps:$4 sm:$0xff]   ;;  %v20471_v28 = vld [vmem:[#allocation14 + $0x2ac] ss:$16 sps:$4 sm:$0xff]  }
 0x574   : > { %v6173_v54 = vpack.c.bf16 %v6167_v52, %v6161_v37  ;;  %7503 = vmatprep.subr.bf16.mxu1 %v20417_v43  ;;  %v20466_v29 = vld [vmem:[#allocation14 + $0x320] ss:$16 sps:$4 sm:$0xff]   ;;  %v20469_v30 = vld [vmem:[#allocation14 + $0x2a8] ss:$16 sps:$4 sm:$0xff]   ;;  %v20474_v31 = vld [vmem:[#allocation14 + $0x344] ss:$16 sps:$4 sm:$0xff]  }
 0x575   : > { %7382 = vmatprep.mubr.bf16.mxu0 %v6171_v59  ;;  %7511 = vmatprep.mubr.bf16.mxu1 %v6171_v59  ;;  %v20477_v32 = vld [vmem:[#allocation14 + $0x2cc] ss:$16 sps:$4 sm:$0xff]   ;;  %v20472_v35 = vld [vmem:[#allocation14 + $0x340] ss:$16 sps:$4 sm:$0xff]   ;;  %v20475_v33 = vld [vmem:[#allocation14 + $0x2c8] ss:$16 sps:$4 sm:$0xff]  }
 0x576   : > { %7383 = vmatmul.mubr.bf16.vlgmr.msra.gmra.mrb[20].mxu0 %v6170_v48  ;;  %v20480_v34 = vld [vmem:[#allocation14 + $0x364] ss:$16 sps:$4 sm:$0xff]   ;;  %v20483_v36 = vld [vmem:[#allocation14 + $0x2ec] ss:$16 sps:$4 sm:$0xff]   ;;  %v20478_v38 = vld [vmem:[#allocation14 + $0x360] ss:$16 sps:$4 sm:$0xff]  }
 0x577   : > { %7394 = vmatpush1.bf16.msra.mxu0 %v20412_v41  ;;  %7425 = vmatprep.mubr.bf16.mxu0 %v6173_v54  ;;  %v20481_v39 = vld [vmem:[#allocation14 + $0x2e8] ss:$16 sps:$4 sm:$0xff]   ;;  %v20486_v43 = vld [vmem:[#allocation14 + $0x384] ss:$16 sps:$4 sm:$0xff]   ;;  %v20489_v40 = vld [vmem:[#allocation14 + $0x30c] ss:$16 sps:$4 sm:$0xff]  }
 0x578   : > { %7395 = vmatprep.subr.bf16.mxu0 %v20420_v60  ;;  %7504 = vmatpush1.bf16.msra.mxu1 %v20415_v62  ;;  %v20487_v49 = vld [vmem:[#allocation14 + $0x308] ss:$16 sps:$4 sm:$0xff]   ;;  %v20492_v37 = vld [vmem:[#allocation14 + $0x3a4] ss:$16 sps:$4 sm:$0xff]   ;;  %v20495_v52 = vld [vmem:[#allocation14 + $0x32c] ss:$16 sps:$4 sm:$0xff]  }
 0x579   : > { %7505 = vmatprep.subr.bf16.mxu1 %v20423_v61  ;;  %v20490_v59 = vld [vmem:[#allocation14 + $0x3a0] ss:$16 sps:$4 sm:$0xff]   ;;  %v20493_v41 = vld [vmem:[#allocation14 + $0x328] ss:$16 sps:$4 sm:$0xff]   ;;  %v20501_v62 = vld [vmem:[#allocation14 + $0x34c] ss:$16 sps:$4 sm:$0xff]  }
 0x57a   : > { %v20496_v60 = vld [vmem:[#allocation14 + $0x3c0] ss:$16 sps:$4 sm:$0xff]   ;;  %v20499_v61 = vld [vmem:[#allocation14 + $0x348] ss:$16 sps:$4 sm:$0xff]  }
 0x57b   : > { %7396 = vmatpush1.bf16.msra.mxu0 %v20418_v63  ;;  %v20504_v63 = vld [vmem:[#allocation14 + $0x3e4] ss:$16 sps:$4 sm:$0xff]  }
 0x57c   : > { %7397 = vmatprep.subr.bf16.mxu0 %v20426_v2  ;;  %7506 = vmatpush1.bf16.msra.mxu1 %v20421_v1  ;;  %v20507_v1 = vld [vmem:[#allocation14 + $0x36c] ss:$16 sps:$4 sm:$0xff]   ;;  %v20502_v2 = vld [vmem:[#allocation14 + $0x3e0] ss:$16 sps:$4 sm:$0xff]  }
 0x57d   : > { %7507 = vmatprep.subr.bf16.mxu1 %v20429_v3  ;;  %v20505_v3 = vld [vmem:[#allocation14 + $0x368] ss:$16 sps:$4 sm:$0xff]  }
 0x57f   : > { %7398 = vmatpush1.bf16.msra.mxu0 %v20424_v4  ;;  %v20522_v4 = vld [vmem:[#allocation14 + $0x404] ss:$16 sps:$4 sm:$0xff]  }
 0x580   : > { %7399 = vmatprep.subr.bf16.mxu0 %v20432_v53  ;;  %7508 = vmatpush1.bf16.msra.mxu1 %v20427_v5  ;;  %v20510_v5 = vld [vmem:[#allocation14 + $0x38c] ss:$16 sps:$4 sm:$0xff]   ;;  %v20520_v53 = vld [vmem:[#allocation14 + $0x400] ss:$16 sps:$4 sm:$0xff]  }
 0x581   : > { %7509 = vmatprep.subr.bf16.mxu1 %v20435_v6  ;;  %v20508_v6 = vld [vmem:[#allocation14 + $0x388] ss:$16 sps:$4 sm:$0xff]  }
 0x583   : > { %7400 = vmatpush1.bf16.msra.mxu0 %v20430_v7  ;;  %v20528_v7 = vld [vmem:[#allocation14 + $0x424] ss:$16 sps:$4 sm:$0xff]  }
 0x584   : > { %7401 = vmatprep.subr.bf16.mxu0 %v20438_v8  ;;  %7510 = vmatpush1.bf16.msra.mxu1 %v20433_v57  ;;  %v20513_v57 = vld [vmem:[#allocation14 + $0x3ac] ss:$16 sps:$4 sm:$0xff]   ;;  %v20526_v8 = vld [vmem:[#allocation14 + $0x420] ss:$16 sps:$4 sm:$0xff]  }
 0x585   : > { %7522 = vmatprep.subr.bf16.mxu1 %v20441_v9  ;;  %v20511_v9 = vld [vmem:[#allocation14 + $0x3a8] ss:$16 sps:$4 sm:$0xff]  }
 0x587   : > { %7402 = vmatpush1.bf16.msra.mxu0 %v20436_v10  ;;  %7512 = vmatmul.mubr.bf16.vlgmr.msra.gmra.mrb[20].mxu1 %v6170_v48  ;;  %v20484_v48 = vld [vmem:[#allocation14 + $0x380] ss:$16 sps:$4 sm:$0xff]   ;;  %v20534_v10 = vld [vmem:[#allocation14 + $0x444] ss:$16 sps:$4 sm:$0xff]  }
 0x588   : > { %7403 = vmatprep.subr.bf16.mxu0 %v20444_v13  ;;  %7523 = vmatpush1.bf16.msra.mxu1 %v20439_v12  ;;  %v20516_v12 = vld [vmem:[#allocation14 + $0x3cc] ss:$16 sps:$4 sm:$0xff]   ;;  %v20532_v13 = vld [vmem:[#allocation14 + $0x440] ss:$16 sps:$4 sm:$0xff]  }
 0x589   : > { %7554 = vmatprep.mubr.bf16.mxu1 %v6173_v54  ;;  %7524 = vmatprep.subr.bf16.mxu1 %v20447_v14  ;;  %v20498_v54 = vld [vmem:[#allocation14 + $0x3c4] ss:$16 sps:$4 sm:$0xff]   ;;  %v20514_v14 = vld [vmem:[#allocation14 + $0x3c8] ss:$16 sps:$4 sm:$0xff]  }
 0x58b   : > { %7404 = vmatpush1.bf16.msra.mxu0 %v20442_v15  ;;  %v20540_v15 = vld [vmem:[#allocation14 + $0x464] ss:$16 sps:$4 sm:$0xff]  }
 0x58c   : > { %7405 = vmatprep.subr.bf16.mxu0 %v20450_v16  ;;  %7525 = vmatpush1.bf16.msra.mxu1 %v20445_v58  ;;  %v20519_v58 = vld [vmem:[#allocation14 + $0x3ec] ss:$16 sps:$4 sm:$0xff]   ;;  %v20538_v16 = vld [vmem:[#allocation14 + $0x460] ss:$16 sps:$4 sm:$0xff]  }
 0x58d   : > { %7526 = vmatprep.subr.bf16.mxu1 %v20453_v17  ;;  %v20517_v17 = vld [vmem:[#allocation14 + $0x3e8] ss:$16 sps:$4 sm:$0xff]  }
 0x58f   : > { %7406 = vmatpush1.bf16.msra.mxu0 %v20448_v18  ;;  %v20546_v18 = vld [vmem:[#allocation14 + $0x484] ss:$16 sps:$4 sm:$0xff]  }
 0x590   : > { %7407 = vmatprep.subr.bf16.mxu0 %v20456_v55  ;;  %7527 = vmatpush1.bf16.msra.mxu1 %v20451_v19  ;;  %v20525_v19 = vld [vmem:[#allocation14 + $0x40c] ss:$16 sps:$4 sm:$0xff]   ;;  %v20544_v55 = vld [vmem:[#allocation14 + $0x480] ss:$16 sps:$4 sm:$0xff]  }
 0x591   : > { %7528 = vmatprep.subr.bf16.mxu1 %v20459_v51  ;;  %v20523_v51 = vld [vmem:[#allocation14 + $0x408] ss:$16 sps:$4 sm:$0xff]  }
 0x593   : > { %7408 = vmatpush1.bf16.msra.mxu0 %v20454_v20  ;;  %v20552_v20 = vld [vmem:[#allocation14 + $0x4a4] ss:$16 sps:$4 sm:$0xff]  }
 0x594   : > { %7409 = vmatprep.subr.bf16.mxu0 %v20462_v23  ;;  %7529 = vmatpush1.bf16.msra.mxu1 %v20457_v22  ;;  %v20531_v22 = vld [vmem:[#allocation14 + $0x42c] ss:$16 sps:$4 sm:$0xff]   ;;  %v20550_v23 = vld [vmem:[#allocation14 + $0x4a0] ss:$16 sps:$4 sm:$0xff]  }
 0x595   : > { %7530 = vmatprep.subr.bf16.mxu1 %v20465_v56  ;;  %v20529_v56 = vld [vmem:[#allocation14 + $0x428] ss:$16 sps:$4 sm:$0xff]  }
 0x597   : > { %7410 = vmatpush1.bf16.msra.mxu0 %v20460_v25  ;;  %v20558_v25 = vld [vmem:[#allocation14 + $0x4c4] ss:$16 sps:$4 sm:$0xff]  }
 0x598   : > { %7411 = vmatprep.subr.bf16.mxu0 %v20468_v27  ;;  %7531 = vmatpush1.bf16.msra.mxu1 %v20463_v26  ;;  %v20537_v26 = vld [vmem:[#allocation14 + $0x44c] ss:$16 sps:$4 sm:$0xff]   ;;  %v20556_v27 = vld [vmem:[#allocation14 + $0x4c0] ss:$16 sps:$4 sm:$0xff]  }
 0x599   : > { %7532 = vmatprep.subr.bf16.mxu1 %v20471_v28  ;;  %v20535_v28 = vld [vmem:[#allocation14 + $0x448] ss:$16 sps:$4 sm:$0xff]  }
 0x59b   : > { %7412 = vmatpush1.bf16.msra.mxu0 %v20466_v29  ;;  %v20564_v29 = vld [vmem:[#allocation14 + $0x4e4] ss:$16 sps:$4 sm:$0xff]  }
 0x59c   : > { %7413 = vmatprep.subr.bf16.mxu0 %v20474_v31  ;;  %7533 = vmatpush1.bf16.msra.mxu1 %v20469_v30  ;;  %v20543_v30 = vld [vmem:[#allocation14 + $0x46c] ss:$16 sps:$4 sm:$0xff]   ;;  %v20562_v31 = vld [vmem:[#allocation14 + $0x4e0] ss:$16 sps:$4 sm:$0xff]  }
 0x59d   : > { %7534 = vmatprep.subr.bf16.mxu1 %v20477_v32  ;;  %v20570_v32 = vld [vmem:[#allocation14 + $0x504] ss:$16 sps:$4 sm:$0xff]  }
 0x59f   : > { %7414 = vmatpush1.bf16.msra.mxu0 %v20472_v35  ;;  %v20549_v35 = vld [vmem:[#allocation14 + $0x48c] ss:$16 sps:$4 sm:$0xff]  }
 0x5a0   : > { %7415 = vmatprep.subr.bf16.mxu0 %v20480_v34  ;;  %7535 = vmatpush1.bf16.msra.mxu1 %v20475_v33  ;;  %v20568_v33 = vld [vmem:[#allocation14 + $0x500] ss:$16 sps:$4 sm:$0xff]   ;;  %v20547_v34 = vld [vmem:[#allocation14 + $0x488] ss:$16 sps:$4 sm:$0xff]  }
 0x5a1   : > { %7536 = vmatprep.subr.bf16.mxu1 %v20483_v36  ;;  %v20576_v36 = vld [vmem:[#allocation14 + $0x524] ss:$16 sps:$4 sm:$0xff]  }
 0x5a3   : > { %7416 = vmatpush1.bf16.msra.mxu0 %v20478_v38  ;;  %v20555_v38 = vld [vmem:[#allocation14 + $0x4ac] ss:$16 sps:$4 sm:$0xff]  }
 0x5a4   : > { %7417 = vmatprep.subr.bf16.mxu0 %v20486_v43  ;;  %7537 = vmatpush1.bf16.msra.mxu1 %v20481_v39  ;;  %v20574_v39 = vld [vmem:[#allocation14 + $0x520] ss:$16 sps:$4 sm:$0xff]   ;;  %v20553_v43 = vld [vmem:[#allocation14 + $0x4a8] ss:$16 sps:$4 sm:$0xff]  }
 0x5a5   : > { %7538 = vmatprep.subr.bf16.mxu1 %v20489_v40  ;;  %v20582_v40 = vld [vmem:[#allocation14 + $0x544] ss:$16 sps:$4 sm:$0xff]  }
 0x5a7   : > { %7418 = vmatpush1.bf16.msra.mxu0 %v20484_v48  ;;  %v20561_v48 = vld [vmem:[#allocation14 + $0x4cc] ss:$16 sps:$4 sm:$0xff]  }
 0x5a8   : > { %7419 = vmatprep.subr.bf16.mxu0 %v20492_v37  ;;  %7539 = vmatpush1.bf16.msra.mxu1 %v20487_v49  ;;  %v20580_v49 = vld [vmem:[#allocation14 + $0x540] ss:$16 sps:$4 sm:$0xff]   ;;  %v20559_v37 = vld [vmem:[#allocation14 + $0x4c8] ss:$16 sps:$4 sm:$0xff]  }
 0x5a9   : > { %7540 = vmatprep.subr.bf16.mxu1 %v20495_v52  ;;  %v20588_v52 = vld [vmem:[#allocation14 + $0x564] ss:$16 sps:$4 sm:$0xff]  }
 0x5ab   : > { %7420 = vmatpush1.bf16.msra.mxu0 %v20490_v59  ;;  %v20567_v59 = vld [vmem:[#allocation14 + $0x4ec] ss:$16 sps:$4 sm:$0xff]  }
 0x5ac   : > { %7421 = vmatprep.subr.bf16.mxu0 %v20498_v54  ;;  %7541 = vmatpush1.bf16.msra.mxu1 %v20493_v41  ;;  %v20586_v41 = vld [vmem:[#allocation14 + $0x560] ss:$16 sps:$4 sm:$0xff]   ;;  %v20565_v54 = vld [vmem:[#allocation14 + $0x4e8] ss:$16 sps:$4 sm:$0xff]  }
 0x5ad   : > { %7542 = vmatprep.subr.bf16.mxu1 %v20501_v62  ;;  %v20594_v62 = vld [vmem:[#allocation14 + $0x584] ss:$16 sps:$4 sm:$0xff]  }
 0x5af   : > { %7422 = vmatpush1.bf16.msra.mxu0 %v20496_v60  ;;  %v20573_v60 = vld [vmem:[#allocation14 + $0x50c] ss:$16 sps:$4 sm:$0xff]  }
 0x5b0   : > { %7423 = vmatprep.subr.bf16.mxu0 %v20504_v63  ;;  %7543 = vmatpush1.bf16.msra.mxu1 %v20499_v61  ;;  %v20592_v61 = vld [vmem:[#allocation14 + $0x580] ss:$16 sps:$4 sm:$0xff]   ;;  %v20571_v63 = vld [vmem:[#allocation14 + $0x508] ss:$16 sps:$4 sm:$0xff]  }
 0x5b1   : > { %7544 = vmatprep.subr.bf16.mxu1 %v20507_v1  ;;  %v20600_v1 = vld [vmem:[#allocation14 + $0x5a4] ss:$16 sps:$4 sm:$0xff]  }
 0x5b3   : > { %7424 = vmatpush1.bf16.msra.mxu0 %v20502_v2  ;;  %v20579_v2 = vld [vmem:[#allocation14 + $0x52c] ss:$16 sps:$4 sm:$0xff]  }
 0x5b4   : > { %7545 = vmatpush1.bf16.msra.mxu1 %v20505_v3  ;;  %7436 = vmatprep.subr.bf16.mxu0 %v20522_v4  ;;  %v20598_v3 = vld [vmem:[#allocation14 + $0x5a0] ss:$16 sps:$4 sm:$0xff]   ;;  %v20577_v4 = vld [vmem:[#allocation14 + $0x528] ss:$16 sps:$4 sm:$0xff]  }
 0x5b5   : > { %7546 = vmatprep.subr.bf16.mxu1 %v20510_v5  ;;  %v20606_v5 = vld [vmem:[#allocation14 + $0x5c4] ss:$16 sps:$4 sm:$0xff]  }
 0x5b6   : > { %7426 = vmatmul.mubr.bf16.vlgmr.msra.gmra.mrb[20].mxu0 %v23052_v50 }
 0x5b7   : > { %7437 = vmatpush1.bf16.msra.mxu0 %v20520_v53  ;;  %v20585_v53 = vld [vmem:[#allocation14 + $0x54c] ss:$16 sps:$4 sm:$0xff]  }
 0x5b8   : > { %7547 = vmatpush1.bf16.msra.mxu1 %v20508_v6  ;;  %7438 = vmatprep.subr.bf16.mxu0 %v20528_v7  ;;  %v20604_v6 = vld [vmem:[#allocation14 + $0x5c0] ss:$16 sps:$4 sm:$0xff]   ;;  %v20583_v7 = vld [vmem:[#allocation14 + $0x548] ss:$16 sps:$4 sm:$0xff]  }
 0x5b9   : > { %7548 = vmatprep.subr.bf16.mxu1 %v20513_v57  ;;  %v20612_v57 = vld [vmem:[#allocation14 + $0x5e4] ss:$16 sps:$4 sm:$0xff]  }
 0x5bb   : > { %7439 = vmatpush1.bf16.msra.mxu0 %v20526_v8  ;;  %v20591_v8 = vld [vmem:[#allocation14 + $0x56c] ss:$16 sps:$4 sm:$0xff]  }
 0x5bc   : > { %7549 = vmatpush1.bf16.msra.mxu1 %v20511_v9  ;;  %7440 = vmatprep.subr.bf16.mxu0 %v20534_v10  ;;  %v20610_v9 = vld [vmem:[#allocation14 + $0x5e0] ss:$16 sps:$4 sm:$0xff]   ;;  %v20589_v10 = vld [vmem:[#allocation14 + $0x568] ss:$16 sps:$4 sm:$0xff]  }
 0x5bd   : > { %7550 = vmatprep.subr.bf16.mxu1 %v20516_v12  ;;  %v20618_v12 = vld [vmem:[%s25279_s10 + $0x4] ss:$48 sps:$4 sm:$0xff]  }
 0x5bf   : > { %7441 = vmatpush1.bf16.msra.mxu0 %v20532_v13  ;;  %v20597_v13 = vld [vmem:[#allocation14 + $0x58c] ss:$16 sps:$4 sm:$0xff]  }
 0x5c0   : > { %7551 = vmatpush1.bf16.msra.mxu1 %v20514_v14  ;;  %7442 = vmatprep.subr.bf16.mxu0 %v20540_v15  ;;  %v20595_v14 = vld [vmem:[#allocation14 + $0x588] ss:$16 sps:$4 sm:$0xff]   ;;  %v20603_v15 = vld [vmem:[#allocation14 + $0x5ac] ss:$16 sps:$4 sm:$0xff]  }
 0x5c1   : > { %7552 = vmatprep.subr.bf16.mxu1 %v20519_v58  ;;  %v20601_v58 = vld [vmem:[#allocation14 + $0x5a8] ss:$16 sps:$4 sm:$0xff]  }
 0x5c3   : > { %7443 = vmatpush1.bf16.msra.mxu0 %v20538_v16  ;;  %v20609_v16 = vld [vmem:[#allocation14 + $0x5cc] ss:$16 sps:$4 sm:$0xff]  }
 0x5c4   : > { %7553 = vmatpush1.bf16.msra.mxu1 %v20517_v17  ;;  %7444 = vmatprep.subr.bf16.mxu0 %v20546_v18  ;;  %v20607_v17 = vld [vmem:[#allocation14 + $0x5c8] ss:$16 sps:$4 sm:$0xff]   ;;  %v20615_v18 = vld [vmem:[#allocation14 + $0x5ec] ss:$16 sps:$4 sm:$0xff]  }
 0x5c5   : > { %7565 = vmatprep.subr.bf16.mxu1 %v20525_v19  ;;  %v20613_v19 = vld [vmem:[#allocation14 + $0x5e8] ss:$16 sps:$4 sm:$0xff]  }
 0x5c7   : > { %7555 = vmatmul.mubr.bf16.vlgmr.msra.gmra.mrb[20].mxu1 %v23052_v50  ;;  %7445 = vmatpush1.bf16.msra.mxu0 %v20544_v55  ;;  %v20541_v50 = vld [vmem:[#allocation14 + $0x468] ss:$16 sps:$4 sm:$0xff]   ;;  %v20621_v55 = vld [vmem:[%s25279_s10 + $0xc] ss:$48 sps:$4 sm:$0xff]  }
 0x5c8   : > { %7566 = vmatpush1.bf16.msra.mxu1 %v20523_v51  ;;  %7446 = vmatprep.subr.bf16.mxu0 %v20552_v20  ;;  %v4272_v51 = vrot.slane %v23042_v24, %v22976_v21  ;;  %v4276_v20 = vrot.slane %v23042_v24, %v23018_v47 }
 0x5c9   : > { %7567 = vmatprep.subr.bf16.mxu1 %v20531_v22 }
 0x5cb   : > { %7447 = vmatpush1.bf16.msra.mxu0 %v20550_v23 }
 0x5cc   : > { %7568 = vmatpush1.bf16.msra.mxu1 %v20529_v56  ;;  %7448 = vmatprep.subr.bf16.mxu0 %v20558_v25 }
 0x5cd   : > { %7569 = vmatprep.subr.bf16.mxu1 %v20537_v26 }
 0x5cf   : > { %7449 = vmatpush1.bf16.msra.mxu0 %v20556_v27 }
 0x5d0   : > { %7570 = vmatpush1.bf16.msra.mxu1 %v20535_v28  ;;  %7450 = vmatprep.subr.bf16.mxu0 %v20564_v29 }
 0x5d1   : > { %7571 = vmatprep.subr.bf16.mxu1 %v20543_v30 }
 0x5d3   : > { %7451 = vmatpush1.bf16.msra.mxu0 %v20562_v31 }
 0x5d4   : > { %7572 = vmatpush1.bf16.msra.mxu1 %v20541_v50  ;;  %7452 = vmatprep.subr.bf16.mxu0 %v20570_v32 }
 0x5d5   : > { %7573 = vmatprep.subr.bf16.mxu1 %v20549_v35 }
 0x5d7   : > { %7453 = vmatpush1.bf16.msra.mxu0 %v20568_v33 }
 0x5d8   : > { %7574 = vmatpush1.bf16.msra.mxu1 %v20547_v34  ;;  %7454 = vmatprep.subr.bf16.mxu0 %v20576_v36 }
 0x5d9   : > { %7575 = vmatprep.subr.bf16.mxu1 %v20555_v38 }
 0x5db   : > { %7455 = vmatpush1.bf16.msra.mxu0 %v20574_v39 }
 0x5dc   : > { %7576 = vmatpush1.bf16.msra.mxu1 %v20553_v43  ;;  %7456 = vmatprep.subr.bf16.mxu0 %v20582_v40 }
 0x5dd   : > { %7577 = vmatprep.subr.bf16.mxu1 %v20561_v48 }
 0x5df   : > { %7457 = vmatpush1.bf16.msra.mxu0 %v20580_v49 }
 0x5e0   : > { %7578 = vmatpush1.bf16.msra.mxu1 %v20559_v37  ;;  %7458 = vmatprep.subr.bf16.mxu0 %v20588_v52 }
 0x5e1   : > { %7579 = vmatprep.subr.bf16.mxu1 %v20567_v59 }
 0x5e3   : > { %7459 = vmatpush1.bf16.msra.mxu0 %v20586_v41 }
 0x5e4   : > { %7580 = vmatpush1.bf16.msra.mxu1 %v20565_v54  ;;  %7460 = vmatprep.subr.bf16.mxu0 %v20594_v62 }
 0x5e5   : > { %7581 = vmatprep.subr.bf16.mxu1 %v20573_v60 }
 0x5e7   : > { %7461 = vmatpush1.bf16.msra.mxu0 %v20592_v61  ;;  %v20616_v61 = vld [vmem:[%s25279_s10] ss:$48 sps:$4 sm:$0xff]  }
 0x5e8   : > { %7582 = vmatpush1.bf16.msra.mxu1 %v20571_v63  ;;  %7462 = vmatprep.subr.bf16.mxu0 %v20600_v1  ;;  %v20619_v63 = vld [vmem:[%s25279_s10 + $0x8] ss:$48 sps:$4 sm:$0xff]   ;;  %v20624_v1 = vld [vmem:[%s25279_s10 + $0x64] ss:$48 sps:$4 sm:$0xff]  }
 0x5e9   : > { %7583 = vmatprep.subr.bf16.mxu1 %v20579_v2  ;;  %v20627_v2 = vld [vmem:[%s25279_s10 + $0x6c] ss:$48 sps:$4 sm:$0xff]  }
 0x5eb   : > { %7463 = vmatpush1.bf16.msra.mxu0 %v20598_v3  ;;  %v20622_v3 = vld [vmem:[%s25279_s10 + $0x60] ss:$48 sps:$4 sm:$0xff]  }
 0x5ec   : > { %7584 = vmatpush1.bf16.msra.mxu1 %v20577_v4  ;;  %7464 = vmatprep.subr.bf16.mxu0 %v20606_v5  ;;  %v20625_v4 = vld [vmem:[%s25279_s10 + $0x68] ss:$48 sps:$4 sm:$0xff]   ;;  %v20630_v5 = vld [vmem:[%s25279_s10 + $0xc4] ss:$48 sps:$4 sm:$0xff]  }
 0x5ed   : > { %7585 = vmatprep.subr.bf16.mxu1 %v20585_v53  ;;  %v20633_v53 = vld [vmem:[%s25279_s10 + $0xcc] ss:$48 sps:$4 sm:$0xff]  }
 0x5ef   : > { %7465 = vmatpush1.bf16.msra.mxu0 %v20604_v6  ;;  %v20628_v6 = vld [vmem:[%s25279_s10 + $0xc0] ss:$48 sps:$4 sm:$0xff]  }
 0x5f0   : > { %7586 = vmatpush1.bf16.msra.mxu1 %v20583_v7  ;;  %7466 = vmatprep.subr.bf16.mxu0 %v20612_v57  ;;  %v20631_v7 = vld [vmem:[%s25279_s10 + $0xc8] ss:$48 sps:$4 sm:$0xff]   ;;  %v20636_v57 = vld [vmem:[%s25279_s10 + $0x124] ss:$48 sps:$4 sm:$0xff]  }
 0x5f1   : > { %7587 = vmatprep.subr.bf16.mxu1 %v20591_v8  ;;  %v20639_v8 = vld [vmem:[%s25279_s10 + $0x12c] ss:$48 sps:$4 sm:$0xff]  }
 0x5f3   : > { %7467 = vmatpush1.bf16.msra.mxu0 %v20610_v9  ;;  %v20634_v9 = vld [vmem:[%s25279_s10 + $0x120] ss:$48 sps:$4 sm:$0xff]  }
 0x5f4   : > { %7588 = vmatpush1.bf16.msra.mxu1 %v20589_v10  ;;  %10036 = vmatprep.subr.bf16.mxu0 %v20618_v12  ;;  %v20637_v10 = vld [vmem:[%s25279_s10 + $0x128] ss:$48 sps:$4 sm:$0xff]   ;;  %v20642_v12 = vld [vmem:[%s25279_s10 + $0x184] ss:$48 sps:$4 sm:$0xff]  }
 0x5f5   : > { %7589 = vmatprep.subr.bf16.mxu1 %v20597_v13  ;;  %v20645_v13 = vld [vmem:[%s25279_s10 + $0x18c] ss:$48 sps:$4 sm:$0xff]  }
 0x5f8   : > { %7590 = vmatpush1.bf16.msra.mxu1 %v20595_v14  ;;  %v20640_v14 = vld [vmem:[%s25279_s10 + $0x180] ss:$48 sps:$4 sm:$0xff]  }
 0x5f9   : > { %7591 = vmatprep.subr.bf16.mxu1 %v20603_v15  ;;  %v20643_v15 = vld [vmem:[%s25279_s10 + $0x188] ss:$48 sps:$4 sm:$0xff]  }
 0x5fc   : > { %7592 = vmatpush1.bf16.msra.mxu1 %v20601_v58  ;;  %v20648_v58 = vld [vmem:[%s25279_s10 + $0x1e4] ss:$48 sps:$4 sm:$0xff]  }
 0x5fd   : > { %7593 = vmatprep.subr.bf16.mxu1 %v20609_v16  ;;  %v20651_v16 = vld [vmem:[%s25279_s10 + $0x1ec] ss:$48 sps:$4 sm:$0xff]  }
 0x600   : > { %7594 = vmatpush1.bf16.msra.mxu1 %v20607_v17  ;;  %v20646_v17 = vld [vmem:[%s25279_s10 + $0x1e0] ss:$48 sps:$4 sm:$0xff]  }
 0x601   : > { %7595 = vmatprep.subr.bf16.mxu1 %v20615_v18  ;;  %v20649_v18 = vld [vmem:[%s25279_s10 + $0x1e8] ss:$48 sps:$4 sm:$0xff]  }
 0x604   : > { %7596 = vmatpush1.bf16.msra.mxu1 %v20613_v19  ;;  %v20654_v19 = vld [vmem:[%s25279_s10 + $0x244] ss:$48 sps:$4 sm:$0xff]  }
 0x605   : > { %10122 = vmatprep.subr.bf16.mxu1 %v20621_v55  ;;  %v20657_v55 = vld [vmem:[%s25279_s10 + $0x24c] ss:$48 sps:$4 sm:$0xff]  }
 0x619   : > { %v6101_v22 = vpop.f32.mrb[16].mxu1 }
 0x61a   : > { %v18951_v23 = vadd.f32 %v6101_v22, %v4272_v51  ;;  %v6103_v56 = vpop.f32.mrb[17].mxu1  ;;  %v20660_v22 = vld [vmem:[%s25279_s10 + $0x2a4] ss:$48 sps:$4 sm:$0xff]  }
 0x61b   : > { %v18952_v25 = vadd.f32 %v6103_v56, %v4276_v20  ;;  %v6105_v26 = vpop.f32.mrb[18].mxu1  ;;  %v20658_v56 = vld [vmem:[%s25279_s10 + $0x2a0] ss:$48 sps:$4 sm:$0xff]  }
 0x61c   : > { %v6126_v27 = vmul.f32 0.70710677, %v18951_v23  ;;  %v18953_v28 = vadd.f32 %v6105_v26, %v4272_v51  ;;  %v6107_v29 = vpop.f32.mrb[19].mxu1  ;;  %v6114_v39 = vmul.f32 0.5, %v18951_v23  ;;  %v20652_v51 = vld [vmem:[%s25279_s10 + $0x240] ss:$48 sps:$4 sm:$0xff]  }
 0x61d   : > { %v6127_v30 = vmul.f32 0.70710677, %v18952_v25  ;;  %v18954_v31 = vadd.f32 %v6107_v29, %v4276_v20  ;;  %v6115_v48 = vmul.f32 0.5, %v18952_v25  ;;  %v20655_v20 = vld [vmem:[%s25279_s10 + $0x248] ss:$48 sps:$4 sm:$0xff]  }
 0x61e   : > { %21972 = verf.f32 %v6126_v27  ;;  %v6132_v50 = vmul.f32 0.70710677, %v18953_v28  ;;  %v6120_v43 = vmul.f32 0.5, %v18953_v28  ;;  %v20663_v23 = vld [vmem:[%s25279_s10 + $0x2ac] ss:$48 sps:$4 sm:$0xff]  }
 0x61f   : > { %21974 = verf.f32 %v6127_v30  ;;  %v6133_v32 = vmul.f32 0.70710677, %v18954_v31  ;;  %v6121_v49 = vmul.f32 0.5, %v18954_v31  ;;  %v20661_v25 = vld [vmem:[%s25279_s10 + $0x2a8] ss:$48 sps:$4 sm:$0xff]  }
 0x620   : > { %21976 = verf.f32 %v6132_v50  ;;  %v20666_v26 = vld [vmem:[%s25279_s10 + $0x304] ss:$48 sps:$4 sm:$0xff]   ;;  %v20669_v27 = vld [vmem:[%s25279_s10 + $0x30c] ss:$48 sps:$4 sm:$0xff]   ;;  %v20664_v28 = vld [vmem:[%s25279_s10 + $0x300] ss:$48 sps:$4 sm:$0xff]  }
 0x621   : > { %21978 = verf.f32 %v6133_v32  ;;  %v20667_v29 = vld [vmem:[%s25279_s10 + $0x308] ss:$48 sps:$4 sm:$0xff]   ;;  %v20672_v30 = vld [vmem:[%s25279_s10 + $0x364] ss:$48 sps:$4 sm:$0xff]   ;;  %v20675_v31 = vld [vmem:[%s25279_s10 + $0x36c] ss:$48 sps:$4 sm:$0xff]  }
 0x622   : > { %v20670_v50 = vld [vmem:[%s25279_s10 + $0x360] ss:$48 sps:$4 sm:$0xff]   ;;  %v20673_v32 = vld [vmem:[%s25279_s10 + $0x368] ss:$48 sps:$4 sm:$0xff]  }
 0x628   : > { %v21973_v35 = vpop.eup %21972 }
 0x629   : > { %v21975_v33 = vpop.eup %21974  ;;  %v6150_v34 = vadd.f32 1.0, %v21973_v35  ;;  %v20678_v35 = vld [vmem:[%s25279_s10 + $0x3c4] ss:$48 sps:$4 sm:$0xff]  }
 0x62a   : > { %v21977_v24 = vpop.eup %21976  ;;  %v6151_v36 = vadd.f32 1.0, %v21975_v33  ;;  %v20681_v33 = vld [vmem:[%s25279_s10 + $0x3cc] ss:$48 sps:$4 sm:$0xff]  }
 0x62b   : > { %v21979_v38 = vpop.eup %21978  ;;  %v6156_v40 = vadd.f32 1.0, %v21977_v24  ;;  %v6162_v52 = vmul.f32 %v6150_v34, %v6114_v39  ;;  %v20676_v34 = vld [vmem:[%s25279_s10 + $0x3c0] ss:$48 sps:$4 sm:$0xff]   ;;  %v20679_v24 = vld [vmem:[%s25279_s10 + $0x3c8] ss:$48 sps:$4 sm:$0xff]  }
 0x62c   : > { %v6157_v37 = vadd.f32 1.0, %v21979_v38  ;;  %v6163_v41 = vmul.f32 %v6151_v36, %v6115_v48  ;;  %v20684_v36 = vld [vmem:[%s25279_s10 + $0x424] ss:$48 sps:$4 sm:$0xff]   ;;  %v20687_v38 = vld [vmem:[%s25279_s10 + $0x42c] ss:$48 sps:$4 sm:$0xff]  }
 0x62d   : > { %v6168_v59 = vmul.f32 %v6156_v40, %v6120_v43  ;;  %v20682_v39 = vld [vmem:[%s25279_s10 + $0x420] ss:$48 sps:$4 sm:$0xff]   ;;  %v20685_v43 = vld [vmem:[%s25279_s10 + $0x428] ss:$48 sps:$4 sm:$0xff]   ;;  %v20690_v40 = vld [vmem:[%s25279_s10 + $0x484] ss:$48 sps:$4 sm:$0xff]  }
 0x62e   : > { %v6169_v54 = vmul.f32 %v6157_v37, %v6121_v49  ;;  %v20693_v48 = vld [vmem:[%s25279_s10 + $0x48c] ss:$48 sps:$4 sm:$0xff]   ;;  %v20688_v49 = vld [vmem:[%s25279_s10 + $0x480] ss:$48 sps:$4 sm:$0xff]   ;;  %v20691_v37 = vld [vmem:[%s25279_s10 + $0x488] ss:$48 sps:$4 sm:$0xff]  }
 0x62f   : > { %v6174_v62 = vpack.c.bf16 %v6168_v59, %v6162_v52  ;;  %v20696_v52 = vld [vmem:[%s25279_s10 + $0x4e4] ss:$48 sps:$4 sm:$0xff]   ;;  %v20699_v59 = vld [vmem:[%s25279_s10 + $0x4ec] ss:$48 sps:$4 sm:$0xff]  }
 0x630   : > { %v6175_v60 = vpack.c.bf16 %v6169_v54, %v6163_v41  ;;  %v20694_v41 = vld [vmem:[%s25279_s10 + $0x4e0] ss:$48 sps:$4 sm:$0xff]   ;;  %v20697_v54 = vld [vmem:[%s25279_s10 + $0x4e8] ss:$48 sps:$4 sm:$0xff]  }
 0x632   : > { %7468 = vmatprep.mubr.bf16.mxu0 %v6175_v60  ;;  %7597 = vmatprep.mubr.bf16.mxu1 %v6175_v60  ;;  %v20705_v60 = vld [vmem:[%s25279_s10 + $0x54c] ss:$48 sps:$4 sm:$0xff]  }
 0x633   : > { %7469 = vmatmul.mubr.bf16.vlgmr.msra.gmra.mrb[20].mxu0 %v6174_v62  ;;  %7598 = vmatmul.mubr.bf16.vlgmr.msra.gmra.mrb[20].mxu1 %v6174_v62  ;;  %v20702_v62 = vld [vmem:[%s25279_s10 + $0x544] ss:$48 sps:$4 sm:$0xff]  }
 0x634   : > { %10037 = vmatpush1.bf16.msra.mxu0 %v20616_v61  ;;  %10123 = vmatpush1.bf16.msra.mxu1 %v20619_v63  ;;  %v20700_v61 = vld [vmem:[%s25279_s10 + $0x540] ss:$48 sps:$4 sm:$0xff]   ;;  %v20703_v63 = vld [vmem:[%s25279_s10 + $0x548] ss:$48 sps:$4 sm:$0xff]  }
 0x635   : > { %10038 = vmatprep.subr.bf16.mxu0 %v20624_v1  ;;  %10124 = vmatprep.subr.bf16.mxu1 %v20627_v2  ;;  %v20708_v1 = vld [vmem:[%s25279_s10 + $0x5a4] ss:$48 sps:$4 sm:$0xff]   ;;  %v20711_v2 = vld [vmem:[%s25279_s10 + $0x5ac] ss:$48 sps:$4 sm:$0xff]  }
 0x638   : > { %10039 = vmatpush1.bf16.msra.mxu0 %v20622_v3  ;;  %10125 = vmatpush1.bf16.msra.mxu1 %v20625_v4  ;;  %v20706_v3 = vld [vmem:[%s25279_s10 + $0x5a0] ss:$48 sps:$4 sm:$0xff]   ;;  %v20709_v4 = vld [vmem:[%s25279_s10 + $0x5a8] ss:$48 sps:$4 sm:$0xff]  }
 0x639   : > { %10040 = vmatprep.subr.bf16.mxu0 %v20630_v5  ;;  %10126 = vmatprep.subr.bf16.mxu1 %v20633_v53  ;;  %v20714_v5 = vld [vmem:[%s25279_s10 + $0x604] ss:$48 sps:$4 sm:$0xff]   ;;  %v20717_v53 = vld [vmem:[%s25279_s10 + $0x60c] ss:$48 sps:$4 sm:$0xff]  }
 0x63c   : > { %10041 = vmatpush1.bf16.msra.mxu0 %v20628_v6  ;;  %10127 = vmatpush1.bf16.msra.mxu1 %v20631_v7  ;;  %v23261_v6 = vld [vmem:[%s25352_s11 + $0x11] sm:$0xf] }
 0x63d   : > { %10042 = vmatprep.subr.bf16.mxu0 %v20636_v57  ;;  %10128 = vmatprep.subr.bf16.mxu1 %v20639_v8  ;;  %v6373_v7 = vrot.slane %v23261_v6, %v22942_v44  ;;  %v6377_v57 = vrot.slane %v23261_v6, %v22948_v45  ;;  %v6385_v8 = vrot.slane %v23261_v6, %v22951_v46 }
 0x640   : > { %10043 = vmatpush1.bf16.msra.mxu0 %v20634_v9  ;;  %10129 = vmatpush1.bf16.msra.mxu1 %v20637_v10 }
 0x641   : > { %10044 = vmatprep.subr.bf16.mxu0 %v20642_v12  ;;  %10130 = vmatprep.subr.bf16.mxu1 %v20645_v13 }
 0x644   : > { %10045 = vmatpush1.bf16.msra.mxu0 %v20640_v14  ;;  %10131 = vmatpush1.bf16.msra.mxu1 %v20643_v15 }
 0x645   : > { %10046 = vmatprep.subr.bf16.mxu0 %v20648_v58  ;;  %10132 = vmatprep.subr.bf16.mxu1 %v20651_v16 }
 0x648   : > { %10047 = vmatpush1.bf16.msra.mxu0 %v20646_v17  ;;  %10133 = vmatpush1.bf16.msra.mxu1 %v20649_v18 }
 0x649   : > { %10048 = vmatprep.subr.bf16.mxu0 %v20654_v19  ;;  %10134 = vmatprep.subr.bf16.mxu1 %v20657_v55 }
 0x64c   : > { %10049 = vmatpush1.bf16.msra.mxu0 %v20652_v51  ;;  %10135 = vmatpush1.bf16.msra.mxu1 %v20655_v20 }
 0x64d   : > { %10050 = vmatprep.subr.bf16.mxu0 %v20660_v22  ;;  %10136 = vmatprep.subr.bf16.mxu1 %v20663_v23 }
 0x650   : > { %10051 = vmatpush1.bf16.msra.mxu0 %v20658_v56  ;;  %10137 = vmatpush1.bf16.msra.mxu1 %v20661_v25 }
 0x651   : > { %10052 = vmatprep.subr.bf16.mxu0 %v20666_v26  ;;  %10138 = vmatprep.subr.bf16.mxu1 %v20669_v27 }
 0x654   : > { %10053 = vmatpush1.bf16.msra.mxu0 %v20664_v28  ;;  %10139 = vmatpush1.bf16.msra.mxu1 %v20667_v29 }
 0x655   : > { %10054 = vmatprep.subr.bf16.mxu0 %v20672_v30  ;;  %10140 = vmatprep.subr.bf16.mxu1 %v20675_v31 }
 0x658   : > { %10055 = vmatpush1.bf16.msra.mxu0 %v20670_v50  ;;  %10141 = vmatpush1.bf16.msra.mxu1 %v20673_v32 }
 0x659   : > { %10056 = vmatprep.subr.bf16.mxu0 %v20678_v35  ;;  %10142 = vmatprep.subr.bf16.mxu1 %v20681_v33 }
 0x65c   : > { %10057 = vmatpush1.bf16.msra.mxu0 %v20676_v34  ;;  %10143 = vmatpush1.bf16.msra.mxu1 %v20679_v24 }
 0x65d   : > { %10058 = vmatprep.subr.bf16.mxu0 %v20684_v36  ;;  %10144 = vmatprep.subr.bf16.mxu1 %v20687_v38 }
 0x660   : > { %10059 = vmatpush1.bf16.msra.mxu0 %v20682_v39  ;;  %10145 = vmatpush1.bf16.msra.mxu1 %v20685_v43 }
 0x661   : > { %10060 = vmatprep.subr.bf16.mxu0 %v20690_v40  ;;  %10146 = vmatprep.subr.bf16.mxu1 %v20693_v48  ;;  %v7652_v48 = vld [vmem:[%s25353_s6 + $0x20] sm:$0xff] }
 0x664   : > { %10061 = vmatpush1.bf16.msra.mxu0 %v20688_v49  ;;  %10147 = vmatpush1.bf16.msra.mxu1 %v20691_v37 }
 0x665   : > { %10062 = vmatprep.subr.bf16.mxu0 %v20696_v52  ;;  %10148 = vmatprep.subr.bf16.mxu1 %v20699_v59  ;;  %v7649_v59 = vld [vmem:[%s25353_s6 + $0x8] sm:$0xff] }
 0x668   : > { %10063 = vmatpush1.bf16.msra.mxu0 %v20694_v41  ;;  %10149 = vmatpush1.bf16.msra.mxu1 %v20697_v54  ;;  %v7653_v54 = vld [vmem:[%s25353_s6 + $0x28] sm:$0xff] }
 0x669   : > { %10064 = vmatprep.subr.bf16.mxu0 %v20702_v62  ;;  %10150 = vmatprep.subr.bf16.mxu1 %v20705_v60 }
 0x66c   : > { %10065 = vmatpush1.bf16.msra.mxu0 %v20700_v61  ;;  %10151 = vmatpush1.bf16.msra.mxu1 %v20703_v63  ;;  %v7648_v61 = vld [vmem:[%s25353_s6] sm:$0xff] }
 0x66d   : > { %10066 = vmatprep.subr.bf16.mxu0 %v20708_v1  ;;  %10152 = vmatprep.subr.bf16.mxu1 %v20711_v2  ;;  %v7655_v1 = vld [vmem:[%s25353_s6 + $0x38] sm:$0xff] }
 0x670   : > { %10067 = vmatpush1.bf16.msra.mxu0 %v20706_v3  ;;  %10153 = vmatpush1.bf16.msra.mxu1 %v20709_v4 }
 0x671   : > { %10079 = vmatprep.subr.bf16.mxu0 %v20714_v5  ;;  %10165 = vmatprep.subr.bf16.mxu1 %v20717_v53  ;;  %v7651_v53 = vld [vmem:[%s25353_s6 + $0x18] sm:$0xff] }
 0x706   : > { %v7470_v9 = vpop.f32.mrb[20].mxu0  ;;  %v23269_v10 = vpop.f32.mrb[20].mxu1 }
 0x707   : > { %v18955_v12 = vadd.f32 %v7470_v9, %v6373_v7  ;;  %v7472_v13 = vpop.f32.mrb[21].mxu0  ;;  %v7601_v14 = vpop.f32.mrb[21].mxu1 }
 0x708   : > { %v18956_v15 = vadd.f32 %v7472_v13, %v6377_v57  ;;  %v18960_v58 = vadd.f32 %v7601_v14, %v6385_v8  ;;  %v7474_v16 = vpop.f32.mrb[22].mxu0  ;;  %v23271_v17 = vpop.f32.mrb[22].mxu1  ;;  %v20715_v13 = vld [vmem:[%s25279_s10 + $0x608] ss:$48 sps:$4 sm:$0xff]  }
 0x709   : > { %v7616_v18 = vmul.f32 0.70710677, %v18955_v12  ;;  %v18957_v51 = vadd.f32 %v7474_v16, %v6373_v7  ;;  %v7476_v20 = vpop.f32.mrb[23].mxu0  ;;  %v7605_v22 = vpop.f32.mrb[23].mxu1  ;;  %v7608_v36 = vmul.f32 0.5, %v18955_v12 }
 0x70a   : > { %v7617_v19 = vmul.f32 0.70710677, %v18956_v15  ;;  %v7619_v55 = vmul.f32 0.70710677, %v18960_v58  ;;  %v18958_v23 = vadd.f32 %v7476_v20, %v6377_v57  ;;  %v18962_v56 = vadd.f32 %v7605_v22, %v6385_v8  ;;  %v20712_v12 = vld [vmem:[%s25279_s10 + $0x600] ss:$48 sps:$4 sm:$0xff]  }
 0x70b   : > { %21980 = verf.f32 %v7616_v18  ;;  %v7620_v25 = vmul.f32 0.70710677, %v18957_v51  ;;  %v7609_v35 = vmul.f32 0.5, %v18956_v15  ;;  %v7612_v33 = vmul.f32 0.5, %v18957_v51  ;;  %v20723_v16 = vld [vmem:[%s25279_s10 + $0x66c] ss:$48 sps:$4 sm:$0xff]  }
 0x70c   : > { %21982 = verf.f32 %v7617_v19  ;;  %v7621_v26 = vmul.f32 0.70710677, %v18958_v23  ;;  %v7623_v27 = vmul.f32 0.70710677, %v18962_v56  ;;  %v7613_v49 = vmul.f32 0.5, %v18958_v23 }
 0x70d   : > { %21984 = verf.f32 %v7619_v55  ;;  %v7611_v41 = vmul.f32 0.5, %v18960_v58  ;;  %v7615_v62 = vmul.f32 0.5, %v18962_v56  ;;  %v20720_v58 = vld [vmem:[%s25279_s10 + $0x664] ss:$48 sps:$4 sm:$0xff]   ;;  %v20718_v19 = vld [vmem:[%s25279_s10 + $0x660] ss:$48 sps:$4 sm:$0xff]  }
 0x70e   : > { %21986 = verf.f32 %v7620_v25  ;;  %v20721_v55 = vld [vmem:[%s25279_s10 + $0x668] ss:$48 sps:$4 sm:$0xff]   ;;  %v20726_v51 = vld [vmem:[%s25279_s10 + $0x6c4] ss:$48 sps:$4 sm:$0xff]   ;;  %v20729_v20 = vld [vmem:[%s25279_s10 + $0x6cc] ss:$48 sps:$4 sm:$0xff]  }
 0x70f   : > { %21988 = verf.f32 %v7621_v26  ;;  %v20724_v22 = vld [vmem:[%s25279_s10 + $0x6c0] ss:$48 sps:$4 sm:$0xff]   ;;  %v20727_v23 = vld [vmem:[%s25279_s10 + $0x6c8] ss:$48 sps:$4 sm:$0xff]   ;;  %v20732_v56 = vld [vmem:[%s25279_s10 + $0x724] ss:$48 sps:$4 sm:$0xff]  }
 0x710   : > { %21990 = verf.f32 %v7623_v27  ;;  %v20735_v25 = vld [vmem:[%s25279_s10 + $0x72c] ss:$48 sps:$4 sm:$0xff]   ;;  %v20730_v26 = vld [vmem:[%s25279_s10 + $0x720] ss:$48 sps:$4 sm:$0xff]   ;;  %v20733_v27 = vld [vmem:[%s25279_s10 + $0x728] ss:$48 sps:$4 sm:$0xff]  }
 0x715   : > { %v21981_v28 = vpop.eup %21980 }
 0x716   : > { %v21983_v29 = vpop.eup %21982  ;;  %v7632_v32 = vadd.f32 1.0, %v21981_v28  ;;  %v20738_v28 = vld [vmem:[%s25279_s10 + $0x784] ss:$48 sps:$4 sm:$0xff]  }
 0x717   : > { %v21985_v30 = vpop.eup %21984  ;;  %v7633_v31 = vadd.f32 1.0, %v21983_v29  ;;  %v20741_v29 = vld [vmem:[%s25279_s10 + $0x78c] ss:$48 sps:$4 sm:$0xff]  }
 0x718   : > { %v21987_v50 = vpop.eup %21986  ;;  %v7635_v38 = vadd.f32 1.0, %v21985_v30  ;;  %v7640_v52 = vmul.f32 %v7632_v32, %v7608_v36  ;;  %v20736_v30 = vld [vmem:[%s25279_s10 + $0x780] ss:$48 sps:$4 sm:$0xff]   ;;  %v20747_v32 = vld [vmem:[%s25279_s10 + $0x7ec] ss:$48 sps:$4 sm:$0xff]  }
 0x719   : > { %v7636_v34 = vadd.f32 1.0, %v21987_v50  ;;  %v21989_v24 = vpop.eup %21988  ;;  %v7641_v43 = vmul.f32 %v7633_v31, %v7609_v35  ;;  %v20739_v31 = vld [vmem:[%s25279_s10 + $0x788] ss:$48 sps:$4 sm:$0xff]   ;;  %v20744_v50 = vld [vmem:[%s25279_s10 + $0x7e4] ss:$48 sps:$4 sm:$0xff]  }
 0x71a   : > { %v21991_v39 = vpop.eup %21990  ;;  %v7637_v37 = vadd.f32 1.0, %v21989_v24  ;;  %v7643_v2 = vmul.f32 %v7635_v38, %v7611_v41  ;;  %v23297_v57 = vadd.f32 %v7648_v61, %v7640_v52  ;;  %v20742_v35 = vld [vmem:[%s25279_s10 + $0x7e0] ss:$48 sps:$4 sm:$0xff]   ;;  %v20753_v24 = vld [vmem:[%s25279_s10 + $0x84c] ss:$48 sps:$4 sm:$0xff]   ;;  %v6381_v52 = vrot.slane %v23261_v6, %v22945_v11 }
 0x71b   : > { %v7644_v40 = vmul.f32 %v7636_v34, %v7612_v33  ;;  %v7639_v60 = vadd.f32 1.0, %v21991_v39  ;;  %v23290_v5 = vadd.f32 %v7649_v59, %v7641_v43  ;;  %v20745_v33 = vld [vmem:[%s25279_s10 + $0x7e8] ss:$48 sps:$4 sm:$0xff]   ;;  %v20750_v34 = vld [vmem:[%s25279_s10 + $0x844] ss:$48 sps:$4 sm:$0xff]  }
 0x71c   : > { %v7645_v63 = vmul.f32 %v7637_v37, %v7613_v49  ;;  %v23311_v14 = vadd.f32 %v7651_v53, %v7643_v2  ;;  %v20748_v36 = vld [vmem:[%s25279_s10 + $0x840] ss:$48 sps:$4 sm:$0xff]   ;;  %v20751_v38 = vld [vmem:[%s25279_s10 + $0x848] ss:$48 sps:$4 sm:$0xff]   ;;  %v20756_v39 = vld [vmem:[%s25279_s10 + $0x8a4] ss:$48 sps:$4 sm:$0xff]   ;;  %v18961_v59 = vadd.f32 %v23271_v17, %v6381_v52  ;;  %v18959_v17 = vadd.f32 %v23269_v10, %v6381_v52 }
 0x71d   : > { %v23288_v3 = vadd.f32 %v7652_v48, %v7644_v40  ;;  %v7647_v4 = vmul.f32 %v7639_v60, %v7615_v62  ;;  %v20759_v43 = vld [vmem:[%s25279_s10 + $0x8ac] ss:$48 sps:$4 sm:$0xff]   ;;  %v20754_v40 = vld [vmem:[%s25279_s10 + $0x8a0] ss:$48 sps:$4 sm:$0xff]   ;;  %v20757_v48 = vld [vmem:[%s25279_s10 + $0x8a8] ss:$48 sps:$4 sm:$0xff]  }
 0x71e   : > { %v23295_v7 = vadd.f32 %v7653_v54, %v7645_v63  ;;  %v20762_v49 = vld [vmem:[%s25279_s10 + $0x904] ss:$48 sps:$4 sm:$0xff]   ;;  %v20765_v37 = vld [vmem:[%s25279_s10 + $0x90c] ss:$48 sps:$4 sm:$0xff]   ;;  %v20760_v41 = vld [vmem:[%s25279_s10 + $0x900] ss:$48 sps:$4 sm:$0xff]  }
 0x71f   : > { %v23299_v8 = vadd.f32 %v7655_v1, %v7647_v4  ;;  %v23315_v15 = vpack.c.bf16 %v23288_v3, %v23297_v57  ;;  %v20763_v54 = vld [vmem:[%s25279_s10 + $0x908] ss:$48 sps:$4 sm:$0xff]   ;;  %v20768_v62 = vld [vmem:[%s25279_s10 + $0x964] ss:$48 sps:$4 sm:$0xff]   ;;  %v20771_v6 = vld [vmem:[%s25279_s10 + $0x96c] ss:$48 sps:$4 sm:$0xff]  }
 0x720   : > { %v23303_v9 = vpack.c.bf16 %v23295_v7, %v23290_v5  ;;  %v7622_v60 = vmul.f32 0.70710677, %v18961_v59  ;;  %v20766_v61 = vld [vmem:[%s25279_s10 + $0x960] ss:$48 sps:$4 sm:$0xff]   ;;  %v20769_v63 = vld [vmem:[%s25279_s10 + $0x968] ss:$48 sps:$4 sm:$0xff]  }
 0x721   : > { %v23327_v18 = vpack.c.bf16 %v23299_v8, %v23311_v14  ;;  %v20774_v1 = vld [vmem:[%s25279_s10 + $0x9c4] ss:$48 sps:$4 sm:$0xff]   ;;  %v20777_v10 = vld [vmem:[%s25279_s10 + $0x9cc] ss:$48 sps:$4 sm:$0xff]   ;;  %v7618_v2 = vmul.f32 0.70710677, %v18959_v17 }
 0x722   : > { %10068 = vmatprep.mubr.bf16.mxu0 %v23303_v9  ;;  %10154 = vmatprep.mubr.bf16.mxu1 %v23303_v9  ;;  %21992 = verf.f32 %v7622_v60  ;;  %v20772_v4 = vld [vmem:[%s25279_s10 + $0x9c0] ss:$48 sps:$4 sm:$0xff]   ;;  %v20775_v53 = vld [vmem:[%s25279_s10 + $0x9c8] ss:$48 sps:$4 sm:$0xff]   ;;  %v20813_v52 = vld [vmem:[%s25279_s10 + $0x1c] ss:$48 sps:$4 sm:$0xff]  }
 0x723   : > { %10069 = vmatmul.mubr.bf16.vlgmr.msra.gmra.mrb[24].mxu0 %v23315_v15  ;;  %10155 = vmatmul.mubr.bf16.vlgmr.msra.gmra.mrb[24].mxu1 %v23315_v15  ;;  %21994 = verf.f32 %v7618_v2  ;;  %v20814_v60 = vld [vmem:[%s25279_s10 + $0x70] ss:$48 sps:$4 sm:$0xff]   ;;  %v20823_v2 = vld [vmem:[%s25279_s10 + $0xd8] ss:$48 sps:$4 sm:$0xff]  }
 0x724   : > { %10080 = vmatpush1.bf16.msra.mxu0 %v20712_v12  ;;  %10166 = vmatpush1.bf16.msra.mxu1 %v20715_v13  ;;  %v20780_v12 = vld [vmem:[%s25279_s10 + $0xa24] ss:$48 sps:$4 sm:$0xff]   ;;  %v20783_v13 = vld [vmem:[%s25279_s10 + $0xa2c] ss:$48 sps:$4 sm:$0xff]  }
 0x725   : > { %10111 = vmatprep.mubr.bf16.mxu0 %v23327_v18  ;;  %10197 = vmatprep.mubr.bf16.mxu1 %v23327_v18 }
 0x726   : > { %10081 = vmatprep.subr.bf16.mxu0 %v20720_v58  ;;  %10167 = vmatprep.subr.bf16.mxu1 %v20723_v16  ;;  %v20778_v58 = vld [vmem:[%s25279_s10 + $0xa20] ss:$48 sps:$4 sm:$0xff]   ;;  %v20781_v16 = vld [vmem:[%s25279_s10 + $0xa28] ss:$48 sps:$4 sm:$0xff]  }
 0x728   : > { %10082 = vmatpush1.bf16.msra.mxu0 %v20718_v19  ;;  %10168 = vmatpush1.bf16.msra.mxu1 %v20721_v55  ;;  %v20786_v19 = vld [vmem:[%s25279_s10 + $0xa84] ss:$48 sps:$4 sm:$0xff]   ;;  %v20789_v55 = vld [vmem:[%s25279_s10 + $0xa8c] ss:$48 sps:$4 sm:$0xff]  }
 0x729   : > { %10083 = vmatprep.subr.bf16.mxu0 %v20726_v51  ;;  %10169 = vmatprep.subr.bf16.mxu1 %v20729_v20  ;;  %v20784_v51 = vld [vmem:[%s25279_s10 + $0xa80] ss:$48 sps:$4 sm:$0xff]   ;;  %v20787_v20 = vld [vmem:[%s25279_s10 + $0xa88] ss:$48 sps:$4 sm:$0xff]  }
 0x72c   : > { %10084 = vmatpush1.bf16.msra.mxu0 %v20724_v22  ;;  %10170 = vmatpush1.bf16.msra.mxu1 %v20727_v23  ;;  %v20792_v22 = vld [vmem:[%s25279_s10 + $0xae4] ss:$48 sps:$4 sm:$0xff]   ;;  %v20795_v23 = vld [vmem:[%s25279_s10 + $0xaec] ss:$48 sps:$4 sm:$0xff]  }
 0x72d   : > { %10085 = vmatprep.subr.bf16.mxu0 %v20732_v56  ;;  %10171 = vmatprep.subr.bf16.mxu1 %v20735_v25  ;;  %v21993_v56 = vpop.eup %21992 }
 0x72e   : > { %v21995_v25 = vpop.eup %21994 }
 0x730   : > { %10086 = vmatpush1.bf16.msra.mxu0 %v20730_v26  ;;  %10172 = vmatpush1.bf16.msra.mxu1 %v20733_v27  ;;  %v20790_v26 = vld [vmem:[%s25279_s10 + $0xae0] ss:$48 sps:$4 sm:$0xff]   ;;  %v20793_v27 = vld [vmem:[%s25279_s10 + $0xae8] ss:$48 sps:$4 sm:$0xff]  }
 0x731   : > { %10087 = vmatprep.subr.bf16.mxu0 %v20738_v28  ;;  %10173 = vmatprep.subr.bf16.mxu1 %v20741_v29  ;;  %v7638_v28 = vadd.f32 1.0, %v21993_v56  ;;  %v20798_v29 = vld [vmem:[%s25279_s10 + $0xb44] ss:$48 sps:$4 sm:$0xff]  }
 0x732   : > { %v20846_v56 = vld [vmem:[%s25279_s10 + $0x254] ss:$48 sps:$4 sm:$0xff]  }
 0x734   : > { %10088 = vmatpush1.bf16.msra.mxu0 %v20736_v30  ;;  %10174 = vmatpush1.bf16.msra.mxu1 %v20739_v31  ;;  %v20801_v30 = vld [vmem:[%s25279_s10 + $0xb4c] ss:$48 sps:$4 sm:$0xff]   ;;  %v7634_v31 = vadd.f32 1.0, %v21995_v25 }
 0x735   : > { %10089 = vmatprep.subr.bf16.mxu0 %v20744_v50  ;;  %10175 = vmatprep.subr.bf16.mxu1 %v20747_v32  ;;  %v7614_v50 = vmul.f32 0.5, %v18961_v59  ;;  %v20796_v32 = vld [vmem:[%s25279_s10 + $0xb40] ss:$48 sps:$4 sm:$0xff]   ;;  %v20849_v25 = vld [vmem:[%s25279_s10 + $0x25c] ss:$48 sps:$4 sm:$0xff]  }
 0x738   : > { %10090 = vmatpush1.bf16.msra.mxu0 %v20742_v35  ;;  %10176 = vmatpush1.bf16.msra.mxu1 %v20745_v33  ;;  %v20799_v35 = vld [vmem:[%s25279_s10 + $0xb48] ss:$48 sps:$4 sm:$0xff]   ;;  %v7610_v33 = vmul.f32 0.5, %v18959_v17  ;;  %v20819_v17 = vld [vmem:[%s25279_s10 + $0x7c] ss:$48 sps:$4 sm:$0xff]  }
 0x739   : > { %10091 = vmatprep.subr.bf16.mxu0 %v20750_v34  ;;  %10177 = vmatprep.subr.bf16.mxu1 %v20753_v24  ;;  %v7646_v34 = vmul.f32 %v7638_v28, %v7614_v50  ;;  %v20804_v24 = vld [vmem:[%s25279_s10 + $0xba4] ss:$48 sps:$4 sm:$0xff]  }
 0x73a   : > { %v20852_v28 = vld [vmem:[%s25279_s10 + $0x2b4] ss:$48 sps:$4 sm:$0xff]  }
 0x73b   : > { %v20858_v50 = vld [vmem:[%s25279_s10 + $0x314] ss:$48 sps:$4 sm:$0xff]  }
 0x73c   : > { %10092 = vmatpush1.bf16.msra.mxu0 %v20748_v36  ;;  %10178 = vmatpush1.bf16.msra.mxu1 %v20751_v38  ;;  %v20807_v36 = vld [vmem:[%s25279_s10 + $0xbac] ss:$48 sps:$4 sm:$0xff]   ;;  %v7654_v38 = vld [vmem:[%s25353_s6 + $0x30] sm:$0xff] }
 0x73d   : > { %10093 = vmatprep.subr.bf16.mxu0 %v20756_v39  ;;  %10179 = vmatprep.subr.bf16.mxu1 %v20759_v43  ;;  %v7642_v39 = vmul.f32 %v7634_v31, %v7610_v33  ;;  %v7650_v43 = vld [vmem:[%s25353_s6 + $0x10] sm:$0xff]  ;;  %v20853_v31 = vld [vmem:[%s25279_s10 + $0x2b8] ss:$48 sps:$4 sm:$0xff]  }
 0x73e   : > { %v20859_v33 = vld [vmem:[%s25279_s10 + $0x318] ss:$48 sps:$4 sm:$0xff]  }
 0x73f   : > { %v23525_v59 = vadd.f32 %v7650_v43, %v7642_v39  ;;  %v20870_v39 = vld [vmem:[%s25279_s10 + $0x3d4] ss:$48 sps:$4 sm:$0xff]   ;;  %v20873_v43 = vld [vmem:[%s25279_s10 + $0x3dc] ss:$48 sps:$4 sm:$0xff]  }
 0x740   : > { %10094 = vmatpush1.bf16.msra.mxu0 %v20754_v40  ;;  %10180 = vmatpush1.bf16.msra.mxu1 %v20757_v48  ;;  %v20802_v40 = vld [vmem:[%s25279_s10 + $0xba0] ss:$48 sps:$4 sm:$0xff]   ;;  %v20805_v48 = vld [vmem:[%s25279_s10 + $0xba8] ss:$48 sps:$4 sm:$0xff]  }
 0x741   : > { %10095 = vmatprep.subr.bf16.mxu0 %v20762_v49  ;;  %10181 = vmatprep.subr.bf16.mxu1 %v20765_v37  ;;  %v23517_v49 = vadd.f32 %v7654_v38, %v7646_v34  ;;  %v20810_v37 = vld [vmem:[%s25279_s10 + $0x14] ss:$48 sps:$4 sm:$0xff]   ;;  %v20865_v38 = vld [vmem:[%s25279_s10 + $0x378] ss:$48 sps:$4 sm:$0xff]  }
 0x742   : > { %v20864_v34 = vld [vmem:[%s25279_s10 + $0x374] ss:$48 sps:$4 sm:$0xff]  }
 0x744   : > { %10096 = vmatpush1.bf16.msra.mxu0 %v20760_v41  ;;  %10182 = vmatpush1.bf16.msra.mxu1 %v20763_v54  ;;  %v20808_v41 = vld [vmem:[%s25279_s10 + $0x10] ss:$48 sps:$4 sm:$0xff]   ;;  %v23532_v54 = vpack.c.bf16 %v23517_v49, %v23525_v59 }
 0x745   : > { %10097 = vmatprep.subr.bf16.mxu0 %v20768_v62  ;;  %10183 = vmatprep.subr.bf16.mxu1 %v20771_v6  ;;  %v20811_v62 = vld [vmem:[%s25279_s10 + $0x18] ss:$48 sps:$4 sm:$0xff]   ;;  %v20816_v6 = vld [vmem:[%s25279_s10 + $0x74] ss:$48 sps:$4 sm:$0xff]  }
 0x748   : > { %10098 = vmatpush1.bf16.msra.mxu0 %v20766_v61  ;;  %10184 = vmatpush1.bf16.msra.mxu1 %v20769_v63  ;;  %v20817_v61 = vld [vmem:[%s25279_s10 + $0x78] ss:$48 sps:$4 sm:$0xff]   ;;  %v20822_v63 = vld [vmem:[%s25279_s10 + $0xd4] ss:$48 sps:$4 sm:$0xff]  }
 0x749   : > { %10099 = vmatprep.subr.bf16.mxu0 %v20774_v1  ;;  %10185 = vmatprep.subr.bf16.mxu1 %v20777_v10  ;;  %v20825_v1 = vld [vmem:[%s25279_s10 + $0xdc] ss:$48 sps:$4 sm:$0xff]   ;;  %v20820_v10 = vld [vmem:[%s25279_s10 + $0xd0] ss:$48 sps:$4 sm:$0xff]  }
 0x74c   : > { %10100 = vmatpush1.bf16.msra.mxu0 %v20772_v4  ;;  %10186 = vmatpush1.bf16.msra.mxu1 %v20775_v53  ;;  %v20828_v4 = vld [vmem:[%s25279_s10 + $0x134] ss:$48 sps:$4 sm:$0xff]   ;;  %v20831_v53 = vld [vmem:[%s25279_s10 + $0x13c] ss:$48 sps:$4 sm:$0xff]  }
 0x74d   : > { %10101 = vmatprep.subr.bf16.mxu0 %v20780_v12  ;;  %10187 = vmatprep.subr.bf16.mxu1 %v20783_v13  ;;  %v20826_v12 = vld [vmem:[%s25279_s10 + $0x130] ss:$48 sps:$4 sm:$0xff]   ;;  %v20829_v13 = vld [vmem:[%s25279_s10 + $0x138] ss:$48 sps:$4 sm:$0xff]  }
 0x750   : > { %10102 = vmatpush1.bf16.msra.mxu0 %v20778_v58  ;;  %10188 = vmatpush1.bf16.msra.mxu1 %v20781_v16  ;;  %v20834_v58 = vld [vmem:[%s25279_s10 + $0x194] ss:$48 sps:$4 sm:$0xff]   ;;  %v20837_v16 = vld [vmem:[%s25279_s10 + $0x19c] ss:$48 sps:$4 sm:$0xff]  }
 0x751   : > { %10103 = vmatprep.subr.bf16.mxu0 %v20786_v19  ;;  %10189 = vmatprep.subr.bf16.mxu1 %v20789_v55  ;;  %v20832_v19 = vld [vmem:[%s25279_s10 + $0x190] ss:$48 sps:$4 sm:$0xff]   ;;  %v20835_v55 = vld [vmem:[%s25279_s10 + $0x198] ss:$48 sps:$4 sm:$0xff]  }
 0x754   : > { %10104 = vmatpush1.bf16.msra.mxu0 %v20784_v51  ;;  %10190 = vmatpush1.bf16.msra.mxu1 %v20787_v20  ;;  %v20840_v51 = vld [vmem:[%s25279_s10 + $0x1f4] ss:$48 sps:$4 sm:$0xff]   ;;  %v20843_v20 = vld [vmem:[%s25279_s10 + $0x1fc] ss:$48 sps:$4 sm:$0xff]  }
 0x755   : > { %10105 = vmatprep.subr.bf16.mxu0 %v20792_v22  ;;  %10191 = vmatprep.subr.bf16.mxu1 %v20795_v23  ;;  %v20838_v22 = vld [vmem:[%s25279_s10 + $0x1f0] ss:$48 sps:$4 sm:$0xff]   ;;  %v20841_v23 = vld [vmem:[%s25279_s10 + $0x1f8] ss:$48 sps:$4 sm:$0xff]  }
 0x758   : > { %10106 = vmatpush1.bf16.msra.mxu0 %v20790_v26  ;;  %10192 = vmatpush1.bf16.msra.mxu1 %v20793_v27  ;;  %v20844_v26 = vld [vmem:[%s25279_s10 + $0x250] ss:$48 sps:$4 sm:$0xff]   ;;  %v20847_v27 = vld [vmem:[%s25279_s10 + $0x258] ss:$48 sps:$4 sm:$0xff]  }
 0x759   : > { %10107 = vmatprep.subr.bf16.mxu0 %v20798_v29  ;;  %10193 = vmatprep.subr.bf16.mxu1 %v20801_v30  ;;  %v20855_v29 = vld [vmem:[%s25279_s10 + $0x2bc] ss:$48 sps:$4 sm:$0xff]   ;;  %v20850_v30 = vld [vmem:[%s25279_s10 + $0x2b0] ss:$48 sps:$4 sm:$0xff]  }
 0x75c   : > { %10108 = vmatpush1.bf16.msra.mxu0 %v20796_v32  ;;  %10194 = vmatpush1.bf16.msra.mxu1 %v20799_v35  ;;  %v20861_v32 = vld [vmem:[%s25279_s10 + $0x31c] ss:$48 sps:$4 sm:$0xff]   ;;  %v20856_v35 = vld [vmem:[%s25279_s10 + $0x310] ss:$48 sps:$4 sm:$0xff]  }
 0x75d   : > { %10109 = vmatprep.subr.bf16.mxu0 %v20804_v24  ;;  %10195 = vmatprep.subr.bf16.mxu1 %v20807_v36  ;;  %v20867_v24 = vld [vmem:[%s25279_s10 + $0x37c] ss:$48 sps:$4 sm:$0xff]   ;;  %v20862_v36 = vld [vmem:[%s25279_s10 + $0x370] ss:$48 sps:$4 sm:$0xff]  }
 0x760   : > { %10110 = vmatpush1.bf16.msra.mxu0 %v20802_v40  ;;  %10196 = vmatpush1.bf16.msra.mxu1 %v20805_v48  ;;  %v20868_v40 = vld [vmem:[%s25279_s10 + $0x3d0] ss:$48 sps:$4 sm:$0xff]   ;;  %v20871_v48 = vld [vmem:[%s25279_s10 + $0x3d8] ss:$48 sps:$4 sm:$0xff]  }
 0x761   : > { %10208 = vmatprep.subr.bf16.mxu0 %v20810_v37  ;;  %10294 = vmatprep.subr.bf16.mxu1 %v20813_v52  ;;  %v20876_v37 = vld [vmem:[%s25279_s10 + $0x434] ss:$48 sps:$4 sm:$0xff]   ;;  %v20879_v52 = vld [vmem:[%s25279_s10 + $0x43c] ss:$48 sps:$4 sm:$0xff]  }
 0x763   : > { %10112 = vmatmul.mubr.bf16.vlgmr.msra.gmra.mrb[24].mxu0 %v23532_v54  ;;  %10198 = vmatmul.mubr.bf16.vlgmr.msra.gmra.mrb[24].mxu1 %v23532_v54 }
 0x764   : > { %10209 = vmatpush1.bf16.msra.mxu0 %v20808_v41  ;;  %10240 = vmatprep.mubr.bf16.mxu0 %v23303_v9  ;;  %v20874_v41 = vld [vmem:[%s25279_s10 + $0x430] ss:$48 sps:$4 sm:$0xff]  }
 0x765   : > { %10295 = vmatpush1.bf16.msra.mxu1 %v20811_v62  ;;  %10326 = vmatprep.mubr.bf16.mxu1 %v23303_v9  ;;  %v20877_v62 = vld [vmem:[%s25279_s10 + $0x438] ss:$48 sps:$4 sm:$0xff]  }
 0x766   : > { %10210 = vmatprep.subr.bf16.mxu0 %v20816_v6  ;;  %10296 = vmatprep.subr.bf16.mxu1 %v20819_v17  ;;  %v20882_v6 = vld [vmem:[%s25279_s10 + $0x494] ss:$48 sps:$4 sm:$0xff]   ;;  %v20885_v17 = vld [vmem:[%s25279_s10 + $0x49c] ss:$48 sps:$4 sm:$0xff]  }
 0x768   : > { %10211 = vmatpush1.bf16.msra.mxu0 %v20814_v60  ;;  %v20880_v60 = vld [vmem:[%s25279_s10 + $0x490] ss:$48 sps:$4 sm:$0xff]  }
 0x769   : > { %10297 = vmatpush1.bf16.msra.mxu1 %v20817_v61  ;;  %10212 = vmatprep.subr.bf16.mxu0 %v20822_v63  ;;  %v20883_v61 = vld [vmem:[%s25279_s10 + $0x498] ss:$48 sps:$4 sm:$0xff]   ;;  %v20888_v63 = vld [vmem:[%s25279_s10 + $0x4f4] ss:$48 sps:$4 sm:$0xff]  }
 0x76a   : > { %10298 = vmatprep.subr.bf16.mxu1 %v20825_v1  ;;  %v20891_v1 = vld [vmem:[%s25279_s10 + $0x4fc] ss:$48 sps:$4 sm:$0xff]  }
 0x76c   : > { %10213 = vmatpush1.bf16.msra.mxu0 %v20820_v10  ;;  %v20886_v10 = vld [vmem:[%s25279_s10 + $0x4f0] ss:$48 sps:$4 sm:$0xff]  }
 0x76d   : > { %10299 = vmatpush1.bf16.msra.mxu1 %v20823_v2  ;;  %10214 = vmatprep.subr.bf16.mxu0 %v20828_v4  ;;  %v20889_v2 = vld [vmem:[%s25279_s10 + $0x4f8] ss:$48 sps:$4 sm:$0xff]   ;;  %v20894_v4 = vld [vmem:[%s25279_s10 + $0x554] ss:$48 sps:$4 sm:$0xff]  }
 0x76e   : > { %10300 = vmatprep.subr.bf16.mxu1 %v20831_v53  ;;  %v20897_v53 = vld [vmem:[%s25279_s10 + $0x55c] ss:$48 sps:$4 sm:$0xff]  }
 0x770   : > { %10215 = vmatpush1.bf16.msra.mxu0 %v20826_v12  ;;  %v20892_v12 = vld [vmem:[%s25279_s10 + $0x550] ss:$48 sps:$4 sm:$0xff]  }
 0x771   : > { %10301 = vmatpush1.bf16.msra.mxu1 %v20829_v13  ;;  %10216 = vmatprep.subr.bf16.mxu0 %v20834_v58  ;;  %v20895_v13 = vld [vmem:[%s25279_s10 + $0x558] ss:$48 sps:$4 sm:$0xff]   ;;  %v20900_v58 = vld [vmem:[%s25279_s10 + $0x5b4] ss:$48 sps:$4 sm:$0xff]  }
 0x772   : > { %10302 = vmatprep.subr.bf16.mxu1 %v20837_v16  ;;  %v20903_v16 = vld [vmem:[%s25279_s10 + $0x5bc] ss:$48 sps:$4 sm:$0xff]  }
 0x774   : > { %10217 = vmatpush1.bf16.msra.mxu0 %v20832_v19  ;;  %v20898_v19 = vld [vmem:[%s25279_s10 + $0x5b0] ss:$48 sps:$4 sm:$0xff]  }
 0x775   : > { %10303 = vmatpush1.bf16.msra.mxu1 %v20835_v55  ;;  %10218 = vmatprep.subr.bf16.mxu0 %v20840_v51  ;;  %v20901_v55 = vld [vmem:[%s25279_s10 + $0x5b8] ss:$48 sps:$4 sm:$0xff]   ;;  %v20906_v51 = vld [vmem:[%s25279_s10 + $0x614] ss:$48 sps:$4 sm:$0xff]  }
 0x776   : > { %10304 = vmatprep.subr.bf16.mxu1 %v20843_v20  ;;  %v20909_v20 = vld [vmem:[%s25279_s10 + $0x61c] ss:$48 sps:$4 sm:$0xff]  }
 0x778   : > { %10219 = vmatpush1.bf16.msra.mxu0 %v20838_v22  ;;  %v20904_v22 = vld [vmem:[%s25279_s10 + $0x610] ss:$48 sps:$4 sm:$0xff]  }
 0x779   : > { %10305 = vmatpush1.bf16.msra.mxu1 %v20841_v23  ;;  %10220 = vmatprep.subr.bf16.mxu0 %v20846_v56  ;;  %v20907_v23 = vld [vmem:[%s25279_s10 + $0x618] ss:$48 sps:$4 sm:$0xff]   ;;  %v20912_v56 = vld [vmem:[%s25279_s10 + $0x674] ss:$48 sps:$4 sm:$0xff]  }
 0x77a   : > { %10306 = vmatprep.subr.bf16.mxu1 %v20849_v25  ;;  %v20915_v25 = vld [vmem:[%s25279_s10 + $0x67c] ss:$48 sps:$4 sm:$0xff]  }
 0x77c   : > { %10221 = vmatpush1.bf16.msra.mxu0 %v20844_v26  ;;  %v20910_v26 = vld [vmem:[%s25279_s10 + $0x670] ss:$48 sps:$4 sm:$0xff]  }
 0x77d   : > { %10307 = vmatpush1.bf16.msra.mxu1 %v20847_v27  ;;  %10222 = vmatprep.subr.bf16.mxu0 %v20852_v28  ;;  %v20913_v27 = vld [vmem:[%s25279_s10 + $0x678] ss:$48 sps:$4 sm:$0xff]   ;;  %v20918_v28 = vld [vmem:[%s25279_s10 + $0x6d4] ss:$48 sps:$4 sm:$0xff]  }
 0x77e   : > { %10308 = vmatprep.subr.bf16.mxu1 %v20855_v29  ;;  %v20921_v29 = vld [vmem:[%s25279_s10 + $0x6dc] ss:$48 sps:$4 sm:$0xff]  }
 0x780   : > { %10223 = vmatpush1.bf16.msra.mxu0 %v20850_v30  ;;  %v20916_v30 = vld [vmem:[%s25279_s10 + $0x6d0] ss:$48 sps:$4 sm:$0xff]  }
 0x781   : > { %10309 = vmatpush1.bf16.msra.mxu1 %v20853_v31  ;;  %10224 = vmatprep.subr.bf16.mxu0 %v20858_v50  ;;  %v20919_v31 = vld [vmem:[%s25279_s10 + $0x6d8] ss:$48 sps:$4 sm:$0xff]   ;;  %v20924_v50 = vld [vmem:[%s25279_s10 + $0x734] ss:$48 sps:$4 sm:$0xff]  }
 0x782   : > { %10310 = vmatprep.subr.bf16.mxu1 %v20861_v32  ;;  %v20927_v32 = vld [vmem:[%s25279_s10 + $0x73c] ss:$48 sps:$4 sm:$0xff]  }
 0x784   : > { %10225 = vmatpush1.bf16.msra.mxu0 %v20856_v35  ;;  %v20922_v35 = vld [vmem:[%s25279_s10 + $0x730] ss:$48 sps:$4 sm:$0xff]  }
 0x785   : > { %10311 = vmatpush1.bf16.msra.mxu1 %v20859_v33  ;;  %10226 = vmatprep.subr.bf16.mxu0 %v20864_v34  ;;  %v20925_v33 = vld [vmem:[%s25279_s10 + $0x738] ss:$48 sps:$4 sm:$0xff]   ;;  %v20930_v34 = vld [vmem:[%s25279_s10 + $0x794] ss:$48 sps:$4 sm:$0xff]  }
 0x786   : > { %10312 = vmatprep.subr.bf16.mxu1 %v20867_v24  ;;  %v20933_v24 = vld [vmem:[%s25279_s10 + $0x79c] ss:$48 sps:$4 sm:$0xff]  }
 0x788   : > { %10227 = vmatpush1.bf16.msra.mxu0 %v20862_v36  ;;  %v20928_v36 = vld [vmem:[%s25279_s10 + $0x790] ss:$48 sps:$4 sm:$0xff]  }
 0x789   : > { %10313 = vmatpush1.bf16.msra.mxu1 %v20865_v38  ;;  %10228 = vmatprep.subr.bf16.mxu0 %v20870_v39  ;;  %v20931_v38 = vld [vmem:[%s25279_s10 + $0x798] ss:$48 sps:$4 sm:$0xff]   ;;  %v20936_v39 = vld [vmem:[%s25279_s10 + $0x7f4] ss:$48 sps:$4 sm:$0xff]  }
 0x78a   : > { %10314 = vmatprep.subr.bf16.mxu1 %v20873_v43  ;;  %v20939_v43 = vld [vmem:[%s25279_s10 + $0x7fc] ss:$48 sps:$4 sm:$0xff]  }
 0x78c   : > { %10229 = vmatpush1.bf16.msra.mxu0 %v20868_v40  ;;  %v20934_v40 = vld [vmem:[%s25279_s10 + $0x7f0] ss:$48 sps:$4 sm:$0xff]  }
 0x78d   : > { %10315 = vmatpush1.bf16.msra.mxu1 %v20871_v48  ;;  %10230 = vmatprep.subr.bf16.mxu0 %v20876_v37  ;;  %v20937_v48 = vld [vmem:[%s25279_s10 + $0x7f8] ss:$48 sps:$4 sm:$0xff]   ;;  %v20942_v37 = vld [vmem:[%s25279_s10 + $0x854] ss:$48 sps:$4 sm:$0xff]  }
 0x78e   : > { %10316 = vmatprep.subr.bf16.mxu1 %v20879_v52  ;;  %v20945_v52 = vld [vmem:[%s25279_s10 + $0x85c] ss:$48 sps:$4 sm:$0xff]  }
 0x790   : > { %10231 = vmatpush1.bf16.msra.mxu0 %v20874_v41  ;;  %v20940_v41 = vld [vmem:[%s25279_s10 + $0x850] ss:$48 sps:$4 sm:$0xff]  }
 0x791   : > { %10317 = vmatpush1.bf16.msra.mxu1 %v20877_v62  ;;  %10232 = vmatprep.subr.bf16.mxu0 %v20882_v6  ;;  %v20943_v62 = vld [vmem:[%s25279_s10 + $0x858] ss:$48 sps:$4 sm:$0xff]   ;;  %v20948_v6 = vld [vmem:[%s25279_s10 + $0x8b4] ss:$48 sps:$4 sm:$0xff]  }
 0x792   : > { %10318 = vmatprep.subr.bf16.mxu1 %v20885_v17  ;;  %v20951_v17 = vld [vmem:[%s25279_s10 + $0x8bc] ss:$48 sps:$4 sm:$0xff]  }
 0x794   : > { %10233 = vmatpush1.bf16.msra.mxu0 %v20880_v60  ;;  %v20946_v60 = vld [vmem:[%s25279_s10 + $0x8b0] ss:$48 sps:$4 sm:$0xff]  }
 0x795   : > { %10319 = vmatpush1.bf16.msra.mxu1 %v20883_v61  ;;  %10234 = vmatprep.subr.bf16.mxu0 %v20888_v63  ;;  %v20949_v61 = vld [vmem:[%s25279_s10 + $0x8b8] ss:$48 sps:$4 sm:$0xff]   ;;  %v20954_v63 = vld [vmem:[%s25279_s10 + $0x914] ss:$48 sps:$4 sm:$0xff]  }
 0x796   : > { %10320 = vmatprep.subr.bf16.mxu1 %v20891_v1  ;;  %v20957_v1 = vld [vmem:[%s25279_s10 + $0x91c] ss:$48 sps:$4 sm:$0xff]  }
 0x798   : > { %10235 = vmatpush1.bf16.msra.mxu0 %v20886_v10  ;;  %v20952_v10 = vld [vmem:[%s25279_s10 + $0x910] ss:$48 sps:$4 sm:$0xff]  }
 0x799   : > { %10321 = vmatpush1.bf16.msra.mxu1 %v20889_v2  ;;  %10236 = vmatprep.subr.bf16.mxu0 %v20894_v4  ;;  %v20955_v2 = vld [vmem:[%s25279_s10 + $0x918] ss:$48 sps:$4 sm:$0xff]   ;;  %v20960_v4 = vld [vmem:[%s25279_s10 + $0x974] ss:$48 sps:$4 sm:$0xff]  }
 0x79a   : > { %10322 = vmatprep.subr.bf16.mxu1 %v20897_v53  ;;  %v20963_v53 = vld [vmem:[%s25279_s10 + $0x97c] ss:$48 sps:$4 sm:$0xff]  }
 0x79c   : > { %10237 = vmatpush1.bf16.msra.mxu0 %v20892_v12  ;;  %v20958_v12 = vld [vmem:[%s25279_s10 + $0x970] ss:$48 sps:$4 sm:$0xff]  }
 0x79d   : > { %10323 = vmatpush1.bf16.msra.mxu1 %v20895_v13  ;;  %10238 = vmatprep.subr.bf16.mxu0 %v20900_v58  ;;  %v20961_v13 = vld [vmem:[%s25279_s10 + $0x978] ss:$48 sps:$4 sm:$0xff]   ;;  %v20966_v58 = vld [vmem:[%s25279_s10 + $0x9d4] ss:$48 sps:$4 sm:$0xff]  }
 0x79e   : > { %10324 = vmatprep.subr.bf16.mxu1 %v20903_v16  ;;  %v20969_v16 = vld [vmem:[%s25279_s10 + $0x9dc] ss:$48 sps:$4 sm:$0xff]  }
 0x7a0   : > { %10239 = vmatpush1.bf16.msra.mxu0 %v20898_v19  ;;  %v20964_v19 = vld [vmem:[%s25279_s10 + $0x9d0] ss:$48 sps:$4 sm:$0xff]  }
 0x7a1   : > { %10325 = vmatpush1.bf16.msra.mxu1 %v20901_v55  ;;  %10251 = vmatprep.subr.bf16.mxu0 %v20906_v51  ;;  %v20967_v55 = vld [vmem:[%s25279_s10 + $0x9d8] ss:$48 sps:$4 sm:$0xff]   ;;  %v20972_v51 = vld [vmem:[%s25279_s10 + $0xa34] ss:$48 sps:$4 sm:$0xff]  }
 0x7a2   : > { %10337 = vmatprep.subr.bf16.mxu1 %v20909_v20  ;;  %v20975_v20 = vld [vmem:[%s25279_s10 + $0xa3c] ss:$48 sps:$4 sm:$0xff]  }
 0x7a3   : > { %10241 = vmatmul.mubr.bf16.vlgmr.msra.gmra.mrb[28].mxu0 %v23315_v15 }
 0x7a4   : > { %10327 = vmatmul.mubr.bf16.vlgmr.msra.gmra.mrb[28].mxu1 %v23315_v15  ;;  %10252 = vmatpush1.bf16.msra.mxu0 %v20904_v22  ;;  %v20970_v22 = vld [vmem:[%s25279_s10 + $0xa30] ss:$48 sps:$4 sm:$0xff]  }
 0x7a5   : > { %10283 = vmatprep.mubr.bf16.mxu0 %v23327_v18  ;;  %10338 = vmatpush1.bf16.msra.mxu1 %v20907_v23  ;;  %v20973_v23 = vld [vmem:[%s25279_s10 + $0xa38] ss:$48 sps:$4 sm:$0xff]  }
 0x7a6   : > { %10369 = vmatprep.mubr.bf16.mxu1 %v23327_v18  ;;  %10253 = vmatprep.subr.bf16.mxu0 %v20912_v56  ;;  %v20978_v56 = vld [vmem:[%s25279_s10 + $0xa94] ss:$48 sps:$4 sm:$0xff]  }
 0x7a7   : > { %10339 = vmatprep.subr.bf16.mxu1 %v20915_v25  ;;  %v20981_v25 = vld [vmem:[%s25279_s10 + $0xa9c] ss:$48 sps:$4 sm:$0xff]  }
 0x7a8   : > { %10254 = vmatpush1.bf16.msra.mxu0 %v20910_v26  ;;  %v20976_v26 = vld [vmem:[%s25279_s10 + $0xa90] ss:$48 sps:$4 sm:$0xff]  }
 0x7a9   : > { %10340 = vmatpush1.bf16.msra.mxu1 %v20913_v27  ;;  %10255 = vmatprep.subr.bf16.mxu0 %v20918_v28  ;;  %v20979_v27 = vld [vmem:[%s25279_s10 + $0xa98] ss:$48 sps:$4 sm:$0xff]   ;;  %v20984_v28 = vld [vmem:[%s25279_s10 + $0xaf4] ss:$48 sps:$4 sm:$0xff]  }
 0x7aa   : > { %10341 = vmatprep.subr.bf16.mxu1 %v20921_v29  ;;  %v20987_v29 = vld [vmem:[%s25279_s10 + $0xafc] ss:$48 sps:$4 sm:$0xff]  }
 0x7ac   : > { %10256 = vmatpush1.bf16.msra.mxu0 %v20916_v30  ;;  %v20982_v30 = vld [vmem:[%s25279_s10 + $0xaf0] ss:$48 sps:$4 sm:$0xff]  }
 0x7ad   : > { %10342 = vmatpush1.bf16.msra.mxu1 %v20919_v31  ;;  %10257 = vmatprep.subr.bf16.mxu0 %v20924_v50  ;;  %v20985_v31 = vld [vmem:[%s25279_s10 + $0xaf8] ss:$48 sps:$4 sm:$0xff]   ;;  %v20990_v50 = vld [vmem:[%s25279_s10 + $0xb54] ss:$48 sps:$4 sm:$0xff]  }
 0x7ae   : > { %10343 = vmatprep.subr.bf16.mxu1 %v20927_v32  ;;  %v20993_v32 = vld [vmem:[%s25279_s10 + $0xb5c] ss:$48 sps:$4 sm:$0xff]  }
 0x7b0   : > { %10258 = vmatpush1.bf16.msra.mxu0 %v20922_v35  ;;  %v20988_v35 = vld [vmem:[%s25279_s10 + $0xb50] ss:$48 sps:$4 sm:$0xff]  }
 0x7b1   : > { %10344 = vmatpush1.bf16.msra.mxu1 %v20925_v33  ;;  %10259 = vmatprep.subr.bf16.mxu0 %v20930_v34  ;;  %v20991_v33 = vld [vmem:[%s25279_s10 + $0xb58] ss:$48 sps:$4 sm:$0xff]   ;;  %v20996_v34 = vld [vmem:[%s25279_s10 + $0xbb4] ss:$48 sps:$4 sm:$0xff]  }
 0x7b2   : > { %10345 = vmatprep.subr.bf16.mxu1 %v20933_v24  ;;  %v20999_v24 = vld [vmem:[%s25279_s10 + $0xbbc] ss:$48 sps:$4 sm:$0xff]  }
 0x7b4   : > { %10260 = vmatpush1.bf16.msra.mxu0 %v20928_v36  ;;  %v20994_v36 = vld [vmem:[%s25279_s10 + $0xbb0] ss:$48 sps:$4 sm:$0xff]  }
 0x7b5   : > { %10346 = vmatpush1.bf16.msra.mxu1 %v20931_v38  ;;  %10261 = vmatprep.subr.bf16.mxu0 %v20936_v39  ;;  %v20997_v38 = vld [vmem:[%s25279_s10 + $0xbb8] ss:$48 sps:$4 sm:$0xff]   ;;  %v21002_v39 = vld [vmem:[%s25279_s10 + $0x24] ss:$48 sps:$4 sm:$0xff]  }
 0x7b6   : > { %10347 = vmatprep.subr.bf16.mxu1 %v20939_v43  ;;  %v21005_v43 = vld [vmem:[%s25279_s10 + $0x2c] ss:$48 sps:$4 sm:$0xff]  }
 0x7b8   : > { %10262 = vmatpush1.bf16.msra.mxu0 %v20934_v40  ;;  %v21000_v40 = vld [vmem:[%s25279_s10 + $0x20] ss:$48 sps:$4 sm:$0xff]  }
 0x7b9   : > { %10348 = vmatpush1.bf16.msra.mxu1 %v20937_v48  ;;  %10263 = vmatprep.subr.bf16.mxu0 %v20942_v37  ;;  %v21003_v48 = vld [vmem:[%s25279_s10 + $0x28] ss:$48 sps:$4 sm:$0xff]   ;;  %v21008_v37 = vld [vmem:[%s25279_s10 + $0x84] ss:$48 sps:$4 sm:$0xff]  }
 0x7ba   : > { %10349 = vmatprep.subr.bf16.mxu1 %v20945_v52  ;;  %v21011_v52 = vld [vmem:[%s25279_s10 + $0x8c] ss:$48 sps:$4 sm:$0xff]  }
 0x7bc   : > { %10264 = vmatpush1.bf16.msra.mxu0 %v20940_v41  ;;  %v21006_v41 = vld [vmem:[%s25279_s10 + $0x80] ss:$48 sps:$4 sm:$0xff]  }
 0x7bd   : > { %10350 = vmatpush1.bf16.msra.mxu1 %v20943_v62  ;;  %10265 = vmatprep.subr.bf16.mxu0 %v20948_v6  ;;  %v21009_v62 = vld [vmem:[%s25279_s10 + $0x88] ss:$48 sps:$4 sm:$0xff]   ;;  %v21014_v6 = vld [vmem:[%s25279_s10 + $0xe4] ss:$48 sps:$4 sm:$0xff]  }
 0x7be   : > { %10351 = vmatprep.subr.bf16.mxu1 %v20951_v17  ;;  %v21017_v17 = vld [vmem:[%s25279_s10 + $0xec] ss:$48 sps:$4 sm:$0xff]  }
 0x7c0   : > { %10266 = vmatpush1.bf16.msra.mxu0 %v20946_v60  ;;  %v21012_v60 = vld [vmem:[%s25279_s10 + $0xe0] ss:$48 sps:$4 sm:$0xff]  }
 0x7c1   : > { %10352 = vmatpush1.bf16.msra.mxu1 %v20949_v61  ;;  %10267 = vmatprep.subr.bf16.mxu0 %v20954_v63  ;;  %v21015_v61 = vld [vmem:[%s25279_s10 + $0xe8] ss:$48 sps:$4 sm:$0xff]   ;;  %v21023_v63 = vld [vmem:[%s25279_s10 + $0x14c] ss:$48 sps:$4 sm:$0xff]  }
 0x7c2   : > { %10353 = vmatprep.subr.bf16.mxu1 %v20957_v1  ;;  %v21018_v1 = vld [vmem:[%s25279_s10 + $0x140] ss:$48 sps:$4 sm:$0xff]  }
 0x7c4   : > { %10268 = vmatpush1.bf16.msra.mxu0 %v20952_v10  ;;  %v21021_v10 = vld [vmem:[%s25279_s10 + $0x148] ss:$48 sps:$4 sm:$0xff]  }
 0x7c5   : > { %10354 = vmatpush1.bf16.msra.mxu1 %v20955_v2  ;;  %10269 = vmatprep.subr.bf16.mxu0 %v20960_v4  ;;  %v21026_v2 = vld [vmem:[%s25279_s10 + $0x1a4] ss:$48 sps:$4 sm:$0xff]   ;;  %v21029_v4 = vld [vmem:[%s25279_s10 + $0x1ac] ss:$48 sps:$4 sm:$0xff]  }
 0x7c6   : > { %10355 = vmatprep.subr.bf16.mxu1 %v20963_v53  ;;  %v21024_v53 = vld [vmem:[%s25279_s10 + $0x1a0] ss:$48 sps:$4 sm:$0xff]  }
 0x7c8   : > { %10270 = vmatpush1.bf16.msra.mxu0 %v20958_v12  ;;  %v21027_v12 = vld [vmem:[%s25279_s10 + $0x1a8] ss:$48 sps:$4 sm:$0xff]  }
 0x7c9   : > { %10356 = vmatpush1.bf16.msra.mxu1 %v20961_v13  ;;  %10271 = vmatprep.subr.bf16.mxu0 %v20966_v58  ;;  %v21032_v13 = vld [vmem:[%s25279_s10 + $0x204] ss:$48 sps:$4 sm:$0xff]   ;;  %v21035_v58 = vld [vmem:[%s25279_s10 + $0x20c] ss:$48 sps:$4 sm:$0xff]  }
 0x7ca   : > { %10357 = vmatprep.subr.bf16.mxu1 %v20969_v16  ;;  %v21030_v16 = vld [vmem:[%s25279_s10 + $0x200] ss:$48 sps:$4 sm:$0xff]  }
 0x7cc   : > { %10272 = vmatpush1.bf16.msra.mxu0 %v20964_v19  ;;  %v21033_v19 = vld [vmem:[%s25279_s10 + $0x208] ss:$48 sps:$4 sm:$0xff]  }
 0x7cd   : > { %10358 = vmatpush1.bf16.msra.mxu1 %v20967_v55  ;;  %10273 = vmatprep.subr.bf16.mxu0 %v20972_v51  ;;  %v21038_v55 = vld [vmem:[%s25279_s10 + $0x264] ss:$48 sps:$4 sm:$0xff]   ;;  %v21041_v51 = vld [vmem:[%s25279_s10 + $0x26c] ss:$48 sps:$4 sm:$0xff]  }
 0x7ce   : > { %10359 = vmatprep.subr.bf16.mxu1 %v20975_v20  ;;  %v21036_v20 = vld [vmem:[%s25279_s10 + $0x260] ss:$48 sps:$4 sm:$0xff]  }
 0x7d0   : > { %10274 = vmatpush1.bf16.msra.mxu0 %v20970_v22  ;;  %v21039_v22 = vld [vmem:[%s25279_s10 + $0x268] ss:$48 sps:$4 sm:$0xff]  }
 0x7d1   : > { %10360 = vmatpush1.bf16.msra.mxu1 %v20973_v23  ;;  %10275 = vmatprep.subr.bf16.mxu0 %v20978_v56  ;;  %v21044_v23 = vld [vmem:[%s25279_s10 + $0x2c4] ss:$48 sps:$4 sm:$0xff]   ;;  %v21047_v56 = vld [vmem:[%s25279_s10 + $0x2cc] ss:$48 sps:$4 sm:$0xff]  }
 0x7d2   : > { %10361 = vmatprep.subr.bf16.mxu1 %v20981_v25  ;;  %v21042_v25 = vld [vmem:[%s25279_s10 + $0x2c0] ss:$48 sps:$4 sm:$0xff]  }
 0x7d4   : > { %10276 = vmatpush1.bf16.msra.mxu0 %v20976_v26  ;;  %v21045_v26 = vld [vmem:[%s25279_s10 + $0x2c8] ss:$48 sps:$4 sm:$0xff]  }
 0x7d5   : > { %10362 = vmatpush1.bf16.msra.mxu1 %v20979_v27  ;;  %10277 = vmatprep.subr.bf16.mxu0 %v20984_v28  ;;  %v21050_v27 = vld [vmem:[%s25279_s10 + $0x324] ss:$48 sps:$4 sm:$0xff]   ;;  %v21053_v28 = vld [vmem:[%s25279_s10 + $0x32c] ss:$48 sps:$4 sm:$0xff]  }
 0x7d6   : > { %10363 = vmatprep.subr.bf16.mxu1 %v20987_v29  ;;  %v21048_v29 = vld [vmem:[%s25279_s10 + $0x320] ss:$48 sps:$4 sm:$0xff]  }
 0x7d8   : > { %10278 = vmatpush1.bf16.msra.mxu0 %v20982_v30  ;;  %v21051_v30 = vld [vmem:[%s25279_s10 + $0x328] ss:$48 sps:$4 sm:$0xff]  }
 0x7d9   : > { %10364 = vmatpush1.bf16.msra.mxu1 %v20985_v31  ;;  %10279 = vmatprep.subr.bf16.mxu0 %v20990_v50  ;;  %v21056_v31 = vld [vmem:[%s25279_s10 + $0x384] ss:$48 sps:$4 sm:$0xff]   ;;  %v21059_v50 = vld [vmem:[%s25279_s10 + $0x38c] ss:$48 sps:$4 sm:$0xff]  }
 0x7da   : > { %10365 = vmatprep.subr.bf16.mxu1 %v20993_v32  ;;  %v21054_v32 = vld [vmem:[%s25279_s10 + $0x380] ss:$48 sps:$4 sm:$0xff]  }
 0x7dc   : > { %10280 = vmatpush1.bf16.msra.mxu0 %v20988_v35  ;;  %v21057_v35 = vld [vmem:[%s25279_s10 + $0x388] ss:$48 sps:$4 sm:$0xff]  }
 0x7dd   : > { %10366 = vmatpush1.bf16.msra.mxu1 %v20991_v33  ;;  %10281 = vmatprep.subr.bf16.mxu0 %v20996_v34  ;;  %v21062_v33 = vld [vmem:[%s25279_s10 + $0x3e4] ss:$48 sps:$4 sm:$0xff]   ;;  %v21065_v34 = vld [vmem:[%s25279_s10 + $0x3ec] ss:$48 sps:$4 sm:$0xff]  }
 0x7de   : > { %10367 = vmatprep.subr.bf16.mxu1 %v20999_v24  ;;  %v21060_v24 = vld [vmem:[%s25279_s10 + $0x3e0] ss:$48 sps:$4 sm:$0xff]  }
 0x7e0   : > { %10282 = vmatpush1.bf16.msra.mxu0 %v20994_v36  ;;  %v21063_v36 = vld [vmem:[%s25279_s10 + $0x3e8] ss:$48 sps:$4 sm:$0xff]  }
 0x7e1   : > { %10368 = vmatpush1.bf16.msra.mxu1 %v20997_v38  ;;  %10380 = vmatprep.subr.bf16.mxu0 %v21002_v39  ;;  %v21068_v38 = vld [vmem:[%s25279_s10 + $0x444] ss:$48 sps:$4 sm:$0xff]   ;;  %v21071_v39 = vld [vmem:[%s25279_s10 + $0x44c] ss:$48 sps:$4 sm:$0xff]  }
 0x7e2   : > { %10466 = vmatprep.subr.bf16.mxu1 %v21005_v43  ;;  %v21066_v43 = vld [vmem:[%s25279_s10 + $0x440] ss:$48 sps:$4 sm:$0xff]  }
 0x7e3   : > { %10284 = vmatmul.mubr.bf16.vlgmr.msra.gmra.mrb[28].mxu0 %v23532_v54 }
 0x7e4   : > { %10370 = vmatmul.mubr.bf16.vlgmr.msra.gmra.mrb[28].mxu1 %v23532_v54  ;;  %10381 = vmatpush1.bf16.msra.mxu0 %v21000_v40  ;;  %v21069_v40 = vld [vmem:[%s25279_s10 + $0x448] ss:$48 sps:$4 sm:$0xff]  }
 0x7e5   : > { %10412 = vmatprep.mubr.bf16.mxu0 %v23303_v9  ;;  %10467 = vmatpush1.bf16.msra.mxu1 %v21003_v48  ;;  %v21074_v48 = vld [vmem:[%s25279_s10 + $0x4a4] ss:$48 sps:$4 sm:$0xff]  }
 0x7e6   : > { %10498 = vmatprep.mubr.bf16.mxu1 %v23303_v9  ;;  %10382 = vmatprep.subr.bf16.mxu0 %v21008_v37  ;;  %v21020_v9 = vld [vmem:[%s25279_s10 + $0x144] ss:$48 sps:$4 sm:$0xff]   ;;  %v21077_v37 = vld [vmem:[%s25279_s10 + $0x4ac] ss:$48 sps:$4 sm:$0xff]  }
 0x7e7   : > { %10468 = vmatprep.subr.bf16.mxu1 %v21011_v52  ;;  %v21072_v52 = vld [vmem:[%s25279_s10 + $0x4a0] ss:$48 sps:$4 sm:$0xff]  }
 0x7e8   : > { %10383 = vmatpush1.bf16.msra.mxu0 %v21006_v41  ;;  %v21075_v41 = vld [vmem:[%s25279_s10 + $0x4a8] ss:$48 sps:$4 sm:$0xff]  }
 0x7e9   : > { %10469 = vmatpush1.bf16.msra.mxu1 %v21009_v62  ;;  %10384 = vmatprep.subr.bf16.mxu0 %v21014_v6  ;;  %v21080_v62 = vld [vmem:[%s25279_s10 + $0x504] ss:$48 sps:$4 sm:$0xff]   ;;  %v21083_v6 = vld [vmem:[%s25279_s10 + $0x50c] ss:$48 sps:$4 sm:$0xff]  }
 0x7ea   : > { %10470 = vmatprep.subr.bf16.mxu1 %v21017_v17  ;;  %v21078_v17 = vld [vmem:[%s25279_s10 + $0x500] ss:$48 sps:$4 sm:$0xff]  }
 0x7ec   : > { %10385 = vmatpush1.bf16.msra.mxu0 %v21012_v60  ;;  %v21081_v60 = vld [vmem:[%s25279_s10 + $0x508] ss:$48 sps:$4 sm:$0xff]  }
 0x7ed   : > { %10471 = vmatpush1.bf16.msra.mxu1 %v21015_v61  ;;  %10386 = vmatprep.subr.bf16.mxu0 %v21020_v9  ;;  %v21086_v61 = vld [vmem:[%s25279_s10 + $0x564] ss:$48 sps:$4 sm:$0xff]   ;;  %v21089_v9 = vld [vmem:[%s25279_s10 + $0x56c] ss:$48 sps:$4 sm:$0xff]  }
 0x7ee   : > { %10472 = vmatprep.subr.bf16.mxu1 %v21023_v63  ;;  %v21084_v63 = vld [vmem:[%s25279_s10 + $0x560] ss:$48 sps:$4 sm:$0xff]  }
 0x7f0   : > { %10387 = vmatpush1.bf16.msra.mxu0 %v21018_v1  ;;  %v21087_v1 = vld [vmem:[%s25279_s10 + $0x568] ss:$48 sps:$4 sm:$0xff]  }
 0x7f1   : > { %10473 = vmatpush1.bf16.msra.mxu1 %v21021_v10  ;;  %10388 = vmatprep.subr.bf16.mxu0 %v21026_v2  ;;  %v21092_v10 = vld [vmem:[%s25279_s10 + $0x5c4] ss:$48 sps:$4 sm:$0xff]   ;;  %v21095_v2 = vld [vmem:[%s25279_s10 + $0x5cc] ss:$48 sps:$4 sm:$0xff]  }
 0x7f2   : > { %10474 = vmatprep.subr.bf16.mxu1 %v21029_v4  ;;  %v21090_v4 = vld [vmem:[%s25279_s10 + $0x5c0] ss:$48 sps:$4 sm:$0xff]  }
 0x7f4   : > { %10389 = vmatpush1.bf16.msra.mxu0 %v21024_v53  ;;  %v21093_v53 = vld [vmem:[%s25279_s10 + $0x5c8] ss:$48 sps:$4 sm:$0xff]  }
 0x7f5   : > { %10475 = vmatpush1.bf16.msra.mxu1 %v21027_v12  ;;  %10390 = vmatprep.subr.bf16.mxu0 %v21032_v13  ;;  %v21098_v12 = vld [vmem:[%s25279_s10 + $0x624] ss:$48 sps:$4 sm:$0xff]   ;;  %v21101_v13 = vld [vmem:[%s25279_s10 + $0x62c] ss:$48 sps:$4 sm:$0xff]  }
 0x7f6   : > { %10476 = vmatprep.subr.bf16.mxu1 %v21035_v58  ;;  %v21096_v58 = vld [vmem:[%s25279_s10 + $0x620] ss:$48 sps:$4 sm:$0xff]  }
 0x7f8   : > { %10391 = vmatpush1.bf16.msra.mxu0 %v21030_v16  ;;  %v21099_v16 = vld [vmem:[%s25279_s10 + $0x628] ss:$48 sps:$4 sm:$0xff]  }
 0x7f9   : > { %10477 = vmatpush1.bf16.msra.mxu1 %v21033_v19  ;;  %10392 = vmatprep.subr.bf16.mxu0 %v21038_v55  ;;  %v21104_v19 = vld [vmem:[%s25279_s10 + $0x684] ss:$48 sps:$4 sm:$0xff]   ;;  %v21107_v55 = vld [vmem:[%s25279_s10 + $0x68c] ss:$48 sps:$4 sm:$0xff]  }
 0x7fa   : > { %10478 = vmatprep.subr.bf16.mxu1 %v21041_v51  ;;  %v21102_v51 = vld [vmem:[%s25279_s10 + $0x680] ss:$48 sps:$4 sm:$0xff]  }
 0x7fc   : > { %10393 = vmatpush1.bf16.msra.mxu0 %v21036_v20  ;;  %v21105_v20 = vld [vmem:[%s25279_s10 + $0x688] ss:$48 sps:$4 sm:$0xff]  }
 0x7fd   : > { %10479 = vmatpush1.bf16.msra.mxu1 %v21039_v22  ;;  %10394 = vmatprep.subr.bf16.mxu0 %v21044_v23  ;;  %v21110_v22 = vld [vmem:[%s25279_s10 + $0x6e4] ss:$48 sps:$4 sm:$0xff]   ;;  %v21108_v23 = vld [vmem:[%s25279_s10 + $0x6e0] ss:$48 sps:$4 sm:$0xff]  }
 0x7fe   : > { %10480 = vmatprep.subr.bf16.mxu1 %v21047_v56  ;;  %v21111_v56 = vld [vmem:[%s25279_s10 + $0x6e8] ss:$48 sps:$4 sm:$0xff]  }
 0x800   : > { %10395 = vmatpush1.bf16.msra.mxu0 %v21042_v25  ;;  %v21119_v25 = vld [vmem:[%s25279_s10 + $0x74c] ss:$48 sps:$4 sm:$0xff]  }
 0x801   : > { %10481 = vmatpush1.bf16.msra.mxu1 %v21045_v26  ;;  %10396 = vmatprep.subr.bf16.mxu0 %v21050_v27  ;;  %v21114_v26 = vld [vmem:[%s25279_s10 + $0x740] ss:$48 sps:$4 sm:$0xff]   ;;  %v21117_v27 = vld [vmem:[%s25279_s10 + $0x748] ss:$48 sps:$4 sm:$0xff]  }
 0x802   : > { %10482 = vmatprep.subr.bf16.mxu1 %v21053_v28  ;;  %v21122_v28 = vld [vmem:[%s25279_s10 + $0x7a4] ss:$48 sps:$4 sm:$0xff]  }
 0x804   : > { %10397 = vmatpush1.bf16.msra.mxu0 %v21048_v29  ;;  %v21125_v29 = vld [vmem:[%s25279_s10 + $0x7ac] ss:$48 sps:$4 sm:$0xff]  }
 0x805   : > { %10483 = vmatpush1.bf16.msra.mxu1 %v21051_v30  ;;  %10398 = vmatprep.subr.bf16.mxu0 %v21056_v31  ;;  %v21120_v30 = vld [vmem:[%s25279_s10 + $0x7a0] ss:$48 sps:$4 sm:$0xff]   ;;  %v24177_v31 = vld [vmem:[%s25352_s11 + $0x15] sm:$0xff] }
 0x806   : > { %10484 = vmatprep.subr.bf16.mxu1 %v21059_v50  ;;  %v21123_v50 = vld [vmem:[%s25279_s10 + $0x7a8] ss:$48 sps:$4 sm:$0xff]  }
 0x808   : > { %10399 = vmatpush1.bf16.msra.mxu0 %v21054_v32  ;;  %v21128_v32 = vld [vmem:[%s25279_s10 + $0x804] ss:$48 sps:$4 sm:$0xff]  }
 0x809   : > { %10485 = vmatpush1.bf16.msra.mxu1 %v21057_v35  ;;  %10400 = vmatprep.subr.bf16.mxu0 %v21062_v33  ;;  %v21131_v35 = vld [vmem:[%s25279_s10 + $0x80c] ss:$48 sps:$4 sm:$0xff]   ;;  %v8059_v33 = vrot.slane %v24177_v31, %v22942_v44 }
 0x80a   : > { %10486 = vmatprep.subr.bf16.mxu1 %v21065_v34  ;;  %v8067_v34 = vrot.slane %v24177_v31, %v22945_v11 }
 0x80c   : > { %10401 = vmatpush1.bf16.msra.mxu0 %v21060_v24  ;;  %v8063_v24 = vrot.slane %v24177_v31, %v22948_v45 }
 0x80d   : > { %10487 = vmatpush1.bf16.msra.mxu1 %v21063_v36  ;;  %10402 = vmatprep.subr.bf16.mxu0 %v21068_v38  ;;  %v8071_v36 = vrot.slane %v24177_v31, %v22951_v46  ;;  %v21126_v38 = vld [vmem:[%s25279_s10 + $0x800] ss:$48 sps:$4 sm:$0xff]  }
 0x80e   : > { %10488 = vmatprep.subr.bf16.mxu1 %v21071_v39  ;;  %v21129_v39 = vld [vmem:[%s25279_s10 + $0x808] ss:$48 sps:$4 sm:$0xff]  }
 0x810   : > { %10403 = vmatpush1.bf16.msra.mxu0 %v21066_v43  ;;  %v21134_v43 = vld [vmem:[%s25279_s10 + $0x864] ss:$48 sps:$4 sm:$0xff]  }
 0x811   : > { %10489 = vmatpush1.bf16.msra.mxu1 %v21069_v40  ;;  %10404 = vmatprep.subr.bf16.mxu0 %v21074_v48 }
 0x812   : > { %10490 = vmatprep.subr.bf16.mxu1 %v21077_v37  ;;  %v21137_v37 = vld [vmem:[%s25279_s10 + $0x86c] ss:$48 sps:$4 sm:$0xff]  }
 0x814   : > { %10405 = vmatpush1.bf16.msra.mxu0 %v21072_v52 }
 0x815   : > { %10491 = vmatpush1.bf16.msra.mxu1 %v21075_v41  ;;  %10406 = vmatprep.subr.bf16.mxu0 %v21080_v62 }
 0x816   : > { %10492 = vmatprep.subr.bf16.mxu1 %v21083_v6 }
 0x818   : > { %10407 = vmatpush1.bf16.msra.mxu0 %v21078_v17 }
 0x819   : > { %10493 = vmatpush1.bf16.msra.mxu1 %v21081_v60  ;;  %10408 = vmatprep.subr.bf16.mxu0 %v21086_v61 }
 0x81a   : > { %10494 = vmatprep.subr.bf16.mxu1 %v21089_v9 }
 0x81c   : > { %10409 = vmatpush1.bf16.msra.mxu0 %v21084_v63  ;;  %v21132_v63 = vld [vmem:[%s25279_s10 + $0x860] ss:$48 sps:$4 sm:$0xff]  }
 0x81d   : > { %10495 = vmatpush1.bf16.msra.mxu1 %v21087_v1  ;;  %10410 = vmatprep.subr.bf16.mxu0 %v21092_v10 }
 0x81e   : > { %10496 = vmatprep.subr.bf16.mxu1 %v21095_v2 }
 0x820   : > { %10411 = vmatpush1.bf16.msra.mxu0 %v21090_v4 }
 0x821   : > { %10497 = vmatpush1.bf16.msra.mxu1 %v21093_v53  ;;  %10423 = vmatprep.subr.bf16.mxu0 %v21098_v12  ;;  %v21135_v53 = vld [vmem:[%s25279_s10 + $0x868] ss:$48 sps:$4 sm:$0xff]   ;;  %v21140_v12 = vld [vmem:[%s25279_s10 + $0x8c4] ss:$48 sps:$4 sm:$0xff]  }
 0x822   : > { %10509 = vmatprep.subr.bf16.mxu1 %v21101_v13 }
 0x823   : > { %10413 = vmatmul.mubr.bf16.vlgmr.msra.gmra.mrb[32].mxu0 %v23315_v15 }
 0x824   : > { %10499 = vmatmul.mubr.bf16.vlgmr.msra.gmra.mrb[32].mxu1 %v23315_v15  ;;  %10424 = vmatpush1.bf16.msra.mxu0 %v21096_v58  ;;  %v21113_v15 = vld [vmem:[%s25279_s10 + $0x6ec] ss:$48 sps:$4 sm:$0xff]  }
 0x825   : > { %10455 = vmatprep.mubr.bf16.mxu0 %v23327_v18  ;;  %10510 = vmatpush1.bf16.msra.mxu1 %v21099_v16  ;;  %v21143_v16 = vld [vmem:[%s25279_s10 + $0x8cc] ss:$48 sps:$4 sm:$0xff]  }
 0x826   : > { %10541 = vmatprep.mubr.bf16.mxu1 %v23327_v18  ;;  %10425 = vmatprep.subr.bf16.mxu0 %v21104_v19  ;;  %v21116_v18 = vld [vmem:[%s25279_s10 + $0x744] ss:$48 sps:$4 sm:$0xff]   ;;  %v21138_v19 = vld [vmem:[%s25279_s10 + $0x8c0] ss:$48 sps:$4 sm:$0xff]  }
 0x827   : > { %10511 = vmatprep.subr.bf16.mxu1 %v21107_v55  ;;  %v21141_v55 = vld [vmem:[%s25279_s10 + $0x8c8] ss:$48 sps:$4 sm:$0xff]  }
 0x828   : > { %10426 = vmatpush1.bf16.msra.mxu0 %v21102_v51  ;;  %v21146_v51 = vld [vmem:[%s25279_s10 + $0x924] ss:$48 sps:$4 sm:$0xff]  }
 0x829   : > { %10512 = vmatpush1.bf16.msra.mxu1 %v21105_v20  ;;  %10427 = vmatprep.subr.bf16.mxu0 %v21110_v22  ;;  %v21149_v20 = vld [vmem:[%s25279_s10 + $0x92c] ss:$48 sps:$4 sm:$0xff]   ;;  %v21144_v22 = vld [vmem:[%s25279_s10 + $0x920] ss:$48 sps:$4 sm:$0xff]  }
 0x82a   : > { %10513 = vmatprep.subr.bf16.mxu1 %v21113_v15  ;;  %v21147_v15 = vld [vmem:[%s25279_s10 + $0x928] ss:$48 sps:$4 sm:$0xff]  }
 0x82c   : > { %10428 = vmatpush1.bf16.msra.mxu0 %v21108_v23  ;;  %v21152_v23 = vld [vmem:[%s25279_s10 + $0x984] ss:$48 sps:$4 sm:$0xff]  }
 0x82d   : > { %10514 = vmatpush1.bf16.msra.mxu1 %v21111_v56  ;;  %10429 = vmatprep.subr.bf16.mxu0 %v21116_v18  ;;  %v21155_v56 = vld [vmem:[%s25279_s10 + $0x98c] ss:$48 sps:$4 sm:$0xff]   ;;  %v21150_v18 = vld [vmem:[%s25279_s10 + $0x980] ss:$48 sps:$4 sm:$0xff]  }
 0x82e   : > { %10515 = vmatprep.subr.bf16.mxu1 %v21119_v25  ;;  %v21153_v25 = vld [vmem:[%s25279_s10 + $0x988] ss:$48 sps:$4 sm:$0xff]  }
 0x830   : > { %10430 = vmatpush1.bf16.msra.mxu0 %v21114_v26  ;;  %v21158_v26 = vld [vmem:[%s25279_s10 + $0x9e4] ss:$48 sps:$4 sm:$0xff]  }
 0x831   : > { %10516 = vmatpush1.bf16.msra.mxu1 %v21117_v27  ;;  %10431 = vmatprep.subr.bf16.mxu0 %v21122_v28  ;;  %v21161_v27 = vld [vmem:[%s25279_s10 + $0x9ec] ss:$48 sps:$4 sm:$0xff]   ;;  %v21156_v28 = vld [vmem:[%s25279_s10 + $0x9e0] ss:$48 sps:$4 sm:$0xff]  }
 0x832   : > { %10517 = vmatprep.subr.bf16.mxu1 %v21125_v29  ;;  %v21159_v29 = vld [vmem:[%s25279_s10 + $0x9e8] ss:$48 sps:$4 sm:$0xff]  }
 0x834   : > { %10432 = vmatpush1.bf16.msra.mxu0 %v21120_v30  ;;  %v21164_v30 = vld [vmem:[%s25279_s10 + $0xa44] ss:$48 sps:$4 sm:$0xff]  }
 0x835   : > { %10518 = vmatpush1.bf16.msra.mxu1 %v21123_v50  ;;  %10433 = vmatprep.subr.bf16.mxu0 %v21128_v32  ;;  %v21167_v50 = vld [vmem:[%s25279_s10 + $0xa4c] ss:$48 sps:$4 sm:$0xff]   ;;  %v21162_v32 = vld [vmem:[%s25279_s10 + $0xa40] ss:$48 sps:$4 sm:$0xff]  }
 0x836   : > { %v10113_v40 = vpop.f32.mrb[24].mxu0  ;;  %v10199_v48 = vpop.f32.mrb[24].mxu1  ;;  %10519 = vmatprep.subr.bf16.mxu1 %v21131_v35  ;;  %v21165_v35 = vld [vmem:[%s25279_s10 + $0xa48] ss:$48 sps:$4 sm:$0xff]  }
 0x837   : > { %v24208_v52 = vadd.f32 %v10113_v40, %v8059_v33  ;;  %v24210_v41 = vadd.f32 %v10199_v48, %v8067_v34  ;;  %v10115_v62 = vpop.f32.mrb[25].mxu0  ;;  %v10201_v6 = vpop.f32.mrb[25].mxu1  ;;  %v21177_v40 = vld [vmem:[%s25279_s10 + $0xb08] ss:$48 sps:$4 sm:$0xff]   ;;  %v21182_v48 = vld [vmem:[%s25279_s10 + $0xb64] ss:$48 sps:$4 sm:$0xff]  }
 0x838   : > { %v24212_v17 = vadd.f32 %v10115_v62, %v8063_v24  ;;  %v24214_v60 = vadd.f32 %v10201_v6, %v8071_v36  ;;  %v10117_v61 = vpop.f32.mrb[26].mxu0  ;;  %v10203_v9 = vpop.f32.mrb[26].mxu1  ;;  %10434 = vmatpush1.bf16.msra.mxu0 %v21126_v38  ;;  %v21176_v38 = vld [vmem:[%s25279_s10 + $0xb04] ss:$48 sps:$4 sm:$0xff]   ;;  %v21180_v62 = vld [vmem:[%s25279_s10 + $0xb60] ss:$48 sps:$4 sm:$0xff]  }
 0x839   : > { %10553 = vst.msk [vmem:[#allocation2] sm:$0xff] %vm10552_vm1, %v24208_v52  ;;  %10625 = vst.msk [vmem:[#allocation2 + $0x40] sm:$0xff] %vm10552_vm1, %v24210_v41  ;;  %v24223_v1 = vadd.f32 %v10117_v61, %v8059_v33  ;;  %v24225_v10 = vadd.f32 %v10203_v9, %v8067_v34  ;;  %10520 = vmatpush1.bf16.msra.mxu1 %v21129_v39  ;;  %v10119_v2 = vpop.f32.mrb[27].mxu0  ;;  %v10205_v4 = vpop.f32.mrb[27].mxu1  ;;  %10435 = vmatprep.subr.bf16.mxu0 %v21134_v43  ;;  %v21170_v33 = vld [vmem:[%s25279_s10 + $0xaa4] ss:$48 sps:$4 sm:$0xff]  }
 0x83a   : > { %10589 = vst.msk [vmem:[#allocation2 + $0x20] sm:$0xff] %vm10552_vm1, %v24212_v17  ;;  %10661 = vst.msk [vmem:[#allocation2 + $0x60] sm:$0xff] %vm10552_vm1, %v24214_v60  ;;  %v24237_v13 = vadd.f32 %v10119_v2, %v8063_v24  ;;  %v24239_v58 = vadd.f32 %v10205_v4, %v8071_v36  ;;  %10521 = vmatprep.subr.bf16.mxu1 %v21137_v37  ;;  %v21173_v34 = vld [vmem:[%s25279_s10 + $0xaac] ss:$48 sps:$4 sm:$0xff]   ;;  %v21168_v24 = vld [vmem:[%s25279_s10 + $0xaa0] ss:$48 sps:$4 sm:$0xff]  }
 0x83b   : > { %10554 = vst.msk [vmem:[#allocation2 + $0x8] sm:$0xff] %vm10552_vm1, %v24223_v1  ;;  %10626 = vst.msk [vmem:[#allocation2 + $0x48] sm:$0xff] %vm10552_vm1, %v24225_v10  ;;  %v21171_v36 = vld [vmem:[%s25279_s10 + $0xaa8] ss:$48 sps:$4 sm:$0xff]   ;;  %v21179_v39 = vld [vmem:[%s25279_s10 + $0xb0c] ss:$48 sps:$4 sm:$0xff]  }
 0x83c   : > { %10590 = vst.msk [vmem:[#allocation2 + $0x28] sm:$0xff] %vm10552_vm1, %v24237_v13  ;;  %10662 = vst.msk [vmem:[#allocation2 + $0x68] sm:$0xff] %vm10552_vm1, %v24239_v58  ;;  %10436 = vmatpush1.bf16.msra.mxu0 %v21132_v63  ;;  %v21174_v43 = vld [vmem:[%s25279_s10 + $0xb00] ss:$48 sps:$4 sm:$0xff]   ;;  %v21185_v37 = vld [vmem:[%s25279_s10 + $0xb6c] ss:$48 sps:$4 sm:$0xff]  }
 0x83d   : > { %10522 = vmatpush1.bf16.msra.mxu1 %v21135_v53  ;;  %10437 = vmatprep.subr.bf16.mxu0 %v21140_v12  ;;  %v21183_v6 = vld [vmem:[%s25279_s10 + $0xb68] ss:$48 sps:$4 sm:$0xff]   ;;  %v21188_v61 = vld [vmem:[%s25279_s10 + $0xbc4] ss:$48 sps:$4 sm:$0xff]   ;;  %v21191_v9 = vld [vmem:[%s25279_s10 + $0xbcc] ss:$48 sps:$4 sm:$0xff]  }
 0x83e   : > { %10523 = vmatprep.subr.bf16.mxu1 %v21143_v16  ;;  %v21186_v63 = vld [vmem:[%s25279_s10 + $0xbc0] ss:$48 sps:$4 sm:$0xff]   ;;  %v21189_v2 = vld [vmem:[%s25279_s10 + $0xbc8] ss:$48 sps:$4 sm:$0xff]   ;;  %v8082_v16 = vsub.s32 6, %v22934_v42 }
 0x840   : > { %10438 = vmatpush1.bf16.msra.mxu0 %v21138_v19  ;;  %v10697_v53 = vld [vmem:[#allocation2] sm:$0xff]  ;;  %v8086_v19 = vsub.s32 7, %v22934_v42 }
 0x841   : > { %10524 = vmatpush1.bf16.msra.mxu1 %v21141_v55  ;;  %10439 = vmatprep.subr.bf16.mxu0 %v21146_v51  ;;  %v8075_v55 = vrot.slane %v24177_v31, %v22976_v21  ;;  %v8083_v51 = vrot.slane %v24177_v31, %v8082_v16 }
 0x842   : > { %10525 = vmatprep.subr.bf16.mxu1 %v21149_v20  ;;  %v10698_v4 = vld [vmem:[#allocation2 + $0x8] sm:$0xff]  ;;  %v8079_v20 = vrot.slane %v24177_v31, %v23018_v47 }
 0x843   : > { %v10713_v12 = vpack.c.bf16 %v10698_v4, %v10697_v53 }
 0x844   : > { %10440 = vmatpush1.bf16.msra.mxu0 %v21144_v22  ;;  %v8087_v22 = vrot.slane %v24177_v31, %v8086_v19 }
 0x845   : > { %10526 = vmatpush1.bf16.msra.mxu1 %v21147_v15  ;;  %10441 = vmatprep.subr.bf16.mxu0 %v21152_v23 }
 0x846   : > { %10527 = vmatprep.subr.bf16.mxu1 %v21155_v56 }
 0x848   : > { %10442 = vmatpush1.bf16.msra.mxu0 %v21150_v18 }
 0x849   : > { %10528 = vmatpush1.bf16.msra.mxu1 %v21153_v25  ;;  %10443 = vmatprep.subr.bf16.mxu0 %v21158_v26 }
 0x84a   : > { %10529 = vmatprep.subr.bf16.mxu1 %v21161_v27 }
 0x84c   : > { %10444 = vmatpush1.bf16.msra.mxu0 %v21156_v28 }
 0x84d   : > { %10530 = vmatpush1.bf16.msra.mxu1 %v21159_v29  ;;  %10445 = vmatprep.subr.bf16.mxu0 %v21164_v30 }
 0x84e   : > { %10531 = vmatprep.subr.bf16.mxu1 %v21167_v50 }
 0x850   : > { %10446 = vmatpush1.bf16.msra.mxu0 %v21162_v32 }
 0x851   : > { %10532 = vmatpush1.bf16.msra.mxu1 %v21165_v35  ;;  %10447 = vmatprep.subr.bf16.mxu0 %v21170_v33 }
 0x852   : > { %10533 = vmatprep.subr.bf16.mxu1 %v21173_v34 }
 0x854   : > { %10448 = vmatpush1.bf16.msra.mxu0 %v21168_v24 }
 0x855   : > { %10534 = vmatpush1.bf16.msra.mxu1 %v21171_v36  ;;  %10449 = vmatprep.subr.bf16.mxu0 %v21176_v38 }
 0x856   : > { %10535 = vmatprep.subr.bf16.mxu1 %v21179_v39 }
 0x858   : > { %10450 = vmatpush1.bf16.msra.mxu0 %v21174_v43 }
 0x859   : > { %10536 = vmatpush1.bf16.msra.mxu1 %v21177_v40  ;;  %10451 = vmatprep.subr.bf16.mxu0 %v21182_v48 }
 0x85a   : > { %10537 = vmatprep.subr.bf16.mxu1 %v21185_v37 }
 0x85c   : > { %10452 = vmatpush1.bf16.msra.mxu0 %v21180_v62 }
 0x85d   : > { %10538 = vmatpush1.bf16.msra.mxu1 %v21183_v6  ;;  %10453 = vmatprep.subr.bf16.mxu0 %v21188_v61 }
 0x85e   : > { %10539 = vmatprep.subr.bf16.mxu1 %v21191_v9 }
 0x860   : > { %10454 = vmatpush1.bf16.msra.mxu0 %v21186_v63 }
 0x861   : > { %10540 = vmatpush1.bf16.msra.mxu1 %v21189_v2 }
 0x863   : > { %10456 = vmatmul.mubr.bf16.vlgmr.msra.gmra.mrb[32].mxu0 %v23532_v54 }
 0x864   : > { %10542 = vmatmul.mubr.bf16.vlgmr.msra.gmra.mrb[32].mxu1 %v23532_v54  ;;  %18859 = vmatprep.mubr.msk.bf16.mxu0 %vm10552_vm1, %v10713_v12 }
 0x8b6   : > { %v10285_v15 = vpop.f32.mrb[28].mxu0 }
 0x8b7   : > { %v18971_v23 = vadd.f32 %v10285_v15, %v8075_v55  ;;  %v10371_v56 = vpop.f32.mrb[28].mxu1  ;;  %v10287_v54 = vpop.f32.mrb[29].mxu0 }
 0x8b8   : > { %v18975_v18 = vadd.f32 %v10371_v56, %v8083_v51  ;;  %v18972_v25 = vadd.f32 %v10287_v54, %v8079_v20  ;;  %v10373_v26 = vpop.f32.mrb[29].mxu1  ;;  %v10289_v27 = vpop.f32.mrb[30].mxu0 }
 0x8b9   : > { %10555 = vst.msk [vmem:[#allocation3] sm:$0xff] %vm10552_vm1, %v18971_v23  ;;  %v18976_v42 = vadd.f32 %v10373_v26, %v8087_v22  ;;  %v18973_v28 = vadd.f32 %v10289_v27, %v8075_v55  ;;  %v10375_v21 = vpop.f32.mrb[30].mxu1  ;;  %v10291_v29 = vpop.f32.mrb[31].mxu0  ;;  %10571 = vrot.lane.b32.xlu0 %v18971_v23, %s22482_s1 }
 0x8ba   : > { %10627 = vst.msk [vmem:[#allocation3 + $0x40] sm:$0xff] %vm10552_vm1, %v18975_v18  ;;  %10591 = vst.msk [vmem:[#allocation3 + $0x20] sm:$0xff] %vm10552_vm1, %v18972_v25  ;;  %v18977_v47 = vadd.f32 %v10375_v21, %v8083_v51  ;;  %v18974_v31 = vadd.f32 %v10291_v29, %v8079_v20  ;;  %v10377_v30 = vpop.f32.mrb[31].mxu1  ;;  %10607 = vrot.lane.b32.xlu1 %v18972_v25, %s22482_s1 }
 0x8bb   : > { %10663 = vst.msk [vmem:[#allocation3 + $0x60] sm:$0xff] %vm10552_vm1, %v18976_v42  ;;  %10556 = vst.msk [vmem:[#allocation3 + $0x8] sm:$0xff] %vm10552_vm1, %v18973_v28  ;;  %v18978_v50 = vadd.f32 %v10377_v30, %v8087_v22 }
 0x8bc   : > { %10628 = vst.msk [vmem:[#allocation3 + $0x48] sm:$0xff] %vm10552_vm1, %v18977_v47  ;;  %10592 = vst.msk [vmem:[#allocation3 + $0x28] sm:$0xff] %vm10552_vm1, %v18974_v31 }
 0x8bd   : > { %10664 = vst.msk [vmem:[#allocation3 + $0x68] sm:$0xff] %vm10552_vm1, %v18978_v50  ;;  %10573 = vrot.lane.b32.xlu0 %v18973_v28, %s22482_s1 }
 0x8be   : > { %10609 = vrot.lane.b32.xlu1 %v18974_v31, %s22482_s1 }
 0x8c0   : > { %v10721_v32 = vld [vmem:[#allocation3] sm:$0xff] }
 0x8c1   : > { %10643 = vrot.lane.b32.xlu0 %v18975_v18, %s22482_s1  ;;  %v10725_v19 = vld [vmem:[#allocation3 + $0x20] sm:$0xff] }
 0x8c2   : > { %10645 = vrot.lane.b32.xlu1 %v18977_v47, %s22482_s1  ;;  %v10722_v35 = vld [vmem:[#allocation3 + $0x8] sm:$0xff] }
 0x8c3   : > { %v10737_v33 = vpack.c.bf16 %v10722_v35, %v10721_v32  ;;  %v10726_v6 = vld [vmem:[#allocation3 + $0x28] sm:$0xff] }
 0x8c4   : > { %v10739_v23 = vpack.c.bf16 %v10726_v6, %v10725_v19 }
 0x8c5   : > { %10679 = vrot.lane.b32.xlu0 %v18976_v42, %s22482_s1  ;;  %19163 = vmatprep.subr.msk.bf16.mxu0 %vm10552_vm1, %v10737_v33  ;;  %v10794_v34 = vsel %vm10552_vm1, %v10737_v33, 0  ;;  %v10730_v33 = vld [vmem:[#allocation3 + $0x48] sm:$0xff] }
 0x8c6   : > { %10681 = vrot.lane.b32.xlu1 %v18978_v50, %s22482_s1  ;;  %18844 = vmatpush3.bf16.xpose.msra.mxu0 %v10794_v34  ;;  %v10800_v29 = vsel %vm10552_vm1, %v10739_v23, 0 }
 0x8c9   : > { %10561 = vrot.lane.b32.xlu0 %v24208_v52, %s22482_s1 }
 0x8ca   : > { %10563 = vrot.lane.b32.xlu1 %v24223_v1, %s22482_s1 }
 0x8cd   : > { %10597 = vrot.lane.b32.xlu0 %v24212_v17, %s22482_s1 }
 0x8ce   : > { %10599 = vrot.lane.b32.xlu1 %v24237_v13, %s22482_s1 }
 0x8d1   : > { %10633 = vrot.lane.b32.xlu0 %v24210_v41, %s22482_s1  ;;  %v8053_v41 = vld [vmem:[%s25352_s11 + $0x1d] sm:$0xf] }
 0x8d2   : > { %10635 = vrot.lane.b32.xlu1 %v24225_v10, %s22482_s1  ;;  %v8091_v10 = vrot.slane %v8053_v41, %v22942_v44  ;;  %v8099_v24 = vrot.slane %v8053_v41, %v22945_v11  ;;  %v8095_v36 = vrot.slane %v8053_v41, %v22948_v45  ;;  %v8103_v38 = vrot.slane %v8053_v41, %v22951_v46 }
 0x8d5   : > { %10669 = vrot.lane.b32.xlu0 %v24214_v60, %s22482_s1 }
 0x8d6   : > { %10671 = vrot.lane.b32.xlu1 %v24239_v58, %s22482_s1 }
 0x92b   : > { %v10572_v52 = vpop.permute.xlu0 %10571 }
 0x92c   : > { %10577 = vst.msk [vmem:[#allocation3 + $0x10] sm:$0xff] %vm10552_vm1, %v10572_v52  ;;  %v10608_v1 = vpop.permute.xlu1 %10607  ;;  %v10729_v52 = vld [vmem:[#allocation3 + $0x40] sm:$0xff] }
 0x92d   : > { %10613 = vst.msk [vmem:[#allocation3 + $0x30] sm:$0xff] %vm10552_vm1, %v10608_v1 }
 0x92f   : > { %v10574_v17 = vpop.permute.xlu0 %10573 }
 0x930   : > { %10578 = vst.msk [vmem:[#allocation3 + $0x18] sm:$0xff] %vm10552_vm1, %v10574_v17  ;;  %v10610_v13 = vpop.permute.xlu1 %10609 }
 0x931   : > { %10614 = vst.msk [vmem:[#allocation3 + $0x38] sm:$0xff] %vm10552_vm1, %v10610_v13  ;;  %v10741_v13 = vpack.c.bf16 %v10730_v33, %v10729_v52 }
 0x933   : > { %v10644_v60 = vpop.permute.xlu0 %10643  ;;  %v10723_v37 = vld [vmem:[#allocation3 + $0x10] sm:$0xff] }
 0x934   : > { %10649 = vst.msk [vmem:[#allocation3 + $0x50] sm:$0xff] %vm10552_vm1, %v10644_v60  ;;  %v10646_v58 = vpop.permute.xlu1 %10645  ;;  %v10727_v28 = vld [vmem:[#allocation3 + $0x30] sm:$0xff] }
 0x935   : > { %10650 = vst.msk [vmem:[#allocation3 + $0x58] sm:$0xff] %vm10552_vm1, %v10646_v58 }
 0x936   : > { %v10457_v39 = vpop.f32.mrb[32].mxu0 }
 0x937   : > { %v18979_v43 = vadd.f32 %v10457_v39, %v8091_v10  ;;  %v10543_v40 = vpop.f32.mrb[32].mxu1  ;;  %v10459_v48 = vpop.f32.mrb[33].mxu0  ;;  %v10724_v62 = vld [vmem:[#allocation3 + $0x18] sm:$0xff] }
 0x938   : > { %v24412_v61 = vadd.f32 %v10543_v40, %v8099_v24  ;;  %v18980_v9 = vadd.f32 %v10459_v48, %v8095_v36  ;;  %v10545_v63 = vpop.f32.mrb[33].mxu1  ;;  %v10680_v2 = vpop.permute.xlu0 %10679  ;;  %v10738_v4 = vpack.c.bf16 %v10724_v62, %v10723_v37  ;;  %v10728_v27 = vld [vmem:[#allocation3 + $0x38] sm:$0xff] }
 0x939   : > { %10557 = vst.msk [vmem:[#allocation4] sm:$0xff] %vm10552_vm1, %v18979_v43  ;;  %v24415_v53 = vadd.f32 %v10545_v63, %v8103_v38  ;;  %10685 = vst.msk [vmem:[#allocation3 + $0x70] sm:$0xff] %vm10552_vm1, %v10680_v2  ;;  %v10461_v12 = vpop.f32.mrb[34].mxu0  ;;  %v10547_v16 = vpop.f32.mrb[34].mxu1  ;;  %10581 = vrot.lane.b32.xlu1 %v18979_v43, %s22482_s1  ;;  %v10740_v47 = vpack.c.bf16 %v10728_v27, %v10727_v28  ;;  %v10702_v63 = vld [vmem:[#allocation2 + $0x28] sm:$0xff]  ;;  %v10709_v27 = vld [vmem:[#allocation2 + $0x60] sm:$0xff] }
 0x93a   : > { %10629 = vst.msk [vmem:[#allocation4 + $0x40] sm:$0xff] %vm10552_vm1, %v24412_v61  ;;  %10593 = vst.msk [vmem:[#allocation4 + $0x20] sm:$0xff] %vm10552_vm1, %v18980_v9  ;;  %v24422_v55 = vadd.f32 %v10461_v12, %v8091_v10  ;;  %v24424_v51 = vadd.f32 %v10547_v16, %v8099_v24  ;;  %v10682_v20 = vpop.permute.xlu1 %10681  ;;  %v10463_v22 = vpop.f32.mrb[35].mxu0  ;;  %19164 = vmatprep.subr.msk.bf16.mxu0 %vm10552_vm1, %v10738_v4  ;;  %v10797_v15 = vsel %vm10552_vm1, %v10738_v4, 0  ;;  %v10806_v10 = vsel %vm10552_vm1, %v10741_v13, 0  ;;  %v10734_v24 = vld [vmem:[#allocation3 + $0x68] sm:$0xff] }
 0x93b   : > { %10665 = vst.msk [vmem:[#allocation4 + $0x60] sm:$0xff] %vm10552_vm1, %v24415_v53  ;;  %10686 = vst.msk [vmem:[#allocation3 + $0x78] sm:$0xff] %vm10552_vm1, %v10682_v20  ;;  %v18982_v56 = vadd.f32 %v10463_v22, %v8095_v36  ;;  %v10549_v54 = vpop.f32.mrb[35].mxu1  ;;  %18846 = vmatpush3.bf16.xpose.msra.mxu0 %v10797_v15  ;;  %v10803_v17 = vsel %vm10552_vm1, %v10740_v47, 0  ;;  %v10731_v41 = vld [vmem:[#allocation3 + $0x50] sm:$0xff]  ;;  %v10733_v36 = vld [vmem:[#allocation3 + $0x60] sm:$0xff] }
 0x93c   : > { %10558 = vst.msk [vmem:[#allocation4 + $0x8] sm:$0xff] %vm10552_vm1, %v24422_v55  ;;  %10630 = vst.msk [vmem:[#allocation4 + $0x48] sm:$0xff] %vm10552_vm1, %v24424_v51  ;;  %v24435_v18 = vadd.f32 %v10549_v54, %v8103_v38  ;;  %v10562_v25 = vpop.permute.xlu0 %10561  ;;  %19165 = vmatprep.subr.msk.bf16.mxu0 %vm10552_vm1, %v10739_v23  ;;  %v10732_v60 = vld [vmem:[#allocation3 + $0x58] sm:$0xff]  ;;  %v10743_v39 = vpack.c.bf16 %v10734_v24, %v10733_v36  ;;  %v10701_v4 = vld [vmem:[#allocation2 + $0x20] sm:$0xff] }
 0x93d   : > { %10594 = vst.msk [vmem:[#allocation4 + $0x28] sm:$0xff] %vm10552_vm1, %v18982_v56  ;;  %10567 = vst.msk [vmem:[#allocation2 + $0x10] sm:$0xff] %vm10552_vm1, %v10562_v25  ;;  %10617 = vrot.lane.b32.xlu1 %v18980_v9, %s22482_s1  ;;  %v10742_v58 = vpack.c.bf16 %v10732_v60, %v10731_v41  ;;  %v10715_v12 = vpack.c.bf16 %v10702_v63, %v10701_v4  ;;  %v10706_v20 = vld [vmem:[#allocation2 + $0x48] sm:$0xff]  ;;  %v10705_v15 = vld [vmem:[#allocation2 + $0x40] sm:$0xff] }
 0x93e   : > { %10666 = vst.msk [vmem:[#allocation4 + $0x68] sm:$0xff] %vm10552_vm1, %v24435_v18  ;;  %v10564_v26 = vpop.permute.xlu1 %10563  ;;  %v10812_v48 = vsel %vm10552_vm1, %v10743_v39, 0  ;;  %v10717_v23 = vpack.c.bf16 %v10706_v20, %v10705_v15  ;;  %v10710_v25 = vld [vmem:[#allocation2 + $0x68] sm:$0xff]  ;;  %v10930_v60 = vld [vmem:[%s25272_s3] sm:$0xff] }
 0x93f   : > { %10568 = vst.msk [vmem:[#allocation2 + $0x18] sm:$0xff] %vm10552_vm1, %v10564_v26  ;;  %v10809_v38 = vsel %vm10552_vm1, %v10742_v58, 0 }
 0x940   : > { %v10598_v42 = vpop.permute.xlu0 %10597  ;;  %v10745_v31 = vld [vmem:[#allocation4] sm:$0xff]  ;;  %v10735_v43 = vld [vmem:[#allocation3 + $0x70] sm:$0xff] }
 0x941   : > { %10603 = vst.msk [vmem:[#allocation2 + $0x30] sm:$0xff] %vm10552_vm1, %v10598_v42  ;;  %10619 = vrot.lane.b32.xlu1 %v18982_v56, %s22482_s1  ;;  %v10719_v42 = vpack.c.bf16 %v10710_v25, %v10709_v27  ;;  %v10935_v25 = vld [vmem:[%s25272_s3 + $0x28] sm:$0xff] }
 0x942   : > { %v10600_v21 = vpop.permute.xlu1 %10599  ;;  %v10736_v40 = vld [vmem:[#allocation3 + $0x78] sm:$0xff] }
 0x943   : > { %10604 = vst.msk [vmem:[#allocation2 + $0x38] sm:$0xff] %vm10552_vm1, %v10600_v21  ;;  %18848 = vmatpush3.bf16.xpose.msra.mxu0 %v10800_v29  ;;  %v10746_v30 = vld [vmem:[#allocation4 + $0x8] sm:$0xff]  ;;  %v10744_v37 = vpack.c.bf16 %v10736_v40, %v10735_v43 }
 0x944   : > { %v10634_v50 = vpop.permute.xlu0 %10633  ;;  %19166 = vmatprep.subr.msk.bf16.mxu0 %vm10552_vm1, %v10740_v47  ;;  %v10761_v32 = vpack.c.bf16 %v10746_v30, %v10745_v31  ;;  %v10699_v6 = vld [vmem:[#allocation2 + $0x10] sm:$0xff] }
 0x945   : > { %10639 = vst.msk [vmem:[#allocation2 + $0x50] sm:$0xff] %vm10552_vm1, %v10634_v50  ;;  %v10815_v62 = vsel %vm10552_vm1, %v10744_v37, 0 }
 0x946   : > { %v10636_v35 = vpop.permute.xlu1 %10635  ;;  %18875 = vmatprep.subr.bf16.mxu1 %v10761_v32  ;;  %v10700_v9 = vld [vmem:[#allocation2 + $0x18] sm:$0xff] }
 0x947   : > { %10640 = vst.msk [vmem:[#allocation2 + $0x58] sm:$0xff] %vm10552_vm1, %v10636_v35  ;;  %18876 = vmatpush3.bf16.msra.mxu1 %v10761_v32  ;;  %v10714_v2 = vpack.c.bf16 %v10700_v9, %v10699_v6  ;;  %v10932_v32 = vld [vmem:[%s25272_s3 + $0x10] sm:$0xff] }
 0x948   : > { %v10670_v34 = vpop.permute.xlu0 %10669  ;;  %v10703_v16 = vld [vmem:[#allocation2 + $0x30] sm:$0xff] }
 0x949   : > { %10675 = vst.msk [vmem:[#allocation2 + $0x70] sm:$0xff] %vm10552_vm1, %v10670_v34 }
 0x94a   : > { %v10672_v1 = vpop.permute.xlu1 %10671  ;;  %v10704_v19 = vld [vmem:[#allocation2 + $0x38] sm:$0xff] }
 0x94b   : > { %10676 = vst.msk [vmem:[#allocation2 + $0x78] sm:$0xff] %vm10552_vm1, %v10672_v1  ;;  %18850 = vmatpush3.bf16.xpose.msra.mxu0 %v10803_v17  ;;  %v10716_v22 = vpack.c.bf16 %v10704_v19, %v10703_v16  ;;  %v10936_v19 = vld [vmem:[%s25272_s3 + $0x30] sm:$0xff] }
 0x94c   : > { %19167 = vmatprep.subr.msk.bf16.mxu0 %vm10552_vm1, %v10741_v13  ;;  %v10707_v56 = vld [vmem:[#allocation2 + $0x50] sm:$0xff]  ;;  %v10931_v13 = vld [vmem:[%s25272_s3 + $0x8] sm:$0xff] }
 0x94e   : > { %v10708_v54 = vld [vmem:[#allocation2 + $0x58] sm:$0xff] }
 0x94f   : > { %v10718_v26 = vpack.c.bf16 %v10708_v54, %v10707_v56 }
 0x950   : > { %v10711_v28 = vld [vmem:[#allocation2 + $0x70] sm:$0xff] }
 0x952   : > { %v10712_v21 = vld [vmem:[#allocation2 + $0x78] sm:$0xff] }
 0x953   : > { %18852 = vmatpush3.bf16.xpose.msra.mxu0 %v10806_v10  ;;  %v10720_v29 = vpack.c.bf16 %v10712_v21, %v10711_v28 }
 0x954   : > { %19168 = vmatprep.subr.msk.bf16.mxu0 %vm10552_vm1, %v10742_v58 }
 0x95b   : > { %18854 = vmatpush3.bf16.xpose.msra.mxu0 %v10809_v38  ;;  %v10933_v38 = vld [vmem:[%s25272_s3 + $0x18] sm:$0xff] }
 0x95c   : > { %19169 = vmatprep.subr.msk.bf16.mxu0 %vm10552_vm1, %v10743_v39 }
 0x963   : > { %18856 = vmatpush3.bf16.xpose.msra.mxu0 %v10812_v48 }
 0x964   : > { %19170 = vmatprep.subr.msk.bf16.mxu0 %vm10552_vm1, %v10744_v37 }
 0x96b   : > { %18858 = vmatpush3.bf16.xpose.msra.mxu0 %v10815_v62 }
 0x972   : > { %18860 = vmatmul.mubr.msk.bf16.vlgmr.msra.gmra.mrb[36].mxu0 %vm10552_vm1, %v10714_v2 }
 0x973   : > { %18863 = vmatprep.mubr.msk.bf16.mxu0 %vm10552_vm1, %v10715_v12 }
 0x97a   : > { %18864 = vmatmul.mubr.msk.bf16.gmra.mrb[40].mxu0 %vm10552_vm1, %v10716_v22 }
 0x97b   : > { %18867 = vmatprep.mubr.msk.bf16.mxu0 %vm10552_vm1, %v10717_v23  ;;  %v10937_v23 = vld [vmem:[%s25272_s3 + $0x38] sm:$0xff] }
 0x982   : > { %18868 = vmatmul.mubr.msk.bf16.gmra.mrb[44].mxu0 %vm10552_vm1, %v10718_v26 }
 0x983   : > { %18871 = vmatprep.mubr.msk.bf16.mxu0 %vm10552_vm1, %v10719_v42 }
 0x98a   : > { %18872 = vmatmul.mubr.msk.bf16.gmra.mrb[48].mxu0 %vm10552_vm1, %v10720_v29 }
 0x98b   : > { %11360 = vmatprep.mubr.bf16.mxu0 %v22481_v0 }
 0x9ab   : > { %v10582_v47 = vpop.permute.xlu1 %10581 }
 0x9ac   : > { %10587 = vst.msk [vmem:[#allocation4 + $0x10] sm:$0xff] %vm10552_vm1, %v10582_v47 }
 0x9af   : > { %v10618_v31 = vpop.permute.xlu1 %10617 }
 0x9b0   : > { %10623 = vst.msk [vmem:[#allocation4 + $0x30] sm:$0xff] %vm10552_vm1, %v10618_v31 }
 0x9b3   : > { %v10620_v30 = vpop.permute.xlu1 %10619 }
 0x9b4   : > { %10624 = vst.msk [vmem:[#allocation4 + $0x38] sm:$0xff] %vm10552_vm1, %v10620_v30 }
 0xa45   : > { %v18861_v50 = vpop.f32.mrb[36].mxu0 }
 0xa46   : > { %v10916_v35 = vmul.f32 0.125, %v18861_v50  ;;  %v10851_v33 = vpop.f32.mrb[37].mxu0 }
 0xa47   : > { %v18862_v34 = vpop.f32.mrb[38].mxu0  ;;  %v10914_v52 = vmul.f32 0.125, %v10851_v33 }
 0xa48   : > { %v10854_v1 = vpop.f32.mrb[39].mxu0  ;;  %v10948_v17 = vadd.f32 %v10932_v32, %v10916_v35  ;;  %v10917_v58 = vmul.f32 0.125, %v18862_v34 }
 0xa49   : > { %v10915_v41 = vmul.f32 0.125, %v10854_v1  ;;  %v10946_v24 = vadd.f32 %v10930_v60, %v10914_v52  ;;  %v10750_v60 = vld [vmem:[#allocation4 + $0x28] sm:$0xff] }
 0xa4a   : > { %10966 = vmax.xlane.f32.xlu0 %v10948_v17  ;;  %v10949_v48 = vadd.f32 %v10933_v38, %v10917_v58  ;;  %v10749_v58 = vld [vmem:[#allocation4 + $0x20] sm:$0xff]  ;;  %v10752_v38 = vld [vmem:[#allocation4 + $0x38] sm:$0xff] }
 0xa4b   : > { %v10947_v10 = vadd.f32 %v10931_v13, %v10915_v41  ;;  %v10747_v13 = vld [vmem:[#allocation4 + $0x10] sm:$0xff] }
 0xa4d   : > { %10964 = vmax.xlane.f32.xlu1 %v10947_v10  ;;  %v18865_v36 = vpop.f32.mrb[40].mxu0 }
 0xa4e   : > { %10962 = vmax.xlane.f32.xlu0 %v10946_v24  ;;  %v10867_v39 = vpop.f32.mrb[41].mxu0  ;;  %v10920_v16 = vmul.f32 0.125, %v18865_v36  ;;  %v10763_v36 = vpack.c.bf16 %v10750_v60, %v10749_v58 }
 0xa4f   : > { %v18866_v43 = vpop.f32.mrb[42].mxu0  ;;  %v10918_v20 = vmul.f32 0.125, %v10867_v39  ;;  %v10751_v39 = vld [vmem:[#allocation4 + $0x30] sm:$0xff] }
 0xa50   : > { %v10870_v40 = vpop.f32.mrb[43].mxu0  ;;  %v24508_v22 = vadd.f32 %v10936_v19, %v10920_v16  ;;  %v10921_v15 = vmul.f32 0.125, %v18866_v43  ;;  %v10764_v43 = vpack.c.bf16 %v10752_v38, %v10751_v39  ;;  %v10945_v38 = vld [vmem:[%s25272_s3 + $0x78] sm:$0xff] }
 0xa51   : > { %v10919_v56 = vmul.f32 0.125, %v10870_v40  ;;  %v10754_v40 = vld [vmem:[#allocation4 + $0x48] sm:$0xff] }
 0xa52   : > { %10968 = vmax.xlane.f32.xlu0 %v10949_v48  ;;  %v24519_v54 = vadd.f32 %v10937_v23, %v10921_v15 }
 0xa53   : > { %v24526_v26 = vadd.f32 %v10935_v25, %v10919_v56 }
 0xa55   : > { %v24485_v37 = vpop.f32.mrb[44].mxu0 }
 0xa56   : > { %v24487_v62 = vpop.f32.mrb[45].mxu0 }
 0xa57   : > { %v24489_v6 = vpop.f32.mrb[46].mxu0 }
 0xa58   : > { %v24491_v9 = vpop.f32.mrb[47].mxu0 }
 0xa5d   : > { %v24493_v63 = vpop.f32.mrb[48].mxu0 }
 0xa5e   : > { %10653 = vrot.lane.b32.xlu1 %v24412_v61, %s22482_s1  ;;  %v24497_v2 = vpop.f32.mrb[49].mxu0  ;;  %v10934_v61 = vld [vmem:[%s25272_s3 + $0x20] sm:$0xff] }
 0xa5f   : > { %v24499_v4 = vpop.f32.mrb[50].mxu0 }
 0xa60   : > { %v24501_v12 = vpop.f32.mrb[51].mxu0  ;;  %v10929_v58 = vmul.f32 0.125, %v24499_v4 }
 0xa62   : > { %v24619_v39 = vadd.f32 %v10945_v38, %v10929_v58 }
 0xa68   : > { %10583 = vrot.lane.b32.xlu0 %v24422_v55, %s22482_s1  ;;  %v24517_v55 = vadd.f32 %v10934_v61, %v10918_v20 }
 0xa82   : > { %10974 = vmax.xlane.f32.xlu1 %v24508_v22 }
 0xa86   : > { %10970 = vmax.xlane.f32.xlu1 %v24517_v55 }
 0xa87   : > { %10976 = vmax.xlane.f32.xlu0 %v24519_v54 }
 0xa8b   : > { %10972 = vmax.xlane.f32.xlu0 %v24526_v26 }
 0xa97   : > { %10689 = vrot.lane.b32.xlu1 %v24415_v53, %s22482_s1 }
 0xad7   : > { %v10967_v27 = vpop.xlane.xlu0 %10966 }
 0xad8   : > { %v10996_v42 = vsub.f32 %v10948_v17, %v10967_v27 }
 0xada   : > { %v11014_v28 = vmul.f32 1.442695, %v10996_v42  ;;  %v10965_v21 = vpop.xlane.xlu1 %10964  ;;  %v10923_v42 = vmul.f32 0.125, %v24491_v9 }
 0xadb   : > { %v10995_v29 = vsub.f32 %v10947_v10, %v10965_v21  ;;  %v10963_v47 = vpop.xlane.xlu0 %10962  ;;  %v10938_v21 = vld [vmem:[%s25272_s3 + $0x40] sm:$0xff] }
 0xadc   : > { %21996 = vpow2.f32 %v11014_v28  ;;  %v10994_v31 = vsub.f32 %v10946_v24, %v10963_v47 }
 0xadd   : > { %v11012_v30 = vmul.f32 1.442695, %v10995_v29 }
 0xade   : > { %v11010_v50 = vmul.f32 1.442695, %v10994_v31  ;;  %v10654_v32 = vpop.permute.xlu1 %10653  ;;  %v10924_v31 = vmul.f32 0.125, %v24485_v37  ;;  %v10942_v37 = vld [vmem:[%s25272_s3 + $0x60] sm:$0xff] }
 0xadf   : > { %21998 = vpow2.f32 %v11012_v30  ;;  %10659 = vst.msk [vmem:[#allocation4 + $0x50] sm:$0xff] %vm10552_vm1, %v10654_v32  ;;  %v10969_v35 = vpop.xlane.xlu0 %10968  ;;  %v10925_v32 = vmul.f32 0.125, %v24489_v6 }
 0xae0   : > { %22000 = vpow2.f32 %v11010_v50  ;;  %v10997_v33 = vsub.f32 %v10949_v48, %v10969_v35  ;;  %v10753_v48 = vld [vmem:[#allocation4 + $0x40] sm:$0xff] }
 0xae1   : > { %v10765_v16 = vpack.c.bf16 %v10754_v40, %v10753_v48 }
 0xae2   : > { %v11016_v34 = vmul.f32 1.442695, %v10997_v33  ;;  %v10941_v33 = vld [vmem:[%s25272_s3 + $0x58] sm:$0xff] }
 0xae3   : > { %v10584_v52 = vpop.permute.xlu0 %10583  ;;  %v24592_v6 = vadd.f32 %v10941_v33, %v10925_v32 }
 0xae4   : > { %22002 = vpow2.f32 %v11016_v34  ;;  %10588 = vst.msk [vmem:[#allocation4 + $0x18] sm:$0xff] %vm10552_vm1, %v10584_v52  ;;  %v10944_v52 = vld [vmem:[%s25272_s3 + $0x70] sm:$0xff] }
 0xae6   : > { %v24533_v53 = vpop.eup %21996 }
 0xae7   : > { %11046 = vadd.xlane.f32.xlu0 %v24533_v53 }
 0xae9   : > { %v24536_v1 = vpop.eup %21998 }
 0xaea   : > { %v24538_v17 = vpop.eup %22000  ;;  %11044 = vadd.xlane.f32.xlu1 %v24536_v1 }
 0xaeb   : > { %11042 = vadd.xlane.f32.xlu0 %v24538_v17  ;;  %v10748_v41 = vld [vmem:[#allocation4 + $0x18] sm:$0xff] }
 0xaec   : > { %v10762_v10 = vpack.c.bf16 %v10748_v41, %v10747_v13 }
 0xaee   : > { %v24542_v24 = vpop.eup %22002  ;;  %18877 = vmatprep.subr.bf16.mxu1 %v10762_v10 }
 0xaef   : > { %18878 = vmatpush3.bf16.msra.mxu1 %v10762_v10  ;;  %11048 = vadd.xlane.f32.xlu0 %v24542_v24  ;;  %v10943_v10 = vld [vmem:[%s25272_s3 + $0x68] sm:$0xff] }
 0xaf0   : > { %18879 = vmatprep.subr.bf16.mxu1 %v10763_v36 }
 0xaf3   : > { %18880 = vmatpush3.bf16.msra.mxu1 %v10763_v36 }
 0xaf4   : > { %18881 = vmatprep.subr.bf16.mxu1 %v10764_v43 }
 0xaf7   : > { %18882 = vmatpush3.bf16.msra.mxu1 %v10764_v43 }
 0xaf8   : > { %18883 = vmatprep.subr.bf16.mxu1 %v10765_v16 }
 0xafb   : > { %18884 = vmatpush3.bf16.msra.mxu1 %v10765_v16  ;;  %10691 = vrot.lane.b32.xlu1 %v24435_v18, %s22482_s1 }
 0xb05   : > { %10655 = vrot.lane.b32.xlu0 %v24424_v51, %s22482_s1  ;;  %v10939_v51 = vld [vmem:[%s25272_s3 + $0x48] sm:$0xff] }
 0xb0f   : > { %v10975_v19 = vpop.xlane.xlu1 %10974 }
 0xb10   : > { %v11000_v15 = vsub.f32 %v24508_v22, %v10975_v19  ;;  %v24557_v22 = vadd.f32 %v10939_v51, %v10923_v42 }
 0xb12   : > { %v11022_v27 = vmul.f32 1.442695, %v11000_v15 }
 0xb13   : > { %v10971_v20 = vpop.xlane.xlu1 %10970 }
 0xb14   : > { %v10998_v61 = vsub.f32 %v24517_v55, %v10971_v20  ;;  %v10977_v23 = vpop.xlane.xlu0 %10976  ;;  %v10922_v55 = vmul.f32 0.125, %v24487_v62  ;;  %v10940_v62 = vld [vmem:[%s25272_s3 + $0x50] sm:$0xff] }
 0xb15   : > { %v11001_v9 = vsub.f32 %v24519_v54, %v10977_v23  ;;  %v24579_v35 = vadd.f32 %v10940_v62, %v10924_v31 }
 0xb16   : > { %v11018_v56 = vmul.f32 1.442695, %v10998_v61  ;;  %v24568_v30 = vadd.f32 %v10938_v21, %v10922_v55 }
 0xb17   : > { %v10690_v25 = vpop.permute.xlu1 %10689  ;;  %v11024_v50 = vmul.f32 1.442695, %v11001_v9 }
 0xb18   : > { %22004 = vpow2.f32 %v11018_v56  ;;  %10695 = vst.msk [vmem:[#allocation4 + $0x70] sm:$0xff] %vm10552_vm1, %v10690_v25  ;;  %v10973_v28 = vpop.xlane.xlu0 %10972  ;;  %v10755_v56 = vld [vmem:[#allocation4 + $0x50] sm:$0xff] }
 0xb19   : > { %22006 = vpow2.f32 %v11022_v27  ;;  %v10999_v18 = vsub.f32 %v24526_v26, %v10973_v28  ;;  %v10926_v26 = vmul.f32 0.125, %v24497_v2  ;;  %v10928_v2 = vmul.f32 0.125, %v24493_v63  ;;  %v10758_v27 = vld [vmem:[#allocation4 + $0x68] sm:$0xff]  ;;  %v10757_v28 = vld [vmem:[#allocation4 + $0x60] sm:$0xff] }
 0xb1a   : > { %v10927_v63 = vmul.f32 0.125, %v24501_v12  ;;  %v10767_v51 = vpack.c.bf16 %v10758_v27, %v10757_v28 }
 0xb1b   : > { %v11020_v29 = vmul.f32 1.442695, %v10999_v18  ;;  %v24590_v34 = vadd.f32 %v10942_v37, %v10926_v26  ;;  %v24599_v13 = vadd.f32 %v10944_v52, %v10928_v2 }
 0xb1c   : > { %v24613_v36 = vadd.f32 %v10943_v10, %v10927_v63 }
 0xb1d   : > { %22008 = vpow2.f32 %v11020_v29 }
 0xb1e   : > { %22010 = vpow2.f32 %v11024_v50 }
 0xb1f   : > { %10980 = vmax.xlane.f32.xlu1 %v24557_v22  ;;  %v10759_v21 = vld [vmem:[#allocation4 + $0x70] sm:$0xff] }
 0xb22   : > { %v24565_v47 = vpop.eup %22004 }
 0xb23   : > { %11050 = vadd.xlane.f32.xlu1 %v24565_v47  ;;  %v24576_v54 = vpop.eup %22006 }
 0xb24   : > { %10978 = vmax.xlane.f32.xlu0 %v24568_v30 }
 0xb27   : > { %11054 = vadd.xlane.f32.xlu1 %v24576_v54  ;;  %v24601_v41 = vpop.eup %22008 }
 0xb28   : > { %10982 = vmax.xlane.f32.xlu0 %v24579_v35  ;;  %v24606_v60 = vpop.eup %22010 }
 0xb2b   : > { %10986 = vmax.xlane.f32.xlu1 %v24590_v34 }
 0xb2c   : > { %10984 = vmax.xlane.f32.xlu0 %v24592_v6 }
 0xb2f   : > { %10990 = vmax.xlane.f32.xlu1 %v24599_v13 }
 0xb30   : > { %11052 = vadd.xlane.f32.xlu0 %v24601_v41 }
 0xb34   : > { %11056 = vadd.xlane.f32.xlu0 %v24606_v60 }
 0xb38   : > { %10988 = vmax.xlane.f32.xlu0 %v24613_v36 }
 0xb3c   : > { %10992 = vmax.xlane.f32.xlu0 %v24619_v39 }
 0xb74   : > { %v11047_v12 = vpop.xlane.xlu0 %11046 }
 0xb77   : > { %v11045_v43 = vpop.xlane.xlu1 %11044 }
 0xb78   : > { %22012 = vrcp.f32 %v11045_v43  ;;  %v11043_v40 = vpop.xlane.xlu0 %11042 }
 0xb79   : > { %22014 = vrcp.f32 %v11043_v40 }
 0xb7b   : > { %v10692_v48 = vpop.permute.xlu1 %10691 }
 0xb7c   : > { %10696 = vst.msk [vmem:[#allocation4 + $0x78] sm:$0xff] %vm10552_vm1, %v10692_v48  ;;  %v11049_v4 = vpop.xlane.xlu0 %11048 }
 0xb7d   : > { %22016 = vrcp.f32 %v11049_v4 }
 0xb7e   : > { %22018 = vrcp.f32 %v11047_v12 }
 0xb80   : > { %v10656_v16 = vpop.permute.xlu0 %10655 }
 0xb81   : > { %10660 = vst.msk [vmem:[#allocation4 + $0x58] sm:$0xff] %vm10552_vm1, %v10656_v16 }
 0xb82   : > { %v22013_v19 = vpop.eup %22012 }
 0xb83   : > { %v22015_v20 = vpop.eup %22014  ;;  %v11091_v15 = vmul.f32 %v22013_v19, %v24536_v1  ;;  %v10760_v18 = vld [vmem:[#allocation4 + $0x78] sm:$0xff] }
 0xb84   : > { %v11090_v61 = vmul.f32 %v22015_v20, %v24538_v17  ;;  %v10768_v9 = vpack.c.bf16 %v10760_v18, %v10759_v21 }
 0xb86   : > { %v11106_v23 = vpack.c.bf16 %v11091_v15, %v11090_v61 }
 0xb87   : > { %v22017_v55 = vpop.eup %22016 }
 0xb88   : > { %18891 = vmatprep.mubr.bf16.mxu1 %v11106_v23  ;;  %v10756_v25 = vld [vmem:[#allocation4 + $0x58] sm:$0xff]  ;;  %v22019_v1 = vpop.eup %22018  ;;  %v11093_v17 = vmul.f32 %v22017_v55, %v24542_v24 }
 0xb89   : > { %v10766_v42 = vpack.c.bf16 %v10756_v25, %v10755_v56  ;;  %v11092_v29 = vmul.f32 %v22019_v1, %v24533_v53 }
 0xb8b   : > { %18885 = vmatprep.subr.bf16.mxu1 %v10766_v42  ;;  %v11107_v31 = vpack.c.bf16 %v11093_v17, %v11092_v29  ;;  %v21194_v29 = vld [vmem:[#allocation15 + $0x84] ss:$16 sps:$4 sm:$0xff]  }
 0xb8c   : > { %18886 = vmatpush3.bf16.msra.mxu1 %v10766_v42  ;;  %11328 = vmatprep.subr.bf16.mxu0 %v21194_v29  ;;  %v21218_v29 = vld [vmem:[#allocation15 + $0x4] ss:$16 sps:$4 sm:$0xff]  }
 0xb8d   : > { %18887 = vmatprep.subr.bf16.mxu1 %v10767_v51 }
 0xb90   : > { %18888 = vmatpush3.bf16.msra.mxu1 %v10767_v51 }
 0xb91   : > { %18889 = vmatprep.subr.bf16.mxu1 %v10768_v9 }
 0xb94   : > { %18890 = vmatpush3.bf16.msra.mxu1 %v10768_v9 }
 0xb97   : > { %18892 = vmatmul.mubr.bf16.vlgmr.msra.gmra.mrb[36].mxu1 %v11107_v31  ;;  %v21197_v31 = vld [vmem:[#allocation15 + $0xa4] ss:$16 sps:$4 sm:$0xff]  }
 0xbac   : > { %v10981_v62 = vpop.xlane.xlu1 %10980 }
 0xbad   : > { %v11003_v26 = vsub.f32 %v24557_v22, %v10981_v62  ;;  %v21195_v62 = vld [vmem:[#allocation15 + $0xa0] ss:$16 sps:$4 sm:$0xff]  }
 0xbaf   : > { %v11028_v50 = vmul.f32 1.442695, %v11003_v26  ;;  %v21201_v26 = vld [vmem:[#allocation15 + $0xe0] ss:$16 sps:$4 sm:$0xff]  }
 0xbb0   : > { %v11051_v32 = vpop.xlane.xlu1 %11050 }
 0xbb1   : > { %22020 = vpow2.f32 %v11028_v50  ;;  %v10979_v37 = vpop.xlane.xlu0 %10978  ;;  %v21203_v50 = vld [vmem:[#allocation15 + $0xe4] ss:$16 sps:$4 sm:$0xff]  }
 0xbb2   : > { %v11002_v33 = vsub.f32 %v24568_v30, %v10979_v37 }
 0xbb4   : > { %v11026_v2 = vmul.f32 1.442695, %v11002_v33  ;;  %v11055_v52 = vpop.xlane.xlu1 %11054 }
 0xbb5   : > { %v10983_v63 = vpop.xlane.xlu0 %10982 }
 0xbb6   : > { %22022 = vpow2.f32 %v11026_v2  ;;  %v11004_v24 = vsub.f32 %v24579_v35, %v10983_v63 }
 0xbb8   : > { %v11030_v10 = vmul.f32 1.442695, %v11004_v24  ;;  %v10987_v53 = vpop.xlane.xlu1 %10986 }
 0xbb9   : > { %v11006_v58 = vsub.f32 %v24590_v34, %v10987_v53  ;;  %v10985_v38 = vpop.xlane.xlu0 %10984 }
 0xbba   : > { %22024 = vpow2.f32 %v11030_v10  ;;  %v11005_v22 = vsub.f32 %v24592_v6, %v10985_v38 }
 0xbbb   : > { %v24633_v12 = vpop.eup %22020  ;;  %v11034_v43 = vmul.f32 1.442695, %v11006_v58  ;;  %22026 = vrcp.f32 %v11051_v32  ;;  %v21206_v32 = vld [vmem:[#allocation15 + $0x8c] ss:$16 sps:$4 sm:$0xff]  }
 0xbbc   : > { %v11032_v40 = vmul.f32 1.442695, %v11005_v22  ;;  %v10991_v30 = vpop.xlane.xlu1 %10990  ;;  %11060 = vadd.xlane.f32.xlu0 %v24633_v12 }
 0xbbd   : > { %22028 = vpow2.f32 %v11034_v43  ;;  %v11008_v48 = vsub.f32 %v24599_v13, %v10991_v30  ;;  %v11053_v35 = vpop.xlane.xlu0 %11052 }
 0xbbe   : > { %22030 = vpow2.f32 %v11032_v40 }
 0xbbf   : > { %v11038_v4 = vmul.f32 1.442695, %v11008_v48  ;;  %22032 = vrcp.f32 %v11053_v35 }
 0xbc0   : > { %v24637_v34 = vpop.eup %22022  ;;  %22034 = vrcp.f32 %v11055_v52 }
 0xbc1   : > { %22036 = vpow2.f32 %v11038_v4  ;;  %v11057_v6 = vpop.xlane.xlu0 %11056  ;;  %11058 = vadd.xlane.f32.xlu1 %v24637_v34 }
 0xbc2   : > { %22038 = vrcp.f32 %v11057_v6 }
 0xbc4   : > { %v24640_v16 = vpop.eup %22024 }
 0xbc5   : > { %11062 = vadd.xlane.f32.xlu1 %v24640_v16  ;;  %v10989_v19 = vpop.xlane.xlu0 %10988  ;;  %v22027_v20 = vpop.eup %22026 }
 0xbc6   : > { %v11007_v13 = vsub.f32 %v24613_v36, %v10989_v19  ;;  %v11094_v28 = vmul.f32 %v22027_v20, %v24565_v47 }
 0xbc7   : > { %v24644_v15 = vpop.eup %22028 }
 0xbc8   : > { %v24646_v61 = vpop.eup %22030  ;;  %v11036_v23 = vmul.f32 1.442695, %v11007_v13  ;;  %v21204_v13 = vld [vmem:[#allocation15 + $0x88] ss:$16 sps:$4 sm:$0xff]  }
 0xbc9   : > { %v22033_v56 = vpop.eup %22032  ;;  %11066 = vadd.xlane.f32.xlu1 %v24644_v15  ;;  %11064 = vadd.xlane.f32.xlu0 %v24646_v61  ;;  %v10993_v25 = vpop.xlane.xlu0 %10992 }
 0xbca   : > { %v22035_v27 = vpop.eup %22034  ;;  %22040 = vpow2.f32 %v11036_v23  ;;  %v11009_v42 = vsub.f32 %v24619_v39, %v10993_v25  ;;  %v11095_v51 = vmul.f32 %v22033_v56, %v24601_v41  ;;  %v21192_v41 = vld [vmem:[#allocation15 + $0x80] ss:$16 sps:$4 sm:$0xff]  }
 0xbcb   : > { %v24653_v36 = vpop.eup %22036  ;;  %v11096_v9 = vmul.f32 %v22035_v27, %v24576_v54  ;;  %11329 = vmatpush1.bf16.msra.mxu0 %v21192_v41  ;;  %v21200_v54 = vld [vmem:[#allocation15 + $0xc4] ss:$16 sps:$4 sm:$0xff]   ;;  %v21209_v27 = vld [vmem:[#allocation15 + $0xac] ss:$16 sps:$4 sm:$0xff]   ;;  %v21213_v41 = vld [vmem:[#allocation15 + $0xe8] ss:$16 sps:$4 sm:$0xff]  }
 0xbcc   : > { %v22039_v18 = vpop.eup %22038  ;;  %v11040_v55 = vmul.f32 1.442695, %v11009_v42  ;;  %v11108_v21 = vpack.c.bf16 %v11095_v51, %v11094_v28  ;;  %11330 = vmatprep.subr.bf16.mxu0 %v21197_v31  ;;  %v21216_v31 = vld [vmem:[#allocation15] ss:$16 sps:$4 sm:$0xff]  }
 0xbcd   : > { %11070 = vadd.xlane.f32.xlu1 %v24653_v36  ;;  %v11097_v1 = vmul.f32 %v22039_v18, %v24606_v60  ;;  %v21198_v60 = vld [vmem:[#allocation15 + $0xc0] ss:$16 sps:$4 sm:$0xff]   ;;  %v21207_v18 = vld [vmem:[#allocation15 + $0xa8] ss:$16 sps:$4 sm:$0xff]  }
 0xbce   : > { %22042 = vpow2.f32 %v11040_v55  ;;  %18895 = vmatprep.mubr.bf16.mxu1 %v11108_v21  ;;  %v21212_v21 = vld [vmem:[#allocation15 + $0xcc] ss:$16 sps:$4 sm:$0xff]  }
 0xbcf   : > { %v11109_v17 = vpack.c.bf16 %v11097_v1, %v11096_v9  ;;  %11331 = vmatpush1.bf16.msra.mxu0 %v21195_v62  ;;  %v21221_v62 = vld [vmem:[#allocation15 + $0x24] ss:$16 sps:$4 sm:$0xff]  }
 0xbd0   : > { %11332 = vmatprep.subr.bf16.mxu0 %v21200_v54  ;;  %v21222_v54 = vld [vmem:[#allocation15 + $0x40] ss:$16 sps:$4 sm:$0xff]  }
 0xbd1   : > { %18896 = vmatmul.mubr.bf16.gmra.mrb[40].mxu1 %v11109_v17 }
 0xbd3   : > { %11333 = vmatpush1.bf16.msra.mxu0 %v21198_v60  ;;  %v21227_v60 = vld [vmem:[#allocation15 + $0x64] ss:$16 sps:$4 sm:$0xff]  }
 0xbd4   : > { %v22041_v39 = vpop.eup %22040  ;;  %11334 = vmatprep.subr.bf16.mxu0 %v21203_v50  ;;  %v21230_v50 = vld [vmem:[#allocation15 + $0xc] ss:$16 sps:$4 sm:$0xff]  }
 0xbd5   : > { %11068 = vadd.xlane.f32.xlu0 %v22041_v39 }
 0xbd7   : > { %11335 = vmatpush1.bf16.msra.mxu0 %v21201_v26  ;;  %v21225_v26 = vld [vmem:[#allocation15 + $0x60] ss:$16 sps:$4 sm:$0xff]  }
 0xbd8   : > { %v24658_v47 = vpop.eup %22042  ;;  %11371 = vmatprep.subr.bf16.mxu0 %v21206_v32  ;;  %v21228_v32 = vld [vmem:[#allocation15 + $0x8] ss:$16 sps:$4 sm:$0xff]  }
 0xbd9   : > { %11072 = vadd.xlane.f32.xlu0 %v24658_v47 }
 0xc49   : > { %v11061_v37 = vpop.xlane.xlu0 %11060 }
 0xc4a   : > { %22044 = vrcp.f32 %v11061_v37  ;;  %v21233_v37 = vld [vmem:[#allocation15 + $0x2c] ss:$16 sps:$4 sm:$0xff]  }
 0xc4e   : > { %v11059_v33 = vpop.xlane.xlu1 %11058 }
 0xc4f   : > { %22046 = vrcp.f32 %v11059_v33  ;;  %v21231_v33 = vld [vmem:[#allocation15 + $0x28] ss:$16 sps:$4 sm:$0xff]  }
 0xc52   : > { %v11063_v2 = vpop.xlane.xlu1 %11062 }
 0xc53   : > { %22048 = vrcp.f32 %v11063_v2  ;;  %v21236_v2 = vld [vmem:[#allocation15 + $0x4c] ss:$16 sps:$4 sm:$0xff]  }
 0xc54   : > { %v22045_v63 = vpop.eup %22044 }
 0xc55   : > { %v11099_v53 = vmul.f32 %v22045_v63, %v24633_v12  ;;  %v21239_v63 = vld [vmem:[#allocation15 + $0x6c] ss:$16 sps:$4 sm:$0xff]  }
 0xc56   : > { %v11065_v52 = vpop.xlane.xlu0 %11064  ;;  %v11067_v58 = vpop.xlane.xlu1 %11066 }
 0xc57   : > { %22050 = vrcp.f32 %v11065_v52  ;;  %v21234_v52 = vld [vmem:[#allocation15 + $0x48] ss:$16 sps:$4 sm:$0xff]  }
 0xc58   : > { %22052 = vrcp.f32 %v11067_v58  ;;  %v21245_v58 = vld [vmem:[#allocation15 + $0x124] ss:$16 sps:$4 sm:$0xff]  }
 0xc59   : > { %v22047_v24 = vpop.eup %22046 }
 0xc5a   : > { %v11098_v10 = vmul.f32 %v22047_v24, %v24637_v34  ;;  %v11071_v40 = vpop.xlane.xlu1 %11070  ;;  %v21237_v24 = vld [vmem:[#allocation15 + $0x68] ss:$16 sps:$4 sm:$0xff]  }
 0xc5c   : > { %v11110_v38 = vpack.c.bf16 %v11099_v53, %v11098_v10  ;;  %v21242_v10 = vld [vmem:[#allocation15 + $0x104] ss:$16 sps:$4 sm:$0xff]   ;;  %v21240_v53 = vld [vmem:[#allocation15 + $0x100] ss:$16 sps:$4 sm:$0xff]  }
 0xc5d   : > { %v22049_v22 = vpop.eup %22048 }
 0xc5e   : > { %18899 = vmatprep.mubr.bf16.mxu1 %v11110_v38  ;;  %v11100_v48 = vmul.f32 %v22049_v22, %v24640_v16  ;;  %v21243_v38 = vld [vmem:[#allocation15 + $0x120] ss:$16 sps:$4 sm:$0xff]   ;;  %v21248_v22 = vld [vmem:[#allocation15 + $0x144] ss:$16 sps:$4 sm:$0xff]  }
 0xc61   : > { %v22051_v43 = vpop.eup %22050 }
 0xc62   : > { %v11069_v30 = vpop.xlane.xlu0 %11068  ;;  %v11101_v35 = vmul.f32 %v22051_v43, %v24646_v61  ;;  %v22053_v12 = vpop.eup %22052 }
 0xc63   : > { %22054 = vrcp.f32 %v11069_v30  ;;  %v11102_v16 = vmul.f32 %v22053_v12, %v24644_v15  ;;  %v21210_v15 = vld [vmem:[#allocation15 + $0xc8] ss:$16 sps:$4 sm:$0xff]   ;;  %v21249_v12 = vld [vmem:[#allocation15 + $0x160] ss:$16 sps:$4 sm:$0xff]  }
 0xc64   : > { %22056 = vrcp.f32 %v11071_v40  ;;  %v11111_v4 = vpack.c.bf16 %v11101_v35, %v11100_v48  ;;  %v21246_v40 = vld [vmem:[#allocation15 + $0x140] ss:$16 sps:$4 sm:$0xff]   ;;  %v21251_v48 = vld [vmem:[#allocation15 + $0x164] ss:$16 sps:$4 sm:$0xff]  }
 0xc66   : > { %v11073_v6 = vpop.xlane.xlu0 %11072  ;;  %18900 = vmatmul.mubr.bf16.gmra.mrb[44].mxu1 %v11111_v4 }
 0xc67   : > { %22058 = vrcp.f32 %v11073_v6 }
 0xc6a   : > { %v18893_v34 = vpop.f32.mrb[36].mxu1 }
 0xc6b   : > { %v11148_v19 = vpop.f32.mrb[37].mxu1 }
 0xc6c   : > { %v18894_v20 = vpop.f32.mrb[38].mxu1 }
 0xc6d   : > { %v22055_v23 = vpop.eup %22054  ;;  %v11228_v56 = vpack.c.bf16 %v18894_v20, %v18893_v34  ;;  %v11151_v25 = vpop.f32.mrb[39].mxu1  ;;  %v21252_v20 = vld [vmem:[#allocation15 + $0x108] ss:$16 sps:$4 sm:$0xff]  }
 0xc6e   : > { %v24665_v42 = vpack.c.bf16 %v11151_v25, %v11148_v19  ;;  %v11103_v28 = vmul.f32 %v22055_v23, %v22041_v39  ;;  %v22057_v61 = vpop.eup %22056  ;;  %v21215_v39 = vld [vmem:[#allocation15 + $0xec] ss:$16 sps:$4 sm:$0xff]   ;;  %v21255_v23 = vld [vmem:[#allocation15 + $0x128] ss:$16 sps:$4 sm:$0xff]  }
 0xc6f   : > { %18132 = vmatmul.mubr.msk.bf16.vlgmr.msra.gmra.mrb[52].mxu0 %vm10552_vm1, %v11228_v56  ;;  %v11104_v9 = vmul.f32 %v22057_v61, %v24653_v36  ;;  %v21219_v36 = vld [vmem:[#allocation15 + $0x20] ss:$16 sps:$4 sm:$0xff]   ;;  %v21254_v19 = vld [vmem:[#allocation15 + $0x10c] ss:$16 sps:$4 sm:$0xff]   ;;  %v21258_v25 = vld [vmem:[#allocation15 + $0x148] ss:$16 sps:$4 sm:$0xff]  }
 0xc70   : > { %11372 = vmatpush1.bf16.msra.mxu0 %v21204_v13  ;;  %v11112_v51 = vpack.c.bf16 %v11103_v28, %v11102_v16  ;;  %11403 = vmatprep.mubr.bf16.mxu0 %v22481_v0  ;;  %v21257_v13 = vld [vmem:[#allocation15 + $0x12c] ss:$16 sps:$4 sm:$0xff]   ;;  %v21266_v16 = vld [vmem:[#allocation15 + $0x184] ss:$16 sps:$4 sm:$0xff]   ;;  %v21264_v28 = vld [vmem:[#allocation15 + $0x180] ss:$16 sps:$4 sm:$0xff]  }
 0xc71   : > { %v22059_v55 = vpop.eup %22058  ;;  %11373 = vmatprep.subr.bf16.mxu0 %v21209_v27  ;;  %v21263_v27 = vld [vmem:[#allocation15 + $0x16c] ss:$16 sps:$4 sm:$0xff]   ;;  %v21269_v61 = vld [vmem:[#allocation15 + $0x1a4] ss:$16 sps:$4 sm:$0xff]  }
 0xc72   : > { %18903 = vmatprep.mubr.bf16.mxu1 %v11112_v51  ;;  %v11105_v1 = vmul.f32 %v22059_v55, %v24658_v47  ;;  %v21224_v47 = vld [vmem:[#allocation15 + $0x44] ss:$16 sps:$4 sm:$0xff]   ;;  %v21267_v51 = vld [vmem:[#allocation15 + $0x1a0] ss:$16 sps:$4 sm:$0xff]  }
 0xc73   : > { %v21270_v55 = vld [vmem:[#allocation15 + $0x1c0] ss:$16 sps:$4 sm:$0xff]  }
 0xc74   : > { %11374 = vmatpush1.bf16.msra.mxu0 %v21207_v18  ;;  %v11113_v17 = vpack.c.bf16 %v11105_v1, %v11104_v9  ;;  %v21272_v18 = vld [vmem:[#allocation15 + $0x1c4] ss:$16 sps:$4 sm:$0xff]   ;;  %v21273_v9 = vld [vmem:[#allocation15 + $0x1e0] ss:$16 sps:$4 sm:$0xff]   ;;  %v21278_v1 = vld [vmem:[#allocation15 + $0x18c] ss:$16 sps:$4 sm:$0xff]  }
 0xc75   : > { %11375 = vmatprep.subr.bf16.mxu0 %v21212_v21  ;;  %v21275_v21 = vld [vmem:[#allocation15 + $0x1e4] ss:$16 sps:$4 sm:$0xff]  }
 0xc76   : > { %18904 = vmatmul.mubr.bf16.gmra.mrb[48].mxu1 %v11113_v17  ;;  %v21276_v17 = vld [vmem:[#allocation15 + $0x188] ss:$16 sps:$4 sm:$0xff]  }
 0xc78   : > { %11376 = vmatpush1.bf16.msra.mxu0 %v21210_v15  ;;  %v21281_v15 = vld [vmem:[#allocation15 + $0x1ac] ss:$16 sps:$4 sm:$0xff]  }
 0xc79   : > { %11377 = vmatprep.subr.bf16.mxu0 %v21215_v39  ;;  %v21279_v39 = vld [vmem:[#allocation15 + $0x1a8] ss:$16 sps:$4 sm:$0xff]  }
 0xc7c   : > { %11378 = vmatpush1.bf16.msra.mxu0 %v21213_v41  ;;  %v21284_v41 = vld [vmem:[#allocation15 + $0x1cc] ss:$16 sps:$4 sm:$0xff]  }
 0xc7d   : > { %11497 = vmatprep.subr.bf16.mxu0 %v21218_v29  ;;  %v21282_v29 = vld [vmem:[#allocation15 + $0x1c8] ss:$16 sps:$4 sm:$0xff]  }
 0xc7f   : > { %18133 = vmatmul.mubr.msk.bf16.vlgmr.msra.gmra.mrb[56].mxu0 %vm10552_vm1, %v11228_v56  ;;  %v21260_v56 = vld [vmem:[#allocation15 + $0x14c] ss:$16 sps:$4 sm:$0xff]  }
 0xc80   : > { %11498 = vmatpush1.bf16.msra.mxu0 %v21216_v31  ;;  %11529 = vmatprep.mubr.bf16.mxu0 %v22481_v0  ;;  %v21287_v31 = vld [vmem:[#allocation15 + $0x1ec] ss:$16 sps:$4 sm:$0xff]  }
 0xc81   : > { %11499 = vmatprep.subr.bf16.mxu0 %v21221_v62  ;;  %v21285_v62 = vld [vmem:[#allocation15 + $0x1e8] ss:$16 sps:$4 sm:$0xff]  }
 0xc84   : > { %11500 = vmatpush1.bf16.msra.mxu0 %v21219_v36  ;;  %v21290_v36 = vld [vmem:[#allocation15 + $0x204] ss:$16 sps:$4 sm:$0xff]  }
 0xc85   : > { %11501 = vmatprep.subr.bf16.mxu0 %v21224_v47  ;;  %v21288_v47 = vld [vmem:[#allocation15 + $0x200] ss:$16 sps:$4 sm:$0xff]  }
 0xc88   : > { %11502 = vmatpush1.bf16.msra.mxu0 %v21222_v54  ;;  %v21293_v54 = vld [vmem:[#allocation15 + $0x224] ss:$16 sps:$4 sm:$0xff]  }
 0xc89   : > { %11503 = vmatprep.subr.bf16.mxu0 %v21227_v60  ;;  %v21291_v60 = vld [vmem:[#allocation15 + $0x220] ss:$16 sps:$4 sm:$0xff]  }
 0xc8c   : > { %11504 = vmatpush1.bf16.msra.mxu0 %v21225_v26  ;;  %v21296_v26 = vld [vmem:[#allocation15 + $0x244] ss:$16 sps:$4 sm:$0xff]  }
 0xc8d   : > { %11540 = vmatprep.subr.bf16.mxu0 %v21230_v50  ;;  %v21294_v50 = vld [vmem:[#allocation15 + $0x240] ss:$16 sps:$4 sm:$0xff]  }
 0xc8f   : > { %18150 = vmatmul.mubr.msk.bf16.vlgmr.msra.gmra.mrb[52].mxu0 %vm10552_vm1, %v24665_v42 }
 0xc90   : > { %11541 = vmatpush1.bf16.msra.mxu0 %v21228_v32  ;;  %11572 = vmatprep.mubr.bf16.mxu0 %v22481_v0  ;;  %v21299_v32 = vld [vmem:[#allocation15 + $0x264] ss:$16 sps:$4 sm:$0xff]  }
 0xc91   : > { %11542 = vmatprep.subr.bf16.mxu0 %v21233_v37  ;;  %v21297_v37 = vld [vmem:[#allocation15 + $0x260] ss:$16 sps:$4 sm:$0xff]  }
 0xc94   : > { %11543 = vmatpush1.bf16.msra.mxu0 %v21231_v33  ;;  %v21302_v33 = vld [vmem:[#allocation15 + $0x20c] ss:$16 sps:$4 sm:$0xff]  }
 0xc95   : > { %11544 = vmatprep.subr.bf16.mxu0 %v21236_v2 }
 0xc98   : > { %11545 = vmatpush1.bf16.msra.mxu0 %v21234_v52 }
 0xc99   : > { %11546 = vmatprep.subr.bf16.mxu0 %v21239_v63 }
 0xc9c   : > { %11547 = vmatpush1.bf16.msra.mxu0 %v21237_v24 }
 0xc9d   : > { %11683 = vmatprep.subr.bf16.mxu0 %v21242_v10 }
 0xc9f   : > { %18151 = vmatmul.mubr.msk.bf16.vlgmr.msra.gmra.mrb[56].mxu0 %vm10552_vm1, %v24665_v42  ;;  %v21261_v42 = vld [vmem:[#allocation15 + $0x168] ss:$16 sps:$4 sm:$0xff]  }
 0xca0   : > { %11684 = vmatpush1.bf16.msra.mxu0 %v21240_v53  ;;  %11715 = vmatprep.mubr.bf16.mxu0 %v22481_v0  ;;  %v21300_v53 = vld [vmem:[#allocation15 + $0x208] ss:$16 sps:$4 sm:$0xff]  }
 0xca1   : > { %11685 = vmatprep.subr.bf16.mxu0 %v21245_v58 }
 0xca4   : > { %11686 = vmatpush1.bf16.msra.mxu0 %v21243_v38  ;;  %v18897_v43 = vpop.f32.mrb[40].mxu1  ;;  %v21305_v38 = vld [vmem:[#allocation15 + $0x22c] ss:$16 sps:$4 sm:$0xff]  }
 0xca5   : > { %v11164_v30 = vpop.f32.mrb[41].mxu1  ;;  %11687 = vmatprep.subr.bf16.mxu0 %v21248_v22  ;;  %v21303_v22 = vld [vmem:[#allocation15 + $0x228] ss:$16 sps:$4 sm:$0xff]  }
 0xca6   : > { %v18898_v35 = vpop.f32.mrb[42].mxu1 }
 0xca7   : > { %v24680_v4 = vpack.c.bf16 %v18898_v35, %v18897_v43  ;;  %v11167_v6 = vpop.f32.mrb[43].mxu1  ;;  %v21308_v43 = vld [vmem:[#allocation15 + $0x24c] ss:$16 sps:$4 sm:$0xff]   ;;  %v21309_v35 = vld [vmem:[#allocation15 + $0x268] ss:$16 sps:$4 sm:$0xff]  }
 0xca8   : > { %v11583_v34 = vpack.c.bf16 %v11167_v6, %v11164_v30  ;;  %11688 = vmatpush1.bf16.msra.mxu0 %v21246_v40  ;;  %v21306_v40 = vld [vmem:[#allocation15 + $0x248] ss:$16 sps:$4 sm:$0xff]   ;;  %v21311_v30 = vld [vmem:[#allocation15 + $0x26c] ss:$16 sps:$4 sm:$0xff]   ;;  %v21314_v6 = vld [vmem:[#allocation15 + $0x284] ss:$16 sps:$4 sm:$0xff]  }
 0xca9   : > { %11689 = vmatprep.subr.bf16.mxu0 %v21251_v48 }
 0xcac   : > { %11690 = vmatpush1.bf16.msra.mxu0 %v21249_v12 }
 0xcad   : > { %11726 = vmatprep.subr.bf16.mxu0 %v21254_v19 }
 0xcaf   : > { %18168 = vmatmul.mubr.msk.bf16.vlgmr.msra.gmra.mrb[52].mxu0 %vm10552_vm1, %v11583_v34 }
 0xcb0   : > { %11727 = vmatpush1.bf16.msra.mxu0 %v21252_v20  ;;  %11758 = vmatprep.mubr.bf16.mxu0 %v22481_v0 }
 0xcb1   : > { %11728 = vmatprep.subr.bf16.mxu0 %v21257_v13  ;;  %v21312_v13 = vld [vmem:[#allocation15 + $0x280] ss:$16 sps:$4 sm:$0xff]  }
 0xcb4   : > { %11729 = vmatpush1.bf16.msra.mxu0 %v21255_v23  ;;  %v21317_v23 = vld [vmem:[#allocation15 + $0x2a4] ss:$16 sps:$4 sm:$0xff]  }
 0xcb5   : > { %11730 = vmatprep.subr.bf16.mxu0 %v21260_v56  ;;  %v21315_v56 = vld [vmem:[#allocation15 + $0x2a0] ss:$16 sps:$4 sm:$0xff]  }
 0xcb8   : > { %11731 = vmatpush1.bf16.msra.mxu0 %v21258_v25  ;;  %v21320_v25 = vld [vmem:[#allocation15 + $0x2c4] ss:$16 sps:$4 sm:$0xff]  }
 0xcb9   : > { %11732 = vmatprep.subr.bf16.mxu0 %v21263_v27  ;;  %v21318_v27 = vld [vmem:[#allocation15 + $0x2c0] ss:$16 sps:$4 sm:$0xff]  }
 0xcbc   : > { %11733 = vmatpush1.bf16.msra.mxu0 %v21261_v42  ;;  %v21323_v42 = vld [vmem:[#allocation15 + $0x2e4] ss:$16 sps:$4 sm:$0xff]  }
 0xcbd   : > { %11877 = vmatprep.subr.bf16.mxu0 %v21266_v16  ;;  %v21321_v16 = vld [vmem:[#allocation15 + $0x2e0] ss:$16 sps:$4 sm:$0xff]  }
 0xcbf   : > { %18169 = vmatmul.mubr.msk.bf16.vlgmr.msra.gmra.mrb[56].mxu0 %vm10552_vm1, %v11583_v34 }
 0xcc0   : > { %11878 = vmatpush1.bf16.msra.mxu0 %v21264_v28  ;;  %11909 = vmatprep.mubr.bf16.mxu0 %v22481_v0  ;;  %v21326_v28 = vld [vmem:[#allocation15 + $0x28c] ss:$16 sps:$4 sm:$0xff]  }
 0xcc1   : > { %11879 = vmatprep.subr.bf16.mxu0 %v21269_v61  ;;  %v21324_v61 = vld [vmem:[#allocation15 + $0x288] ss:$16 sps:$4 sm:$0xff]  }
 0xcc4   : > { %11880 = vmatpush1.bf16.msra.mxu0 %v21267_v51  ;;  %v21329_v51 = vld [vmem:[#allocation15 + $0x2ac] ss:$16 sps:$4 sm:$0xff]  }
 0xcc5   : > { %11881 = vmatprep.subr.bf16.mxu0 %v21272_v18  ;;  %v21327_v18 = vld [vmem:[#allocation15 + $0x2a8] ss:$16 sps:$4 sm:$0xff]  }
 0xcc8   : > { %11882 = vmatpush1.bf16.msra.mxu0 %v21270_v55  ;;  %v21332_v55 = vld [vmem:[#allocation15 + $0x2cc] ss:$16 sps:$4 sm:$0xff]  }
 0xcc9   : > { %11883 = vmatprep.subr.bf16.mxu0 %v21275_v21  ;;  %v21330_v21 = vld [vmem:[#allocation15 + $0x2c8] ss:$16 sps:$4 sm:$0xff]  }
 0xccc   : > { %11884 = vmatpush1.bf16.msra.mxu0 %v21273_v9  ;;  %v21335_v9 = vld [vmem:[#allocation15 + $0x2ec] ss:$16 sps:$4 sm:$0xff]  }
 0xccd   : > { %11920 = vmatprep.subr.bf16.mxu0 %v21278_v1  ;;  %v21333_v1 = vld [vmem:[#allocation15 + $0x2e8] ss:$16 sps:$4 sm:$0xff]  }
 0xccf   : > { %18186 = vmatmul.mubr.msk.bf16.vlgmr.msra.gmra.mrb[52].mxu0 %vm10552_vm1, %v24680_v4 }
 0xcd0   : > { %11921 = vmatpush1.bf16.msra.mxu0 %v21276_v17  ;;  %11952 = vmatprep.mubr.bf16.mxu0 %v22481_v0  ;;  %v21338_v17 = vld [vmem:[#allocation15 + $0x304] ss:$16 sps:$4 sm:$0xff]  }
 0xcd1   : > { %11922 = vmatprep.subr.bf16.mxu0 %v21281_v15  ;;  %v21336_v15 = vld [vmem:[#allocation15 + $0x300] ss:$16 sps:$4 sm:$0xff]  }
 0xcd4   : > { %11923 = vmatpush1.bf16.msra.mxu0 %v21279_v39  ;;  %v21341_v39 = vld [vmem:[#allocation15 + $0x324] ss:$16 sps:$4 sm:$0xff]  }
 0xcd5   : > { %11924 = vmatprep.subr.bf16.mxu0 %v21284_v41  ;;  %v21339_v41 = vld [vmem:[#allocation15 + $0x320] ss:$16 sps:$4 sm:$0xff]  }
 0xcd8   : > { %11925 = vmatpush1.bf16.msra.mxu0 %v21282_v29  ;;  %v21344_v29 = vld [vmem:[#allocation15 + $0x344] ss:$16 sps:$4 sm:$0xff]  }
 0xcd9   : > { %11926 = vmatprep.subr.bf16.mxu0 %v21287_v31  ;;  %v21342_v31 = vld [vmem:[#allocation15 + $0x340] ss:$16 sps:$4 sm:$0xff]  }
 0xcdc   : > { %11927 = vmatpush1.bf16.msra.mxu0 %v21285_v62  ;;  %v21347_v62 = vld [vmem:[#allocation15 + $0x364] ss:$16 sps:$4 sm:$0xff]  }
 0xcdd   : > { %12071 = vmatprep.subr.bf16.mxu0 %v21290_v36  ;;  %v21345_v36 = vld [vmem:[#allocation15 + $0x360] ss:$16 sps:$4 sm:$0xff]  }
 0xcdf   : > { %18187 = vmatmul.mubr.msk.bf16.vlgmr.msra.gmra.mrb[56].mxu0 %vm10552_vm1, %v24680_v4 }
 0xce0   : > { %12072 = vmatpush1.bf16.msra.mxu0 %v21288_v47  ;;  %12103 = vmatprep.mubr.bf16.mxu0 %v22481_v0  ;;  %v21350_v47 = vld [vmem:[#allocation15 + $0x30c] ss:$16 sps:$4 sm:$0xff]  }
 0xce1   : > { %12073 = vmatprep.subr.bf16.mxu0 %v21293_v54  ;;  %v21348_v54 = vld [vmem:[#allocation15 + $0x308] ss:$16 sps:$4 sm:$0xff]  }
 0xce4   : > { %12074 = vmatpush1.bf16.msra.mxu0 %v21291_v60  ;;  %v21353_v60 = vld [vmem:[#allocation15 + $0x32c] ss:$16 sps:$4 sm:$0xff]  }
 0xce5   : > { %12075 = vmatprep.subr.bf16.mxu0 %v21296_v26  ;;  %v21351_v26 = vld [vmem:[#allocation15 + $0x328] ss:$16 sps:$4 sm:$0xff]  }
 0xce8   : > { %12076 = vmatpush1.bf16.msra.mxu0 %v21294_v50  ;;  %v21356_v50 = vld [vmem:[#allocation15 + $0x34c] ss:$16 sps:$4 sm:$0xff]  }
 0xce9   : > { %12077 = vmatprep.subr.bf16.mxu0 %v21299_v32  ;;  %v21354_v32 = vld [vmem:[#allocation15 + $0x348] ss:$16 sps:$4 sm:$0xff]  }
 0xcec   : > { %12078 = vmatpush1.bf16.msra.mxu0 %v21297_v37  ;;  %v21359_v37 = vld [vmem:[#allocation15 + $0x36c] ss:$16 sps:$4 sm:$0xff]  }
 0xced   : > { %12114 = vmatprep.subr.bf16.mxu0 %v21302_v33  ;;  %v21357_v33 = vld [vmem:[#allocation15 + $0x368] ss:$16 sps:$4 sm:$0xff]  }
 0xd39   : > { %v18901_v2 = vpop.f32.mrb[44].mxu1 }
 0xd3a   : > { %v11180_v52 = vpop.f32.mrb[45].mxu1 }
 0xd3b   : > { %v18902_v63 = vpop.f32.mrb[46].mxu1 }
 0xd3c   : > { %v24692_v24 = vpack.c.bf16 %v18902_v63, %v18901_v2  ;;  %v11183_v10 = vpop.f32.mrb[47].mxu1  ;;  %v21362_v2 = vld [vmem:[#allocation15 + $0x384] ss:$16 sps:$4 sm:$0xff]  }
 0xd3d   : > { %v11971_v58 = vpack.c.bf16 %v11183_v10, %v11180_v52  ;;  %v21360_v52 = vld [vmem:[#allocation15 + $0x380] ss:$16 sps:$4 sm:$0xff]   ;;  %v21365_v63 = vld [vmem:[#allocation15 + $0x3a4] ss:$16 sps:$4 sm:$0xff]  }
 0xd3e   : > { %v21368_v10 = vld [vmem:[#allocation15 + $0x3c4] ss:$16 sps:$4 sm:$0xff]  }
 0xd3f   : > { %18204 = vmatmul.mubr.msk.bf16.vlgmr.msra.gmra.mrb[52].mxu0 %vm10552_vm1, %v11971_v58 }
 0xd40   : > { %12115 = vmatpush1.bf16.msra.mxu0 %v21300_v53  ;;  %12146 = vmatprep.mubr.bf16.mxu0 %v22481_v0  ;;  %v21366_v53 = vld [vmem:[#allocation15 + $0x3c0] ss:$16 sps:$4 sm:$0xff]  }
 0xd41   : > { %12116 = vmatprep.subr.bf16.mxu0 %v21305_v38  ;;  %v21369_v38 = vld [vmem:[#allocation15 + $0x3e0] ss:$16 sps:$4 sm:$0xff]  }
 0xd44   : > { %12117 = vmatpush1.bf16.msra.mxu0 %v21303_v22  ;;  %v21374_v22 = vld [vmem:[#allocation15 + $0x38c] ss:$16 sps:$4 sm:$0xff]  }
 0xd45   : > { %12118 = vmatprep.subr.bf16.mxu0 %v21308_v43  ;;  %v21372_v43 = vld [vmem:[#allocation15 + $0x388] ss:$16 sps:$4 sm:$0xff]  }
 0xd48   : > { %12119 = vmatpush1.bf16.msra.mxu0 %v21306_v40  ;;  %v21377_v40 = vld [vmem:[#allocation15 + $0x3ac] ss:$16 sps:$4 sm:$0xff]  }
 0xd49   : > { %v18905_v48 = vpop.f32.mrb[48].mxu1  ;;  %12120 = vmatprep.subr.bf16.mxu0 %v21311_v30  ;;  %v21375_v30 = vld [vmem:[#allocation15 + $0x3a8] ss:$16 sps:$4 sm:$0xff]  }
 0xd4a   : > { %v11196_v4 = vpop.f32.mrb[49].mxu1 }
 0xd4b   : > { %v18906_v34 = vpop.f32.mrb[50].mxu1 }
 0xd4c   : > { %v24696_v12 = vpack.c.bf16 %v18906_v34, %v18905_v48  ;;  %v11199_v19 = vpop.f32.mrb[51].mxu1  ;;  %12121 = vmatpush1.bf16.msra.mxu0 %v21309_v35  ;;  %v21380_v48 = vld [vmem:[#allocation15 + $0x3cc] ss:$16 sps:$4 sm:$0xff]   ;;  %v21378_v35 = vld [vmem:[#allocation15 + $0x3c8] ss:$16 sps:$4 sm:$0xff]  }
 0xd4d   : > { %v24698_v20 = vpack.c.bf16 %v11199_v19, %v11196_v4  ;;  %12265 = vmatprep.subr.bf16.mxu0 %v21314_v6  ;;  %v21383_v4 = vld [vmem:[#allocation15 + $0x3ec] ss:$16 sps:$4 sm:$0xff]   ;;  %v21381_v6 = vld [vmem:[#allocation15 + $0x3e8] ss:$16 sps:$4 sm:$0xff]  }
 0xd4f   : > { %18205 = vmatmul.mubr.msk.bf16.vlgmr.msra.gmra.mrb[56].mxu0 %vm10552_vm1, %v11971_v58  ;;  %v21371_v58 = vld [vmem:[#allocation15 + $0x3e4] ss:$16 sps:$4 sm:$0xff]  }
 0xd50   : > { %12266 = vmatpush1.bf16.msra.mxu0 %v21312_v13  ;;  %12297 = vmatprep.mubr.bf16.mxu0 %v22481_v0 }
 0xd51   : > { %12267 = vmatprep.subr.bf16.mxu0 %v21317_v23  ;;  %v12747_v23 = vld [vmem:[%s25352_s11 + $0x21] sm:$0xf] }
 0xd54   : > { %12268 = vmatpush1.bf16.msra.mxu0 %v21315_v56  ;;  %v12752_v56 = vrot.slane %v12747_v23, %v22942_v44 }
 0xd55   : > { %12269 = vmatprep.subr.bf16.mxu0 %v21320_v25  ;;  %v12756_v25 = vrot.slane %v12747_v23, %v22948_v45 }
 0xd58   : > { %12270 = vmatpush1.bf16.msra.mxu0 %v21318_v27 }
 0xd59   : > { %12271 = vmatprep.subr.bf16.mxu0 %v21323_v42 }
 0xd5c   : > { %12272 = vmatpush1.bf16.msra.mxu0 %v21321_v16 }
 0xd5d   : > { %12308 = vmatprep.subr.bf16.mxu0 %v21326_v28 }
 0xd5f   : > { %18222 = vmatmul.mubr.msk.bf16.vlgmr.msra.gmra.mrb[52].mxu0 %vm10552_vm1, %v24692_v24 }
 0xd60   : > { %12309 = vmatpush1.bf16.msra.mxu0 %v21324_v61  ;;  %12340 = vmatprep.mubr.bf16.mxu0 %v22481_v0  ;;  %v12760_v61 = vrot.slane %v12747_v23, %v22945_v11 }
 0xd61   : > { %12310 = vmatprep.subr.bf16.mxu0 %v21329_v51 }
 0xd64   : > { %12311 = vmatpush1.bf16.msra.mxu0 %v21327_v18 }
 0xd65   : > { %12312 = vmatprep.subr.bf16.mxu0 %v21332_v55 }
 0xd68   : > { %12313 = vmatpush1.bf16.msra.mxu0 %v21330_v21 }
 0xd69   : > { %12314 = vmatprep.subr.bf16.mxu0 %v21335_v9 }
 0xd6c   : > { %12315 = vmatpush1.bf16.msra.mxu0 %v21333_v1 }
 0xd6d   : > { %12459 = vmatprep.subr.bf16.mxu0 %v21338_v17 }
 0xd6f   : > { %18223 = vmatmul.mubr.msk.bf16.vlgmr.msra.gmra.mrb[56].mxu0 %vm10552_vm1, %v24692_v24  ;;  %v21363_v24 = vld [vmem:[#allocation15 + $0x3a0] ss:$16 sps:$4 sm:$0xff]  }
 0xd70   : > { %12460 = vmatpush1.bf16.msra.mxu0 %v21336_v15  ;;  %12491 = vmatprep.mubr.bf16.mxu0 %v22481_v0 }
 0xd71   : > { %12461 = vmatprep.subr.bf16.mxu0 %v21341_v39 }
 0xd74   : > { %12462 = vmatpush1.bf16.msra.mxu0 %v21339_v41 }
 0xd75   : > { %12463 = vmatprep.subr.bf16.mxu0 %v21344_v29 }
 0xd78   : > { %12464 = vmatpush1.bf16.msra.mxu0 %v21342_v31 }
 0xd79   : > { %12465 = vmatprep.subr.bf16.mxu0 %v21347_v62 }
 0xd7c   : > { %12466 = vmatpush1.bf16.msra.mxu0 %v21345_v36 }
 0xd7d   : > { %12502 = vmatprep.subr.bf16.mxu0 %v21350_v47 }
 0xd7f   : > { %18240 = vmatmul.mubr.msk.bf16.vlgmr.msra.gmra.mrb[52].mxu0 %vm10552_vm1, %v24698_v20 }
 0xd80   : > { %12503 = vmatpush1.bf16.msra.mxu0 %v21348_v54  ;;  %12534 = vmatprep.mubr.bf16.mxu0 %v22481_v0 }
 0xd81   : > { %12504 = vmatprep.subr.bf16.mxu0 %v21353_v60 }
 0xd84   : > { %12505 = vmatpush1.bf16.msra.mxu0 %v21351_v26 }
 0xd85   : > { %12506 = vmatprep.subr.bf16.mxu0 %v21356_v50 }
 0xd88   : > { %12507 = vmatpush1.bf16.msra.mxu0 %v21354_v32 }
 0xd89   : > { %12508 = vmatprep.subr.bf16.mxu0 %v21359_v37 }
 0xd8c   : > { %12509 = vmatpush1.bf16.msra.mxu0 %v21357_v33 }
 0xd8d   : > { %12653 = vmatprep.subr.bf16.mxu0 %v21362_v2 }
 0xd8f   : > { %18241 = vmatmul.mubr.msk.bf16.vlgmr.msra.gmra.mrb[56].mxu0 %vm10552_vm1, %v24698_v20 }
 0xd90   : > { %12654 = vmatpush1.bf16.msra.mxu0 %v21360_v52  ;;  %12685 = vmatprep.mubr.bf16.mxu0 %v22481_v0 }
 0xd91   : > { %12655 = vmatprep.subr.bf16.mxu0 %v21365_v63 }
 0xd94   : > { %12656 = vmatpush1.bf16.msra.mxu0 %v21363_v24 }
 0xd95   : > { %12657 = vmatprep.subr.bf16.mxu0 %v21368_v10 }
 0xd98   : > { %12658 = vmatpush1.bf16.msra.mxu0 %v21366_v53 }
 0xd99   : > { %12659 = vmatprep.subr.bf16.mxu0 %v21371_v58 }
 0xd9c   : > { %12660 = vmatpush1.bf16.msra.mxu0 %v21369_v38 }
 0xd9d   : > { %12696 = vmatprep.subr.bf16.mxu0 %v21374_v22 }
 0xd9f   : > { %18258 = vmatmul.mubr.msk.bf16.vlgmr.msra.gmra.mrb[52].mxu0 %vm10552_vm1, %v24696_v12 }
 0xda0   : > { %12697 = vmatpush1.bf16.msra.mxu0 %v21372_v43  ;;  %12728 = vmatprep.mubr.bf16.mxu0 %v22481_v0 }
 0xda1   : > { %12698 = vmatprep.subr.bf16.mxu0 %v21377_v40 }
 0xda4   : > { %12699 = vmatpush1.bf16.msra.mxu0 %v21375_v30 }
 0xda5   : > { %12700 = vmatprep.subr.bf16.mxu0 %v21380_v48 }
 0xda8   : > { %12701 = vmatpush1.bf16.msra.mxu0 %v21378_v35 }
 0xda9   : > { %12702 = vmatprep.subr.bf16.mxu0 %v21383_v4 }
 0xdac   : > { %12703 = vmatpush1.bf16.msra.mxu0 %v21381_v6 }
 0xdaf   : > { %18259 = vmatmul.mubr.msk.bf16.vlgmr.msra.gmra.mrb[56].mxu0 %vm10552_vm1, %v24696_v12  ;;  %v12764_v12 = vrot.slane %v12747_v23, %v22951_v46 }
 0xe72   : > { %v12687_v34 = vpop.f32.mrb[52].mxu0 }
 0xe73   : > { %v12689_v19 = vpop.f32.mrb[53].mxu0  ;;  %v12769_v27 = vadd.f32 %v12752_v56, %v12687_v34 }
 0xe74   : > { %v12691_v20 = vpop.f32.mrb[54].mxu0  ;;  %v12770_v42 = vadd.f32 %v12756_v25, %v12689_v19 }
 0xe75   : > { %v12693_v13 = vpop.f32.mrb[55].mxu0  ;;  %v12773_v16 = vadd.f32 %v12752_v56, %v12691_v20  ;;  %v12777_v51 = vadd.f32 %v12769_v27, %v23297_v57  ;;  %v21389_v27 = vld [vmem:[%s25281_s12 + $0x10] sm:$0xff]  }
 0xe76   : > { %v12774_v28 = vadd.f32 %v12756_v25, %v12693_v13  ;;  %v12778_v18 = vadd.f32 %v12770_v42, %v23290_v5  ;;  %v21388_v25 = vld [vmem:[%s25281_s12 + $0x50] sm:$0xff]   ;;  %v21390_v42 = vld [vmem:[%s25281_s12 + $0x58] sm:$0xff]  }
 0xe77   : > { %v12781_v21 = vadd.f32 %v12773_v16, %v23288_v3  ;;  %v21391_v16 = vld [vmem:[%s25281_s12 + $0x18] sm:$0xff]  }
 0xe78   : > { %v12782_v9 = vadd.f32 %v12774_v28, %v23295_v7  ;;  %v12787_v41 = vadd.f32 %v12778_v18, %v12777_v51  ;;  %v21392_v28 = vld [vmem:[%s25281_s12 + $0x60] sm:$0xff]  }
 0xe7a   : > { %v12792_v57 = vadd.f32 %v12782_v9, %v12781_v21 }
 0xe82   : > { %v12730_v55 = vpop.f32.mrb[56].mxu0 }
 0xe83   : > { %v12771_v1 = vadd.f32 %v12760_v61, %v12730_v55  ;;  %v12732_v17 = vpop.f32.mrb[57].mxu0  ;;  %v21397_v55 = vld [vmem:[%s25281_s12 + $0x30] sm:$0xff]  }
 0xe84   : > { %v12772_v15 = vadd.f32 %v12764_v12, %v12732_v17  ;;  %v12734_v39 = vpop.f32.mrb[58].mxu0 }
 0xe85   : > { %v12779_v29 = vadd.f32 %v12771_v1, %v23525_v59  ;;  %v12775_v31 = vadd.f32 %v12760_v61, %v12734_v39  ;;  %v12736_v62 = vpop.f32.mrb[59].mxu0  ;;  %v21384_v59 = vld [vmem:[%s25281_s12 + $0x40] sm:$0xff]  }
 0xe86   : > { %v12780_v36 = vadd.f32 %v12772_v15, %v23311_v14  ;;  %v12776_v47 = vadd.f32 %v12764_v12, %v12736_v62  ;;  %v21385_v14 = vld [vmem:[%s25281_s12] sm:$0xff]   ;;  %18711 = vmatprep.subr.bf16.mxu1 %v21384_v59  ;;  %v21394_v12 = vld [vmem:[%s25281_s12 + $0x68] sm:$0xff]  }
 0xe87   : > { %v12783_v5 = vadd.f32 %v12775_v31, %v23517_v49  ;;  %v12788_v54 = vadd.f32 %v12787_v41, %v12779_v29  ;;  %v21386_v49 = vld [vmem:[%s25281_s12 + $0x48] sm:$0xff]   ;;  %18712 = vmatpush3.bf16.msra.mxu1 %v21385_v14  ;;  %v21393_v61 = vld [vmem:[%s25281_s12 + $0x20] sm:$0xff]  }
 0xe88   : > { %v12784_v3 = vadd.f32 %v12776_v47, %v23299_v8  ;;  %v21387_v8 = vld [vmem:[%s25281_s12 + $0x8] sm:$0xff]   ;;  %18713 = vmatprep.subr.bf16.mxu1 %v21386_v49  ;;  %v21400_v1 = vld [vmem:[%s25281_s12 + $0xc0] sm:$0xff]  }
 0xe89   : > { %v12789_v60 = vadd.f32 %v12788_v54, %v12780_v36  ;;  %v12793_v7 = vadd.f32 %v12792_v57, %v12783_v5  ;;  %v12785_v62 = vld [vmem:[%s25352_s11 + $0x25] sm:$0xf] }
 0xe8a   : > { %v12848_v47 = vrot.slane %v12785_v62, %v22948_v45  ;;  %v12844_v57 = vrot.slane %v12785_v62, %v22942_v44 }
 0xe8b   : > { %12790 = vadd.xlane.f32.xlu1 %v12789_v60  ;;  %v12794_v26 = vadd.f32 %v12793_v7, %v12784_v3  ;;  %18714 = vmatpush3.bf16.msra.mxu1 %v21387_v8  ;;  %v12856_v7 = vrot.slane %v12785_v62, %v22951_v46 }
 0xe8c   : > { %18715 = vmatprep.subr.bf16.mxu1 %v21388_v25  ;;  %v21408_v25 = vld [vmem:[%s25281_s12 + $0xe0] sm:$0xff]  }
 0xe8d   : > { %12795 = vadd.xlane.f32.xlu0 %v12794_v26 }
 0xe8f   : > { %18716 = vmatpush3.bf16.msra.mxu1 %v21389_v27  ;;  %v21409_v27 = vld [vmem:[%s25281_s12 + $0xa0] sm:$0xff]  }
 0xe90   : > { %18717 = vmatprep.subr.bf16.mxu1 %v21390_v42  ;;  %v21410_v42 = vld [vmem:[%s25281_s12 + $0xe8] sm:$0xff]  }
 0xe93   : > { %18718 = vmatpush3.bf16.msra.mxu1 %v21391_v16  ;;  %v21411_v16 = vld [vmem:[%s25281_s12 + $0xa8] sm:$0xff]  }
 0xe94   : > { %18719 = vmatprep.subr.bf16.mxu1 %v21392_v28  ;;  %v21412_v28 = vld [vmem:[%s25281_s12 + $0xf0] sm:$0xff]  }
 0xe97   : > { %18720 = vmatpush3.bf16.msra.mxu1 %v21393_v61 }
 0xe98   : > { %18721 = vmatprep.subr.bf16.mxu1 %v21394_v12 }
 0xf18   : > { %v12791_v50 = vpop.xlane.xlu1 %12790 }
 0xf19   : > { %v12798_v32 = vmul.f32 0.001953125, %v12791_v50 }
 0xf1a   : > { %v12796_v37 = vpop.xlane.xlu0 %12795 }
 0xf1b   : > { %v24746_v33 = vsub.f32 %v12777_v51, %v12798_v32  ;;  %v24748_v2 = vsub.f32 %v12778_v18, %v12798_v32  ;;  %v12799_v52 = vmul.f32 0.001953125, %v12796_v37  ;;  %v24750_v63 = vsub.f32 %v12779_v29, %v12798_v32  ;;  %v21395_v51 = vld [vmem:[%s25281_s12 + $0x28] sm:$0xff]   ;;  %v21396_v18 = vld [vmem:[%s25281_s12 + $0x70] sm:$0xff]  }
 0xf1c   : > { %v12803_v24 = vsub.f32 %v12780_v36, %v12798_v32  ;;  %18722 = vmatpush3.bf16.msra.mxu1 %v21395_v51  ;;  %v24819_v36 = vld [vmem:[%s25352_s11 + $0x29] sm:$0xf]  ;;  %v12852_v51 = vrot.slane %v12785_v62, %v22945_v11  ;;  %v21424_v62 = vld [vmem:[#allocation17 + $0x44] ss:$16 sps:$4 sm:$0xff]  }
 0xf1d   : > { %v24752_v10 = vsub.f32 %v12781_v21, %v12799_v52  ;;  %v24754_v53 = vsub.f32 %v12782_v9, %v12799_v52  ;;  %v12808_v58 = vmul.f32 %v24746_v33, %v24746_v33  ;;  %v12809_v38 = vmul.f32 %v24748_v2, %v24748_v2  ;;  %18723 = vmatprep.subr.bf16.mxu1 %v21396_v18  ;;  %v21398_v21 = vld [vmem:[%s25281_s12 + $0x78] sm:$0xff]   ;;  %v21413_v18 = vld [vmem:[%s25281_s12 + $0xb0] sm:$0xff]  }
 0xf1e   : > { %v12810_v22 = vmul.f32 %v24750_v63, %v24750_v63  ;;  %v24762_v43 = vsub.f32 %v12783_v5, %v12799_v52  ;;  %v24764_v30 = vsub.f32 %v12784_v3, %v12799_v52  ;;  %v12811_v4 = vmul.f32 %v12803_v24, %v12803_v24  ;;  %v21399_v9 = vld [vmem:[%s25281_s12 + $0x38] sm:$0xff]  }
 0xf1f   : > { %v12816_v40 = vadd.f32 %v12809_v38, %v12808_v58  ;;  %v12812_v48 = vmul.f32 %v24752_v10, %v24752_v10  ;;  %v12813_v35 = vmul.f32 %v24754_v53, %v24754_v53  ;;  %v12877_v59 = vrot.slane %v24819_v36, %v22948_v45 }
 0xf20   : > { %v12814_v34 = vmul.f32 %v24762_v43, %v24762_v43  ;;  %v12815_v13 = vmul.f32 %v24764_v30, %v24764_v30  ;;  %18724 = vmatpush3.bf16.msra.mxu1 %v21397_v55  ;;  %v12873_v14 = vrot.slane %v24819_v36, %v22942_v44  ;;  %v21414_v55 = vld [vmem:[%s25281_s12 + $0xf8] sm:$0xff]  }
 0xf21   : > { %v12817_v6 = vadd.f32 %v12816_v40, %v12810_v22  ;;  %v12821_v19 = vadd.f32 %v12813_v35, %v12812_v48  ;;  %18725 = vmatprep.subr.bf16.mxu1 %v21398_v21  ;;  %v21401_v35 = vld [vmem:[%s25281_s12 + $0x80] sm:$0xff]  }
 0xf23   : > { %v12818_v20 = vadd.f32 %v12817_v6, %v12811_v4  ;;  %v12822_v23 = vadd.f32 %v12821_v19, %v12814_v34  ;;  %v21402_v6 = vld [vmem:[%s25281_s12 + $0xc8] sm:$0xff]  }
 0xf24   : > { %18726 = vmatpush3.bf16.msra.mxu1 %v21399_v9  ;;  %v21403_v19 = vld [vmem:[%s25281_s12 + $0x88] sm:$0xff]  }
 0xf25   : > { %12819 = vadd.xlane.f32.xlu1 %v12818_v20  ;;  %v12823_v56 = vadd.f32 %v12822_v23, %v12815_v13  ;;  %18733 = vmatprep.subr.bf16.mxu1 %v21400_v1  ;;  %v21404_v20 = vld [vmem:[%s25281_s12 + $0xd0] sm:$0xff]   ;;  %v21406_v23 = vld [vmem:[%s25281_s12 + $0xd8] sm:$0xff]   ;;  %v12881_v1 = vrot.slane %v24819_v36, %v22945_v11 }
 0xf26   : > { %v21405_v13 = vld [vmem:[%s25281_s12 + $0x90] sm:$0xff]  }
 0xf27   : > { %12824 = vadd.xlane.f32.xlu0 %v12823_v56  ;;  %v21407_v56 = vld [vmem:[%s25281_s12 + $0x98] sm:$0xff]  }
 0xfb2   : > { %v12820_v17 = vpop.xlane.xlu1 %12819 }
 0xfb3   : > { %v12826_v15 = vmul.f32 0.001953125, %v12820_v17 }
 0xfb4   : > { %v12825_v39 = vpop.xlane.xlu0 %12824 }
 0xfb5   : > { %v12828_v41 = vadd.f32 1e-05, %v12826_v15  ;;  %v12827_v29 = vmul.f32 0.001953125, %v12825_v39  ;;  %v21416_v39 = vld [vmem:[#allocation17] ss:$16 sps:$4 sm:$0xff]  }
 0xfb7   : > { %22060 = vrsqrt.f32 %v12828_v41  ;;  %v12829_v31 = vadd.f32 1e-05, %v12827_v29  ;;  %v21418_v41 = vld [vmem:[#allocation17 + $0x4] ss:$16 sps:$4 sm:$0xff]  }
 0xfb8   : > { %v21421_v29 = vld [vmem:[#allocation17 + $0x24] ss:$16 sps:$4 sm:$0xff]  }
 0xfb9   : > { %22062 = vrsqrt.f32 %v12829_v31  ;;  %v21419_v31 = vld [vmem:[#allocation17 + $0x20] ss:$16 sps:$4 sm:$0xff]  }
 0xfc1   : > { %v22061_v5 = vpop.eup %22060 }
 0xfc2   : > { %v12833_v54 = vmul.f32 %v22061_v5, %v24748_v2  ;;  %v12832_v3 = vmul.f32 %v22061_v5, %v24746_v33  ;;  %v12835_v60 = vmul.f32 %v22061_v5, %v12803_v24  ;;  %v12885_v24 = vrot.slane %v24819_v36, %v22951_v46  ;;  %v21422_v36 = vld [vmem:[#allocation17 + $0x40] ss:$16 sps:$4 sm:$0xff]  }
 0xfc3   : > { %v22063_v26 = vpop.eup %22062  ;;  %v12834_v12 = vmul.f32 %v22061_v5, %v24750_v63  ;;  %v21415_v63 = vld [vmem:[%s25281_s12 + $0xb8] sm:$0xff]   ;;  %v21430_v5 = vld [vmem:[#allocation17 + $0x84] ss:$16 sps:$4 sm:$0xff]  }
 0xfc4   : > { %v12837_v49 = vmul.f32 %v22063_v26, %v24754_v53  ;;  %v12862_v8 = vmul.f32 %v12848_v47, %v12833_v54  ;;  %v12836_v50 = vmul.f32 %v22063_v26, %v24752_v10  ;;  %v12861_v32 = vmul.f32 %v12844_v57, %v12832_v3  ;;  %v21428_v54 = vld [vmem:[#allocation17 + $0x80] ss:$16 sps:$4 sm:$0xff]   ;;  %v21433_v3 = vld [vmem:[#allocation17 + $0xa4] ss:$16 sps:$4 sm:$0xff]  }
 0xfc5   : > { %v12839_v37 = vmul.f32 %v22063_v26, %v24764_v30  ;;  %v12864_v52 = vmul.f32 %v12856_v7, %v12835_v60  ;;  %v12838_v61 = vmul.f32 %v22063_v26, %v24762_v43  ;;  %v12863_v9 = vmul.f32 %v12852_v51, %v12834_v12  ;;  %v21431_v60 = vld [vmem:[#allocation17 + $0xa0] ss:$16 sps:$4 sm:$0xff]   ;;  %v21451_v12 = vld [vmem:[#allocation17 + $0x6c] ss:$16 sps:$4 sm:$0xff]  }
 0xfc6   : > { %v12866_v2 = vmul.f32 %v12848_v47, %v12837_v49  ;;  %v12865_v33 = vmul.f32 %v12844_v57, %v12836_v50  ;;  %v24835_v38 = vadd.f32 %v12877_v59, %v12862_v8  ;;  %v24839_v40 = vadd.f32 %v12873_v14, %v12861_v32  ;;  %v21427_v47 = vld [vmem:[#allocation17 + $0x64] ss:$16 sps:$4 sm:$0xff]   ;;  %v21425_v57 = vld [vmem:[#allocation17 + $0x60] ss:$16 sps:$4 sm:$0xff]   ;;  %v21442_v49 = vld [vmem:[#allocation17 + $0xc] ss:$16 sps:$4 sm:$0xff]  }
 0xfc7   : > { %v12868_v58 = vmul.f32 %v12856_v7, %v12839_v37  ;;  %v24852_v4 = vadd.f32 %v12885_v24, %v12864_v52  ;;  %v12867_v21 = vmul.f32 %v12852_v51, %v12838_v61  ;;  %v24905_v17 = vadd.f32 %v12881_v1, %v12863_v9  ;;  %v21436_v7 = vld [vmem:[#allocation17 + $0xc4] ss:$16 sps:$4 sm:$0xff]   ;;  %v21434_v26 = vld [vmem:[#allocation17 + $0xc0] ss:$16 sps:$4 sm:$0xff]   ;;  %v18260_v52 = vld [vmem:[%s25352_s11 + $0x2d] ss:$0 sm:$0xff] }
 0xfc8   : > { %v24837_v22 = vadd.f32 %v12877_v59, %v12866_v2  ;;  %v24841_v53 = vadd.f32 %v12873_v14, %v12865_v33  ;;  %v21439_v59 = vld [vmem:[#allocation17 + $0xe4] ss:$16 sps:$4 sm:$0xff]   ;;  %v21437_v14 = vld [vmem:[#allocation17 + $0xe0] ss:$16 sps:$4 sm:$0xff]   ;;  %v21446_v61 = vld [vmem:[#allocation17 + $0x48] ss:$16 sps:$4 sm:$0xff]  }
 0xfc9   : > { %v24843_v48 = vadd.f32 %v12885_v24, %v12868_v58  ;;  %v24903_v43 = vadd.f32 %v12881_v1, %v12867_v21  ;;  %v21449_v51 = vld [vmem:[#allocation17 + $0x68] ss:$16 sps:$4 sm:$0xff]   ;;  %v21457_v21 = vld [vmem:[#allocation17 + $0xac] ss:$16 sps:$4 sm:$0xff]  }
 0xfca   : > { %v12899_v10 = vpack.c.bf16 %v24837_v22, %v24835_v38  ;;  %v12898_v30 = vpack.c.bf16 %v24841_v53, %v24839_v40  ;;  %v21455_v9 = vld [vmem:[#allocation17 + $0xa8] ss:$16 sps:$4 sm:$0xff]   ;;  %v21460_v1 = vld [vmem:[#allocation17 + $0xcc] ss:$16 sps:$4 sm:$0xff]  }
 0xfcb   : > { %v12901_v34 = vpack.c.bf16 %v24843_v48, %v24852_v4  ;;  %v12900_v15 = vpack.c.bf16 %v24903_v43, %v24905_v17 }
 0xfcc   : > { %13197 = vmatprep.mubr.bf16.mxu1 %v12899_v10 }
 0xfcd   : > { %13198 = vmatmul.mubr.bf16.vlgmr.msra.gmra.mrb[52].mxu1 %v12898_v30 }
 0xfce   : > { %18734 = vmatpush3.bf16.msra.mxu1 %v21401_v35  ;;  %13238 = vmatprep.mubr.bf16.mxu1 %v12901_v34 }
 0xfcf   : > { %18735 = vmatprep.subr.bf16.mxu1 %v21402_v6 }
 0xfd2   : > { %18736 = vmatpush3.bf16.msra.mxu1 %v21403_v19 }
 0xfd3   : > { %18737 = vmatprep.subr.bf16.mxu1 %v21404_v20 }
 0xfd6   : > { %18738 = vmatpush3.bf16.msra.mxu1 %v21405_v13 }
 0xfd7   : > { %18739 = vmatprep.subr.bf16.mxu1 %v21406_v23 }
 0xfda   : > { %18740 = vmatpush3.bf16.msra.mxu1 %v21407_v56 }
 0xfdb   : > { %18741 = vmatprep.subr.bf16.mxu1 %v21408_v25  ;;  %v21440_v25 = vld [vmem:[#allocation17 + $0x8] ss:$16 sps:$4 sm:$0xff]  }
 0xfde   : > { %18742 = vmatpush3.bf16.msra.mxu1 %v21409_v27 }
 0xfdf   : > { %18743 = vmatprep.subr.bf16.mxu1 %v21410_v42  ;;  %v21445_v42 = vld [vmem:[#allocation17 + $0x2c] ss:$16 sps:$4 sm:$0xff]  }
 0xfe2   : > { %18744 = vmatpush3.bf16.msra.mxu1 %v21411_v16  ;;  %v21443_v16 = vld [vmem:[#allocation17 + $0x28] ss:$16 sps:$4 sm:$0xff]  }
 0xfe3   : > { %18745 = vmatprep.subr.bf16.mxu1 %v21412_v28  ;;  %v21448_v28 = vld [vmem:[#allocation17 + $0x4c] ss:$16 sps:$4 sm:$0xff]  }
 0xfe6   : > { %18746 = vmatpush3.bf16.msra.mxu1 %v21413_v18  ;;  %v21454_v18 = vld [vmem:[#allocation17 + $0x8c] ss:$16 sps:$4 sm:$0xff]  }
 0xfe7   : > { %18747 = vmatprep.subr.bf16.mxu1 %v21414_v55  ;;  %v21452_v55 = vld [vmem:[#allocation17 + $0x88] ss:$16 sps:$4 sm:$0xff]  }
 0xfea   : > { %18748 = vmatpush3.bf16.msra.mxu1 %v21415_v63  ;;  %v21463_v63 = vld [vmem:[#allocation17 + $0xec] ss:$16 sps:$4 sm:$0xff]  }
 0xfeb   : > { %13464 = vmatprep.subr.bf16.mxu1 %v21418_v41 }
 0xfed   : > { %13239 = vmatmul.mubr.bf16.vlgmr.msra.gmra.mrb[56].mxu1 %v12900_v15  ;;  %v21461_v15 = vld [vmem:[#allocation17 + $0xe8] ss:$16 sps:$4 sm:$0xff]  }
 0xfee   : > { %13496 = vmatprep.mubr.bf16.mxu1 %v22481_v0  ;;  %13465 = vmatpush1.bf16.msra.mxu1 %v21416_v39 }
 0xfef   : > { %13466 = vmatprep.subr.bf16.mxu1 %v21421_v29 }
 0xff2   : > { %13467 = vmatpush1.bf16.msra.mxu1 %v21419_v31 }
 0xff3   : > { %13468 = vmatprep.subr.bf16.mxu1 %v21424_v62  ;;  %v13282_v62 = vld [vmem:[%s25352_s11 + $0x2e] sm:$0xf] }
 0xff6   : > { %13469 = vmatpush1.bf16.msra.mxu1 %v21422_v36  ;;  %v13287_v36 = vrot.slane %v13282_v62, %v22942_v44 }
 0xff7   : > { %13470 = vmatprep.subr.bf16.mxu1 %v21427_v47  ;;  %v13291_v47 = vrot.slane %v13282_v62, %v22948_v45 }
 0xffa   : > { %13471 = vmatpush1.bf16.msra.mxu1 %v21425_v57 }
 0xffb   : > { %13472 = vmatprep.subr.bf16.mxu1 %v21430_v5 }
 0xffe   : > { %13473 = vmatpush1.bf16.msra.mxu1 %v21428_v54 }
 0xfff   : > { %13474 = vmatprep.subr.bf16.mxu1 %v21433_v3 }
0x1002   : > { %13475 = vmatpush1.bf16.msra.mxu1 %v21431_v60  ;;  %v13295_v60 = vrot.slane %v13282_v62, %v22945_v11 }
0x1003   : > { %13476 = vmatprep.subr.bf16.mxu1 %v21436_v7  ;;  %v13299_v7 = vrot.slane %v13282_v62, %v22951_v46  ;;  %v21511_v62 = vld [vmem:[#allocation18 + $0xec] ss:$16 sps:$4 sm:$0xff]  }
0x1006   : > { %13477 = vmatpush1.bf16.msra.mxu1 %v21434_v26 }
0x1007   : > { %13478 = vmatprep.subr.bf16.mxu1 %v21439_v59 }
0x100a   : > { %13479 = vmatpush1.bf16.msra.mxu1 %v21437_v14 }
0x100b   : > { %13507 = vmatprep.subr.bf16.mxu1 %v21442_v49 }
0x10a0   : > { %v18727_v8 = vpop.f32.mrb[52].mxu1 }
0x10a1   : > { %v18728_v50 = vpop.f32.mrb[53].mxu1 }
0x10a2   : > { %v18729_v32 = vadd.f32 %v18728_v50, %v18727_v8  ;;  %v18730_v37 = vpop.f32.mrb[54].mxu1 }
0x10a3   : > { %v18731_v2 = vpop.f32.mrb[55].mxu1 }
0x10a4   : > { %v18732_v33 = vadd.f32 %v18731_v2, %v18730_v37  ;;  %v13200_v10 = vadd.f32 %v18729_v32, %v18260_v52 }
0x10a6   : > { %v13203_v34 = vadd.f32 %v18732_v33, %v18260_v52 }
0x10c0   : > { %v18749_v24 = vpop.f32.mrb[56].mxu1 }
0x10c1   : > { %v18750_v58 = vpop.f32.mrb[57].mxu1 }
0x10c2   : > { %v18751_v30 = vadd.f32 %v18750_v58, %v18749_v24  ;;  %v18752_v35 = vpop.f32.mrb[58].mxu1 }
0x10c3   : > { %v18753_v6 = vpop.f32.mrb[59].mxu1 }
0x10c4   : > { %v13241_v19 = vadd.f32 %v18751_v30, %v13200_v10  ;;  %v18754_v20 = vadd.f32 %v18753_v6, %v18752_v35  ;;  %v21464_v6 = vld [vmem:[#allocation18] ss:$16 sps:$4 sm:$0xff]  }
0x10c6   : > { %v13244_v13 = vadd.f32 %v18754_v20, %v13203_v34  ;;  %v13247_v23 = vmax.f32 %v13241_v19, 0.0  ;;  %v21466_v34 = vld [vmem:[#allocation18 + $0x4] ss:$16 sps:$4 sm:$0xff]   ;;  %v21467_v19 = vld [vmem:[#allocation18 + $0x8] ss:$16 sps:$4 sm:$0xff]  }
0x10c7   : > { %v21469_v20 = vld [vmem:[#allocation18 + $0xc] ss:$16 sps:$4 sm:$0xff]  }
0x10c8   : > { %v13248_v56 = vmax.f32 %v13244_v13, 0.0  ;;  %v21472_v13 = vld [vmem:[#allocation18 + $0x24] ss:$16 sps:$4 sm:$0xff]   ;;  %14550 = vmatprep.subr.bf16.mxu0 %v21469_v20 }
0x10c9   : > { %14551 = vmatpush1.bf16.msra.mxu0 %v21467_v19 }
0x10ca   : > { %v13249_v27 = vpack.c.bf16 %v13248_v56, %v13247_v23  ;;  %v21470_v23 = vld [vmem:[#allocation18 + $0x20] ss:$16 sps:$4 sm:$0xff]   ;;  %v21478_v56 = vld [vmem:[#allocation18 + $0x44] ss:$16 sps:$4 sm:$0xff]  }
0x10cc   : > { %13497 = vmatmul.mubr.bf16.vlgmr.msra.gmra.mrb[60].mxu1 %v13249_v27 }
0x10cd   : > { %13508 = vmatpush1.bf16.msra.mxu1 %v21440_v25  ;;  %13539 = vmatprep.mubr.bf16.mxu1 %v22481_v0  ;;  %v21458_v0 = vld [vmem:[#allocation17 + $0xc8] ss:$16 sps:$4 sm:$0xff]   ;;  %v21481_v25 = vld [vmem:[#allocation18 + $0x4c] ss:$16 sps:$4 sm:$0xff]  }
0x10ce   : > { %13509 = vmatprep.subr.bf16.mxu1 %v21445_v42  ;;  %v21479_v42 = vld [vmem:[#allocation18 + $0x48] ss:$16 sps:$4 sm:$0xff]  }
0x10d1   : > { %13510 = vmatpush1.bf16.msra.mxu1 %v21443_v16  ;;  %v21484_v16 = vld [vmem:[#allocation18 + $0x64] ss:$16 sps:$4 sm:$0xff]  }
0x10d2   : > { %13511 = vmatprep.subr.bf16.mxu1 %v21448_v28  ;;  %v21487_v28 = vld [vmem:[#allocation18 + $0x6c] ss:$16 sps:$4 sm:$0xff]  }
0x10d5   : > { %13512 = vmatpush1.bf16.msra.mxu1 %v21446_v61  ;;  %v21482_v61 = vld [vmem:[#allocation18 + $0x60] ss:$16 sps:$4 sm:$0xff]  }
0x10d6   : > { %13513 = vmatprep.subr.bf16.mxu1 %v21451_v12  ;;  %v21485_v12 = vld [vmem:[#allocation18 + $0x68] ss:$16 sps:$4 sm:$0xff]  }
0x10d9   : > { %13514 = vmatpush1.bf16.msra.mxu1 %v21449_v51  ;;  %v21490_v51 = vld [vmem:[#allocation18 + $0x84] ss:$16 sps:$4 sm:$0xff]  }
0x10da   : > { %13515 = vmatprep.subr.bf16.mxu1 %v21454_v18  ;;  %v21493_v18 = vld [vmem:[#allocation18 + $0x8c] ss:$16 sps:$4 sm:$0xff]  }
0x10dd   : > { %13516 = vmatpush1.bf16.msra.mxu1 %v21452_v55  ;;  %v21488_v55 = vld [vmem:[#allocation18 + $0x80] ss:$16 sps:$4 sm:$0xff]  }
0x10de   : > { %13517 = vmatprep.subr.bf16.mxu1 %v21457_v21  ;;  %v21491_v21 = vld [vmem:[#allocation18 + $0x88] ss:$16 sps:$4 sm:$0xff]  }
0x10e1   : > { %13518 = vmatpush1.bf16.msra.mxu1 %v21455_v9  ;;  %v21496_v9 = vld [vmem:[#allocation18 + $0xa4] ss:$16 sps:$4 sm:$0xff]  }
0x10e2   : > { %13519 = vmatprep.subr.bf16.mxu1 %v21460_v1  ;;  %v21499_v1 = vld [vmem:[#allocation18 + $0xac] ss:$16 sps:$4 sm:$0xff]  }
0x10e5   : > { %13520 = vmatpush1.bf16.msra.mxu1 %v21458_v0  ;;  %v21494_v0 = vld [vmem:[#allocation18 + $0xa0] ss:$16 sps:$4 sm:$0xff]  }
0x10e6   : > { %13521 = vmatprep.subr.bf16.mxu1 %v21463_v63  ;;  %v21497_v63 = vld [vmem:[#allocation18 + $0xa8] ss:$16 sps:$4 sm:$0xff]  }
0x10e9   : > { %13522 = vmatpush1.bf16.msra.mxu1 %v21461_v15  ;;  %v21502_v15 = vld [vmem:[#allocation18 + $0xc4] ss:$16 sps:$4 sm:$0xff]  }
0x10ea   : > { %14464 = vmatprep.subr.bf16.mxu1 %v21466_v34 }
0x10ec   : > { %13540 = vmatmul.mubr.bf16.vlgmr.msra.gmra.mrb[64].mxu1 %v13249_v27  ;;  %v21476_v27 = vld [vmem:[#allocation18 + $0x40] ss:$16 sps:$4 sm:$0xff]  }
0x10ed   : > { %14465 = vmatpush1.bf16.msra.mxu1 %v21464_v6 }
0x10ee   : > { %14466 = vmatprep.subr.bf16.mxu1 %v21472_v13 }
0x10f1   : > { %14467 = vmatpush1.bf16.msra.mxu1 %v21470_v23  ;;  %v21526_v23 = vld [vmem:[#allocation18 + $0x144] ss:$16 sps:$4 sm:$0xff]  }
0x10f2   : > { %14468 = vmatprep.subr.bf16.mxu1 %v21478_v56  ;;  %v21524_v56 = vld [vmem:[#allocation18 + $0x140] ss:$16 sps:$4 sm:$0xff]  }
0x10f5   : > { %14469 = vmatpush1.bf16.msra.mxu1 %v21476_v27  ;;  %v21532_v27 = vld [vmem:[#allocation18 + $0x164] ss:$16 sps:$4 sm:$0xff]  }
0x10f6   : > { %14470 = vmatprep.subr.bf16.mxu1 %v21484_v16  ;;  %v21530_v16 = vld [vmem:[#allocation18 + $0x160] ss:$16 sps:$4 sm:$0xff]  }
0x10f9   : > { %14471 = vmatpush1.bf16.msra.mxu1 %v21482_v61  ;;  %v21538_v61 = vld [vmem:[#allocation18 + $0x184] ss:$16 sps:$4 sm:$0xff]  }
0x10fa   : > { %14472 = vmatprep.subr.bf16.mxu1 %v21490_v51  ;;  %v21539_v51 = vld [vmem:[#allocation18 + $0x188] ss:$16 sps:$4 sm:$0xff]  }
0x10fd   : > { %14473 = vmatpush1.bf16.msra.mxu1 %v21488_v55  ;;  %v21544_v55 = vld [vmem:[#allocation18 + $0x1a4] ss:$16 sps:$4 sm:$0xff]  }
0x10fe   : > { %14474 = vmatprep.subr.bf16.mxu1 %v21496_v9  ;;  %v21542_v9 = vld [vmem:[#allocation18 + $0x1a0] ss:$16 sps:$4 sm:$0xff]  }
0x1101   : > { %14475 = vmatpush1.bf16.msra.mxu1 %v21494_v0  ;;  %v21550_v0 = vld [vmem:[#allocation18 + $0x1c4] ss:$16 sps:$4 sm:$0xff]  }
0x1102   : > { %14476 = vmatprep.subr.bf16.mxu1 %v21502_v15  ;;  %v21548_v15 = vld [vmem:[#allocation18 + $0x1c0] ss:$16 sps:$4 sm:$0xff]  }
0x119f   : > { %v13498_v39 = vpop.f32.mrb[60].mxu1 }
0x11a0   : > { %v13500_v41 = vpop.f32.mrb[61].mxu1  ;;  %v13499_v57 = vadd.f32 %v13498_v39, %v13287_v36  ;;  %v21505_v39 = vld [vmem:[#allocation18 + $0xcc] ss:$16 sps:$4 sm:$0xff]  }
0x11a1   : > { %v13502_v29 = vpop.f32.mrb[62].mxu1  ;;  %v13501_v5 = vadd.f32 %v13500_v41, %v13291_v47  ;;  %v21500_v41 = vld [vmem:[#allocation18 + $0xc0] ss:$16 sps:$4 sm:$0xff]  }
0x11a2   : > { %v13504_v31 = vpop.f32.mrb[63].mxu1  ;;  %v13503_v54 = vadd.f32 %v13502_v29, %v13287_v36  ;;  %v24922_v26 = vadd.f32 %v13499_v57, %v24839_v40  ;;  %v21503_v29 = vld [vmem:[#allocation18 + $0xc8] ss:$16 sps:$4 sm:$0xff]   ;;  %14477 = vmatpush1.bf16.msra.mxu1 %v21500_v41  ;;  %v21506_v36 = vld [vmem:[#allocation18 + $0xe0] ss:$16 sps:$4 sm:$0xff]  }
0x11a3   : > { %v13505_v3 = vadd.f32 %v13504_v31, %v13291_v47  ;;  %v24925_v59 = vadd.f32 %v13501_v5, %v24835_v38  ;;  %v21508_v31 = vld [vmem:[#allocation18 + $0xe4] ss:$16 sps:$4 sm:$0xff]   ;;  %v21509_v47 = vld [vmem:[#allocation18 + $0xe8] ss:$16 sps:$4 sm:$0xff]   ;;  %v21517_v5 = vld [vmem:[#allocation18 + $0x10c] ss:$16 sps:$4 sm:$0xff]  }
0x11a4   : > { %v24928_v49 = vadd.f32 %v13503_v54, %v24841_v53  ;;  %14478 = vmatprep.subr.bf16.mxu1 %v21508_v31  ;;  %v21514_v57 = vld [vmem:[#allocation18 + $0x104] ss:$16 sps:$4 sm:$0xff]   ;;  %v21512_v54 = vld [vmem:[#allocation18 + $0x100] ss:$16 sps:$4 sm:$0xff]  }
0x11a5   : > { %v24931_v8 = vadd.f32 %v13505_v3, %v24837_v22  ;;  %v13560_v33 = vadd.f32 %v24925_v59, %v24922_v26  ;;  %v21515_v3 = vld [vmem:[#allocation18 + $0x108] ss:$16 sps:$4 sm:$0xff]   ;;  %v21556_v41 = vld [vmem:[#allocation18 + $0x1e4] ss:$16 sps:$4 sm:$0xff]   ;;  %v21554_v31 = vld [vmem:[#allocation18 + $0x1e0] ss:$16 sps:$4 sm:$0xff]  }
0x11a6   : > { %14479 = vmatpush1.bf16.msra.mxu1 %v21506_v36  ;;  %v21562_v36 = vld [vmem:[#allocation18 + $0x204] ss:$16 sps:$4 sm:$0xff]  }
0x11a7   : > { %v13565_v22 = vadd.f32 %v24931_v8, %v24928_v49  ;;  %14480 = vmatprep.subr.bf16.mxu1 %v21514_v57 }
0x11aa   : > { %14481 = vmatpush1.bf16.msra.mxu1 %v21512_v54 }
0x11bf   : > { %v13541_v14 = vpop.f32.mrb[64].mxu1 }
0x11c0   : > { %v13542_v50 = vadd.f32 %v13541_v14, %v13295_v60  ;;  %v13543_v32 = vpop.f32.mrb[65].mxu1  ;;  %v21518_v14 = vld [vmem:[#allocation18 + $0x120] ss:$16 sps:$4 sm:$0xff]  }
0x11c1   : > { %v13544_v37 = vadd.f32 %v13543_v32, %v13299_v7  ;;  %v13545_v2 = vpop.f32.mrb[66].mxu1 }
0x11c2   : > { %v24936_v40 = vadd.f32 %v13542_v50, %v24905_v17  ;;  %v13546_v52 = vadd.f32 %v13545_v2, %v13295_v60  ;;  %v13547_v38 = vpop.f32.mrb[67].mxu1  ;;  %v21520_v60 = vld [vmem:[#allocation18 + $0x124] ss:$16 sps:$4 sm:$0xff]   ;;  %v21521_v50 = vld [vmem:[#allocation18 + $0x128] ss:$16 sps:$4 sm:$0xff]  }
0x11c3   : > { %v24939_v24 = vadd.f32 %v13544_v37, %v24852_v4  ;;  %v13548_v53 = vadd.f32 %v13547_v38, %v13299_v7  ;;  %v21523_v7 = vld [vmem:[#allocation18 + $0x12c] ss:$16 sps:$4 sm:$0xff]   ;;  %14482 = vmatprep.subr.bf16.mxu1 %v21520_v60 }
0x11c4   : > { %v24944_v58 = vadd.f32 %v13546_v52, %v24903_v43  ;;  %v13561_v10 = vadd.f32 %v13560_v33, %v24936_v40  ;;  %v21475_v43 = vld [vmem:[#allocation18 + $0x2c] ss:$16 sps:$4 sm:$0xff]   ;;  %14483 = vmatpush1.bf16.msra.mxu1 %v21518_v14  ;;  %v13558_v14 = vld [vmem:[%s25352_s11 + $0x32] sm:$0xf] }
0x11c5   : > { %v24948_v30 = vadd.f32 %v13548_v53, %v24843_v48  ;;  %v21473_v48 = vld [vmem:[#allocation18 + $0x28] ss:$16 sps:$4 sm:$0xff]   ;;  %14552 = vmatprep.subr.bf16.mxu0 %v21475_v43  ;;  %14484 = vmatprep.subr.bf16.mxu1 %v21526_v23 }
0x11c6   : > { %v13562_v17 = vadd.f32 %v13561_v10, %v24939_v24  ;;  %v13566_v35 = vadd.f32 %v13565_v22, %v24944_v58  ;;  %14553 = vmatpush1.bf16.msra.mxu0 %v21473_v48  ;;  %v21529_v48 = vld [vmem:[#allocation18 + $0x14c] ss:$16 sps:$4 sm:$0xff]  }
0x11c7   : > { %14554 = vmatprep.subr.bf16.mxu0 %v21481_v25  ;;  %v21527_v25 = vld [vmem:[#allocation18 + $0x148] ss:$16 sps:$4 sm:$0xff]  }
0x11c8   : > { %13563 = vadd.xlane.f32.xlu1 %v13562_v17  ;;  %v13567_v4 = vadd.f32 %v13566_v35, %v24948_v30  ;;  %14485 = vmatpush1.bf16.msra.mxu1 %v21524_v56 }
0x11c9   : > { %14486 = vmatprep.subr.bf16.mxu1 %v21532_v27 }
0x11ca   : > { %13568 = vadd.xlane.f32.xlu0 %v13567_v4  ;;  %14555 = vmatpush1.bf16.msra.mxu0 %v21479_v42  ;;  %v21535_v42 = vld [vmem:[#allocation18 + $0x16c] ss:$16 sps:$4 sm:$0xff]  }
0x11cb   : > { %14556 = vmatprep.subr.bf16.mxu0 %v21487_v28  ;;  %v21533_v28 = vld [vmem:[#allocation18 + $0x168] ss:$16 sps:$4 sm:$0xff]  }
0x11cc   : > { %14487 = vmatpush1.bf16.msra.mxu1 %v21530_v16 }
0x11cd   : > { %14488 = vmatprep.subr.bf16.mxu1 %v21538_v61  ;;  %v21560_v61 = vld [vmem:[#allocation18 + $0x200] ss:$16 sps:$4 sm:$0xff]  }
0x11ce   : > { %14557 = vmatpush1.bf16.msra.mxu0 %v21485_v12  ;;  %v21536_v12 = vld [vmem:[#allocation18 + $0x180] ss:$16 sps:$4 sm:$0xff]  }
0x11cf   : > { %14558 = vmatprep.subr.bf16.mxu0 %v21493_v18  ;;  %v21541_v18 = vld [vmem:[#allocation18 + $0x18c] ss:$16 sps:$4 sm:$0xff]  }
0x11d0   : > { %14489 = vmatpush1.bf16.msra.mxu1 %v21536_v12  ;;  %v21563_v12 = vld [vmem:[#allocation18 + $0x208] ss:$16 sps:$4 sm:$0xff]  }
0x11d1   : > { %14490 = vmatprep.subr.bf16.mxu1 %v21544_v55  ;;  %v21568_v55 = vld [vmem:[#allocation18 + $0x224] ss:$16 sps:$4 sm:$0xff]  }
0x11d2   : > { %14559 = vmatpush1.bf16.msra.mxu0 %v21491_v21  ;;  %v21547_v21 = vld [vmem:[#allocation18 + $0x1ac] ss:$16 sps:$4 sm:$0xff]  }
0x11d3   : > { %14560 = vmatprep.subr.bf16.mxu0 %v21499_v1  ;;  %v21545_v1 = vld [vmem:[#allocation18 + $0x1a8] ss:$16 sps:$4 sm:$0xff]  }
0x11d4   : > { %14491 = vmatpush1.bf16.msra.mxu1 %v21542_v9 }
0x11d5   : > { %14492 = vmatprep.subr.bf16.mxu1 %v21550_v0  ;;  %v21569_v0 = vld [vmem:[#allocation18 + $0x228] ss:$16 sps:$4 sm:$0xff]  }
0x11d6   : > { %14561 = vmatpush1.bf16.msra.mxu0 %v21497_v63  ;;  %v21553_v63 = vld [vmem:[#allocation18 + $0x1cc] ss:$16 sps:$4 sm:$0xff]  }
0x11d7   : > { %14562 = vmatprep.subr.bf16.mxu0 %v21505_v39  ;;  %v21551_v39 = vld [vmem:[#allocation18 + $0x1c8] ss:$16 sps:$4 sm:$0xff]  }
0x11d8   : > { %14493 = vmatpush1.bf16.msra.mxu1 %v21548_v15  ;;  %v21577_v15 = vld [vmem:[#allocation18 + $0x24c] ss:$16 sps:$4 sm:$0xff]  }
0x11d9   : > { %14494 = vmatprep.subr.bf16.mxu1 %v21556_v41  ;;  %v21575_v41 = vld [vmem:[#allocation18 + $0x248] ss:$16 sps:$4 sm:$0xff]  }
0x11da   : > { %14563 = vmatpush1.bf16.msra.mxu0 %v21503_v29  ;;  %v21559_v29 = vld [vmem:[#allocation18 + $0x1ec] ss:$16 sps:$4 sm:$0xff]  }
0x11db   : > { %14564 = vmatprep.subr.bf16.mxu0 %v21511_v62  ;;  %v21557_v62 = vld [vmem:[#allocation18 + $0x1e8] ss:$16 sps:$4 sm:$0xff]  }
0x11dc   : > { %14495 = vmatpush1.bf16.msra.mxu1 %v21554_v31  ;;  %v21583_v31 = vld [vmem:[#allocation18 + $0x26c] ss:$16 sps:$4 sm:$0xff]  }
0x11dd   : > { %14507 = vmatprep.subr.bf16.mxu1 %v21562_v36  ;;  %v21581_v36 = vld [vmem:[#allocation18 + $0x268] ss:$16 sps:$4 sm:$0xff]  }
0x11de   : > { %14565 = vmatpush1.bf16.msra.mxu0 %v21509_v47  ;;  %v21565_v47 = vld [vmem:[#allocation18 + $0x20c] ss:$16 sps:$4 sm:$0xff]  }
0x11df   : > { %14566 = vmatprep.subr.bf16.mxu0 %v21517_v5 }
0x11e2   : > { %14567 = vmatpush1.bf16.msra.mxu0 %v21515_v3 }
0x11e3   : > { %14568 = vmatprep.subr.bf16.mxu0 %v21523_v7 }
0x11e6   : > { %14569 = vmatpush1.bf16.msra.mxu0 %v21521_v50  ;;  %v13559_v50 = vld [vmem:[%s25352_s11 + $0x36] sm:$0xf] }
0x11e7   : > { %14570 = vmatprep.subr.bf16.mxu0 %v21529_v48  ;;  %v13657_v48 = vrot.slane %v13559_v50, %v22951_v46 }
0x11ea   : > { %14571 = vmatpush1.bf16.msra.mxu0 %v21527_v25 }
0x11eb   : > { %14572 = vmatprep.subr.bf16.mxu0 %v21535_v42 }
0x11ee   : > { %14573 = vmatpush1.bf16.msra.mxu0 %v21533_v28 }
0x11ef   : > { %14574 = vmatprep.subr.bf16.mxu0 %v21541_v18 }
0x11f2   : > { %14575 = vmatpush1.bf16.msra.mxu0 %v21539_v51 }
0x11f3   : > { %14576 = vmatprep.subr.bf16.mxu0 %v21547_v21  ;;  %v21571_v21 = vld [vmem:[#allocation18 + $0x22c] ss:$16 sps:$4 sm:$0xff]  }
0x11f6   : > { %14577 = vmatpush1.bf16.msra.mxu0 %v21545_v1  ;;  %v21566_v1 = vld [vmem:[#allocation18 + $0x220] ss:$16 sps:$4 sm:$0xff]  }
0x11f7   : > { %14578 = vmatprep.subr.bf16.mxu0 %v21553_v63  ;;  %v21574_v63 = vld [vmem:[#allocation18 + $0x244] ss:$16 sps:$4 sm:$0xff]  }
0x11fa   : > { %14579 = vmatpush1.bf16.msra.mxu0 %v21551_v39  ;;  %v21572_v39 = vld [vmem:[#allocation18 + $0x240] ss:$16 sps:$4 sm:$0xff]  }
0x11fb   : > { %14580 = vmatprep.subr.bf16.mxu0 %v21559_v29  ;;  %v21580_v29 = vld [vmem:[#allocation18 + $0x264] ss:$16 sps:$4 sm:$0xff]  }
0x11fe   : > { %14581 = vmatpush1.bf16.msra.mxu0 %v21557_v62  ;;  %v21578_v62 = vld [vmem:[#allocation18 + $0x260] ss:$16 sps:$4 sm:$0xff]  }
0x11ff   : > { %14593 = vmatprep.subr.bf16.mxu0 %v21565_v47  ;;  %v21586_v47 = vld [vmem:[#allocation18 + $0x284] ss:$16 sps:$4 sm:$0xff]  }
0x1255   : > { %v13564_v32 = vpop.xlane.xlu1 %13563 }
0x1256   : > { %v13570_v37 = vmul.f32 0.001953125, %v13564_v32  ;;  %v13620_v32 = vrot.slane %v13558_v14, %v22948_v45 }
0x1257   : > { %v13569_v2 = vpop.xlane.xlu0 %13568 }
0x1258   : > { %v24954_v33 = vsub.f32 %v24922_v26, %v13570_v37  ;;  %v24957_v52 = vsub.f32 %v24925_v59, %v13570_v37  ;;  %v13571_v38 = vmul.f32 0.001953125, %v13569_v2  ;;  %v24960_v53 = vsub.f32 %v24936_v40, %v13570_v37 }
0x1259   : > { %v24963_v22 = vsub.f32 %v24939_v24, %v13570_v37  ;;  %v13616_v37 = vrot.slane %v13558_v14, %v22942_v44 }
0x125a   : > { %v24966_v10 = vsub.f32 %v24928_v49, %v13571_v38  ;;  %v24969_v17 = vsub.f32 %v24931_v8, %v13571_v38  ;;  %v13580_v26 = vmul.f32 %v24954_v33, %v24954_v33  ;;  %v13581_v59 = vmul.f32 %v24957_v52, %v24957_v52 }
0x125b   : > { %v13582_v35 = vmul.f32 %v24960_v53, %v24960_v53  ;;  %v24978_v40 = vsub.f32 %v24944_v58, %v13571_v38  ;;  %v24981_v4 = vsub.f32 %v24948_v30, %v13571_v38  ;;  %v13583_v6 = vmul.f32 %v24963_v22, %v24963_v22 }
0x125c   : > { %v13588_v24 = vadd.f32 %v13581_v59, %v13580_v26  ;;  %v13584_v49 = vmul.f32 %v24966_v10, %v24966_v10  ;;  %v13585_v8 = vmul.f32 %v24969_v17, %v24969_v17  ;;  %v13624_v38 = vrot.slane %v13558_v14, %v22945_v11 }
0x125d   : > { %v13586_v19 = vmul.f32 %v24978_v40, %v24978_v40  ;;  %v13587_v13 = vmul.f32 %v24981_v4, %v24981_v4 }
0x125e   : > { %v13589_v34 = vadd.f32 %v13588_v24, %v13582_v35  ;;  %v13593_v20 = vadd.f32 %v13585_v8, %v13584_v49  ;;  %v13628_v35 = vrot.slane %v13558_v14, %v22951_v46  ;;  %v13649_v8 = vrot.slane %v13559_v50, %v22948_v45  ;;  %v21593_v14 = vld [vmem:[#allocation18 + $0x2a8] ss:$16 sps:$4 sm:$0xff]  }
0x1260   : > { %v13590_v58 = vadd.f32 %v13589_v34, %v13583_v6  ;;  %v13594_v30 = vadd.f32 %v13593_v20, %v13586_v19  ;;  %v13645_v6 = vrot.slane %v13559_v50, %v22942_v44  ;;  %v13653_v19 = vrot.slane %v13559_v50, %v22945_v11  ;;  %v21598_v50 = vld [vmem:[#allocation18 + $0x2c4] ss:$16 sps:$4 sm:$0xff]  }
0x1262   : > { %13591 = vadd.xlane.f32.xlu1 %v13590_v58  ;;  %v13595_v43 = vadd.f32 %v13594_v30, %v13587_v13 }
0x1264   : > { %13596 = vadd.xlane.f32.xlu0 %v13595_v43 }
0x12ef   : > { %v13592_v57 = vpop.xlane.xlu1 %13591 }
0x12f0   : > { %v13598_v5 = vmul.f32 0.001953125, %v13592_v57  ;;  %v21589_v57 = vld [vmem:[#allocation18 + $0x28c] ss:$16 sps:$4 sm:$0xff]  }
0x12f1   : > { %v13597_v54 = vpop.xlane.xlu0 %13596 }
0x12f2   : > { %v13600_v3 = vadd.f32 1e-05, %v13598_v5  ;;  %v13599_v60 = vmul.f32 0.001953125, %v13597_v54  ;;  %v21584_v5 = vld [vmem:[#allocation18 + $0x280] ss:$16 sps:$4 sm:$0xff]  }
0x12f3   : > { %v21587_v54 = vld [vmem:[#allocation18 + $0x288] ss:$16 sps:$4 sm:$0xff]  }
0x12f4   : > { %22064 = vrsqrt.f32 %v13600_v3  ;;  %v13601_v7 = vadd.f32 1e-05, %v13599_v60  ;;  %v21592_v3 = vld [vmem:[#allocation18 + $0x2a4] ss:$16 sps:$4 sm:$0xff]   ;;  %v21595_v60 = vld [vmem:[#allocation18 + $0x2ac] ss:$16 sps:$4 sm:$0xff]  }
0x12f6   : > { %22066 = vrsqrt.f32 %v13601_v7  ;;  %v21590_v7 = vld [vmem:[#allocation18 + $0x2a0] ss:$16 sps:$4 sm:$0xff]  }
0x12fe   : > { %v22065_v2 = vpop.eup %22064 }
0x12ff   : > { %v13605_v26 = vmul.f32 %v22065_v2, %v24957_v52  ;;  %v13604_v59 = vmul.f32 %v22065_v2, %v24954_v33  ;;  %v13606_v24 = vmul.f32 %v22065_v2, %v24960_v53  ;;  %v13607_v34 = vmul.f32 %v22065_v2, %v24963_v22  ;;  %v21599_v2 = vld [vmem:[#allocation18 + $0x2c8] ss:$16 sps:$4 sm:$0xff]  }
0x1300   : > { %v22067_v49 = vpop.eup %22066 }
0x1301   : > { %v13609_v20 = vmul.f32 %v22067_v49, %v24969_v17  ;;  %v13634_v58 = vmul.f32 %v13620_v32, %v13605_v26  ;;  %v13608_v52 = vmul.f32 %v22067_v49, %v24966_v10  ;;  %v13633_v13 = vmul.f32 %v13616_v37, %v13604_v59  ;;  %v21607_v26 = vld [vmem:[#allocation18 + $0x2ec] ss:$16 sps:$4 sm:$0xff]   ;;  %v21602_v59 = vld [vmem:[#allocation18 + $0x2e0] ss:$16 sps:$4 sm:$0xff]  }
0x1302   : > { %v13611_v33 = vmul.f32 %v22067_v49, %v24981_v4  ;;  %v13610_v30 = vmul.f32 %v22067_v49, %v24978_v40  ;;  %v13635_v53 = vmul.f32 %v13624_v38, %v13606_v24  ;;  %v13636_v56 = vmul.f32 %v13628_v35, %v13607_v34  ;;  %v21610_v24 = vld [vmem:[#allocation18 + $0x304] ss:$16 sps:$4 sm:$0xff]   ;;  %v21613_v49 = vld [vmem:[#allocation18 + $0x30c] ss:$16 sps:$4 sm:$0xff]  }
0x1303   : > { %v13638_v43 = vmul.f32 %v13620_v32, %v13609_v20  ;;  %v13637_v23 = vmul.f32 %v13616_v37, %v13608_v52  ;;  %v25017_v42 = vadd.f32 %v13649_v8, %v13634_v58  ;;  %v25021_v10 = vadd.f32 %v13645_v6, %v13633_v13  ;;  %v21601_v32 = vld [vmem:[#allocation18 + $0x2cc] ss:$16 sps:$4 sm:$0xff]   ;;  %v21596_v37 = vld [vmem:[#allocation18 + $0x2c0] ss:$16 sps:$4 sm:$0xff]   ;;  %v21616_v34 = vld [vmem:[#allocation18 + $0x324] ss:$16 sps:$4 sm:$0xff]  }
0x1304   : > { %v13640_v25 = vmul.f32 %v13628_v35, %v13611_v33  ;;  %v13639_v22 = vmul.f32 %v13624_v38, %v13610_v30  ;;  %v25015_v27 = vadd.f32 %v13653_v19, %v13635_v53  ;;  %v25037_v18 = vadd.f32 %v13657_v48, %v13636_v56  ;;  %v21604_v38 = vld [vmem:[#allocation18 + $0x2e4] ss:$16 sps:$4 sm:$0xff]   ;;  %v21605_v35 = vld [vmem:[#allocation18 + $0x2e8] ss:$16 sps:$4 sm:$0xff]   ;;  %v21614_v20 = vld [vmem:[#allocation18 + $0x320] ss:$16 sps:$4 sm:$0xff]  }
0x1305   : > { %v25019_v17 = vadd.f32 %v13649_v8, %v13638_v43  ;;  %v25023_v16 = vadd.f32 %v13645_v6, %v13637_v23  ;;  %v21608_v8 = vld [vmem:[#allocation18 + $0x300] ss:$16 sps:$4 sm:$0xff]   ;;  %v21611_v6 = vld [vmem:[#allocation18 + $0x308] ss:$16 sps:$4 sm:$0xff]   ;;  %v21622_v52 = vld [vmem:[#allocation18 + $0x344] ss:$16 sps:$4 sm:$0xff]  }
0x1306   : > { %v25025_v4 = vadd.f32 %v13657_v48, %v13640_v25  ;;  %v25027_v40 = vadd.f32 %v13653_v19, %v13639_v22  ;;  %v21619_v19 = vld [vmem:[#allocation18 + $0x32c] ss:$16 sps:$4 sm:$0xff]   ;;  %v21617_v58 = vld [vmem:[#allocation18 + $0x328] ss:$16 sps:$4 sm:$0xff]   ;;  %v21620_v33 = vld [vmem:[#allocation18 + $0x340] ss:$16 sps:$4 sm:$0xff]  }
0x1307   : > { %v25031_v28 = vpack.c.bf16 %v25019_v17, %v25017_v42  ;;  %v25035_v51 = vpack.c.bf16 %v25023_v16, %v25021_v10  ;;  %v21625_v13 = vld [vmem:[#allocation18 + $0x34c] ss:$16 sps:$4 sm:$0xff]   ;;  %v21623_v30 = vld [vmem:[#allocation18 + $0x348] ss:$16 sps:$4 sm:$0xff]   ;;  %v21628_v53 = vld [vmem:[#allocation18 + $0x364] ss:$16 sps:$4 sm:$0xff]  }
0x1308   : > { %v25045_v9 = vpack.c.bf16 %v25025_v4, %v25037_v18  ;;  %v21631_v43 = vld [vmem:[#allocation18 + $0x36c] ss:$16 sps:$4 sm:$0xff]   ;;  %v21626_v23 = vld [vmem:[#allocation18 + $0x360] ss:$16 sps:$4 sm:$0xff]   ;;  %v21629_v48 = vld [vmem:[#allocation18 + $0x368] ss:$16 sps:$4 sm:$0xff]  }
0x1309   : > { %14496 = vmatprep.mubr.bf16.mxu1 %v25031_v28  ;;  %14582 = vmatprep.mubr.bf16.mxu0 %v25031_v28  ;;  %v21634_v56 = vld [vmem:[#allocation18 + $0x384] ss:$16 sps:$4 sm:$0xff]   ;;  %v21637_v25 = vld [vmem:[#allocation18 + $0x38c] ss:$16 sps:$4 sm:$0xff]   ;;  %v21632_v22 = vld [vmem:[#allocation18 + $0x380] ss:$16 sps:$4 sm:$0xff]  }
0x130a   : > { %14497 = vmatmul.mubr.bf16.vlgmr.msra.gmra.mrb[68].mxu1 %v25035_v51  ;;  %14583 = vmatmul.mubr.bf16.vlgmr.msra.gmra.mrb[60].mxu0 %v25035_v51 }
0x130b   : > { %14508 = vmatpush1.bf16.msra.mxu1 %v21560_v61  ;;  %14594 = vmatpush1.bf16.msra.mxu0 %v21563_v12  ;;  %v21635_v61 = vld [vmem:[#allocation18 + $0x388] ss:$16 sps:$4 sm:$0xff]   ;;  %v21640_v12 = vld [vmem:[#allocation18 + $0x3a4] ss:$16 sps:$4 sm:$0xff]  }
0x130c   : > { %14539 = vmatprep.mubr.bf16.mxu1 %v25045_v9  ;;  %14625 = vmatprep.mubr.bf16.mxu0 %v25045_v9 }
0x130d   : > { %14509 = vmatprep.subr.bf16.mxu1 %v21568_v55  ;;  %14595 = vmatprep.subr.bf16.mxu0 %v21571_v21  ;;  %v21643_v55 = vld [vmem:[#allocation18 + $0x3ac] ss:$16 sps:$4 sm:$0xff]   ;;  %v21638_v21 = vld [vmem:[#allocation18 + $0x3a0] ss:$16 sps:$4 sm:$0xff]  }
0x130f   : > { %14510 = vmatpush1.bf16.msra.mxu1 %v21566_v1  ;;  %14596 = vmatpush1.bf16.msra.mxu0 %v21569_v0  ;;  %v21641_v1 = vld [vmem:[#allocation18 + $0x3a8] ss:$16 sps:$4 sm:$0xff]   ;;  %v21646_v0 = vld [vmem:[#allocation18 + $0x3c4] ss:$16 sps:$4 sm:$0xff]  }
0x1310   : > { %14511 = vmatprep.subr.bf16.mxu1 %v21574_v63  ;;  %14597 = vmatprep.subr.bf16.mxu0 %v21577_v15  ;;  %v21649_v63 = vld [vmem:[#allocation18 + $0x3cc] ss:$16 sps:$4 sm:$0xff]   ;;  %v21644_v15 = vld [vmem:[#allocation18 + $0x3c0] ss:$16 sps:$4 sm:$0xff]  }
0x1313   : > { %14512 = vmatpush1.bf16.msra.mxu1 %v21572_v39  ;;  %14598 = vmatpush1.bf16.msra.mxu0 %v21575_v41  ;;  %v21647_v39 = vld [vmem:[#allocation18 + $0x3c8] ss:$16 sps:$4 sm:$0xff]   ;;  %v21652_v41 = vld [vmem:[#allocation18 + $0x3e4] ss:$16 sps:$4 sm:$0xff]  }
0x1314   : > { %14513 = vmatprep.subr.bf16.mxu1 %v21580_v29  ;;  %14599 = vmatprep.subr.bf16.mxu0 %v21583_v31  ;;  %v21655_v29 = vld [vmem:[#allocation18 + $0x3ec] ss:$16 sps:$4 sm:$0xff]   ;;  %v21650_v31 = vld [vmem:[#allocation18 + $0x3e0] ss:$16 sps:$4 sm:$0xff]  }
0x1317   : > { %14514 = vmatpush1.bf16.msra.mxu1 %v21578_v62  ;;  %14600 = vmatpush1.bf16.msra.mxu0 %v21581_v36  ;;  %v21653_v62 = vld [vmem:[#allocation18 + $0x3e8] ss:$16 sps:$4 sm:$0xff]   ;;  %v21658_v36 = vld [vmem:[#allocation20 + $0x4] ss:$16 sps:$4 sm:$0xff]  }
0x1318   : > { %14515 = vmatprep.subr.bf16.mxu1 %v21586_v47  ;;  %14601 = vmatprep.subr.bf16.mxu0 %v21589_v57  ;;  %v21661_v47 = vld [vmem:[#allocation20 + $0xc] ss:$16 sps:$4 sm:$0xff]   ;;  %v21656_v57 = vld [vmem:[#allocation20] ss:$16 sps:$4 sm:$0xff]  }
0x131b   : > { %14516 = vmatpush1.bf16.msra.mxu1 %v21584_v5  ;;  %14602 = vmatpush1.bf16.msra.mxu0 %v21587_v54  ;;  %v25051_v5 = vpack.c.bf16 %v25027_v40, %v25015_v27  ;;  %v21659_v54 = vld [vmem:[#allocation20 + $0x8] ss:$16 sps:$4 sm:$0xff]  }
0x131c   : > { %14517 = vmatprep.subr.bf16.mxu1 %v21592_v3  ;;  %14603 = vmatprep.subr.bf16.mxu0 %v21595_v60  ;;  %v21664_v3 = vld [vmem:[#allocation20 + $0x24] ss:$16 sps:$4 sm:$0xff]   ;;  %v21667_v60 = vld [vmem:[#allocation20 + $0x2c] ss:$16 sps:$4 sm:$0xff]  }
0x131f   : > { %14518 = vmatpush1.bf16.msra.mxu1 %v21590_v7  ;;  %14604 = vmatpush1.bf16.msra.mxu0 %v21593_v14  ;;  %v21662_v7 = vld [vmem:[#allocation20 + $0x20] ss:$16 sps:$4 sm:$0xff]   ;;  %v21665_v14 = vld [vmem:[#allocation20 + $0x28] ss:$16 sps:$4 sm:$0xff]  }
0x1320   : > { %14519 = vmatprep.subr.bf16.mxu1 %v21598_v50  ;;  %14605 = vmatprep.subr.bf16.mxu0 %v21601_v32  ;;  %v21670_v50 = vld [vmem:[#allocation20 + $0x44] ss:$16 sps:$4 sm:$0xff]   ;;  %v21673_v32 = vld [vmem:[#allocation20 + $0x4c] ss:$16 sps:$4 sm:$0xff]  }
0x1323   : > { %14520 = vmatpush1.bf16.msra.mxu1 %v21596_v37  ;;  %14606 = vmatpush1.bf16.msra.mxu0 %v21599_v2  ;;  %v21668_v37 = vld [vmem:[#allocation20 + $0x40] ss:$16 sps:$4 sm:$0xff]   ;;  %v21671_v2 = vld [vmem:[#allocation20 + $0x48] ss:$16 sps:$4 sm:$0xff]  }
0x1324   : > { %14521 = vmatprep.subr.bf16.mxu1 %v21604_v38  ;;  %14607 = vmatprep.subr.bf16.mxu0 %v21607_v26  ;;  %v21676_v38 = vld [vmem:[#allocation20 + $0x64] ss:$16 sps:$4 sm:$0xff]   ;;  %v21679_v26 = vld [vmem:[#allocation20 + $0x6c] ss:$16 sps:$4 sm:$0xff]  }
0x1327   : > { %14522 = vmatpush1.bf16.msra.mxu1 %v21602_v59  ;;  %14608 = vmatpush1.bf16.msra.mxu0 %v21605_v35  ;;  %v21674_v59 = vld [vmem:[#allocation20 + $0x60] ss:$16 sps:$4 sm:$0xff]   ;;  %v21677_v35 = vld [vmem:[#allocation20 + $0x68] ss:$16 sps:$4 sm:$0xff]  }
0x1328   : > { %14523 = vmatprep.subr.bf16.mxu1 %v21610_v24  ;;  %14609 = vmatprep.subr.bf16.mxu0 %v21613_v49  ;;  %v21682_v24 = vld [vmem:[#allocation20 + $0x84] ss:$16 sps:$4 sm:$0xff]   ;;  %v21680_v49 = vld [vmem:[#allocation20 + $0x80] ss:$16 sps:$4 sm:$0xff]  }
0x132b   : > { %14524 = vmatpush1.bf16.msra.mxu1 %v21608_v8  ;;  %14610 = vmatpush1.bf16.msra.mxu0 %v21611_v6  ;;  %v21683_v8 = vld [vmem:[#allocation20 + $0x88] ss:$16 sps:$4 sm:$0xff]   ;;  %v21688_v6 = vld [vmem:[#allocation20 + $0xa4] ss:$16 sps:$4 sm:$0xff]  }
0x132c   : > { %14525 = vmatprep.subr.bf16.mxu1 %v21616_v34  ;;  %14611 = vmatprep.subr.bf16.mxu0 %v21619_v19  ;;  %v21691_v34 = vld [vmem:[#allocation20 + $0xac] ss:$16 sps:$4 sm:$0xff]   ;;  %v21686_v19 = vld [vmem:[#allocation20 + $0xa0] ss:$16 sps:$4 sm:$0xff]  }
0x132f   : > { %14526 = vmatpush1.bf16.msra.mxu1 %v21614_v20  ;;  %14612 = vmatpush1.bf16.msra.mxu0 %v21617_v58  ;;  %v21689_v20 = vld [vmem:[#allocation20 + $0xa8] ss:$16 sps:$4 sm:$0xff]   ;;  %v21694_v58 = vld [vmem:[#allocation20 + $0xc4] ss:$16 sps:$4 sm:$0xff]  }
0x1330   : > { %14527 = vmatprep.subr.bf16.mxu1 %v21622_v52  ;;  %14613 = vmatprep.subr.bf16.mxu0 %v21625_v13  ;;  %v21697_v52 = vld [vmem:[#allocation20 + $0xcc] ss:$16 sps:$4 sm:$0xff]   ;;  %v21692_v13 = vld [vmem:[#allocation20 + $0xc0] ss:$16 sps:$4 sm:$0xff]  }
0x1333   : > { %14528 = vmatpush1.bf16.msra.mxu1 %v21620_v33  ;;  %14614 = vmatpush1.bf16.msra.mxu0 %v21623_v30  ;;  %v21695_v33 = vld [vmem:[#allocation20 + $0xc8] ss:$16 sps:$4 sm:$0xff]   ;;  %v21700_v30 = vld [vmem:[#allocation20 + $0xe4] ss:$16 sps:$4 sm:$0xff]  }
0x1334   : > { %14529 = vmatprep.subr.bf16.mxu1 %v21628_v53  ;;  %14615 = vmatprep.subr.bf16.mxu0 %v21631_v43  ;;  %v21703_v53 = vld [vmem:[#allocation20 + $0xec] ss:$16 sps:$4 sm:$0xff]   ;;  %v21698_v43 = vld [vmem:[#allocation20 + $0xe0] ss:$16 sps:$4 sm:$0xff]  }
0x1337   : > { %14530 = vmatpush1.bf16.msra.mxu1 %v21626_v23  ;;  %14616 = vmatpush1.bf16.msra.mxu0 %v21629_v48  ;;  %v21701_v23 = vld [vmem:[#allocation20 + $0xe8] ss:$16 sps:$4 sm:$0xff]   ;;  %v21706_v48 = vld [vmem:[#allocation20 + $0x104] ss:$16 sps:$4 sm:$0xff]  }
0x1338   : > { %14531 = vmatprep.subr.bf16.mxu1 %v21634_v56  ;;  %14617 = vmatprep.subr.bf16.mxu0 %v21637_v25  ;;  %v21709_v56 = vld [vmem:[#allocation20 + $0x10c] ss:$16 sps:$4 sm:$0xff]   ;;  %v21704_v25 = vld [vmem:[#allocation20 + $0x100] ss:$16 sps:$4 sm:$0xff]  }
0x133b   : > { %14532 = vmatpush1.bf16.msra.mxu1 %v21632_v22  ;;  %14618 = vmatpush1.bf16.msra.mxu0 %v21635_v61  ;;  %v21707_v22 = vld [vmem:[#allocation20 + $0x108] ss:$16 sps:$4 sm:$0xff]   ;;  %v21712_v61 = vld [vmem:[#allocation20 + $0x124] ss:$16 sps:$4 sm:$0xff]  }
0x133c   : > { %14533 = vmatprep.subr.bf16.mxu1 %v21640_v12  ;;  %14619 = vmatprep.subr.bf16.mxu0 %v21643_v55  ;;  %v21715_v12 = vld [vmem:[#allocation20 + $0x12c] ss:$16 sps:$4 sm:$0xff]   ;;  %v21710_v55 = vld [vmem:[#allocation20 + $0x120] ss:$16 sps:$4 sm:$0xff]  }
0x133f   : > { %14534 = vmatpush1.bf16.msra.mxu1 %v21638_v21  ;;  %14620 = vmatpush1.bf16.msra.mxu0 %v21641_v1  ;;  %v21713_v21 = vld [vmem:[#allocation20 + $0x128] ss:$16 sps:$4 sm:$0xff]   ;;  %v21718_v1 = vld [vmem:[#allocation20 + $0x144] ss:$16 sps:$4 sm:$0xff]  }
0x1340   : > { %14535 = vmatprep.subr.bf16.mxu1 %v21646_v0  ;;  %14621 = vmatprep.subr.bf16.mxu0 %v21649_v63  ;;  %v21721_v0 = vld [vmem:[#allocation20 + $0x14c] ss:$16 sps:$4 sm:$0xff]   ;;  %v21716_v63 = vld [vmem:[#allocation20 + $0x140] ss:$16 sps:$4 sm:$0xff]  }
0x1343   : > { %14536 = vmatpush1.bf16.msra.mxu1 %v21644_v15  ;;  %14622 = vmatpush1.bf16.msra.mxu0 %v21647_v39  ;;  %v21719_v15 = vld [vmem:[#allocation20 + $0x148] ss:$16 sps:$4 sm:$0xff]   ;;  %v21724_v39 = vld [vmem:[#allocation20 + $0x164] ss:$16 sps:$4 sm:$0xff]  }
0x1344   : > { %14537 = vmatprep.subr.bf16.mxu1 %v21652_v41  ;;  %14623 = vmatprep.subr.bf16.mxu0 %v21655_v29  ;;  %v21727_v41 = vld [vmem:[#allocation20 + $0x16c] ss:$16 sps:$4 sm:$0xff]   ;;  %v21722_v29 = vld [vmem:[#allocation20 + $0x160] ss:$16 sps:$4 sm:$0xff]  }
0x1347   : > { %14538 = vmatpush1.bf16.msra.mxu1 %v21650_v31  ;;  %14624 = vmatpush1.bf16.msra.mxu0 %v21653_v62  ;;  %v21725_v31 = vld [vmem:[#allocation20 + $0x168] ss:$16 sps:$4 sm:$0xff]   ;;  %v21730_v62 = vld [vmem:[#allocation20 + $0x184] ss:$16 sps:$4 sm:$0xff]  }
0x1348   : > { %15404 = vmatprep.subr.bf16.mxu1 %v21658_v36  ;;  %15490 = vmatprep.subr.bf16.mxu0 %v21661_v47  ;;  %v21733_v36 = vld [vmem:[#allocation20 + $0x18c] ss:$16 sps:$4 sm:$0xff]   ;;  %v21728_v47 = vld [vmem:[#allocation20 + $0x180] ss:$16 sps:$4 sm:$0xff]  }
0x134a   : > { %14540 = vmatmul.mubr.bf16.vlgmr.msra.gmra.mrb[68].mxu1 %v25051_v5  ;;  %14626 = vmatmul.mubr.bf16.vlgmr.msra.gmra.mrb[60].mxu0 %v25051_v5 }
0x134b   : > { %15405 = vmatpush1.bf16.msra.mxu1 %v21656_v57  ;;  %15436 = vmatprep.mubr.bf16.mxu1 %v25031_v28  ;;  %v21731_v57 = vld [vmem:[#allocation20 + $0x188] ss:$16 sps:$4 sm:$0xff]  }
0x134c   : > { %15491 = vmatpush1.bf16.msra.mxu0 %v21659_v54  ;;  %15522 = vmatprep.mubr.bf16.mxu0 %v25031_v28  ;;  %v21685_v28 = vld [vmem:[#allocation20 + $0x8c] ss:$16 sps:$4 sm:$0xff]   ;;  %v21736_v54 = vld [vmem:[#allocation20 + $0x1a4] ss:$16 sps:$4 sm:$0xff]  }
0x134d   : > { %15406 = vmatprep.subr.bf16.mxu1 %v21664_v3  ;;  %15492 = vmatprep.subr.bf16.mxu0 %v21667_v60  ;;  %v21739_v3 = vld [vmem:[#allocation20 + $0x1ac] ss:$16 sps:$4 sm:$0xff]   ;;  %v21734_v60 = vld [vmem:[#allocation20 + $0x1a0] ss:$16 sps:$4 sm:$0xff]  }
0x134f   : > { %15407 = vmatpush1.bf16.msra.mxu1 %v21662_v7  ;;  %v21737_v7 = vld [vmem:[#allocation20 + $0x1a8] ss:$16 sps:$4 sm:$0xff]  }
0x1350   : > { %15493 = vmatpush1.bf16.msra.mxu0 %v21665_v14  ;;  %15408 = vmatprep.subr.bf16.mxu1 %v21670_v50  ;;  %v21742_v14 = vld [vmem:[#allocation20 + $0x1c4] ss:$16 sps:$4 sm:$0xff]   ;;  %v21745_v50 = vld [vmem:[#allocation20 + $0x1cc] ss:$16 sps:$4 sm:$0xff]  }
0x1351   : > { %15494 = vmatprep.subr.bf16.mxu0 %v21673_v32  ;;  %v21740_v32 = vld [vmem:[#allocation20 + $0x1c0] ss:$16 sps:$4 sm:$0xff]  }
0x1353   : > { %15409 = vmatpush1.bf16.msra.mxu1 %v21668_v37  ;;  %v21743_v37 = vld [vmem:[#allocation20 + $0x1c8] ss:$16 sps:$4 sm:$0xff]  }
0x1354   : > { %15495 = vmatpush1.bf16.msra.mxu0 %v21671_v2  ;;  %15410 = vmatprep.subr.bf16.mxu1 %v21676_v38  ;;  %v21748_v2 = vld [vmem:[#allocation20 + $0x1e4] ss:$16 sps:$4 sm:$0xff]   ;;  %v21751_v38 = vld [vmem:[#allocation20 + $0x1ec] ss:$16 sps:$4 sm:$0xff]  }
0x1355   : > { %15496 = vmatprep.subr.bf16.mxu0 %v21679_v26  ;;  %v21746_v26 = vld [vmem:[#allocation20 + $0x1e0] ss:$16 sps:$4 sm:$0xff]  }
0x1357   : > { %15411 = vmatpush1.bf16.msra.mxu1 %v21674_v59  ;;  %v21749_v59 = vld [vmem:[#allocation20 + $0x1e8] ss:$16 sps:$4 sm:$0xff]  }
0x1358   : > { %15497 = vmatpush1.bf16.msra.mxu0 %v21677_v35  ;;  %15412 = vmatprep.subr.bf16.mxu1 %v21682_v24  ;;  %v21754_v35 = vld [vmem:[#allocation20 + $0x204] ss:$16 sps:$4 sm:$0xff]   ;;  %v21757_v24 = vld [vmem:[#allocation20 + $0x20c] ss:$16 sps:$4 sm:$0xff]  }
0x1359   : > { %15498 = vmatprep.subr.bf16.mxu0 %v21685_v28  ;;  %v21752_v28 = vld [vmem:[#allocation20 + $0x200] ss:$16 sps:$4 sm:$0xff]  }
0x135b   : > { %15413 = vmatpush1.bf16.msra.mxu1 %v21680_v49  ;;  %v21755_v49 = vld [vmem:[#allocation20 + $0x208] ss:$16 sps:$4 sm:$0xff]  }
0x135c   : > { %15499 = vmatpush1.bf16.msra.mxu0 %v21683_v8  ;;  %15414 = vmatprep.subr.bf16.mxu1 %v21688_v6  ;;  %v21760_v8 = vld [vmem:[#allocation20 + $0x224] ss:$16 sps:$4 sm:$0xff]   ;;  %v21763_v6 = vld [vmem:[#allocation20 + $0x22c] ss:$16 sps:$4 sm:$0xff]  }
0x135d   : > { %15500 = vmatprep.subr.bf16.mxu0 %v21691_v34  ;;  %v21758_v34 = vld [vmem:[#allocation20 + $0x220] ss:$16 sps:$4 sm:$0xff]  }
0x135f   : > { %15415 = vmatpush1.bf16.msra.mxu1 %v21686_v19  ;;  %v21761_v19 = vld [vmem:[#allocation20 + $0x228] ss:$16 sps:$4 sm:$0xff]  }
0x1360   : > { %15501 = vmatpush1.bf16.msra.mxu0 %v21689_v20  ;;  %15416 = vmatprep.subr.bf16.mxu1 %v21694_v58  ;;  %v21766_v20 = vld [vmem:[#allocation20 + $0x244] ss:$16 sps:$4 sm:$0xff]   ;;  %v21769_v58 = vld [vmem:[#allocation20 + $0x24c] ss:$16 sps:$4 sm:$0xff]  }
0x1361   : > { %15502 = vmatprep.subr.bf16.mxu0 %v21697_v52  ;;  %v21764_v52 = vld [vmem:[#allocation20 + $0x240] ss:$16 sps:$4 sm:$0xff]  }
0x1363   : > { %15417 = vmatpush1.bf16.msra.mxu1 %v21692_v13  ;;  %v21767_v13 = vld [vmem:[#allocation20 + $0x248] ss:$16 sps:$4 sm:$0xff]  }
0x1364   : > { %15503 = vmatpush1.bf16.msra.mxu0 %v21695_v33  ;;  %15418 = vmatprep.subr.bf16.mxu1 %v21700_v30  ;;  %v21772_v33 = vld [vmem:[#allocation20 + $0x264] ss:$16 sps:$4 sm:$0xff]   ;;  %v21770_v30 = vld [vmem:[#allocation20 + $0x260] ss:$16 sps:$4 sm:$0xff]  }
0x1365   : > { %15504 = vmatprep.subr.bf16.mxu0 %v21703_v53  ;;  %v21773_v53 = vld [vmem:[#allocation20 + $0x268] ss:$16 sps:$4 sm:$0xff]  }
0x1367   : > { %15419 = vmatpush1.bf16.msra.mxu1 %v21698_v43  ;;  %v21778_v43 = vld [vmem:[#allocation20 + $0x284] ss:$16 sps:$4 sm:$0xff]  }
0x1368   : > { %15505 = vmatpush1.bf16.msra.mxu0 %v21701_v23  ;;  %15420 = vmatprep.subr.bf16.mxu1 %v21706_v48  ;;  %v21781_v23 = vld [vmem:[#allocation20 + $0x28c] ss:$16 sps:$4 sm:$0xff]   ;;  %v21779_v48 = vld [vmem:[#allocation20 + $0x288] ss:$16 sps:$4 sm:$0xff]  }
0x1369   : > { %15506 = vmatprep.subr.bf16.mxu0 %v21709_v56  ;;  %v21784_v56 = vld [vmem:[#allocation20 + $0x2a4] ss:$16 sps:$4 sm:$0xff]  }
0x136b   : > { %15421 = vmatpush1.bf16.msra.mxu1 %v21704_v25  ;;  %v21787_v25 = vld [vmem:[#allocation20 + $0x2ac] ss:$16 sps:$4 sm:$0xff]  }
0x136c   : > { %15507 = vmatpush1.bf16.msra.mxu0 %v21707_v22  ;;  %15422 = vmatprep.subr.bf16.mxu1 %v21712_v61  ;;  %v21782_v22 = vld [vmem:[#allocation20 + $0x2a0] ss:$16 sps:$4 sm:$0xff]   ;;  %v21785_v61 = vld [vmem:[#allocation20 + $0x2a8] ss:$16 sps:$4 sm:$0xff]  }
0x136d   : > { %15508 = vmatprep.subr.bf16.mxu0 %v21715_v12  ;;  %v21790_v12 = vld [vmem:[#allocation20 + $0x2c4] ss:$16 sps:$4 sm:$0xff]  }
0x136f   : > { %15423 = vmatpush1.bf16.msra.mxu1 %v21710_v55  ;;  %v21793_v55 = vld [vmem:[#allocation20 + $0x2cc] ss:$16 sps:$4 sm:$0xff]  }
0x1370   : > { %15509 = vmatpush1.bf16.msra.mxu0 %v21713_v21  ;;  %15424 = vmatprep.subr.bf16.mxu1 %v21718_v1  ;;  %v21788_v21 = vld [vmem:[#allocation20 + $0x2c0] ss:$16 sps:$4 sm:$0xff]   ;;  %v21791_v1 = vld [vmem:[#allocation20 + $0x2c8] ss:$16 sps:$4 sm:$0xff]  }
0x1371   : > { %15510 = vmatprep.subr.bf16.mxu0 %v21721_v0  ;;  %v21796_v0 = vld [vmem:[#allocation20 + $0x2e4] ss:$16 sps:$4 sm:$0xff]  }
0x1373   : > { %15425 = vmatpush1.bf16.msra.mxu1 %v21716_v63  ;;  %v21799_v63 = vld [vmem:[#allocation20 + $0x2ec] ss:$16 sps:$4 sm:$0xff]  }
0x1374   : > { %15511 = vmatpush1.bf16.msra.mxu0 %v21719_v15  ;;  %15426 = vmatprep.subr.bf16.mxu1 %v21724_v39  ;;  %v21794_v15 = vld [vmem:[#allocation20 + $0x2e0] ss:$16 sps:$4 sm:$0xff]   ;;  %v21797_v39 = vld [vmem:[#allocation20 + $0x2e8] ss:$16 sps:$4 sm:$0xff]  }
0x1375   : > { %15512 = vmatprep.subr.bf16.mxu0 %v21727_v41  ;;  %v21802_v41 = vld [vmem:[#allocation20 + $0x304] ss:$16 sps:$4 sm:$0xff]  }
0x1377   : > { %15427 = vmatpush1.bf16.msra.mxu1 %v21722_v29  ;;  %v21805_v29 = vld [vmem:[#allocation20 + $0x30c] ss:$16 sps:$4 sm:$0xff]  }
0x1378   : > { %15513 = vmatpush1.bf16.msra.mxu0 %v21725_v31  ;;  %15428 = vmatprep.subr.bf16.mxu1 %v21730_v62  ;;  %v21800_v31 = vld [vmem:[#allocation20 + $0x300] ss:$16 sps:$4 sm:$0xff]   ;;  %v21803_v62 = vld [vmem:[#allocation20 + $0x308] ss:$16 sps:$4 sm:$0xff]  }
0x1379   : > { %15514 = vmatprep.subr.bf16.mxu0 %v21733_v36  ;;  %v21808_v36 = vld [vmem:[#allocation20 + $0x324] ss:$16 sps:$4 sm:$0xff]  }
0x137b   : > { %15429 = vmatpush1.bf16.msra.mxu1 %v21728_v47  ;;  %v21811_v47 = vld [vmem:[#allocation20 + $0x32c] ss:$16 sps:$4 sm:$0xff]  }
0x137c   : > { %15515 = vmatpush1.bf16.msra.mxu0 %v21731_v57  ;;  %15430 = vmatprep.subr.bf16.mxu1 %v21736_v54  ;;  %v21806_v57 = vld [vmem:[#allocation20 + $0x320] ss:$16 sps:$4 sm:$0xff]   ;;  %v21809_v54 = vld [vmem:[#allocation20 + $0x328] ss:$16 sps:$4 sm:$0xff]  }
0x137d   : > { %15516 = vmatprep.subr.bf16.mxu0 %v21739_v3  ;;  %v21814_v3 = vld [vmem:[#allocation20 + $0x344] ss:$16 sps:$4 sm:$0xff]  }
0x137f   : > { %15431 = vmatpush1.bf16.msra.mxu1 %v21734_v60  ;;  %v21817_v60 = vld [vmem:[#allocation20 + $0x34c] ss:$16 sps:$4 sm:$0xff]  }
0x1380   : > { %15517 = vmatpush1.bf16.msra.mxu0 %v21737_v7  ;;  %15432 = vmatprep.subr.bf16.mxu1 %v21742_v14  ;;  %v21812_v7 = vld [vmem:[#allocation20 + $0x340] ss:$16 sps:$4 sm:$0xff]   ;;  %v21815_v14 = vld [vmem:[#allocation20 + $0x348] ss:$16 sps:$4 sm:$0xff]  }
0x1381   : > { %15518 = vmatprep.subr.bf16.mxu0 %v21745_v50  ;;  %v21820_v50 = vld [vmem:[#allocation20 + $0x364] ss:$16 sps:$4 sm:$0xff]  }
0x1383   : > { %15433 = vmatpush1.bf16.msra.mxu1 %v21740_v32  ;;  %v21823_v32 = vld [vmem:[#allocation20 + $0x36c] ss:$16 sps:$4 sm:$0xff]  }
0x1384   : > { %15519 = vmatpush1.bf16.msra.mxu0 %v21743_v37  ;;  %15434 = vmatprep.subr.bf16.mxu1 %v21748_v2  ;;  %v21818_v37 = vld [vmem:[#allocation20 + $0x360] ss:$16 sps:$4 sm:$0xff]   ;;  %v21821_v2 = vld [vmem:[#allocation20 + $0x368] ss:$16 sps:$4 sm:$0xff]  }
0x1385   : > { %15520 = vmatprep.subr.bf16.mxu0 %v21751_v38  ;;  %v21826_v38 = vld [vmem:[#allocation20 + $0x384] ss:$16 sps:$4 sm:$0xff]  }
0x1387   : > { %15435 = vmatpush1.bf16.msra.mxu1 %v21746_v26  ;;  %v21829_v26 = vld [vmem:[#allocation20 + $0x38c] ss:$16 sps:$4 sm:$0xff]  }
0x1388   : > { %15521 = vmatpush1.bf16.msra.mxu0 %v21749_v59  ;;  %15447 = vmatprep.subr.bf16.mxu1 %v21754_v35  ;;  %v21824_v59 = vld [vmem:[#allocation20 + $0x380] ss:$16 sps:$4 sm:$0xff]   ;;  %v21827_v35 = vld [vmem:[#allocation20 + $0x388] ss:$16 sps:$4 sm:$0xff]  }
0x1389   : > { %15533 = vmatprep.subr.bf16.mxu0 %v21757_v24  ;;  %v21832_v24 = vld [vmem:[#allocation20 + $0x3a4] ss:$16 sps:$4 sm:$0xff]  }
0x138a   : > { %15437 = vmatmul.mubr.bf16.vlgmr.msra.gmra.mrb[72].mxu1 %v25035_v51 }
0x138b   : > { %15523 = vmatmul.mubr.bf16.vlgmr.msra.gmra.mrb[64].mxu0 %v25035_v51  ;;  %15448 = vmatpush1.bf16.msra.mxu1 %v21752_v28  ;;  %v21775_v51 = vld [vmem:[#allocation20 + $0x26c] ss:$16 sps:$4 sm:$0xff]  }
0x138c   : > { %15479 = vmatprep.mubr.bf16.mxu1 %v25045_v9  ;;  %15534 = vmatpush1.bf16.msra.mxu0 %v21755_v49  ;;  %v21835_v28 = vld [vmem:[#allocation20 + $0x3ac] ss:$16 sps:$4 sm:$0xff]   ;;  %v21830_v49 = vld [vmem:[#allocation20 + $0x3a0] ss:$16 sps:$4 sm:$0xff]  }
0x138d   : > { %15565 = vmatprep.mubr.bf16.mxu0 %v25045_v9  ;;  %15449 = vmatprep.subr.bf16.mxu1 %v21760_v8  ;;  %v21776_v9 = vld [vmem:[#allocation20 + $0x280] ss:$16 sps:$4 sm:$0xff]   ;;  %v21833_v8 = vld [vmem:[#allocation20 + $0x3a8] ss:$16 sps:$4 sm:$0xff]  }
0x138e   : > { %15535 = vmatprep.subr.bf16.mxu0 %v21763_v6  ;;  %v21838_v6 = vld [vmem:[#allocation20 + $0x3c4] ss:$16 sps:$4 sm:$0xff]  }
0x138f   : > { %15450 = vmatpush1.bf16.msra.mxu1 %v21758_v34  ;;  %v21841_v34 = vld [vmem:[#allocation20 + $0x3cc] ss:$16 sps:$4 sm:$0xff]  }
0x1390   : > { %15536 = vmatpush1.bf16.msra.mxu0 %v21761_v19  ;;  %15451 = vmatprep.subr.bf16.mxu1 %v21766_v20  ;;  %v21836_v19 = vld [vmem:[#allocation20 + $0x3c0] ss:$16 sps:$4 sm:$0xff]   ;;  %v21839_v20 = vld [vmem:[#allocation20 + $0x3c8] ss:$16 sps:$4 sm:$0xff]  }
0x1391   : > { %15537 = vmatprep.subr.bf16.mxu0 %v21769_v58  ;;  %v21844_v58 = vld [vmem:[#allocation20 + $0x3e4] ss:$16 sps:$4 sm:$0xff]  }
0x1393   : > { %15452 = vmatpush1.bf16.msra.mxu1 %v21764_v52  ;;  %v21847_v52 = vld [vmem:[#allocation20 + $0x3ec] ss:$16 sps:$4 sm:$0xff]  }
0x1394   : > { %15538 = vmatpush1.bf16.msra.mxu0 %v21767_v13  ;;  %15453 = vmatprep.subr.bf16.mxu1 %v21772_v33  ;;  %v21842_v13 = vld [vmem:[#allocation20 + $0x3e0] ss:$16 sps:$4 sm:$0xff]   ;;  %v21845_v33 = vld [vmem:[#allocation20 + $0x3e8] ss:$16 sps:$4 sm:$0xff]  }
0x1395   : > { %15539 = vmatprep.subr.bf16.mxu0 %v21775_v51 }
0x1397   : > { %15454 = vmatpush1.bf16.msra.mxu1 %v21770_v30 }
0x1398   : > { %15540 = vmatpush1.bf16.msra.mxu0 %v21773_v53  ;;  %15455 = vmatprep.subr.bf16.mxu1 %v21778_v43 }
0x1399   : > { %15541 = vmatprep.subr.bf16.mxu0 %v21781_v23 }
0x139b   : > { %15456 = vmatpush1.bf16.msra.mxu1 %v21776_v9 }
0x139c   : > { %15542 = vmatpush1.bf16.msra.mxu0 %v21779_v48  ;;  %15457 = vmatprep.subr.bf16.mxu1 %v21784_v56 }
0x139d   : > { %15543 = vmatprep.subr.bf16.mxu0 %v21787_v25  ;;  %v22483_v25 = vmov 0.0  }
0x139f   : > { %15458 = vmatpush1.bf16.msra.mxu1 %v21782_v22 }
0x13a0   : > { %15544 = vmatpush1.bf16.msra.mxu0 %v21785_v61  ;;  %15459 = vmatprep.subr.bf16.mxu1 %v21790_v12 }
0x13a1   : > { %15545 = vmatprep.subr.bf16.mxu0 %v21793_v55 }
0x13a3   : > { %15460 = vmatpush1.bf16.msra.mxu1 %v21788_v21 }
0x13a4   : > { %15546 = vmatpush1.bf16.msra.mxu0 %v21791_v1  ;;  %15461 = vmatprep.subr.bf16.mxu1 %v21796_v0 }
0x13a5   : > { %15547 = vmatprep.subr.bf16.mxu0 %v21799_v63 }
0x13a7   : > { %15462 = vmatpush1.bf16.msra.mxu1 %v21794_v15 }
0x13a8   : > { %15548 = vmatpush1.bf16.msra.mxu0 %v21797_v39  ;;  %15463 = vmatprep.subr.bf16.mxu1 %v21802_v41 }
0x13a9   : > { %15549 = vmatprep.subr.bf16.mxu0 %v21805_v29  ;;  %v15576_v29 = vld [vmem:[#allocation6] sm:$0xff] }
0x13ab   : > { %15464 = vmatpush1.bf16.msra.mxu1 %v21800_v31  ;;  %v21848_v31 = vld [vmem:[#allocation21 + $0x40] sm:$0xff]  }
0x13ac   : > { %15550 = vmatpush1.bf16.msra.mxu0 %v21803_v62  ;;  %15465 = vmatprep.subr.bf16.mxu1 %v21808_v36  ;;  %v15577_v62 = vld [vmem:[#allocation6 + $0x8] sm:$0xff]  ;;  %v21849_v36 = vld [vmem:[#allocation21] sm:$0xff]  }
0x13ad   : > { %15551 = vmatprep.subr.bf16.mxu0 %v21811_v47  ;;  %v21850_v47 = vld [vmem:[#allocation21 + $0x48] sm:$0xff]  }
0x13af   : > { %15466 = vmatpush1.bf16.msra.mxu1 %v21806_v57  ;;  %v21851_v57 = vld [vmem:[#allocation21 + $0x8] sm:$0xff]  }
0x13b0   : > { %15552 = vmatpush1.bf16.msra.mxu0 %v21809_v54  ;;  %15467 = vmatprep.subr.bf16.mxu1 %v21814_v3  ;;  %v21852_v54 = vld [vmem:[#allocation21 + $0x50] sm:$0xff]  }
0x13b1   : > { %15553 = vmatprep.subr.bf16.mxu0 %v21817_v60  ;;  %v21853_v3 = vld [vmem:[#allocation21 + $0x10] sm:$0xff]   ;;  %v21854_v60 = vld [vmem:[#allocation21 + $0x58] sm:$0xff]  }
0x13b3   : > { %15468 = vmatpush1.bf16.msra.mxu1 %v21812_v7  ;;  %v21855_v7 = vld [vmem:[#allocation21 + $0x18] sm:$0xff]  }
0x13b4   : > { %15554 = vmatpush1.bf16.msra.mxu0 %v21815_v14  ;;  %15469 = vmatprep.subr.bf16.mxu1 %v21820_v50  ;;  %v21856_v14 = vld [vmem:[#allocation21 + $0x60] sm:$0xff]  }
0x13b5   : > { %15555 = vmatprep.subr.bf16.mxu0 %v21823_v32  ;;  %v21857_v50 = vld [vmem:[#allocation21 + $0x20] sm:$0xff]   ;;  %v21858_v32 = vld [vmem:[#allocation21 + $0x68] sm:$0xff]  }
0x13b7   : > { %15470 = vmatpush1.bf16.msra.mxu1 %v21818_v37  ;;  %v21859_v37 = vld [vmem:[#allocation21 + $0x28] sm:$0xff]  }
0x13b8   : > { %15556 = vmatpush1.bf16.msra.mxu0 %v21821_v2  ;;  %15471 = vmatprep.subr.bf16.mxu1 %v21826_v38  ;;  %v21860_v2 = vld [vmem:[#allocation21 + $0x70] sm:$0xff]  }
0x13b9   : > { %15557 = vmatprep.subr.bf16.mxu0 %v21829_v26  ;;  %v21861_v38 = vld [vmem:[#allocation21 + $0x30] sm:$0xff]   ;;  %v21862_v26 = vld [vmem:[#allocation21 + $0x78] sm:$0xff]  }
0x13bb   : > { %15472 = vmatpush1.bf16.msra.mxu1 %v21824_v59  ;;  %v21863_v59 = vld [vmem:[#allocation21 + $0x38] sm:$0xff]  }
0x13bc   : > { %15558 = vmatpush1.bf16.msra.mxu0 %v21827_v35  ;;  %15473 = vmatprep.subr.bf16.mxu1 %v21832_v24  ;;  %v21864_v35 = vld [vmem:[#allocation21 + $0xc0] sm:$0xff]   ;;  %v13802_v24 = vld [vmem:[%s25352_s11 + $0x3a] sm:$0xf] }
0x13bd   : > { %15559 = vmatprep.subr.bf16.mxu0 %v21835_v28  ;;  %v13807_v28 = vrot.slane %v13802_v24, %v22942_v44 }
0x13bf   : > { %15474 = vmatpush1.bf16.msra.mxu1 %v21830_v49  ;;  %v13811_v49 = vrot.slane %v13802_v24, %v22948_v45 }
0x13c0   : > { %15560 = vmatpush1.bf16.msra.mxu0 %v21833_v8  ;;  %15475 = vmatprep.subr.bf16.mxu1 %v21838_v6 }
0x13c1   : > { %15561 = vmatprep.subr.bf16.mxu0 %v21841_v34 }
0x13c3   : > { %15476 = vmatpush1.bf16.msra.mxu1 %v21836_v19 }
0x13c4   : > { %15562 = vmatpush1.bf16.msra.mxu0 %v21839_v20  ;;  %15477 = vmatprep.subr.bf16.mxu1 %v21844_v58 }
0x13c5   : > { %15563 = vmatprep.subr.bf16.mxu0 %v21847_v52  ;;  %v13815_v52 = vrot.slane %v13802_v24, %v22945_v11 }
0x13c7   : > { %15478 = vmatpush1.bf16.msra.mxu1 %v21842_v13 }
0x13c8   : > { %15564 = vmatpush1.bf16.msra.mxu0 %v21845_v33  ;;  %v13819_v33 = vrot.slane %v13802_v24, %v22951_v46  ;;  %v21879_v24 = vld [vmem:[#allocation21 + $0xb8] sm:$0xff]  }
0x13ca   : > { %15480 = vmatmul.mubr.bf16.vlgmr.msra.gmra.mrb[72].mxu1 %v25051_v5 }
0x13cb   : > { %15566 = vmatmul.mubr.bf16.vlgmr.msra.gmra.mrb[64].mxu0 %v25051_v5  ;;  %15649 = vmatprep.mubr.f32.mxu1 %v22483_v25 }
0x141d   : > { %v25063_v51 = vpop.f32.mrb[68].mxu1  ;;  %v25065_v30 = vpop.f32.mrb[60].mxu0 }
0x141e   : > { %v25067_v53 = vpop.f32.mrb[69].mxu1  ;;  %v25069_v43 = vpop.f32.mrb[61].mxu0  ;;  %v18987_v8 = vadd.f32 %v25063_v51, %v13807_v28 }
0x141f   : > { %v25071_v23 = vpop.f32.mrb[70].mxu1  ;;  %v25073_v9 = vpop.f32.mrb[62].mxu0  ;;  %v18988_v6 = vadd.f32 %v25067_v53, %v13811_v49  ;;  %v18991_v53 = vadd.f32 %v25065_v30, %v13815_v52 }
0x1420   : > { %v25075_v48 = vpop.f32.mrb[71].mxu1  ;;  %v25077_v56 = vpop.f32.mrb[63].mxu0  ;;  %v18989_v13 = vadd.f32 %v25071_v23, %v13807_v28  ;;  %v18993_v46 = vadd.f32 %v25073_v9, %v13815_v52 }
0x149d   : > { %v15481_v5 = vpop.f32.mrb[72].mxu1 }
0x149e   : > { %v15567_v22 = vpop.f32.mrb[64].mxu0  ;;  %v15483_v61 = vpop.f32.mrb[73].mxu1 }
0x149f   : > { %v15569_v12 = vpop.f32.mrb[65].mxu0  ;;  %v15485_v55 = vpop.f32.mrb[74].mxu1 }
0x14a0   : > { %v18909_v21 = vpack.c.bf16 %v15485_v55, %v15481_v5  ;;  %v15571_v1 = vpop.f32.mrb[66].mxu0  ;;  %v15487_v0 = vpop.f32.mrb[75].mxu1  ;;  %v18990_v5 = vadd.f32 %v25075_v48, %v13811_v49  ;;  %v18994_v48 = vadd.f32 %v25077_v56, %v13819_v33  ;;  %v21867_v56 = vld [vmem:[#allocation21 + $0x88] sm:$0xff]  }
0x14a1   : > { %v18913_v63 = vpack.c.bf16 %v15571_v1, %v15567_v22  ;;  %v18907_v15 = vpack.c.bf16 %v15487_v0, %v15483_v61  ;;  %v15573_v39 = vpop.f32.mrb[67].mxu0  ;;  %v18992_v61 = vadd.f32 %v25069_v43, %v13819_v33 }
0x14a2   : > { %v18911_v41 = vpack.c.bf16 %v15573_v39, %v15569_v12 }
0x14a3   : > { %18908 = vmatprep.subr.bf16.mxu1 %v18907_v15 }
0x14a4   : > { %18910 = vmatpush1.bf16.msra.mxu1 %v18909_v21 }
0x14a5   : > { %18912 = vmatprep.subr.bf16.mxu1 %v18911_v41 }
0x14a7   : > { %18581 = vmatmul.mubr.msk.f32.vlgmr.msra.gmra.mrb[76].mxu1 %vm15578_vm2, %v15576_v29 }
0x14a8   : > { %18914 = vmatpush1.bf16.msra.mxu1 %v18913_v63  ;;  %15655 = vmatprep.mubr.f32.mxu1 %v22483_v25 }
0x14a9   : > { %18755 = vmatprep.subr.bf16.mxu1 %v21848_v31  ;;  %v21865_v31 = vld [vmem:[#allocation21 + $0x80] sm:$0xff]  }
0x14ab   : > { %18582 = vmatmul.mubr.msk.f32.gmra.mrb[78].mxu1 %vm15578_vm2, %v15577_v62 }
0x14ac   : > { %15726 = vmatprep.mubr.f32.mxu1 %v22483_v25 }
0x14af   : > { %18583 = vmatmul.mubr.msk.f32.vlgmr.msra.gmra.mrb[80].mxu1 %vm15578_vm2, %v15576_v29 }
0x14b0   : > { %15732 = vmatprep.mubr.f32.mxu1 %v22483_v25  ;;  %18756 = vmatpush3.bf16.msra.mxu1 %v21849_v36 }
0x14b1   : > { %18757 = vmatprep.subr.bf16.mxu1 %v21850_v47  ;;  %v21868_v47 = vld [vmem:[#allocation21 + $0xd0] sm:$0xff]  }
0x14b3   : > { %18584 = vmatmul.mubr.msk.f32.gmra.mrb[82].mxu1 %vm15578_vm2, %v15577_v62  ;;  %v21866_v62 = vld [vmem:[#allocation21 + $0xc8] sm:$0xff]  }
0x14b4   : > { %18758 = vmatpush3.bf16.msra.mxu1 %v21851_v57 }
0x14b5   : > { %18759 = vmatprep.subr.bf16.mxu1 %v21852_v54 }
0x14b8   : > { %18760 = vmatpush3.bf16.msra.mxu1 %v21853_v3 }
0x14b9   : > { %18761 = vmatprep.subr.bf16.mxu1 %v21854_v60 }
0x14bc   : > { %18762 = vmatpush3.bf16.msra.mxu1 %v21855_v7  ;;  %v21869_v7 = vld [vmem:[#allocation21 + $0x90] sm:$0xff]  }
0x14bd   : > { %18763 = vmatprep.subr.bf16.mxu1 %v21856_v14  ;;  %v21870_v14 = vld [vmem:[#allocation21 + $0xd8] sm:$0xff]  }
0x14c0   : > { %18764 = vmatpush3.bf16.msra.mxu1 %v21857_v50  ;;  %v21871_v50 = vld [vmem:[#allocation21 + $0x98] sm:$0xff]  }
0x14c1   : > { %18765 = vmatprep.subr.bf16.mxu1 %v21858_v32  ;;  %v21872_v32 = vld [vmem:[#allocation21 + $0xe0] sm:$0xff]  }
0x14c4   : > { %18766 = vmatpush3.bf16.msra.mxu1 %v21859_v37  ;;  %v21873_v37 = vld [vmem:[#allocation21 + $0xa0] sm:$0xff]  }
0x14c5   : > { %18767 = vmatprep.subr.bf16.mxu1 %v21860_v2  ;;  %v21874_v2 = vld [vmem:[#allocation21 + $0xe8] sm:$0xff]  }
0x14c8   : > { %18768 = vmatpush3.bf16.msra.mxu1 %v21861_v38  ;;  %v21875_v38 = vld [vmem:[#allocation21 + $0xa8] sm:$0xff]  }
0x14c9   : > { %18769 = vmatprep.subr.bf16.mxu1 %v21862_v26  ;;  %v21876_v26 = vld [vmem:[#allocation21 + $0xf0] sm:$0xff]  }
0x14cc   : > { %18770 = vmatpush3.bf16.msra.mxu1 %v21863_v59  ;;  %v21877_v59 = vld [vmem:[#allocation21 + $0xb0] sm:$0xff]  }
0x14cd   : > { %18777 = vmatprep.subr.bf16.mxu1 %v21864_v35  ;;  %v21878_v35 = vld [vmem:[#allocation21 + $0xf8] sm:$0xff]  }
0x157a   : > { %v15651_v34 = vpop.f32.mrb[76].mxu1 }
0x157b   : > { %v15739_v19 = vadd.f32 %v18987_v8, %v15651_v34  ;;  %v15653_v20 = vpop.f32.mrb[77].mxu1 }
0x157c   : > { %v15740_v58 = vadd.f32 %v18988_v6, %v15653_v20 }
0x157d   : > { %22068 = vtanh.f32 %v15739_v19 }
0x157e   : > { %v15657_v22 = vpop.f32.mrb[78].mxu1  ;;  %22070 = vtanh.f32 %v15740_v58 }
0x157f   : > { %v15743_v44 = vadd.f32 %v18989_v13, %v15657_v22  ;;  %v15659_v45 = vpop.f32.mrb[79].mxu1 }
0x1580   : > { %v15744_v51 = vadd.f32 %v18990_v5, %v15659_v45 }
0x1581   : > { %22072 = vtanh.f32 %v15743_v44 }
0x1582   : > { %22074 = vtanh.f32 %v15744_v51  ;;  %v15728_v12 = vpop.f32.mrb[80].mxu1 }
0x1583   : > { %v15741_v11 = vadd.f32 %v18991_v53, %v15728_v12  ;;  %v15730_v55 = vpop.f32.mrb[81].mxu1 }
0x1584   : > { %v15742_v23 = vadd.f32 %v18992_v61, %v15730_v55 }
0x1585   : > { %22076 = vtanh.f32 %v15741_v11 }
0x1586   : > { %v15734_v21 = vpop.f32.mrb[82].mxu1  ;;  %22078 = vtanh.f32 %v15742_v23 }
0x1587   : > { %v15745_v1 = vadd.f32 %v18993_v46, %v15734_v21  ;;  %v15736_v0 = vpop.f32.mrb[83].mxu1  ;;  %v22069_v15 = vpop.eup %22068 }
0x1588   : > { %v15746_v63 = vadd.f32 %v18994_v48, %v15736_v0  ;;  %v22071_v30 = vpop.eup %22070 }
0x1589   : > { %22080 = vtanh.f32 %v15745_v1 }
0x158a   : > { %22082 = vtanh.f32 %v15746_v63 }
0x158b   : > { %v22073_v43 = vpop.eup %22072 }
0x158c   : > { %v22075_v39 = vpop.eup %22074  ;;  %v15755_v41 = vpack.c.bf16 %v22073_v43, %v22069_v15 }
0x158d   : > { %v15756_v29 = vpack.c.bf16 %v22075_v39, %v22071_v30 }
0x158f   : > { %16047 = vmatprep.mubr.bf16.mxu1 %v15756_v29  ;;  %v22077_v9 = vpop.eup %22076 }
0x1590   : > { %16048 = vmatmul.mubr.bf16.vlgmr.msra.gmra.mrb[84].mxu1 %v15755_v41  ;;  %v22079_v36 = vpop.eup %22078 }
0x1591   : > { %18778 = vmatpush3.bf16.msra.mxu1 %v21865_v31 }
0x1592   : > { %18779 = vmatprep.subr.bf16.mxu1 %v21866_v62 }
0x1593   : > { %v22081_v57 = vpop.eup %22080 }
0x1594   : > { %v22083_v54 = vpop.eup %22082  ;;  %v15757_v3 = vpack.c.bf16 %v22081_v57, %v22077_v9 }
0x1595   : > { %18780 = vmatpush3.bf16.msra.mxu1 %v21867_v56  ;;  %v15758_v60 = vpack.c.bf16 %v22083_v54, %v22079_v36 }
0x1596   : > { %18781 = vmatprep.subr.bf16.mxu1 %v21868_v47 }
0x1597   : > { %16088 = vmatprep.mubr.bf16.mxu1 %v15758_v60 }
0x1599   : > { %18782 = vmatpush3.bf16.msra.mxu1 %v21869_v7 }
0x159a   : > { %18783 = vmatprep.subr.bf16.mxu1 %v21870_v14 }
0x159d   : > { %18784 = vmatpush3.bf16.msra.mxu1 %v21871_v50 }
0x159e   : > { %18785 = vmatprep.subr.bf16.mxu1 %v21872_v32 }
0x15a1   : > { %18786 = vmatpush3.bf16.msra.mxu1 %v21873_v37 }
0x15a2   : > { %18787 = vmatprep.subr.bf16.mxu1 %v21874_v2 }
0x15a5   : > { %18788 = vmatpush3.bf16.msra.mxu1 %v21875_v38 }
0x15a6   : > { %18789 = vmatprep.subr.bf16.mxu1 %v21876_v26 }
0x15a9   : > { %18790 = vmatpush3.bf16.msra.mxu1 %v21877_v59 }
0x15aa   : > { %18791 = vmatprep.subr.bf16.mxu1 %v21878_v35 }
0x15ad   : > { %18792 = vmatpush3.bf16.msra.mxu1 %v21879_v24  ;;  %v21883_v24 = vld [vmem:[%s25286_s17 + $0xc0] sm:$0xff]  }
0x15ae   : > { %18821 = vmatprep.subr.bf16.mxu0 %v21883_v24 }
0x15b0   : > { %16089 = vmatmul.mubr.bf16.vlgmr.msra.gmra.mrb[88].mxu1 %v15757_v3 }
0x15b1   : > { %16226 = vmatprep.mubr.f32.mxu1 %v22483_v25 }
0x1663   : > { %v18771_v28 = vpop.f32.mrb[84].mxu1 }
0x1664   : > { %v18772_v49 = vpop.f32.mrb[85].mxu1 }
0x1665   : > { %v18773_v8 = vadd.f32 %v18772_v49, %v18771_v28  ;;  %v18774_v6 = vpop.f32.mrb[86].mxu1  ;;  %v21885_v28 = vld [vmem:[%s25286_s17 + $0x80] sm:$0xff]   ;;  %v21887_v49 = vld [vmem:[%s25286_s17 + $0xc8] sm:$0xff]  }
0x1666   : > { %v18775_v34 = vpop.f32.mrb[87].mxu1  ;;  %18822 = vmatpush3.bf16.msra.mxu0 %v21885_v28 }
0x1667   : > { %v18776_v19 = vadd.f32 %v18775_v34, %v18774_v6  ;;  %18823 = vmatprep.subr.bf16.mxu0 %v21887_v49  ;;  %v21891_v6 = vld [vmem:[%s25286_s17 + $0xd0] sm:$0xff]  }
0x1668   : > { %v21893_v34 = vld [vmem:[%s25286_s17 + $0x90] sm:$0xff]  }
0x1683   : > { %v18793_v20 = vpop.f32.mrb[88].mxu1 }
0x1684   : > { %v18794_v58 = vpop.f32.mrb[89].mxu1 }
0x1685   : > { %v18795_v52 = vadd.f32 %v18794_v58, %v18793_v20  ;;  %v18796_v13 = vpop.f32.mrb[90].mxu1  ;;  %v21897_v20 = vld [vmem:[%s25286_s17 + $0x98] sm:$0xff]   ;;  %v21899_v58 = vld [vmem:[%s25286_s17 + $0xe0] sm:$0xff]  }
0x1686   : > { %v18797_v33 = vpop.f32.mrb[91].mxu1 }
0x1687   : > { %v16091_v5 = vadd.f32 %v18795_v52, %v18773_v8  ;;  %v18798_v22 = vadd.f32 %v18797_v33, %v18796_v13  ;;  %v21889_v8 = vld [vmem:[%s25286_s17 + $0x88] sm:$0xff]   ;;  %v21901_v52 = vld [vmem:[%s25286_s17 + $0xa0] sm:$0xff]  }
0x1688   : > { %18824 = vmatpush3.bf16.msra.mxu0 %v21889_v8  ;;  %v21903_v13 = vld [vmem:[%s25286_s17 + $0xe8] sm:$0xff]  }
0x1689   : > { %v16098_v44 = vsel %vm16097_vm3, %v16091_v5, -inf  ;;  %v16094_v45 = vadd.f32 %v18798_v22, %v18776_v19  ;;  %18825 = vmatprep.subr.bf16.mxu0 %v21891_v6  ;;  %v21895_v19 = vld [vmem:[%s25286_s17 + $0xd8] sm:$0xff]   ;;  %v21905_v33 = vld [vmem:[%s25286_s17 + $0xa8] sm:$0xff]  }
0x168a   : > { %v16099_v51 = vrot.slane %v16098_v44, 4 }
0x168b   : > { %v16118_v53 = vsel %vm16097_vm3, %v16094_v45, -inf }
0x168c   : > { %v16100_v61 = vmax.f32 %v16098_v44, %v16099_v51  ;;  %v16119_v12 = vrot.slane %v16118_v53, 4  ;;  %18826 = vmatpush3.bf16.msra.mxu0 %v21893_v34 }
0x168d   : > { %18827 = vmatprep.subr.bf16.mxu0 %v21895_v19 }
0x168e   : > { %v16101_v11 = vrot.slane %v16100_v61, 2  ;;  %v16120_v55 = vmax.f32 %v16118_v53, %v16119_v12 }
0x1690   : > { %v16102_v23 = vmax.f32 %v16100_v61, %v16101_v11  ;;  %v16121_v46 = vrot.slane %v16120_v55, 2  ;;  %18828 = vmatpush3.bf16.msra.mxu0 %v21897_v20 }
0x1691   : > { %18829 = vmatprep.subr.bf16.mxu0 %v21899_v58 }
0x1692   : > { %v16103_v48 = vrot.slane %v16102_v23, 1  ;;  %v16122_v21 = vmax.f32 %v16120_v55, %v16121_v46 }
0x1694   : > { %v16104_v1 = vmax.f32 %v16102_v23, %v16103_v48  ;;  %v16123_v0 = vrot.slane %v16122_v21, 1  ;;  %18830 = vmatpush3.bf16.msra.mxu0 %v21901_v52 }
0x1695   : > { %18831 = vmatprep.subr.bf16.mxu0 %v21903_v13 }
0x1696   : > { %v16105_v63 = vsub.f32 %v16091_v5, %v16104_v1  ;;  %v16124_v15 = vmax.f32 %v16122_v21, %v16123_v0  ;;  %v21892_v21 = vld [vmem:[%s25286_s17 + $0x18] sm:$0xff]   ;;  %v21894_v1 = vld [vmem:[%s25286_s17 + $0x60] sm:$0xff]  }
0x1697   : > { %v21896_v0 = vld [vmem:[%s25286_s17 + $0x20] sm:$0xff]  }
0x1698   : > { %v16106_v30 = vmul.f32 1.442695, %v16105_v63  ;;  %v16125_v43 = vsub.f32 %v16094_v45, %v16124_v15  ;;  %18832 = vmatpush3.bf16.msra.mxu0 %v21905_v33  ;;  %v21898_v63 = vld [vmem:[%s25286_s17 + $0x68] sm:$0xff]  }
0x1699   : > { %v21900_v15 = vld [vmem:[%s25286_s17 + $0x28] sm:$0xff]  }
0x169a   : > { %22084 = vpow2.f32 %v16106_v30  ;;  %v16126_v39 = vmul.f32 1.442695, %v16125_v43  ;;  %v21902_v30 = vld [vmem:[%s25286_s17 + $0x70] sm:$0xff]  }
0x169b   : > { %v21904_v43 = vld [vmem:[%s25286_s17 + $0x30] sm:$0xff]  }
0x169c   : > { %22086 = vpow2.f32 %v16126_v39  ;;  %v21906_v39 = vld [vmem:[%s25286_s17 + $0x78] sm:$0xff]  }
0x16a4   : > { %v22085_v41 = vpop.eup %22084 }
0x16a5   : > { %v16108_v29 = vsel %vm16097_vm3, %v22085_v41, 0.0 }
0x16a6   : > { %v22087_v31 = vpop.eup %22086  ;;  %v16109_v62 = vrot.slane %v16108_v29, 4 }
0x16a7   : > { %v16128_v9 = vsel %vm16097_vm3, %v22087_v31, 0.0 }
0x16a8   : > { %v16110_v56 = vadd.f32 %v16109_v62, %v16108_v29  ;;  %v16129_v36 = vrot.slane %v16128_v9, 4  ;;  %v21908_v29 = vld [vmem:[%s25286_s17 + $0x38] sm:$0xff]  }
0x16a9   : > { %v21910_v62 = vld [vmem:[%s25286_s17 + $0xf8] sm:$0xff]  }
0x16aa   : > { %v16111_v47 = vrot.slane %v16110_v56, 2  ;;  %v16130_v57 = vadd.f32 %v16129_v36, %v16128_v9  ;;  %v21911_v9 = vld [vmem:[%s25286_s17 + $0xb8] sm:$0xff]  }
0x16ac   : > { %v16112_v54 = vadd.f32 %v16111_v47, %v16110_v56  ;;  %v16131_v3 = vrot.slane %v16130_v57, 2 }
0x16ae   : > { %v16113_v60 = vrot.slane %v16112_v54, 1  ;;  %v16132_v7 = vadd.f32 %v16131_v3, %v16130_v57 }
0x16b0   : > { %v16114_v14 = vadd.f32 %v16113_v60, %v16112_v54  ;;  %v16133_v50 = vrot.slane %v16132_v7, 1 }
0x16b2   : > { %22088 = vrcp.f32 %v16114_v14  ;;  %v16134_v32 = vadd.f32 %v16133_v50, %v16132_v7 }
0x16b4   : > { %22090 = vrcp.f32 %v16134_v32 }
0x16bc   : > { %v22089_v37 = vpop.eup %22088 }
0x16bd   : > { %v16116_v2 = vmul.f32 %v22089_v37, %v22085_v41  ;;  %v21907_v41 = vld [vmem:[%s25286_s17 + $0xf0] sm:$0xff]  }
0x16be   : > { %v22091_v38 = vpop.eup %22090  ;;  %18833 = vmatprep.subr.bf16.mxu0 %v21907_v41 }
0x16bf   : > { %16117 = vst.msk [vmem:[#allocation5] sm:$0xff] %vm16097_vm3, %v16116_v2  ;;  %v16136_v26 = vmul.f32 %v22091_v38, %v22087_v31  ;;  %v21909_v31 = vld [vmem:[%s25286_s17 + $0xb0] sm:$0xff]   ;;  %v18619_v2 = vld [vmem:[%s25352_s11 + $0x3e] ss:$0 sm:$0xff] }
0x16c0   : > { %18834 = vmatpush3.bf16.msra.mxu0 %v21909_v31 }
0x16c1   : > { %16137 = vst.msk [vmem:[#allocation5 + $0x8] sm:$0xff] %vm16097_vm3, %v16136_v26  ;;  %18835 = vmatprep.subr.bf16.mxu0 %v21910_v62 }
0x16c4   : > { %18836 = vmatpush3.bf16.msra.mxu0 %v21911_v9 }
0x16c6   : > { %v16139_v59 = vld [vmem:[#allocation5] sm:$0xff] }
0x16c7   : > { %16143 = vperm.xlu1 %19324, %v16139_v59  }
0x16c8   : > { %v16140_v35 = vld [vmem:[#allocation5 + $0x8] sm:$0xff] }
0x16c9   : > { %16148 = vperm.xlu0 %19325, %v16140_v35  }
0x1746   : > { %v16144_v5 = vpop.permute.xlu1 %16143 }
0x1747   : > { %v16151_v22 = vmul.f32 %v16144_v5, %v25021_v10  ;;  %v16152_v45 = vmul.f32 %v16144_v5, %v25017_v42  ;;  %v16154_v12 = vmul.f32 %v16144_v5, %v25037_v18  ;;  %v16153_v48 = vmul.f32 %v16144_v5, %v25015_v27  ;;  %v16138_v42 = vld [vmem:[%s25354_s19] sm:$0x3]  ;;  %v21888_v18 = vld [vmem:[%s25286_s17 + $0x10] sm:$0xff]  }
0x1748   : > { %v16149_v44 = vpop.permute.xlu0 %16148  ;;  %v21881_v27 = vld [vmem:[%s25286_s17] sm:$0xff]  }
0x1749   : > { %v16155_v51 = vmul.f32 %v16149_v44, %v25023_v16  ;;  %v16156_v53 = vmul.f32 %v16149_v44, %v25019_v17  ;;  %v16158_v61 = vmul.f32 %v16149_v44, %v25025_v4  ;;  %v16157_v23 = vmul.f32 %v16149_v44, %v25027_v40  ;;  %v21880_v17 = vld [vmem:[%s25286_s17 + $0x40] sm:$0xff]   ;;  %v21882_v16 = vld [vmem:[%s25286_s17 + $0x48] sm:$0xff]   ;;  %v21886_v40 = vld [vmem:[%s25286_s17 + $0x50] sm:$0xff]  }
0x174a   : > { %v21884_v4 = vld [vmem:[%s25286_s17 + $0x8] sm:$0xff]  }
0x174b   : > { %v18917_v11 = vpack.c.bf16 %v16155_v51, %v16151_v22  ;;  %v18915_v55 = vpack.c.bf16 %v16156_v53, %v16152_v45  ;;  %v18919_v46 = vpack.c.bf16 %v16158_v61, %v16154_v12  ;;  %v18921_v10 = vpack.c.bf16 %v16157_v23, %v16153_v48 }
0x174d   : > { %18916 = vmatprep.subr.bf16.mxu1 %v18915_v55 }
0x174e   : > { %18918 = vmatpush1.bf16.msra.mxu1 %v18917_v11 }
0x174f   : > { %18920 = vmatprep.subr.bf16.mxu1 %v18919_v46 }
0x1751   : > { %18617 = vmatmul.mubr.msk.f32.vlgmr.msra.gmra.mrb[92].mxu1 %vm15578_vm2, %v16138_v42 }
0x1752   : > { %18922 = vmatpush1.bf16.msra.mxu1 %v18921_v10  ;;  %16297 = vmatprep.mubr.f32.mxu1 %v22483_v25  ;;  %v21890_v25 = vld [vmem:[%s25286_s17 + $0x58] sm:$0xff]  }
0x1753   : > { %18799 = vmatprep.subr.bf16.mxu1 %v21880_v17 }
0x1755   : > { %18618 = vmatmul.mubr.msk.f32.vlgmr.msra.gmra.mrb[94].mxu1 %vm15578_vm2, %v16138_v42 }
0x1756   : > { %18800 = vmatpush3.bf16.msra.mxu1 %v21881_v27 }
0x1757   : > { %18801 = vmatprep.subr.bf16.mxu1 %v21882_v16 }
0x175a   : > { %18802 = vmatpush3.bf16.msra.mxu1 %v21884_v4 }
0x175b   : > { %18803 = vmatprep.subr.bf16.mxu1 %v21886_v40 }
0x175e   : > { %18804 = vmatpush3.bf16.msra.mxu1 %v21888_v18 }
0x175f   : > { %18805 = vmatprep.subr.bf16.mxu1 %v21890_v25 }
0x1762   : > { %18806 = vmatpush3.bf16.msra.mxu1 %v21892_v21 }
0x1763   : > { %18807 = vmatprep.subr.bf16.mxu1 %v21894_v1 }
0x1766   : > { %18808 = vmatpush3.bf16.msra.mxu1 %v21896_v0 }
0x1767   : > { %18809 = vmatprep.subr.bf16.mxu1 %v21898_v63 }
0x176a   : > { %18810 = vmatpush3.bf16.msra.mxu1 %v21900_v15 }
0x176b   : > { %18811 = vmatprep.subr.bf16.mxu1 %v21902_v30 }
0x176e   : > { %18812 = vmatpush3.bf16.msra.mxu1 %v21904_v43 }
0x176f   : > { %18813 = vmatprep.subr.bf16.mxu1 %v21906_v39 }
0x1772   : > { %18814 = vmatpush3.bf16.msra.mxu1 %v21908_v29 }
0x1824   : > { %v16228_v56 = vpop.f32.mrb[92].mxu1 }
0x1825   : > { %v16230_v36 = vpop.f32.mrb[93].mxu1  ;;  %v16304_v57 = vpack.c.bf16 %v16228_v56, %v16228_v56 }
0x1826   : > { %v16305_v47 = vpack.c.bf16 %v16230_v36, %v16230_v36 }
0x1828   : > { %v16299_v54 = vpop.f32.mrb[94].mxu1  ;;  %16603 = vmatprep.mubr.bf16.mxu1 %v16305_v47 }
0x1829   : > { %v16301_v3 = vpop.f32.mrb[95].mxu1  ;;  %16604 = vmatmul.mubr.bf16.vlgmr.msra.gmra.mrb[96].mxu1 %v16304_v57  ;;  %v16306_v7 = vpack.c.bf16 %v16299_v54, %v16299_v54 }
0x182a   : > { %v16307_v60 = vpack.c.bf16 %v16301_v3, %v16301_v3 }
0x182c   : > { %16643 = vmatprep.mubr.bf16.mxu0 %v16307_v60 }
0x182d   : > { %16644 = vmatmul.mubr.bf16.vlgmr.msra.gmra.mrb[68].mxu0 %v16306_v7 }
0x18fc   : > { %v18815_v14 = vpop.f32.mrb[96].mxu1 }
0x18fd   : > { %v18816_v50 = vpop.f32.mrb[97].mxu1 }
0x18fe   : > { %v18817_v32 = vadd.f32 %v18816_v50, %v18815_v14  ;;  %v18818_v37 = vpop.f32.mrb[98].mxu1 }
0x18ff   : > { %v18819_v38 = vpop.f32.mrb[99].mxu1 }
0x1900   : > { %v18837_v26 = vpop.f32.mrb[68].mxu0  ;;  %v16606_v35 = vadd.f32 %v18817_v32, %v18619_v2 }
0x1901   : > { %v18838_v59 = vpop.f32.mrb[69].mxu0 }
0x1902   : > { %v18839_v24 = vadd.f32 %v18838_v59, %v18837_v26  ;;  %v18840_v28 = vpop.f32.mrb[70].mxu0 }
0x1903   : > { %v18841_v49 = vpop.f32.mrb[71].mxu0 }
0x1904   : > { %v16646_v8 = vadd.f32 %v18839_v24, %v16606_v35 }
0x1906   : > { %16651 = vst [vmem:[%s717_s26] sm:$0x3] %v16646_v8 }
0x1907   : > { %22386 = shalt.err (!%p22383_p1)
}
0x1908   : > { %s22387_s30 = scalar_lea.hbm %s25227_s8, 32  ;;  %s22391_s29 = scalar_lea.hbm %s25357_s25, 64 }
0x1909   : > { %p22388_p2 = scmp.ne.s32.totalorder %s25227_s8, %s22387_s30  ;;  %p22392_p7 = scmp.lt.u32.totalorder %s25227_s8, %s25357_s25 }
0x190a   : > { %p22393_p8 = scmp.lt.u32.totalorder %s22391_s29, %s22387_s30  ;;  %p22395_p6 = scmp.lt.u32.totalorder %s22387_s30, %s25227_s8 }
0x190b   : > { %p22389_p3 = pnand %p22388_p2, %p25358_p5 }
0x190c   : > { %p22394_p11 = por %p22393_p8, %p22392_p7 }
0x190d   : > { %p22390_p4 = pneg %p22389_p3 }
0x190e   : > { %p22396_p0 = por %p22395_p6, %p22394_p11 }
0x1910   : > { %p22397_p9 = pnand %p22396_p0, %p22390_p4 }
0x1912   : > { %22400 = shalt.err (!%p22397_p9)
}
0x1913   : > { %19211 = dma.vmem_to_hbm [thread:$0]  (%p25358_p5), %s25229_s24, 32, %s25227_s8, %s16653_s22  }
0x1914 PF: > { %s25359_s26 = sld [smem:[#allocation34_spill]]  ;;  %s25360_s1 = sld [smem:[#allocation31_spill]] }
0x1915   : > { %s25361_s19 = sld [smem:[#allocation38_spill]] }
0x191a   : > { %p19268_p10 = scmp.ge.s32.totalorder %s25359_s26, 2  ;;  %s16678_s0 = sand.u32 1, %s25360_s1  }
0x191b   : > { %p25362_p13 = scmp.ne.s32.totalorder %s25361_s19, 0  ;;  %s16679_s21 = scalar_lea.sflag [#allocation8], %s16678_s0 }
0x191d   : > { %p19245_p12 = pnand %p19268_p10, %p25362_p13 }
0x191f   : > { %22442 = dma.done.wait (!%p19245_p12), %s16679_s21, 32  }
0x1920   : > { %22444 = vsyncadd (!%p19245_p12), %s16679_s21, 4294967264  ;;  %s25363_s30 = sld [smem:[#allocation35_spill]]  ;;  %s25364_s27 = sld [smem:[#allocation32_spill]] }
0x1921   : > { %s25365_s28 = sld [smem:[#allocation33_spill]]  ;;  %s25366_s29 = sld [smem:[#allocation36_spill]] }
0x1926   : > { %p34_p1 = scmp.ge.s32.totalorder %s25363_s30, 4  }
0x1928   :  { %36 = sbr.rel (!%p34_p1) target bundleno = 18 (0x12), region = 168 }
0x192f   :  { %16684 = vsyncpa [#allocation7], 1 }
0x1930   :  { %16686 = vsyncpa [#allocation7 + $0x1], 1 }
0x1931   :  { %16687 = vsyncpa [#allocation10], 1 }
0x1932   :  { %16688 = vsyncpa [#allocation13], 1 }
0x1933   :  { %16689 = vsyncpa [#allocation16], 1 }
0x1934   :  { %16690 = vsyncpa [#allocation19], 1 }
0x1935   :  { %16691 = vsyncpa [#allocation22], 1 }
0x1936   :  { %16692 = vsyncpa [#allocation8], 1 }
0x1937   :  { %16694 = vsyncpa [#allocation8 + $0x1], 1 }

</bundles_post_ra>
